<compile_context>
chip_gen: v6e
topology: v6e:2x2x1
jax: 0.10.0
libtpu: 0.0.40
codegen_flags: <defaults>
</compile_context>

<pallas_src>
import functools

import jax
import jax.numpy as jnp
from jax import lax
from jax.experimental import pallas as pl
from jax.experimental.pallas import tpu as pltpu


# ---------------------------------------------------------------- utilities
def _layernorm(x, gamma, beta, eps=1e-5):
    # PyTorch nn.LayerNorm: biased variance, eps inside rsqrt; f32 statistics.
    mu = jnp.mean(x, axis=-1, keepdims=True)
    var = jnp.mean((x - mu) ** 2, axis=-1, keepdims=True)
    return (x - mu) * lax.rsqrt(var + eps) * gamma + beta


# ---------------------------------------------------------------- fused kernel
def transformer_kernel(x_ref, ln1g_ref, ln1b_ref, wqkv_ref, wo_ref, bo_ref,
                       ln2g_ref, ln2b_ref, w1_ref, b1_ref, w2_ref, b2_ref,
                       o_ref, *, heads, dim_head):
    """One grid step = (batch block, layer).

    o_ref is the VMEM-resident f32 carry: initialized from x at layer 0,
    updated in place every layer, written back to HBM only when the batch
    block changes (accumulator pattern on the arbitrary layer axis).
    """
    layer = pl.program_id(1)

    @pl.when(layer == 0)
    def _():
        # TODO(synk): with input_output_aliases the x input (and this copy)
        # could be dropped; kept so the caller's x stays valid afterwards.
        o_ref[...] = x_ref[...]

    xb = o_ref[...]                                   # (Bt, N, D) f32 carry
    Bt, N, D = xb.shape
    M = Bt * N
    inner = heads * dim_head
    x = xb.reshape(M, D)

    # -------------------------- attention sub-block (pre-norm) ------------
    xn = _layernorm(x, ln1g_ref[0], ln1b_ref[0])      # (M, D) f32
    # One lane-dense QKV matmul over all Bt*N rows (bf16 operands, f32 acc).
    qkv = jnp.dot(xn.astype(jnp.bfloat16), wqkv_ref[0],
                  preferred_element_type=jnp.float32)  # (M, 3*inner)
    qkv = qkv.reshape(Bt, N, 3 * inner)

    ctx_heads = []
    for h in range(heads):                            # static loop: score/ctx
        lo = h * dim_head                             # matmuls are per-head
        q_h = qkv[:, :, lo:lo + dim_head].astype(jnp.bfloat16)               # (Bt,N,dh)
        k_h = qkv[:, :, inner + lo:inner + lo + dim_head].astype(jnp.bfloat16)
        v_h = qkv[:, :, 2 * inner + lo:2 * inner + lo + dim_head].astype(jnp.bfloat16)
        # 1/sqrt(dim_head) already folded into the Q columns of W_qkv.
        s = lax.dot_general(q_h, k_h, (((2,), (2,)), ((0,), (0,))),
                            preferred_element_type=jnp.float32)              # (Bt,N,N)
        s = s - jnp.max(s, axis=-1, keepdims=True)
        e = jnp.exp(s)
        p = e * pl.reciprocal(jnp.sum(e, axis=-1, keepdims=True), approx=True)
        ctx_heads.append(
            lax.dot_general(p.astype(jnp.bfloat16), v_h,
                            (((2,), (1,)), ((0,), (0,))),
                            preferred_element_type=jnp.float32))             # (Bt,N,dh)

    # concat(heads) -> one lane-dense (M, inner) @ (inner, D) projection.
    ctx = jnp.concatenate(ctx_heads, axis=-1).reshape(M, inner)
    attn_out = jnp.dot(ctx.astype(jnp.bfloat16), wo_ref[0],
                       preferred_element_type=jnp.float32) + bo_ref[0]
    x = x + attn_out

    # -------------------------- feed-forward sub-block (pre-norm) ---------
    xn2 = _layernorm(x, ln2g_ref[0], ln2b_ref[0])
    h1 = jnp.dot(xn2.astype(jnp.bfloat16), w1_ref[0],
                 preferred_element_type=jnp.float32) + b1_ref[0]
    # exact GELU (PyTorch nn.GELU default): 0.5*x*(1+erf(x/sqrt(2)))
    h1 = 0.5 * h1 * (1.0 + lax.erf(h1 * (2.0 ** -0.5)))
    y = jnp.dot(h1.astype(jnp.bfloat16), w2_ref[0],
                preferred_element_type=jnp.float32) + b2_ref[0]

    o_ref[...] = (x + y).reshape(Bt, N, D).astype(o_ref.dtype)


# ---------------------------------------------------------------- wrapper
def transformer_forward(x, packed, heads, dim_head, *, block_b=2):
    B, N, D = x.shape
    depth, _, mlp_dim = packed["w1"].shape
    inner = heads * dim_head
    assert B % block_b == 0, "batch must be divisible by the batch block"

    kern = functools.partial(transformer_kernel, heads=heads, dim_head=dim_head)
    return pl.pallas_call(
        kern,
        out_shape=jax.ShapeDtypeStruct((B, N, D), x.dtype),
        grid=(B // block_b, depth),
        in_specs=[
            pl.BlockSpec((block_b, N, D), lambda b, l: (b, 0, 0)),        # x
            pl.BlockSpec((1, 1, D), lambda b, l: (l, 0, 0)),              # ln1 gamma
            pl.BlockSpec((1, 1, D), lambda b, l: (l, 0, 0)),              # ln1 beta
            pl.BlockSpec((1, D, 3 * inner), lambda b, l: (l, 0, 0)),      # W_qkv (bf16, scale folded)
            pl.BlockSpec((1, inner, D), lambda b, l: (l, 0, 0)),          # W_out (bf16)
            pl.BlockSpec((1, 1, D), lambda b, l: (l, 0, 0)),              # b_out
            pl.BlockSpec((1, 1, D), lambda b, l: (l, 0, 0)),              # ln2 gamma
            pl.BlockSpec((1, 1, D), lambda b, l: (l, 0, 0)),              # ln2 beta
            pl.BlockSpec((1, D, mlp_dim), lambda b, l: (l, 0, 0)),        # W1 (bf16)
            pl.BlockSpec((1, 1, mlp_dim), lambda b, l: (l, 0, 0)),        # b1
            pl.BlockSpec((1, mlp_dim, D), lambda b, l: (l, 0, 0)),        # W2 (bf16)
            pl.BlockSpec((1, 1, D), lambda b, l: (l, 0, 0)),              # b2
        ],
        out_specs=pl.BlockSpec((block_b, N, D), lambda b, l: (b, 0, 0)),
        compiler_params=pltpu.CompilerParams(
            dimension_semantics=("parallel", "arbitrary"),
            vmem_limit_bytes=48 * 1024 * 1024),
    )(x, packed["ln1_g"], packed["ln1_b"], packed["w_qkv"], packed["w_out"],
      packed["b_out"], packed["ln2_g"], packed["ln2_b"], packed["w1"],
      packed["b1"], packed["w2"], packed["b2"])


# ---------------------------------------------------------------- params
def init_params(key, dim, depth, heads, dim_head, mlp_dim):
    """Per-layer params mirroring the PyTorch module (logical layout, f32)."""
    inner = heads * dim_head
    params = []
    for _ in range(depth):
        key, *ks = jax.random.split(key, 7)
        attn = {
            "ln_g": jnp.ones((dim,), jnp.float32),
            "ln_b": jnp.zeros((dim,), jnp.float32),
            "w_qkv": 0.05 * jax.random.normal(ks[0], (dim, 3 * inner), jnp.float32),
            "w_out": 0.05 * jax.random.normal(ks[1], (inner, dim), jnp.float32),
            "b_out": 0.01 * jax.random.normal(ks[2], (dim,), jnp.float32),
        }
        ff = {
            "ln_g": jnp.ones((dim,), jnp.float32),
            "ln_b": jnp.zeros((dim,), jnp.float32),
            "w1": 0.05 * jax.random.normal(ks[3], (dim, mlp_dim), jnp.float32),
            "b1": 0.01 * jax.random.normal(ks[4], (mlp_dim,), jnp.float32),
            "w2": 0.05 * jax.random.normal(ks[5], (mlp_dim, dim), jnp.float32),
            "b2": jnp.zeros((dim,), jnp.float32),
        }
        params.append({"attn": attn, "ff": ff})
    return params


def pack_params(params, heads, dim_head):
    """Stack layers, fold the 1/sqrt(dim_head) score scale into the Q columns
    of W_qkv, and cast matmul weights to bf16 (biases / LN params stay f32)."""
    depth = len(params)
    dim = params[0]["attn"]["w_qkv"].shape[0]
    mlp_dim = params[0]["ff"]["w1"].shape[1]
    inner = heads * dim_head
    scale = dim_head ** (-0.5)

    def stack_vec(fn, last):
        return jnp.stack([fn(p) for p in params]).reshape(depth, 1, last)

    w_qkv = jnp.stack([p["attn"]["w_qkv"] for p in params])          # (depth, D, 3*inner)
    w_qkv = jnp.concatenate([w_qkv[..., :inner] * scale, w_qkv[..., inner:]], axis=-1)
    w_out = jnp.stack([p["attn"]["w_out"] for p in params])          # (depth, inner, D)

    bf16 = jnp.bfloat16
    return {
        "ln1_g": stack_vec(lambda p: p["attn"]["ln_g"], dim),
        "ln1_b": stack_vec(lambda p: p["attn"]["ln_b"], dim),
        "w_qkv": w_qkv.astype(bf16),
        "w_out": w_out.astype(bf16),
        "b_out": stack_vec(lambda p: p["attn"]["b_out"], dim),
        "ln2_g": stack_vec(lambda p: p["ff"]["ln_g"], dim),
        "ln2_b": stack_vec(lambda p: p["ff"]["ln_b"], dim),
        "w1": jnp.stack([p["ff"]["w1"] for p in params]).astype(bf16),
        "b1": stack_vec(lambda p: p["ff"]["b1"], mlp_dim),
        "w2": jnp.stack([p["ff"]["w2"] for p in params]).astype(bf16),
        "b2": stack_vec(lambda p: p["ff"]["b2"], dim),
    }


# ---------------------------------------------------------------- pure-JAX reference (f32)
def reference_forward(x, params, heads, dim_head):
    def ln(v, g, b):
        mu = jnp.mean(v, axis=-1, keepdims=True)
        var = jnp.mean((v - mu) ** 2, axis=-1, keepdims=True)
        return (v - mu) / jnp.sqrt(var + 1e-5) * g + b

    B, N, D = x.shape
    inner = heads * dim_head
    for layer in params:
        a = layer["attn"]
        xn = ln(x, a["ln_g"], a["ln_b"])
        qkv = xn @ a["w_qkv"]
        q, k, v = jnp.split(qkv, 3, axis=-1)
        q = q.reshape(B, N, heads, dim_head).transpose(0, 2, 1, 3)
        k = k.reshape(B, N, heads, dim_head).transpose(0, 2, 1, 3)
        v = v.reshape(B, N, heads, dim_head).transpose(0, 2, 1, 3)
        dots = jnp.einsum("bhnd,bhmd->bhnm", q, k) * dim_head ** (-0.5)
        attn = jax.nn.softmax(dots, axis=-1)
        out = jnp.einsum("bhnm,bhmd->bhnd", attn, v)
        out = out.transpose(0, 2, 1, 3).reshape(B, N, inner)
        x = out @ a["w_out"] + a["b_out"] + x

        f = layer["ff"]
        xn = ln(x, f["ln_g"], f["ln_b"])
        h = xn @ f["w1"] + f["b1"]
        h = 0.5 * h * (1.0 + lax.erf(h / jnp.sqrt(2.0)))
        x = h @ f["w2"] + f["b2"] + x
    return x


# ---------------------------------------------------------------- main
if __name__ == "__main__":
    # Lane-dense small config: D, inner, mlp_dim, N are multiples of 128.
    B, N = 4, 128
    dim, depth, heads, dim_head, mlp_dim = 128, 2, 4, 32, 256
    block_b = 2            # parallel grid axis = B // block_b = 2 (v7x: 2 TCs)

    key = jax.random.PRNGKey(0)
    kx, kp = jax.random.split(key)
    x = jax.random.normal(kx, (B, N, dim), jnp.float32)
    params = init_params(kp, dim, depth, heads, dim_head, mlp_dim)
    packed = pack_params(params, heads, dim_head)

    out = transformer_forward(x, packed, heads, dim_head, block_b=block_b)
    out = jax.block_until_ready(out)

    ref = reference_forward(x, params, heads, dim_head)
    assert out.shape == (B, N, dim)
    max_err = float(jnp.max(jnp.abs(out - ref)))
    # bf16 matmul operands (f32 accumulation / stats / residual) => loose tol.
    assert jnp.allclose(out, ref, atol=5e-2, rtol=5e-2), \
        f"mismatch vs reference (max abs err {max_err:.3e})"

    print("KERNEL_OK")
</pallas_src>

<mosaic_0001>
module attributes {stable_mosaic.version = 11 : i64} {
  func.func @transformer_kernel(%arg0: i32, %arg1: i32, %arg2: memref<2x128x128xf32, #tpu.memory_space<vmem>>, %arg3: memref<1x1x128xf32, #tpu.memory_space<vmem>>, %arg4: memref<1x1x128xf32, #tpu.memory_space<vmem>>, %arg5: memref<1x128x384xbf16, #tpu.memory_space<vmem>>, %arg6: memref<1x128x128xbf16, #tpu.memory_space<vmem>>, %arg7: memref<1x1x128xf32, #tpu.memory_space<vmem>>, %arg8: memref<1x1x128xf32, #tpu.memory_space<vmem>>, %arg9: memref<1x1x128xf32, #tpu.memory_space<vmem>>, %arg10: memref<1x128x256xbf16, #tpu.memory_space<vmem>>, %arg11: memref<1x1x256xf32, #tpu.memory_space<vmem>>, %arg12: memref<1x256x128xbf16, #tpu.memory_space<vmem>>, %arg13: memref<1x1x128xf32, #tpu.memory_space<vmem>>, %arg14: memref<2x128x128xf32, #tpu.memory_space<vmem>>) attributes {dimension_semantics = [#tpu.dimension_semantics<parallel>, #tpu.dimension_semantics<arbitrary>], iteration_bounds = array<i64: 2, 2>, scalar_prefetch = 0 : i64, scratch_operands = 0 : i64, tpu.core_type = #tpu.core_type<tc>, window_params = [{transform_indices = @transform_0, window_bounds = array<i64: 2, 128, 128>}, {transform_indices = @transform_1, window_bounds = array<i64: 1, 1, 128>}, {transform_indices = @transform_2, window_bounds = array<i64: 1, 1, 128>}, {transform_indices = @transform_3, window_bounds = array<i64: 1, 128, 384>}, {transform_indices = @transform_4, window_bounds = array<i64: 1, 128, 128>}, {transform_indices = @transform_5, window_bounds = array<i64: 1, 1, 128>}, {transform_indices = @transform_6, window_bounds = array<i64: 1, 1, 128>}, {transform_indices = @transform_7, window_bounds = array<i64: 1, 1, 128>}, {transform_indices = @transform_8, window_bounds = array<i64: 1, 128, 256>}, {transform_indices = @transform_9, window_bounds = array<i64: 1, 1, 256>}, {transform_indices = @transform_10, window_bounds = array<i64: 1, 256, 128>}, {transform_indices = @transform_11, window_bounds = array<i64: 1, 1, 128>}, {transform_indices = @transform_12, window_bounds = array<i64: 2, 128, 128>}]} {
    %c0_i32 = arith.constant 0 : i32
    %0 = arith.cmpi eq, %arg1, %c0_i32 : i32
    %1 = arith.extui %0 : i1 to i32
    %c0_i32_0 = arith.constant 0 : i32
    %2 = arith.cmpi ne, %1, %c0_i32_0 : i32
    scf.if %2 {
      %c0_71 = arith.constant 0 : index
      %c0_72 = arith.constant 0 : index
      %c0_73 = arith.constant 0 : index
      %176 = vector.load %arg2[%c0_71, %c0_72, %c0_73] : memref<2x128x128xf32, #tpu.memory_space<vmem>>, vector<2x128x128xf32>
      %c0_74 = arith.constant 0 : index
      %c0_75 = arith.constant 0 : index
      %c0_76 = arith.constant 0 : index
      %177 = vector.load %arg14[%c0_74, %c0_75, %c0_76] : memref<2x128x128xf32, #tpu.memory_space<vmem>>, vector<2x128x128xf32>
      tpu.vector_store %arg14[%c0_74, %c0_75, %c0_76], %176 {strides = array<i32>} : memref<2x128x128xf32, #tpu.memory_space<vmem>>, vector<2x128x128xf32>,
    } else {
    }
    %c0 = arith.constant 0 : index
    %c0_1 = arith.constant 0 : index
    %c0_2 = arith.constant 0 : index
    %3 = vector.load %arg14[%c0, %c0_1, %c0_2] : memref<2x128x128xf32, #tpu.memory_space<vmem>>, vector<2x128x128xf32>
    %4 = vector.shape_cast %3 : vector<2x128x128xf32> to vector<256x128xf32>
    %c0_3 = arith.constant 0 : index
    %c0_4 = arith.constant 0 : index
    %c0_5 = arith.constant 0 : index
    %5 = vector.load %arg3[%c0_3, %c0_4, %c0_5] : memref<1x1x128xf32, #tpu.memory_space<vmem>>, vector<1x1x128xf32>
    %6 = vector.shape_cast %5 : vector<1x1x128xf32> to vector<1x128xf32>
    %c0_6 = arith.constant 0 : index
    %c0_7 = arith.constant 0 : index
    %c0_8 = arith.constant 0 : index
    %7 = vector.load %arg4[%c0_6, %c0_7, %c0_8] : memref<1x1x128xf32, #tpu.memory_space<vmem>>, vector<1x1x128xf32>
    %8 = vector.shape_cast %7 : vector<1x1x128xf32> to vector<1x128xf32>
    %cst = arith.constant dense<0.000000e+00> : vector<256xf32>
    %9 = vector.multi_reduction <add>, %4, %cst [1] : vector<256x128xf32> to vector<256xf32>
    %10 = vector.shape_cast %9 : vector<256xf32> to vector<256x1xf32>
    %cst_9 = arith.constant 1.280000e+02 : f32
    %11 = vector.broadcast %cst_9 : f32 to vector<256x1xf32>
    %12 = arith.divf %10, %11 : vector<256x1xf32>
    %13 = vector.broadcast %12 : vector<256x1xf32> to vector<256x128xf32>
    %14 = arith.subf %4, %13 : vector<256x128xf32>
    %15 = arith.mulf %14, %14 : vector<256x128xf32>
    %cst_10 = arith.constant dense<0.000000e+00> : vector<256xf32>
    %16 = vector.multi_reduction <add>, %15, %cst_10 [1] : vector<256x128xf32> to vector<256xf32>
    %17 = vector.shape_cast %16 : vector<256xf32> to vector<256x1xf32>
    %cst_11 = arith.constant 1.280000e+02 : f32
    %18 = vector.broadcast %cst_11 : f32 to vector<256x1xf32>
    %19 = arith.divf %17, %18 : vector<256x1xf32>
    %20 = vector.broadcast %12 : vector<256x1xf32> to vector<256x128xf32>
    %21 = arith.subf %4, %20 : vector<256x128xf32>
    %cst_12 = arith.constant 9.99999974E-6 : f32
    %22 = vector.broadcast %cst_12 : f32 to vector<256x1xf32>
    %23 = arith.addf %19, %22 : vector<256x1xf32>
    %24 = math.rsqrt %23 : vector<256x1xf32>
    %25 = vector.broadcast %24 : vector<256x1xf32> to vector<256x128xf32>
    %26 = arith.mulf %21, %25 : vector<256x128xf32>
    %27 = vector.broadcast %6 : vector<1x128xf32> to vector<256x128xf32>
    %28 = arith.mulf %26, %27 : vector<256x128xf32>
    %29 = vector.broadcast %8 : vector<1x128xf32> to vector<256x128xf32>
    %30 = arith.addf %28, %29 : vector<256x128xf32>
    %31 = arith.truncf %30 : vector<256x128xf32> to vector<256x128xbf16>
    %c0_13 = arith.constant 0 : index
    %c0_14 = arith.constant 0 : index
    %c0_15 = arith.constant 0 : index
    %32 = vector.load %arg5[%c0_13, %c0_14, %c0_15] : memref<1x128x384xbf16, #tpu.memory_space<vmem>>, vector<1x128x384xbf16>
    %33 = vector.shape_cast %32 : vector<1x128x384xbf16> to vector<128x384xbf16>
    %cst_16 = arith.constant dense<0.000000e+00> : vector<256x384xf32>
    %34 = tpu.matmul %31, %33, %cst_16 {dimension_numbers = #tpu.dot_dimension_numbers<[1], [0], [0], [1], [0, 0, 1, 1], [], []>} : vector<256x128xbf16>, vector<128x384xbf16>, vector<256x384xf32> -> vector<256x384xf32>
    %35 = vector.shape_cast %34 : vector<256x384xf32> to vector<2x128x384xf32>
    %36 = vector.extract_strided_slice %35 {offsets = [0, 0, 0], sizes = [2, 128, 32], strides = [1, 1, 1]} : vector<2x128x384xf32> to vector<2x128x32xf32>
    %37 = arith.truncf %36 : vector<2x128x32xf32> to vector<2x128x32xbf16>
    %38 = vector.extract_strided_slice %35 {offsets = [0, 0, 128], sizes = [2, 128, 32], strides = [1, 1, 1]} : vector<2x128x384xf32> to vector<2x128x32xf32>
    %39 = arith.truncf %38 : vector<2x128x32xf32> to vector<2x128x32xbf16>
    %40 = vector.extract_strided_slice %35 {offsets = [0, 0, 256], sizes = [2, 128, 32], strides = [1, 1, 1]} : vector<2x128x384xf32> to vector<2x128x32xf32>
    %41 = arith.truncf %40 : vector<2x128x32xf32> to vector<2x128x32xbf16>
    %cst_17 = arith.constant dense<0.000000e+00> : vector<2x128x128xf32>
    %42 = tpu.matmul %37, %39, %cst_17 {dimension_numbers = #tpu.dot_dimension_numbers<[2], [2], [1], [1], [0, 0, 0, 1, 1, 1], [0], [0]>} : vector<2x128x32xbf16>, vector<2x128x32xbf16>, vector<2x128x128xf32> -> vector<2x128x128xf32>
    %cst_18 = arith.constant dense<0xFF800000> : vector<2x128xf32>
    %43 = vector.multi_reduction <maximumf>, %42, %cst_18 [2] : vector<2x128x128xf32> to vector<2x128xf32>
    %44 = vector.shape_cast %43 : vector<2x128xf32> to vector<2x128x1xf32>
    %45 = vector.broadcast %44 : vector<2x128x1xf32> to vector<2x128x128xf32>
    %46 = arith.subf %42, %45 : vector<2x128x128xf32>
    %47 = math.exp %46 : vector<2x128x128xf32>
    %cst_19 = arith.constant dense<0.000000e+00> : vector<2x128xf32>
    %48 = vector.multi_reduction <add>, %47, %cst_19 [2] : vector<2x128x128xf32> to vector<2x128xf32>
    %49 = vector.shape_cast %48 : vector<2x128xf32> to vector<2x128x1xf32>
    %50 = tpu.reciprocal %49 {approx = true} : vector<2x128x1xf32> -> vector<2x128x1xf32>
    %51 = vector.broadcast %50 : vector<2x128x1xf32> to vector<2x128x128xf32>
    %52 = arith.mulf %47, %51 : vector<2x128x128xf32>
    %53 = arith.truncf %52 : vector<2x128x128xf32> to vector<2x128x128xbf16>
    %cst_20 = arith.constant dense<0.000000e+00> : vector<2x128x32xf32>
    %54 = tpu.matmul %53, %41, %cst_20 {dimension_numbers = #tpu.dot_dimension_numbers<[2], [1], [1], [2], [0, 0, 0, 1, 1, 2], [0], [0]>} : vector<2x128x128xbf16>, vector<2x128x32xbf16>, vector<2x128x32xf32> -> vector<2x128x32xf32>
    %55 = vector.extract_strided_slice %35 {offsets = [0, 0, 32], sizes = [2, 128, 32], strides = [1, 1, 1]} : vector<2x128x384xf32> to vector<2x128x32xf32>
    %56 = arith.truncf %55 : vector<2x128x32xf32> to vector<2x128x32xbf16>
    %57 = vector.extract_strided_slice %35 {offsets = [0, 0, 160], sizes = [2, 128, 32], strides = [1, 1, 1]} : vector<2x128x384xf32> to vector<2x128x32xf32>
    %58 = arith.truncf %57 : vector<2x128x32xf32> to vector<2x128x32xbf16>
    %59 = vector.extract_strided_slice %35 {offsets = [0, 0, 288], sizes = [2, 128, 32], strides = [1, 1, 1]} : vector<2x128x384xf32> to vector<2x128x32xf32>
    %60 = arith.truncf %59 : vector<2x128x32xf32> to vector<2x128x32xbf16>
    %cst_21 = arith.constant dense<0.000000e+00> : vector<2x128x128xf32>
    %61 = tpu.matmul %56, %58, %cst_21 {dimension_numbers = #tpu.dot_dimension_numbers<[2], [2], [1], [1], [0, 0, 0, 1, 1, 1], [0], [0]>} : vector<2x128x32xbf16>, vector<2x128x32xbf16>, vector<2x128x128xf32> -> vector<2x128x128xf32>
    %cst_22 = arith.constant dense<0xFF800000> : vector<2x128xf32>
    %62 = vector.multi_reduction <maximumf>, %61, %cst_22 [2] : vector<2x128x128xf32> to vector<2x128xf32>
    %63 = vector.shape_cast %62 : vector<2x128xf32> to vector<2x128x1xf32>
    %64 = vector.broadcast %63 : vector<2x128x1xf32> to vector<2x128x128xf32>
    %65 = arith.subf %61, %64 : vector<2x128x128xf32>
    %66 = math.exp %65 : vector<2x128x128xf32>
    %cst_23 = arith.constant dense<0.000000e+00> : vector<2x128xf32>
    %67 = vector.multi_reduction <add>, %66, %cst_23 [2] : vector<2x128x128xf32> to vector<2x128xf32>
    %68 = vector.shape_cast %67 : vector<2x128xf32> to vector<2x128x1xf32>
    %69 = tpu.reciprocal %68 {approx = true} : vector<2x128x1xf32> -> vector<2x128x1xf32>
    %70 = vector.broadcast %69 : vector<2x128x1xf32> to vector<2x128x128xf32>
    %71 = arith.mulf %66, %70 : vector<2x128x128xf32>
    %72 = arith.truncf %71 : vector<2x128x128xf32> to vector<2x128x128xbf16>
    %cst_24 = arith.constant dense<0.000000e+00> : vector<2x128x32xf32>
    %73 = tpu.matmul %72, %60, %cst_24 {dimension_numbers = #tpu.dot_dimension_numbers<[2], [1], [1], [2], [0, 0, 0, 1, 1, 2], [0], [0]>} : vector<2x128x128xbf16>, vector<2x128x32xbf16>, vector<2x128x32xf32> -> vector<2x128x32xf32>
    %74 = vector.extract_strided_slice %35 {offsets = [0, 0, 64], sizes = [2, 128, 32], strides = [1, 1, 1]} : vector<2x128x384xf32> to vector<2x128x32xf32>
    %75 = arith.truncf %74 : vector<2x128x32xf32> to vector<2x128x32xbf16>
    %76 = vector.extract_strided_slice %35 {offsets = [0, 0, 192], sizes = [2, 128, 32], strides = [1, 1, 1]} : vector<2x128x384xf32> to vector<2x128x32xf32>
    %77 = arith.truncf %76 : vector<2x128x32xf32> to vector<2x128x32xbf16>
    %78 = vector.extract_strided_slice %35 {offsets = [0, 0, 320], sizes = [2, 128, 32], strides = [1, 1, 1]} : vector<2x128x384xf32> to vector<2x128x32xf32>
    %79 = arith.truncf %78 : vector<2x128x32xf32> to vector<2x128x32xbf16>
    %cst_25 = arith.constant dense<0.000000e+00> : vector<2x128x128xf32>
    %80 = tpu.matmul %75, %77, %cst_25 {dimension_numbers = #tpu.dot_dimension_numbers<[2], [2], [1], [1], [0, 0, 0, 1, 1, 1], [0], [0]>} : vector<2x128x32xbf16>, vector<2x128x32xbf16>, vector<2x128x128xf32> -> vector<2x128x128xf32>
    %cst_26 = arith.constant dense<0xFF800000> : vector<2x128xf32>
    %81 = vector.multi_reduction <maximumf>, %80, %cst_26 [2] : vector<2x128x128xf32> to vector<2x128xf32>
    %82 = vector.shape_cast %81 : vector<2x128xf32> to vector<2x128x1xf32>
    %83 = vector.broadcast %82 : vector<2x128x1xf32> to vector<2x128x128xf32>
    %84 = arith.subf %80, %83 : vector<2x128x128xf32>
    %85 = math.exp %84 : vector<2x128x128xf32>
    %cst_27 = arith.constant dense<0.000000e+00> : vector<2x128xf32>
    %86 = vector.multi_reduction <add>, %85, %cst_27 [2] : vector<2x128x128xf32> to vector<2x128xf32>
    %87 = vector.shape_cast %86 : vector<2x128xf32> to vector<2x128x1xf32>
    %88 = tpu.reciprocal %87 {approx = true} : vector<2x128x1xf32> -> vector<2x128x1xf32>
    %89 = vector.broadcast %88 : vector<2x128x1xf32> to vector<2x128x128xf32>
    %90 = arith.mulf %85, %89 : vector<2x128x128xf32>
    %91 = arith.truncf %90 : vector<2x128x128xf32> to vector<2x128x128xbf16>
    %cst_28 = arith.constant dense<0.000000e+00> : vector<2x128x32xf32>
    %92 = tpu.matmul %91, %79, %cst_28 {dimension_numbers = #tpu.dot_dimension_numbers<[2], [1], [1], [2], [0, 0, 0, 1, 1, 2], [0], [0]>} : vector<2x128x128xbf16>, vector<2x128x32xbf16>, vector<2x128x32xf32> -> vector<2x128x32xf32>
    %93 = vector.extract_strided_slice %35 {offsets = [0, 0, 96], sizes = [2, 128, 32], strides = [1, 1, 1]} : vector<2x128x384xf32> to vector<2x128x32xf32>
    %94 = arith.truncf %93 : vector<2x128x32xf32> to vector<2x128x32xbf16>
    %95 = vector.extract_strided_slice %35 {offsets = [0, 0, 224], sizes = [2, 128, 32], strides = [1, 1, 1]} : vector<2x128x384xf32> to vector<2x128x32xf32>
    %96 = arith.truncf %95 : vector<2x128x32xf32> to vector<2x128x32xbf16>
    %97 = vector.extract_strided_slice %35 {offsets = [0, 0, 352], sizes = [2, 128, 32], strides = [1, 1, 1]} : vector<2x128x384xf32> to vector<2x128x32xf32>
    %98 = arith.truncf %97 : vector<2x128x32xf32> to vector<2x128x32xbf16>
    %cst_29 = arith.constant dense<0.000000e+00> : vector<2x128x128xf32>
    %99 = tpu.matmul %94, %96, %cst_29 {dimension_numbers = #tpu.dot_dimension_numbers<[2], [2], [1], [1], [0, 0, 0, 1, 1, 1], [0], [0]>} : vector<2x128x32xbf16>, vector<2x128x32xbf16>, vector<2x128x128xf32> -> vector<2x128x128xf32>
    %cst_30 = arith.constant dense<0xFF800000> : vector<2x128xf32>
    %100 = vector.multi_reduction <maximumf>, %99, %cst_30 [2] : vector<2x128x128xf32> to vector<2x128xf32>
    %101 = vector.shape_cast %100 : vector<2x128xf32> to vector<2x128x1xf32>
    %102 = vector.broadcast %101 : vector<2x128x1xf32> to vector<2x128x128xf32>
    %103 = arith.subf %99, %102 : vector<2x128x128xf32>
    %104 = math.exp %103 : vector<2x128x128xf32>
    %cst_31 = arith.constant dense<0.000000e+00> : vector<2x128xf32>
    %105 = vector.multi_reduction <add>, %104, %cst_31 [2] : vector<2x128x128xf32> to vector<2x128xf32>
    %106 = vector.shape_cast %105 : vector<2x128xf32> to vector<2x128x1xf32>
    %107 = tpu.reciprocal %106 {approx = true} : vector<2x128x1xf32> -> vector<2x128x1xf32>
    %108 = vector.broadcast %107 : vector<2x128x1xf32> to vector<2x128x128xf32>
    %109 = arith.mulf %104, %108 : vector<2x128x128xf32>
    %110 = arith.truncf %109 : vector<2x128x128xf32> to vector<2x128x128xbf16>
    %cst_32 = arith.constant dense<0.000000e+00> : vector<2x128x32xf32>
    %111 = tpu.matmul %110, %98, %cst_32 {dimension_numbers = #tpu.dot_dimension_numbers<[2], [1], [1], [2], [0, 0, 0, 1, 1, 2], [0], [0]>} : vector<2x128x128xbf16>, vector<2x128x32xbf16>, vector<2x128x32xf32> -> vector<2x128x32xf32>
    %112 = tpu.concatenate %54, %73, %92, %111 in 2 : vector<2x128x32xf32>, vector<2x128x32xf32>, vector<2x128x32xf32>, vector<2x128x32xf32> -> vector<2x128x128xf32>
    %113 = vector.shape_cast %112 : vector<2x128x128xf32> to vector<256x128xf32>
    %114 = arith.truncf %113 : vector<256x128xf32> to vector<256x128xbf16>
    %c0_33 = arith.constant 0 : index
    %c0_34 = arith.constant 0 : index
    %c0_35 = arith.constant 0 : index
    %115 = vector.load %arg6[%c0_33, %c0_34, %c0_35] : memref<1x128x128xbf16, #tpu.memory_space<vmem>>, vector<1x128x128xbf16>
    %116 = vector.shape_cast %115 : vector<1x128x128xbf16> to vector<128x128xbf16>
    %cst_36 = arith.constant dense<0.000000e+00> : vector<256x128xf32>
    %117 = tpu.matmul %114, %116, %cst_36 {dimension_numbers = #tpu.dot_dimension_numbers<[1], [0], [0], [1], [0, 0, 1, 1], [], []>} : vector<256x128xbf16>, vector<128x128xbf16>, vector<256x128xf32> -> vector<256x128xf32>
    %c0_37 = arith.constant 0 : index
    %c0_38 = arith.constant 0 : index
    %c0_39 = arith.constant 0 : index
    %118 = vector.load %arg7[%c0_37, %c0_38, %c0_39] : memref<1x1x128xf32, #tpu.memory_space<vmem>>, vector<1x1x128xf32>
    %119 = vector.shape_cast %118 : vector<1x1x128xf32> to vector<1x128xf32>
    %120 = vector.broadcast %119 : vector<1x128xf32> to vector<256x128xf32>
    %121 = arith.addf %117, %120 : vector<256x128xf32>
    %122 = arith.addf %4, %121 : vector<256x128xf32>
    %c0_40 = arith.constant 0 : index
    %c0_41 = arith.constant 0 : index
    %c0_42 = arith.constant 0 : index
    %123 = vector.load %arg8[%c0_40, %c0_41, %c0_42] : memref<1x1x128xf32, #tpu.memory_space<vmem>>, vector<1x1x128xf32>
    %124 = vector.shape_cast %123 : vector<1x1x128xf32> to vector<1x128xf32>
    %c0_43 = arith.constant 0 : index
    %c0_44 = arith.constant 0 : index
    %c0_45 = arith.constant 0 : index
    %125 = vector.load %arg9[%c0_43, %c0_44, %c0_45] : memref<1x1x128xf32, #tpu.memory_space<vmem>>, vector<1x1x128xf32>
    %126 = vector.shape_cast %125 : vector<1x1x128xf32> to vector<1x128xf32>
    %cst_46 = arith.constant dense<0.000000e+00> : vector<256xf32>
    %127 = vector.multi_reduction <add>, %122, %cst_46 [1] : vector<256x128xf32> to vector<256xf32>
    %128 = vector.shape_cast %127 : vector<256xf32> to vector<256x1xf32>
    %cst_47 = arith.constant 1.280000e+02 : f32
    %129 = vector.broadcast %cst_47 : f32 to vector<256x1xf32>
    %130 = arith.divf %128, %129 : vector<256x1xf32>
    %131 = vector.broadcast %130 : vector<256x1xf32> to vector<256x128xf32>
    %132 = arith.subf %122, %131 : vector<256x128xf32>
    %133 = arith.mulf %132, %132 : vector<256x128xf32>
    %cst_48 = arith.constant dense<0.000000e+00> : vector<256xf32>
    %134 = vector.multi_reduction <add>, %133, %cst_48 [1] : vector<256x128xf32> to vector<256xf32>
    %135 = vector.shape_cast %134 : vector<256xf32> to vector<256x1xf32>
    %cst_49 = arith.constant 1.280000e+02 : f32
    %136 = vector.broadcast %cst_49 : f32 to vector<256x1xf32>
    %137 = arith.divf %135, %136 : vector<256x1xf32>
    %138 = vector.broadcast %130 : vector<256x1xf32> to vector<256x128xf32>
    %139 = arith.subf %122, %138 : vector<256x128xf32>
    %cst_50 = arith.constant 9.99999974E-6 : f32
    %140 = vector.broadcast %cst_50 : f32 to vector<256x1xf32>
    %141 = arith.addf %137, %140 : vector<256x1xf32>
    %142 = math.rsqrt %141 : vector<256x1xf32>
    %143 = vector.broadcast %142 : vector<256x1xf32> to vector<256x128xf32>
    %144 = arith.mulf %139, %143 : vector<256x128xf32>
    %145 = vector.broadcast %124 : vector<1x128xf32> to vector<256x128xf32>
    %146 = arith.mulf %144, %145 : vector<256x128xf32>
    %147 = vector.broadcast %126 : vector<1x128xf32> to vector<256x128xf32>
    %148 = arith.addf %146, %147 : vector<256x128xf32>
    %149 = arith.truncf %148 : vector<256x128xf32> to vector<256x128xbf16>
    %c0_51 = arith.constant 0 : index
    %c0_52 = arith.constant 0 : index
    %c0_53 = arith.constant 0 : index
    %150 = vector.load %arg10[%c0_51, %c0_52, %c0_53] : memref<1x128x256xbf16, #tpu.memory_space<vmem>>, vector<1x128x256xbf16>
    %151 = vector.shape_cast %150 : vector<1x128x256xbf16> to vector<128x256xbf16>
    %cst_54 = arith.constant dense<0.000000e+00> : vector<256x256xf32>
    %152 = tpu.matmul %149, %151, %cst_54 {dimension_numbers = #tpu.dot_dimension_numbers<[1], [0], [0], [1], [0, 0, 1, 1], [], []>} : vector<256x128xbf16>, vector<128x256xbf16>, vector<256x256xf32> -> vector<256x256xf32>
    %c0_55 = arith.constant 0 : index
    %c0_56 = arith.constant 0 : index
    %c0_57 = arith.constant 0 : index
    %153 = vector.load %arg11[%c0_55, %c0_56, %c0_57] : memref<1x1x256xf32, #tpu.memory_space<vmem>>, vector<1x1x256xf32>
    %154 = vector.shape_cast %153 : vector<1x1x256xf32> to vector<1x256xf32>
    %155 = vector.broadcast %154 : vector<1x256xf32> to vector<256x256xf32>
    %156 = arith.addf %152, %155 : vector<256x256xf32>
    %cst_58 = arith.constant 5.000000e-01 : f32
    %157 = vector.broadcast %cst_58 : f32 to vector<256x256xf32>
    %158 = arith.mulf %157, %156 : vector<256x256xf32>
    %cst_59 = arith.constant 0.707106769 : f32
    %159 = vector.broadcast %cst_59 : f32 to vector<256x256xf32>
    %160 = arith.mulf %156, %159 : vector<256x256xf32>
    %161 = math.erf %160 : vector<256x256xf32>
    %cst_60 = arith.constant 1.000000e+00 : f32
    %162 = vector.broadcast %cst_60 : f32 to vector<256x256xf32>
    %163 = arith.addf %162, %161 : vector<256x256xf32>
    %164 = arith.mulf %158, %163 : vector<256x256xf32>
    %165 = arith.truncf %164 : vector<256x256xf32> to vector<256x256xbf16>
    %c0_61 = arith.constant 0 : index
    %c0_62 = arith.constant 0 : index
    %c0_63 = arith.constant 0 : index
    %166 = vector.load %arg12[%c0_61, %c0_62, %c0_63] : memref<1x256x128xbf16, #tpu.memory_space<vmem>>, vector<1x256x128xbf16>
    %167 = vector.shape_cast %166 : vector<1x256x128xbf16> to vector<256x128xbf16>
    %cst_64 = arith.constant dense<0.000000e+00> : vector<256x128xf32>
    %168 = tpu.matmul %165, %167, %cst_64 {dimension_numbers = #tpu.dot_dimension_numbers<[1], [0], [0], [1], [0, 0, 1, 1], [], []>} : vector<256x256xbf16>, vector<256x128xbf16>, vector<256x128xf32> -> vector<256x128xf32>
    %c0_65 = arith.constant 0 : index
    %c0_66 = arith.constant 0 : index
    %c0_67 = arith.constant 0 : index
    %169 = vector.load %arg13[%c0_65, %c0_66, %c0_67] : memref<1x1x128xf32, #tpu.memory_space<vmem>>, vector<1x1x128xf32>
    %170 = vector.shape_cast %169 : vector<1x1x128xf32> to vector<1x128xf32>
    %171 = vector.broadcast %170 : vector<1x128xf32> to vector<256x128xf32>
    %172 = arith.addf %168, %171 : vector<256x128xf32>
    %173 = arith.addf %122, %172 : vector<256x128xf32>
    %174 = vector.shape_cast %173 : vector<256x128xf32> to vector<2x128x128xf32>
    %c0_68 = arith.constant 0 : index
    %c0_69 = arith.constant 0 : index
    %c0_70 = arith.constant 0 : index
    %175 = vector.load %arg14[%c0_68, %c0_69, %c0_70] : memref<2x128x128xf32, #tpu.memory_space<vmem>>, vector<2x128x128xf32>
    tpu.vector_store %arg14[%c0_68, %c0_69, %c0_70], %174 {strides = array<i32>} : memref<2x128x128xf32, #tpu.memory_space<vmem>>, vector<2x128x128xf32>,
    return
  }
  func.func @transform_0(%arg0: i32, %arg1: i32) -> (i32, i32, i32) {
    %c0_i32 = arith.constant 0 : i32
    %c0_i32_0 = arith.constant 0 : i32
    %c0_i32_1 = arith.constant 0 : i32
    return %arg0, %c0_i32, %c0_i32_0 : i32, i32, i32
  }
  func.func @transform_1(%arg0: i32, %arg1: i32) -> (i32, i32, i32) {
    %c0_i32 = arith.constant 0 : i32
    %c0_i32_0 = arith.constant 0 : i32
    %c0_i32_1 = arith.constant 0 : i32
    return %arg1, %c0_i32, %c0_i32_0 : i32, i32, i32
  }
  func.func @transform_2(%arg0: i32, %arg1: i32) -> (i32, i32, i32) {
    %c0_i32 = arith.constant 0 : i32
    %c0_i32_0 = arith.constant 0 : i32
    %c0_i32_1 = arith.constant 0 : i32
    return %arg1, %c0_i32, %c0_i32_0 : i32, i32, i32
  }
  func.func @transform_3(%arg0: i32, %arg1: i32) -> (i32, i32, i32) {
    %c0_i32 = arith.constant 0 : i32
    %c0_i32_0 = arith.constant 0 : i32
    %c0_i32_1 = arith.constant 0 : i32
    return %arg1, %c0_i32, %c0_i32_0 : i32, i32, i32
  }
  func.func @transform_4(%arg0: i32, %arg1: i32) -> (i32, i32, i32) {
    %c0_i32 = arith.constant 0 : i32
    %c0_i32_0 = arith.constant 0 : i32
    %c0_i32_1 = arith.constant 0 : i32
    return %arg1, %c0_i32, %c0_i32_0 : i32, i32, i32
  }
  func.func @transform_5(%arg0: i32, %arg1: i32) -> (i32, i32, i32) {
    %c0_i32 = arith.constant 0 : i32
    %c0_i32_0 = arith.constant 0 : i32
    %c0_i32_1 = arith.constant 0 : i32
    return %arg1, %c0_i32, %c0_i32_0 : i32, i32, i32
  }
  func.func @transform_6(%arg0: i32, %arg1: i32) -> (i32, i32, i32) {
    %c0_i32 = arith.constant 0 : i32
    %c0_i32_0 = arith.constant 0 : i32
    %c0_i32_1 = arith.constant 0 : i32
    return %arg1, %c0_i32, %c0_i32_0 : i32, i32, i32
  }
  func.func @transform_7(%arg0: i32, %arg1: i32) -> (i32, i32, i32) {
    %c0_i32 = arith.constant 0 : i32
    %c0_i32_0 = arith.constant 0 : i32
    %c0_i32_1 = arith.constant 0 : i32
    return %arg1, %c0_i32, %c0_i32_0 : i32, i32, i32
  }
  func.func @transform_8(%arg0: i32, %arg1: i32) -> (i32, i32, i32) {
    %c0_i32 = arith.constant 0 : i32
    %c0_i32_0 = arith.constant 0 : i32
    %c0_i32_1 = arith.constant 0 : i32
    return %arg1, %c0_i32, %c0_i32_0 : i32, i32, i32
  }
  func.func @transform_9(%arg0: i32, %arg1: i32) -> (i32, i32, i32) {
    %c0_i32 = arith.constant 0 : i32
    %c0_i32_0 = arith.constant 0 : i32
    %c0_i32_1 = arith.constant 0 : i32
    return %arg1, %c0_i32, %c0_i32_0 : i32, i32, i32
  }
  func.func @transform_10(%arg0: i32, %arg1: i32) -> (i32, i32, i32) {
    %c0_i32 = arith.constant 0 : i32
    %c0_i32_0 = arith.constant 0 : i32
    %c0_i32_1 = arith.constant 0 : i32
    return %arg1, %c0_i32, %c0_i32_0 : i32, i32, i32
  }
  func.func @transform_11(%arg0: i32, %arg1: i32) -> (i32, i32, i32) {
    %c0_i32 = arith.constant 0 : i32
    %c0_i32_0 = arith.constant 0 : i32
    %c0_i32_1 = arith.constant 0 : i32
    return %arg1, %c0_i32, %c0_i32_0 : i32, i32, i32
  }
  func.func @transform_12(%arg0: i32, %arg1: i32) -> (i32, i32, i32) {
    %c0_i32 = arith.constant 0 : i32
    %c0_i32_0 = arith.constant 0 : i32
    %c0_i32_1 = arith.constant 0 : i32
    return %arg0, %c0_i32, %c0_i32_0 : i32, i32, i32
  }
}

</mosaic_0001>

<bundles_post_ra>
// kernel: tpu_custom_call.1
= control target key start
LH: loop header
LB: loop body
LE: loop exit
PB: predicated region body
PF: predicated region fallthrough
CT: control target
= control target key end

     0   :  { %s14943_s0 = inlined_call_operand.hbm [shape: f32[4,128,128], index: 0, kind: input, shape index: {}]   ;;  %s14944_s1 = inlined_call_operand.hbm [shape: f32[2,1,128], index: 1, kind: input, shape index: {}]   ;;  %s14945_s2 = inlined_call_operand.vmem [shape: f32[2,1,128], index: 2, kind: input, shape index: {}]   ;;  %s14946_s3 = inlined_call_operand.hbm [shape: bf16[2,128,384], index: 3, kind: input, shape index: {}]   ;;  %s14947_s4 = inlined_call_operand.hbm [shape: bf16[2,128,128], index: 4, kind: input, shape index: {}]   ;;  %s14948_s5 = inlined_call_operand.vmem [shape: f32[2,1,128], index: 5, kind: input, shape index: {}]   ;;  %s14949_s6 = inlined_call_operand.vmem [shape: f32[2,1,128], index: 6, kind: input, shape index: {}]   ;;  %s14950_s7 = inlined_call_operand.vmem [shape: f32[2,1,128], index: 7, kind: input, shape index: {}]   ;;  %s14951_s8 = inlined_call_operand.hbm [shape: bf16[2,128,256], index: 8, kind: input, shape index: {}]   ;;  %s14952_s9 = inlined_call_operand.vmem [shape: f32[2,1,256], index: 9, kind: input, shape index: {}]   ;;  %s14953_s10 = inlined_call_operand.hbm [shape: bf16[2,256,128], index: 10, kind: input, shape index: {}]   ;;  %s14954_s11 = inlined_call_operand.vmem [shape: f32[2,1,128], index: 11, kind: input, shape index: {}]   ;;  %s14955_s12 = inlined_call_operand.hbm [shape: f32[4,128,128], index: 12, kind: output, shape index: {}]  }
   0x1   :  { %15135 = sst [smem:[#allocation137_spill]] %s14943_s0 }
   0x2   :  { %15136 = sst [smem:[#allocation138_spill]] %s14944_s1 }
   0x3   :  { %15137 = sst [smem:[#allocation139_spill]] %s14945_s2 }
   0x4   :  { %15138 = sst [smem:[#allocation140_spill]] %s14946_s3 }
   0x5   :  { %15139 = sst [smem:[#allocation141_spill]] %s14947_s4 }
   0x6   :  { %15140 = sst [smem:[#allocation142_spill]] %s14948_s5 }
   0x7   :  { %15141 = sst [smem:[#allocation143_spill]] %s14949_s6 }
   0x8   :  { %15142 = sst [smem:[#allocation144_spill]] %s14950_s7 }
   0x9   :  { %15143 = sst [smem:[#allocation145_spill]] %s14951_s8 }
   0xa   :  { %15144 = sst [smem:[#allocation146_spill]] %s14952_s9 }
   0xb   :  { %15145 = sst [smem:[#allocation147_spill]] %s14953_s10 }
   0xc   :  { %15146 = sst [smem:[#allocation148_spill]] %s14954_s11 }
   0xd   :  { %15147 = sst [smem:[#allocation149_spill]] %s14955_s12 }
   0xe   :  { %17 = vsyncpa [#allocation3], 0 }
   0xf   :  { %19 = vsyncpa [#allocation3 + $0x1], 0 }
  0x10   :  { %20 = vsyncpa [#allocation6], 0 }
  0x11   :  { %22 = vsyncpa [#allocation6 + $0x1], 0 }
  0x12   :  { %23 = vsyncpa [#allocation9], 0 }
  0x13   :  { %25 = vsyncpa [#allocation9 + $0x1], 0 }
  0x14   :  { %26 = vsyncpa [#allocation12], 0 }
  0x15   :  { %28 = vsyncpa [#allocation12 + $0x1], 0 }
  0x16   :  { %29 = vsyncpa [#allocation4], 0 }
  0x17   :  { %31 = vsyncpa [#allocation4 + $0x1], 0  ;;  %s10778_s21 = smov 0   ;;  %s10780_s22 = smov 0  }
  0x18   :  { %s10782_s23 = smov 0   ;;  %s10784_s24 = smov 0  }
  0x19   :  { %s10786_s25 = smov 0   ;;  %s10788_s26 = smov 0  }
  0x1a   :  { %s10790_s27 = smov 0   ;;  %s10792_s28 = smov 0  }
  0x1b   :  { %s10794_s29 = smov 0   ;;  %s10796_s30 = smov 0  }
  0x1c   :  { %s10798_s13 = smov 0  }
  0x1d LB: > { %15148 = sst [smem:[#allocation19_spill]] %s10656_s22  ;;  %s10832_s14 = sadd.s32 4294967295, %s10692_s13   ;;  %s10692_s13 = sphi %s10798_s13, %s37_s13   ;;  %s10688_s30 = sphi %s10796_s30, %s15607_s30   ;;  %s10684_s29 = sphi %s10794_s29, %s15606_s29   ;;  %s10680_s28 = sphi %s10792_s28, %s15605_s28   ;;  %s10676_s27 = sphi %s10790_s27, %s15604_s27   ;;  %s10672_s26 = sphi %s10788_s26, %s15603_s26   ;;  %s10668_s25 = sphi %s10786_s25, %s15602_s25   ;;  %s10664_s24 = sphi %s10784_s24, %s15601_s24   ;;  %s10660_s23 = sphi %s10782_s23, %s15600_s23   ;;  %s10656_s22 = sphi %s10780_s22, %s15599_s22   ;;  %s10652_s21 = sphi %s10778_s21, %s15598_s21  }
  0x1e   : > { %15149 = sst [smem:[#allocation20_spill]] %s10660_s23  ;;  %s46_s15 = sadd.s32 1, %s10684_s29 }
  0x1f   : > { %15150 = sst [smem:[#allocation21_spill]] %s10664_s24  ;;  %p10835_p0 = scmp.ge.s32.totalorder %s46_s15, 2 }
  0x20   : > { %15151 = sst [smem:[#allocation22_spill]] %s10668_s25  ;;  %p64_p1 = scmp.eq.s32.totalorder %s10692_s13, 0 }
  0x21   : > { %15152 = sst [smem:[#allocation23_spill]] %s10672_s26  ;;  %p14959_p2 = scmp.eq.s32.totalorder %s10832_s14, 0 }
  0x22   : > { %15153 = sst [smem:[#allocation24_spill]] %s10676_s27  ;;  %s82_s17 = sadd.s32 1, %s10660_s23 }
  0x23   : > { %15154 = sst [smem:[#allocation25_spill]] %s10680_s28  ;;  %s15609_s15 = smov (%p10835_p0, %s46_s15), 0 }
  0x24   : > { %15155 = sst [smem:[#allocation26_spill]] %s10684_s29  ;;  %p89_p3 = scmp.ne.s32.totalorder %s10660_s23, %s10656_s22 }
  0x25   : > { %15156 = sst [smem:[#allocation27_spill]] %s10688_s30  ;;  %p95_p4 = scmp.ne.s32.totalorder %s10656_s22, %s10652_s21 }
  0x26   : > { %15157 = sst [smem:[#allocation28_spill]] %s10692_s13  ;;  %s79_s18 = ssub.s32 %s10684_s29, %s15609_s15 }
  0x27   : > { %15158 = sst [smem:[#allocation29_spill]] %s10832_s14  ;;  %p80_p5 = scmp.eq.s32.totalorder %s79_s18, 0 }
  0x28   : > { %15160 = sst [smem:[#allocation30_spill]] %s15609_s15  ;;  %p91_p6 = por %p89_p3, %p64_p1 }
  0x29   : > { %p10855_p7 = por %p95_p4, %p14959_p2  ;;  %p14958_p8 = scmp.lt.s32.totalorder %s10692_s13, 4 }
  0x2a   : > { %s10861_s20 = scalar_select %p80_p5, %s10660_s23, %s82_s17  }
  0x2b   : > { %s15161_s19 = scalar_select %p10855_p7, 1, 0 }
  0x2c   : > { %15163 = sst [smem:[#allocation32_spill]] %s10861_s20  ;;  %s14960_s12 = sand.u32 1, %s10692_s13  }
  0x2d   : > { %15162 = sst [smem:[#allocation31_spill]] %s15161_s19  ;;  %s10865_s28 = sand.u32 1, %s10660_s23  }
  0x2e   : > { %s7860_s21 = sshll.u32 %s10684_s29, 4  ;;  %s430_s9 = scalar_lea.vmem [#allocation5], %s10865_s28 }
  0x2f   : > { %s437_s15 = sshll.u32 %s430_s9, 4  ;;  %s15164_s1 = sld [smem:[#allocation138_spill]]  ;;  %s438_s15 = int_to_ptr.vmem [resolvable:$true] %s437_s15 }
  0x30   : > { %p10874_p9 = pnand %p14958_p8, %p91_p6  ;;  %p7871_p10 = scmp.ge.s32.totalorder %s10692_s13, 1 }
  0x31   : > { %p563_p11 = scmp.lt.s32.totalorder %s10692_s13, 5  ;;  %s7862_s17 = sshll.u32 %s10865_s28, 6 }
  0x32   : > { %s10883_s20 = scalar_lea.sflag [#allocation6], %s14960_s12  ;;  %p10887_p12 = pneg %p10874_p9 }
  0x33   : > { %s10405_s11 = scalar_lea.vmem %s438_s15, 16 }
  0x34   : > { %p10406_p13 = scmp.ne.s32.totalorder %s438_s15, %s10405_s11 }
  0x35   : > { %s435_s7 = scalar_lea.hbm %s15164_s1, %s7860_s21  ;;  %s10694_s21 = smov [#allocation5]  }
  0x36   : > { %p10408_p3 = pnand %p10406_p13, %p10887_p12  ;;  %s10410_s18 = sshll.u32 %s10694_s21, 4  ;;  %s10411_s18 = int_to_ptr.vmem [resolvable:$false] %s10410_s18 }
  0x37   : > { %s10412_s1 = scalar_lea.vmem %s10411_s18, 32  ;;  %p10413_p5 = scmp.lt.s32.totalorder %s438_s15, %s10411_s18 }
  0x38   : > { %p10409_p4 = pneg %p10408_p3  ;;  %p10414_p6 = scmp.lt.s32.totalorder %s10412_s1, %s10405_s11 }
  0x3a   : > { %p10415_p8 = por %p10414_p6, %p10413_p5 }
  0x3c   : > { %p10416_p2 = pnand %p10415_p8, %p10409_p4 }
  0x3e   : > { %10419 = shalt.err (!%p10416_p2)
}
  0x3f   : > { %9153 = dma.hbm_to_vmem [thread:$0]  (!%p10874_p9), %s435_s7, 16, %s438_s15, %s10883_s20  }
  0x40   : > { %p10900_p13 = pnand %p7871_p10, %p563_p11  ;;  %s8021_s18 = sshll.u32 %s10684_s29, 10 }
  0x41   : > { %s475_s1 = scalar_lea.vmem [#allocation8], %s7862_s17  ;;  %s15168_s4 = sld [smem:[#allocation141_spill]] }
  0x42   : > { %s482_s11 = sshll.u32 %s475_s1, 4  ;;  %s15169_s2 = sand.u32 1, %s10692_s13   ;;  %s483_s11 = int_to_ptr.vmem [resolvable:$true] %s482_s11 }
  0x43   : > { %s10910_s27 = scalar_lea.sflag [#allocation9], %s15169_s2  ;;  %s10433_s19 = scalar_lea.vmem %s483_s11, 1024 }
  0x44   : > { %p10434_p2 = scmp.ne.s32.totalorder %s483_s11, %s10433_s19  ;;  %s10695_s7 = smov [#allocation8]  }
  0x45   : > { %s10438_s15 = sshll.u32 %s10695_s7, 4  ;;  %s10439_s15 = int_to_ptr.vmem [resolvable:$false] %s10438_s15 }
  0x46   : > { %p10436_p8 = pnand %p10434_p2, %p10887_p12  ;;  %s10440_s22 = scalar_lea.vmem %s10439_s15, 2048 }
  0x47   : > { %s481_s5 = scalar_lea.hbm %s15168_s4, %s8021_s18  ;;  %p10441_p10 = scmp.lt.s32.totalorder %s483_s11, %s10439_s15 }
  0x48   : > { %p10437_p3 = pneg %p10436_p8  ;;  %p10442_p11 = scmp.lt.s32.totalorder %s10440_s22, %s10433_s19 }
  0x4a   : > { %p10443_p4 = por %p10442_p11, %p10441_p10 }
  0x4c   : > { %p10444_p5 = pnand %p10443_p4, %p10437_p3 }
  0x4e   : > { %10447 = shalt.err (!%p10444_p5)
}
  0x4f   : > { %s14967_s12 = smov 64   ;;  %s14968_s2 = smov 4  }
  0x50   : > { %9159 = dma.hbm_to_vmem [thread:$0]  (!%p10874_p9), %s481_s5, 1024, %s483_s11, %s10910_s27, %s14967_s12, %s14967_s12, %s14968_s2  }
  0x51   : > { %s7853_s22 = sadd.s32 4294967294, %s10692_s13   ;;  %s49_s23 = sadd.s32 1, %s10688_s30 }
  0x52   : > { %s15611_s23 = smov (!%p10835_p0, %s49_s23), %s10688_s30  ;;  %s56_s19 = sadd.s32 1, %s10672_s26 }
  0x53   : > { %p63_p6 = scmp.ne.s32.totalorder %s10672_s26, %s10668_s25  ;;  %p51_p2 = scmp.ge.s32.totalorder %s15611_s23, 2 }
  0x54   : > { %p69_p8 = scmp.ne.s32.totalorder %s10668_s25, %s10664_s24  ;;  %p379_p10 = scmp.eq.s32.totalorder %s10832_s14, 3 }
  0x55   : > { %p10932_p3 = por %p64_p1, %p63_p6  ;;  %s15613_s23 = smov (%p51_p2, %s15611_s23), 0 }
  0x56   : > { %15171 = sst [smem:[#allocation33_spill]] %s15613_s23  ;;  %p15172_p11 = scmp.eq.s32.totalorder %s10832_s14, 0 }
  0x57   : > { %p10945_p0 = por %p379_p10, %p63_p6  ;;  %s53_s18 = ssub.s32 %s10688_s30, %s15613_s23 }
  0x58   : > { %p10941_p4 = por %p15172_p11, %p69_p8  ;;  %p385_p1 = scmp.eq.s32.totalorder %s7853_s22, 3 }
  0x59   : > { %s15175_s16 = scalar_select %p10945_p0, 1, 0 }
  0x5a   : > { %s15173_s5 = scalar_select %p10941_p4, 1, 0 }
  0x5b   : > { %p54_p5 = scmp.eq.s32.totalorder %s53_s18, 0  ;;  %s405_s1 = sand.u32 1, %s10672_s26  }
  0x5c   : > { %15174 = sst [smem:[#allocation34_spill]] %s15173_s5  ;;  %p10952_p7 = por %p385_p1, %p69_p8 }
  0x5d   : > { %s10957_s7 = scalar_select %p54_p5, %s10672_s26, %s56_s19  }
  0x5e   : > { %s15176_s11 = scalar_select %p10952_p7, 1, 0 }
  0x5f   : > { %15178 = sst [smem:[#allocation36_spill]] %s10957_s7  ;;  %s7856_s15 = sshll.u32 %s405_s1, 8 }
  0x60   : > { %15177 = sst [smem:[#allocation35_spill]] %s15176_s11  ;;  %s8020_s12 = sshll.u32 %s10688_s30, 12 }
  0x61   : > { %s15179_s0 = sld [smem:[#allocation137_spill]]  ;;  %s409_s14 = scalar_lea.vmem [#allocation2], %s7856_s15 }
  0x62   : > { %s417_s5 = sshll.u32 %s409_s14, 4  ;;  %p15180_p6 = scmp.lt.s32.totalorder %s10692_s13, 4  ;;  %s418_s5 = int_to_ptr.vmem [resolvable:$true] %s417_s5 }
  0x63   : > { %s406_s18 = scalar_lea.sflag [#allocation3], %s405_s1  ;;  %s10461_s19 = scalar_lea.vmem %s418_s5, 4096 }
  0x64   : > { %p10967_p2 = pnand %p15180_p6, %p10932_p3  ;;  %p10462_p10 = scmp.ne.s32.totalorder %s418_s5, %s10461_s19 }
  0x65   : > { %s10698_s23 = smov [#allocation2]  }
  0x66   : > { %p10450_p8 = pneg %p10967_p2  ;;  %s10466_s4 = sshll.u32 %s10698_s23, 4  ;;  %s10467_s4 = int_to_ptr.vmem [resolvable:$false] %s10466_s4 }
  0x67   : > { %s416_s24 = scalar_lea.hbm %s15179_s0, %s8020_s12  ;;  %s10468_s12 = scalar_lea.vmem %s10467_s4, 8192 }
  0x68   : > { %p10464_p11 = pnand %p10462_p10, %p10450_p8  ;;  %p10469_p5 = scmp.lt.s32.totalorder %s418_s5, %s10467_s4 }
  0x69   : > { %p10470_p7 = scmp.lt.s32.totalorder %s10468_s12, %s10461_s19 }
  0x6a   : > { %p10465_p1 = pneg %p10464_p11 }
  0x6b   : > { %p10471_p0 = por %p10470_p7, %p10469_p5 }
  0x6d   : > { %p10472_p3 = pnand %p10471_p0, %p10465_p1 }
  0x6f   : > { %10475 = shalt.err (!%p10472_p3)
}
  0x70   : > { %s10699_s14 = smov 128   ;;  %s10700_s2 = smov 8  }
  0x71   : > { %9150 = dma.hbm_to_vmem [thread:$0]  (!%p10967_p2), %s416_s24, 4096, %s418_s5, %s406_s18, %s10699_s14, %s10699_s14, %s10700_s2  }
  0x72   : > { %s9130_s23 = smul.u32 192, %s10865_s28  ;;  %s7865_s1 = sshll.u32 %s10865_s28, 7 }
  0x73   : > { %s9131_s17 = smul.u32 3072, %s10684_s29  ;;  %s15182_s3 = sld [smem:[#allocation140_spill]] }
  0x74   : > { %s454_s12 = scalar_lea.vmem [#allocation7], %s9130_s23  ;;  %s10701_s22 = smov [#allocation7]  }
  0x75   : > { %s461_s0 = sshll.u32 %s454_s12, 4  ;;  %s10494_s7 = sshll.u32 %s10701_s22, 4  ;;  %s462_s0 = int_to_ptr.vmem [resolvable:$true] %s461_s0  ;;  %s10495_s7 = int_to_ptr.vmem [resolvable:$false] %s10494_s7 }
  0x76   : > { %s10489_s30 = scalar_lea.vmem %s462_s0, 3072  ;;  %s10496_s26 = scalar_lea.vmem %s10495_s7, 6144 }
  0x77   : > { %p10490_p7 = scmp.ne.s32.totalorder %s462_s0, %s10489_s30  ;;  %p10497_p2 = scmp.lt.s32.totalorder %s462_s0, %s10495_s7 }
  0x78   : > { %p10498_p8 = scmp.lt.s32.totalorder %s10496_s26, %s10489_s30 }
  0x79   : > { %s460_s4 = scalar_lea.hbm %s15182_s3, %s9131_s17  ;;  %p10492_p0 = pnand %p10490_p7, %p10887_p12 }
  0x7a   : > { %p10499_p10 = por %p10498_p8, %p10497_p2 }
  0x7b   : > { %p10493_p6 = pneg %p10492_p0 }
  0x7d   : > { %p10500_p11 = pnand %p10499_p10, %p10493_p6 }
  0x7f   : > { %10503 = shalt.err (!%p10500_p11)
}
  0x80   : > { %s10702_s24 = smov 192   ;;  %s10703_s5 = smov 12  }
  0x81   : > { %9156 = dma.hbm_to_vmem [thread:$0]  (!%p10874_p9), %s460_s4, 3072, %s462_s0, %s10883_s20, %s10702_s24, %s10702_s24, %s10703_s5  }
  0x82   : > { %s8022_s18 = sshll.u32 %s10684_s29, 11  ;;  %s514_s23 = scalar_lea.vmem [#allocation10], %s7865_s1 }
  0x83   : > { %s521_s17 = sshll.u32 %s514_s23, 4  ;;  %s15183_s8 = sld [smem:[#allocation145_spill]]  ;;  %s522_s17 = int_to_ptr.vmem [resolvable:$true] %s521_s17 }
  0x84   : > { %s10517_s30 = scalar_lea.vmem %s522_s17, 2048  ;;  %s10704_s7 = smov [#allocation10]  }
  0x85   : > { %p10518_p1 = scmp.ne.s32.totalorder %s522_s17, %s10517_s30  ;;  %s10522_s12 = sshll.u32 %s10704_s7, 4  ;;  %s10523_s12 = int_to_ptr.vmem [resolvable:$false] %s10522_s12 }
  0x86   : > { %s10524_s22 = scalar_lea.vmem %s10523_s12, 4096  ;;  %p10525_p7 = scmp.lt.s32.totalorder %s522_s17, %s10523_s12 }
  0x87   : > { %p10520_p5 = pnand %p10518_p1, %p10887_p12  ;;  %p10526_p0 = scmp.lt.s32.totalorder %s10524_s22, %s10517_s30 }
  0x89   : > { %s520_s26 = scalar_lea.hbm %s15183_s8, %s8022_s18  ;;  %p10521_p3 = pneg %p10520_p5 }
  0x8a   : > { %p10527_p6 = por %p10526_p0, %p10525_p7 }
  0x8c   : > { %p10528_p2 = pnand %p10527_p6, %p10521_p3 }
  0x8e   : > { %10531 = shalt.err (!%p10528_p2)
}
  0x8f   : > { %9162 = dma.hbm_to_vmem [thread:$0]  (!%p10874_p9), %s520_s26, 2048, %s522_s17, %s10910_s27, %s10699_s14, %s10699_s14, %s10700_s2  }
  0x90   : > { %s15184_s10 = sld [smem:[#allocation147_spill]]  ;;  %s542_s24 = scalar_lea.vmem [#allocation11], %s7865_s1 }
  0x91   : > { %s549_s5 = sshll.u32 %s542_s24, 4  ;;  %s539_s23 = scalar_lea.sflag [#allocation12], %s10865_s28  ;;  %s550_s5 = int_to_ptr.vmem [resolvable:$true] %s549_s5 }
  0x92   : > { %s10545_s15 = scalar_lea.vmem %s550_s5, 2048  ;;  %s10705_s19 = smov [#allocation11]  }
  0x93   : > { %p10546_p8 = scmp.ne.s32.totalorder %s550_s5, %s10545_s15  ;;  %s10550_s30 = sshll.u32 %s10705_s19, 4  ;;  %s10551_s30 = int_to_ptr.vmem [resolvable:$false] %s10550_s30 }
  0x94   : > { %s10552_s7 = scalar_lea.vmem %s10551_s30, 4096  ;;  %p10553_p1 = scmp.lt.s32.totalorder %s550_s5, %s10551_s30 }
  0x95   : > { %p10548_p10 = pnand %p10546_p8, %p10887_p12  ;;  %p10554_p5 = scmp.lt.s32.totalorder %s10552_s7, %s10545_s15 }
  0x96   : > { %s548_s4 = scalar_lea.hbm %s15184_s10, %s8022_s18 }
  0x97   : > { %p10549_p11 = pneg %p10548_p10  ;;  %p10555_p3 = por %p10554_p5, %p10553_p1 }
  0x99   : > { %p10556_p7 = pnand %p10555_p3, %p10549_p11 }
  0x9b   : > { %10559 = shalt.err (!%p10556_p7)
}
  0x9c   : > { %s15185_s27 = smov 4   ;;  %s15186_s14 = smov 64  }
  0x9d   : > { %9165 = dma.hbm_to_vmem [thread:$0]  (!%p10874_p9), %s548_s4, 2048, %s550_s5, %s539_s23, %s15186_s14, %s15186_s14, %s15185_s27  }
  0x9e   : > { %567 = sbr.rel (%p10900_p13) target bundleno = 5122 (0x1402), region = 68 }
  0xa3   : > { %s11019_s9 = sand.u32 1, %s10668_s25  }
  0xa4   : > { %s14977_s2 = sshll.u32 %s11019_s9, 8  ;;  %s570_s1 = scalar_lea.sflag [#allocation3], %s11019_s9 }
  0xa5   : > { %s11025_s18 = scalar_lea.vmem [#allocation2], %s14977_s2 }
  0xa6   : > { %10631 = dma.done.wait (%p10941_p4), %s570_s1, 4096  }
  0xa7   : > { %10633 = vsyncadd (%p10941_p4), %s570_s1, 4294963200  ;;  %s15188_s6 = sld [smem:[#allocation29_spill]] }
  0xa8   : > { %s15189_s21 = sld [smem:[#allocation19_spill]] }
  0xa9   : > { %s15190_s17 = sld [smem:[#allocation31_spill]] }
  0xad   : > { %s578_s26 = sand.u32 1, %s15188_s6  }
  0xae   : > { %s11033_s12 = sand.u32 1, %s15189_s21   ;;  %s579_s22 = scalar_lea.sflag [#allocation6], %s578_s26 }
  0xaf   : > { %p15191_p9 = scmp.ne.s32.totalorder %s15190_s17, 0 }
  0xb1   : > { %10635 = dma.done.wait (%p15191_p9), %s579_s22, 3088  }
  0xb2   : > { %10637 = vsyncadd (%p15191_p9), %s579_s22, 4294964208  ;;  %s9132_s20 = smul.u32 192, %s11033_s12  ;;  %s7873_s4 = sshll.u32 %s11033_s12, 6 }
  0xb3   : > { %s596_s5 = scalar_lea.sflag [#allocation9], %s578_s26  ;;  %s11044_s23 = scalar_lea.vmem [#allocation8], %s7873_s4 }
  0xb4   : > { %s11042_s24 = scalar_lea.vmem [#allocation7], %s9132_s20 }
  0xb5   : > { %10639 = dma.done.wait (%p15191_p9), %s596_s5, 3072  }
  0xb6   : > { %10641 = vsyncadd (%p15191_p9), %s596_s5, 4294964224  ;;  %s7874_s15 = sshll.u32 %s11033_s12, 7  ;;  %s614_s30 = scalar_lea.sflag [#allocation12], %s11033_s12 }
  0xb7   : > { %s11051_s19 = scalar_lea.vmem [#allocation10], %s7874_s15  ;;  %s11054_s7 = scalar_lea.vmem [#allocation11], %s7874_s15 }
  0xb8   : > { %10643 = dma.done.wait (%p15191_p9), %s614_s30, 2048  }
  0xb9   : > { %10645 = vsyncadd (%p15191_p9), %s614_s30, 4294965248  ;;  %s15192_s27 = sld [smem:[#allocation24_spill]]  ;;  %s15199_s26 = sshll.u32 %s11019_s9, 8 }
  0xba   : > { %s15194_s17 = sld [smem:[#allocation142_spill]]  ;;  %s11092_s22 = scalar_lea.vmem [#allocation13], %s15199_s26 }
  0xbb   : > { %s15195_s15 = sld [smem:[#allocation143_spill]] }
  0xbc   : > { %s15196_s3 = sld [smem:[#allocation144_spill]] }
  0xbd   : > { %s15197_s29 = sld [smem:[#allocation148_spill]] }
  0xbe   : > { %s15198_s6 = sld [smem:[#allocation146_spill]] }
  0xbf   : > { %p702_p12 = scmp.lt.s32.totalorder %s15192_s27, 1  ;;  %p7878_p13 = scmp.ne.s32.totalorder %s15192_s27, 0 }
  0xc1   : > { %s11062_s14 = scalar_select %p702_p12, %s15192_s27, 1 }
  0xc2   : > { %726 = sbr.rel (%p7878_p13) target bundleno = 216 (0xd8), region = 96 }
  0xc3   : > { %s707_s20 = scalar_lea.vmem %s15194_s17, %s11062_s14  ;;  %s710_s30 = scalar_lea.vmem %s15195_s15, %s11062_s14 }
  0xc4   : > { %s713_s8 = scalar_lea.vmem %s15196_s3, %s11062_s14  ;;  %s7877_s10 = sshll.u32 %s11062_s14, 1 }
  0xc5   : > { %s720_s25 = scalar_lea.vmem %s15197_s29, %s11062_s14  ;;  %s11088_s21 = scalar_lea.vmem %s15198_s6, %s7877_s10 }
  0xc7   : > { %v727_v0 = vld [vmem:[%s11025_s18] sm:$0xff]  ;;  %v728_v1 = vld [vmem:[%s11025_s18 + $0x8] sm:$0xff]  ;;  %v729_v2 = vld [vmem:[%s11025_s18 + $0x10] sm:$0xff] }
  0xc8   : > { %759 = vst [vmem:[%s11092_s22] sm:$0xff] %v727_v0  ;;  %760 = vst [vmem:[%s11092_s22 + $0x8] sm:$0xff] %v728_v1  ;;  %v730_v3 = vld [vmem:[%s11025_s18 + $0x18] sm:$0xff]  ;;  %v731_v4 = vld [vmem:[%s11025_s18 + $0x20] sm:$0xff] }
  0xc9   : > { %761 = vst [vmem:[%s11092_s22 + $0x10] sm:$0xff] %v729_v2  ;;  %v732_v5 = vld [vmem:[%s11025_s18 + $0x28] sm:$0xff]  ;;  %762 = vst [vmem:[%s11092_s22 + $0x18] sm:$0xff] %v730_v3  ;;  %v733_v6 = vld [vmem:[%s11025_s18 + $0x30] sm:$0xff] }
  0xca   : > { %763 = vst [vmem:[%s11092_s22 + $0x20] sm:$0xff] %v731_v4  ;;  %764 = vst [vmem:[%s11092_s22 + $0x28] sm:$0xff] %v732_v5  ;;  %v734_v7 = vld [vmem:[%s11025_s18 + $0x38] sm:$0xff]  ;;  %v735_v8 = vld [vmem:[%s11025_s18 + $0x40] sm:$0xff] }
  0xcb   : > { %765 = vst [vmem:[%s11092_s22 + $0x30] sm:$0xff] %v733_v6  ;;  %766 = vst [vmem:[%s11092_s22 + $0x38] sm:$0xff] %v734_v7  ;;  %v736_v9 = vld [vmem:[%s11025_s18 + $0x48] sm:$0xff]  ;;  %v737_v10 = vld [vmem:[%s11025_s18 + $0x50] sm:$0xff] }
  0xcc   : > { %767 = vst [vmem:[%s11092_s22 + $0x40] sm:$0xff] %v735_v8  ;;  %v738_v11 = vld [vmem:[%s11025_s18 + $0x58] sm:$0xff]  ;;  %768 = vst [vmem:[%s11092_s22 + $0x48] sm:$0xff] %v736_v9  ;;  %v739_v12 = vld [vmem:[%s11025_s18 + $0x60] sm:$0xff] }
  0xcd   : > { %769 = vst [vmem:[%s11092_s22 + $0x50] sm:$0xff] %v737_v10  ;;  %770 = vst [vmem:[%s11092_s22 + $0x58] sm:$0xff] %v738_v11  ;;  %v740_v13 = vld [vmem:[%s11025_s18 + $0x68] sm:$0xff]  ;;  %v741_v14 = vld [vmem:[%s11025_s18 + $0x70] sm:$0xff] }
  0xce   : > { %771 = vst [vmem:[%s11092_s22 + $0x60] sm:$0xff] %v739_v12  ;;  %772 = vst [vmem:[%s11092_s22 + $0x68] sm:$0xff] %v740_v13  ;;  %v742_v15 = vld [vmem:[%s11025_s18 + $0x78] sm:$0xff]  ;;  %v743_v16 = vld [vmem:[%s11025_s18 + $0x80] sm:$0xff] }
  0xcf   : > { %773 = vst [vmem:[%s11092_s22 + $0x70] sm:$0xff] %v741_v14  ;;  %v744_v17 = vld [vmem:[%s11025_s18 + $0x88] sm:$0xff]  ;;  %774 = vst [vmem:[%s11092_s22 + $0x78] sm:$0xff] %v742_v15  ;;  %v745_v18 = vld [vmem:[%s11025_s18 + $0x90] sm:$0xff] }
  0xd0   : > { %775 = vst [vmem:[%s11092_s22 + $0x80] sm:$0xff] %v743_v16  ;;  %776 = vst [vmem:[%s11092_s22 + $0x88] sm:$0xff] %v744_v17  ;;  %v746_v19 = vld [vmem:[%s11025_s18 + $0x98] sm:$0xff]  ;;  %v747_v20 = vld [vmem:[%s11025_s18 + $0xa0] sm:$0xff] }
  0xd1   : > { %777 = vst [vmem:[%s11092_s22 + $0x90] sm:$0xff] %v745_v18  ;;  %778 = vst [vmem:[%s11092_s22 + $0x98] sm:$0xff] %v746_v19  ;;  %v748_v21 = vld [vmem:[%s11025_s18 + $0xa8] sm:$0xff]  ;;  %v749_v22 = vld [vmem:[%s11025_s18 + $0xb0] sm:$0xff] }
  0xd2   : > { %779 = vst [vmem:[%s11092_s22 + $0xa0] sm:$0xff] %v747_v20  ;;  %v750_v23 = vld [vmem:[%s11025_s18 + $0xb8] sm:$0xff]  ;;  %780 = vst [vmem:[%s11092_s22 + $0xa8] sm:$0xff] %v748_v21  ;;  %v751_v24 = vld [vmem:[%s11025_s18 + $0xc0] sm:$0xff] }
  0xd3   : > { %781 = vst [vmem:[%s11092_s22 + $0xb0] sm:$0xff] %v749_v22  ;;  %782 = vst [vmem:[%s11092_s22 + $0xb8] sm:$0xff] %v750_v23  ;;  %v752_v25 = vld [vmem:[%s11025_s18 + $0xc8] sm:$0xff]  ;;  %v753_v26 = vld [vmem:[%s11025_s18 + $0xd0] sm:$0xff] }
  0xd4   : > { %783 = vst [vmem:[%s11092_s22 + $0xc0] sm:$0xff] %v751_v24  ;;  %784 = vst [vmem:[%s11092_s22 + $0xc8] sm:$0xff] %v752_v25  ;;  %v754_v27 = vld [vmem:[%s11025_s18 + $0xd8] sm:$0xff]  ;;  %v755_v28 = vld [vmem:[%s11025_s18 + $0xe0] sm:$0xff] }
  0xd5   : > { %785 = vst [vmem:[%s11092_s22 + $0xd0] sm:$0xff] %v753_v26  ;;  %v756_v29 = vld [vmem:[%s11025_s18 + $0xe8] sm:$0xff]  ;;  %786 = vst [vmem:[%s11092_s22 + $0xd8] sm:$0xff] %v754_v27  ;;  %v757_v30 = vld [vmem:[%s11025_s18 + $0xf0] sm:$0xff] }
  0xd6   : > { %787 = vst [vmem:[%s11092_s22 + $0xe0] sm:$0xff] %v755_v28  ;;  %788 = vst [vmem:[%s11092_s22 + $0xe8] sm:$0xff] %v756_v29  ;;  %v758_v31 = vld [vmem:[%s11025_s18 + $0xf8] sm:$0xff] }
  0xd7   : > { %789 = vst [vmem:[%s11092_s22 + $0xf0] sm:$0xff] %v757_v30  ;;  %790 = vst [vmem:[%s11092_s22 + $0xf8] sm:$0xff] %v758_v31 }
  0xd8 PF: > { %v791_v32 = vld [vmem:[%s11092_s22] sm:$0xff]  ;;  %v793_v33 = vld [vmem:[%s11092_s22 + $0x10] sm:$0xff]  ;;  %v792_v34 = vld [vmem:[%s11092_s22 + $0x8] sm:$0xff]  ;;  %s15200_s3 = scalar_lea.vmem [#allocation5], %s11033_s12  ;;  %s15201_s13 = sld [smem:[#allocation139_spill]]  ;;  %vm1832_vm0 = vcmask 261120  }
  0xd9   : > { %825 = vadd.xlane.f32.xlu0 %v791_v32  ;;  %829 = vadd.xlane.f32.xlu1 %v793_v33  ;;  %v794_v35 = vld [vmem:[%s11092_s22 + $0x18] sm:$0xff]  ;;  %v11164_v36 = vld [vmem:[%s11092_s22 + $0x20] sm:$0xff]  ;;  %v11167_v37 = vld [vmem:[%s11092_s22 + $0x28] sm:$0xff]  ;;  %s10707_s2 = smov 96   ;;  %s10708_s18 = smov 64   ;;  %vm5785_vm1 = vcmask 523264  }
  0xda   : > { %v11170_v38 = vld [vmem:[%s11092_s22 + $0x30] sm:$0xff]  ;;  %v11173_v39 = vld [vmem:[%s11092_s22 + $0x38] sm:$0xff]  ;;  %v11178_v40 = vld [vmem:[%s11092_s22 + $0x40] sm:$0xff]  ;;  %s10709_s12 = smov 32   ;;  %vm5818_vm2 = vcmask 785408   ;;  %s7605_s15 = sshll.u32 %s11092_s22, 4  ;;  %s14879_s15 = int_to_ptr.vmem [resolvable:$true] %s7605_s15 }
  0xdb   : > { %v11181_v41 = vld [vmem:[%s11092_s22 + $0x48] sm:$0xff]  ;;  %v11186_v42 = vld [vmem:[%s11092_s22 + $0x50] sm:$0xff]  ;;  %v11191_v43 = vld [vmem:[%s11092_s22 + $0x58] sm:$0xff]  ;;  %s15591_s1 = sld [smem:[#allocation149_spill]]  ;;  %s7591_s26 = scalar_lea.sflag [#allocation4], %s11019_s9 }
  0xdc   : > { %v11194_v44 = vld [vmem:[%s11092_s22 + $0x60] sm:$0xff]  ;;  %v11197_v45 = vld [vmem:[%s11092_s22 + $0x68] sm:$0xff]  ;;  %v11202_v46 = vld [vmem:[%s11092_s22 + $0x70] sm:$0xff]  ;;  %p15593_p0 = scmp.ne.s32.totalorder %s15175_s16, 0  ;;  %s10710_s10 = smov [#allocation13]  }
  0xdd   : > { %827 = vadd.xlane.f32.xlu0 %v792_v34  ;;  %831 = vadd.xlane.f32.xlu1 %v794_v35  ;;  %v11207_v47 = vld [vmem:[%s11092_s22 + $0x78] sm:$0xff]  ;;  %v11210_v48 = vld [vmem:[%s11092_s22 + $0xc0] sm:$0xff]  ;;  %v11215_v49 = vld [vmem:[%s11092_s22 + $0xc8] sm:$0xff]  ;;  %s10564_s29 = sshll.u32 %s10710_s10, 4  ;;  %s10565_s29 = int_to_ptr.vmem [resolvable:$false] %s10564_s29 }
  0xde   : > { %v11218_v50 = vld [vmem:[%s11092_s22 + $0xd0] sm:$0xff]  ;;  %v11221_v51 = vld [vmem:[%s11092_s22 + $0xd8] sm:$0xff]  ;;  %v11238_v2 = vld [vmem:[%s11092_s22 + $0xe0] sm:$0xff]  ;;  %s15202_s11 = scalar_lea.vmem %s15201_s13, %s11062_s14  ;;  %s10566_s13 = scalar_lea.vmem %s10565_s29, 8192 }
  0xdf   : > { %v9512_v52 = vld [vmem:[%s11042_s24 + $0xac] ss:$12 sps:$4 sm:$0xff]   ;;  %v9514_v53 = vld [vmem:[%s11042_s24 + $0xa8] ss:$12 sps:$4 sm:$0xff]   ;;  %v9517_v16 = vld [vmem:[%s11042_s24 + $0x90] ss:$12 sps:$4 sm:$0xff]   ;;  %p10567_p8 = scmp.lt.s32.totalorder %s14879_s15, %s10565_s29 }
  0xe0   : > { %1430 = vmatprep.subr.bf16.mxu0 %v9512_v52  ;;  %9050 = vmatprep.subr.bf16.mxu1 %v9512_v52  ;;  %v11248_v8 = vld [vmem:[%s11092_s22 + $0xe8] sm:$0xff]  ;;  %v11257_v13 = vld [vmem:[%s11092_s22 + $0xf0] sm:$0xff]  ;;  %v11268_v20 = vld [vmem:[%s11092_s22 + $0xf8] sm:$0xff] }
  0xe1   : > { %833 = vadd.xlane.f32.xlu0 %v11164_v36  ;;  %835 = vadd.xlane.f32.xlu1 %v11167_v37  ;;  %v9515_v15 = vld [vmem:[%s11042_s24 + $0x94] ss:$12 sps:$4 sm:$0xff]   ;;  %v9518_v22 = vld [vmem:[%s11042_s24 + $0x7c] ss:$12 sps:$4 sm:$0xff]   ;;  %v9520_v23 = vld [vmem:[%s11042_s24 + $0x78] ss:$12 sps:$4 sm:$0xff]  }
  0xe2   : > { %1431 = vmatpush1.bf16.msra.mxu0 %v9514_v53  ;;  %9058 = vmatpush1.bf16.msra.mxu1 %v9514_v53  ;;  %v11279_v27 = vld [vmem:[%s11092_s22 + $0x80] sm:$0xff] }
  0xe3   : > { %1432 = vmatprep.subr.bf16.mxu0 %v9515_v15  ;;  %9051 = vmatprep.subr.bf16.mxu1 %v9515_v15  ;;  %v9521_v29 = vld [vmem:[%s11042_s24 + $0x64] ss:$12 sps:$4 sm:$0xff]   ;;  %v9523_v30 = vld [vmem:[%s11042_s24 + $0x60] ss:$12 sps:$4 sm:$0xff]  }
  0xe5   : > { %837 = vadd.xlane.f32.xlu0 %v11170_v38  ;;  %839 = vadd.xlane.f32.xlu1 %v11173_v39 }
  0xe6   : > { %1433 = vmatpush1.bf16.msra.mxu0 %v9517_v16  ;;  %9059 = vmatpush1.bf16.msra.mxu1 %v9517_v16 }
  0xe7   : > { %1434 = vmatprep.subr.bf16.mxu0 %v9518_v22  ;;  %9052 = vmatprep.subr.bf16.mxu1 %v9518_v22 }
  0xe9   : > { %841 = vadd.xlane.f32.xlu0 %v11178_v40  ;;  %843 = vadd.xlane.f32.xlu1 %v11181_v41 }
  0xea   : > { %1435 = vmatpush1.bf16.msra.mxu0 %v9520_v23  ;;  %9060 = vmatpush1.bf16.msra.mxu1 %v9520_v23  ;;  %v14983_v23 = vmov 0  }
  0xeb   : > { %1436 = vmatprep.subr.bf16.mxu0 %v9521_v29  ;;  %9053 = vmatprep.subr.bf16.mxu1 %v9521_v29 }
  0xec   : > { %1462 = vmatprep.mubr.bf16.mxu0 %v14983_v23  ;;  %1582 = vmatprep.mubr.bf16.mxu1 %v14983_v23 }
  0xed   : > { %845 = vadd.xlane.f32.xlu0 %v11186_v42  ;;  %847 = vadd.xlane.f32.xlu1 %v11191_v43 }
  0xee   : > { %1437 = vmatpush1.bf16.msra.mxu0 %v9523_v30  ;;  %9061 = vmatpush1.bf16.msra.mxu1 %v9523_v30 }
  0xf1   : > { %849 = vadd.xlane.f32.xlu0 %v11194_v44  ;;  %851 = vadd.xlane.f32.xlu1 %v11197_v45 }
  0xf5   : > { %853 = vadd.xlane.f32.xlu0 %v11202_v46  ;;  %855 = vadd.xlane.f32.xlu1 %v11207_v47 }
  0xf9   : > { %873 = vadd.xlane.f32.xlu0 %v11210_v48  ;;  %875 = vadd.xlane.f32.xlu1 %v11215_v49 }
  0xfd   : > { %877 = vadd.xlane.f32.xlu0 %v11218_v50  ;;  %879 = vadd.xlane.f32.xlu1 %v11221_v51 }
 0x162   : > { %v826_v54 = vpop.xlane.xlu0 %825  ;;  %v830_v55 = vpop.xlane.xlu1 %829 }
 0x163   : > { %v890_v56 = vmul.f32 0.0078125, %v826_v54  ;;  %v892_v58 = vmul.f32 0.0078125, %v830_v55  ;;  %v11301_v54 = vld [vmem:[%s11092_s22 + $0x90] sm:$0xff] }
 0x164   : > { %v9527_v55 = vld [vmem:[%s11042_s24 + $0x34] ss:$12 sps:$4 sm:$0xff]  }
 0x165   : > { %v11229_v57 = vsub.f32 %v791_v32, %v890_v56  ;;  %v11235_v1 = vsub.f32 %v793_v33, %v892_v58 }
 0x166   : > { %v828_v59 = vpop.xlane.xlu0 %827  ;;  %v832_v60 = vpop.xlane.xlu1 %831 }
 0x167   : > { %v891_v61 = vmul.f32 0.0078125, %v828_v59  ;;  %v954_v62 = vmul.f32 %v11229_v57, %v11229_v57  ;;  %v893_v0 = vmul.f32 0.0078125, %v832_v60  ;;  %v956_v5 = vmul.f32 %v11235_v1, %v11235_v1  ;;  %v9529_v59 = vld [vmem:[%s11042_s24 + $0x30] ss:$12 sps:$4 sm:$0xff]  }
 0x169   : > { %986 = vadd.xlane.f32.xlu0 %v954_v62  ;;  %v11233_v63 = vsub.f32 %v792_v34, %v891_v61  ;;  %v11245_v7 = vsub.f32 %v794_v35, %v893_v0  ;;  %v11290_v34 = vld [vmem:[%s11092_s22 + $0x88] sm:$0xff]  ;;  %v11312_v62 = vld [vmem:[%s11092_s22 + $0x98] sm:$0xff] }
 0x16a   : > { %v834_v3 = vpop.xlane.xlu0 %833  ;;  %v836_v9 = vpop.xlane.xlu1 %835  ;;  %v9530_v0 = vld [vmem:[%s11042_s24 + $0x1c] ss:$12 sps:$4 sm:$0xff]  }
 0x16b   : > { %v955_v4 = vmul.f32 %v11233_v63, %v11233_v63  ;;  %v894_v6 = vmul.f32 0.0078125, %v834_v3  ;;  %v957_v10 = vmul.f32 %v11245_v7, %v11245_v7  ;;  %v895_v11 = vmul.f32 0.0078125, %v836_v9  ;;  %v11323_v9 = vld [vmem:[%s11092_s22 + $0xa0] sm:$0xff] }
 0x16d   : > { %881 = vadd.xlane.f32.xlu0 %v11238_v2  ;;  %988 = vadd.xlane.f32.xlu1 %v955_v4  ;;  %v11254_v12 = vsub.f32 %v11164_v36, %v894_v6  ;;  %v11265_v19 = vsub.f32 %v11167_v37, %v895_v11  ;;  %v9524_v36 = vld [vmem:[%s11042_s24 + $0x4c] ss:$12 sps:$4 sm:$0xff]   ;;  %v9533_v11 = vld [vmem:[%s11042_s24 + $0x4] ss:$12 sps:$4 sm:$0xff]  }
 0x16e   : > { %v838_v14 = vpop.xlane.xlu0 %837  ;;  %v840_v21 = vpop.xlane.xlu1 %839  ;;  %1438 = vmatprep.subr.bf16.mxu0 %v9524_v36  ;;  %9054 = vmatprep.subr.bf16.mxu1 %v9524_v36  ;;  %v9532_v4 = vld [vmem:[%s11042_s24 + $0x18] ss:$12 sps:$4 sm:$0xff]  }
 0x16f   : > { %v958_v17 = vmul.f32 %v11254_v12, %v11254_v12  ;;  %v896_v18 = vmul.f32 0.0078125, %v838_v14  ;;  %v959_v24 = vmul.f32 %v11265_v19, %v11265_v19  ;;  %v897_v25 = vmul.f32 0.0078125, %v840_v21  ;;  %v9535_v14 = vld [vmem:[%s11042_s24] ss:$12 sps:$4 sm:$0xff]  }
 0x171   : > { %990 = vadd.xlane.f32.xlu0 %v956_v5  ;;  %883 = vadd.xlane.f32.xlu1 %v11248_v8  ;;  %v11276_v26 = vsub.f32 %v11170_v38, %v896_v18  ;;  %v11287_v33 = vsub.f32 %v11173_v39, %v897_v25  ;;  %v9526_v38 = vld [vmem:[%s11042_s24 + $0x48] ss:$12 sps:$4 sm:$0xff]  }
 0x172   : > { %v842_v28 = vpop.xlane.xlu0 %841  ;;  %v844_v35 = vpop.xlane.xlu1 %843  ;;  %1439 = vmatpush1.bf16.msra.mxu0 %v9526_v38  ;;  %9062 = vmatpush1.bf16.msra.mxu1 %v9526_v38 }
 0x173   : > { %v960_v31 = vmul.f32 %v11276_v26, %v11276_v26  ;;  %v898_v32 = vmul.f32 0.0078125, %v842_v28  ;;  %v961_v52 = vmul.f32 %v11287_v33, %v11287_v33  ;;  %v899_v39 = vmul.f32 0.0078125, %v844_v35  ;;  %1440 = vmatprep.subr.bf16.mxu0 %v9527_v55  ;;  %9055 = vmatprep.subr.bf16.mxu1 %v9527_v55  ;;  %v11345_v28 = vld [vmem:[%s11092_s22 + $0xb0] sm:$0xff] }
 0x175   : > { %885 = vadd.xlane.f32.xlu0 %v11257_v13  ;;  %992 = vadd.xlane.f32.xlu1 %v957_v10  ;;  %v11298_v53 = vsub.f32 %v11178_v40, %v898_v32  ;;  %v11309_v61 = vsub.f32 %v11181_v41, %v899_v39 }
 0x176   : > { %v846_v37 = vpop.xlane.xlu0 %845  ;;  %v848_v56 = vpop.xlane.xlu1 %847  ;;  %1441 = vmatpush1.bf16.msra.mxu0 %v9529_v59  ;;  %9063 = vmatpush1.bf16.msra.mxu1 %v9529_v59 }
 0x177   : > { %v962_v60 = vmul.f32 %v11298_v53, %v11298_v53  ;;  %v900_v40 = vmul.f32 0.0078125, %v846_v37  ;;  %v963_v5 = vmul.f32 %v11309_v61, %v11309_v61  ;;  %v901_v41 = vmul.f32 0.0078125, %v848_v56  ;;  %1442 = vmatprep.subr.bf16.mxu0 %v9530_v0  ;;  %9056 = vmatprep.subr.bf16.mxu1 %v9530_v0  ;;  %v11357_v37 = vld [vmem:[%s11092_s22 + $0xb8] sm:$0xff] }
 0x179   : > { %887 = vadd.xlane.f32.xlu1 %v11268_v20  ;;  %994 = vadd.xlane.f32.xlu0 %v958_v17  ;;  %v11320_v6 = vsub.f32 %v11186_v42, %v900_v40  ;;  %v11331_v17 = vsub.f32 %v11191_v43, %v901_v41  ;;  %v11334_v42 = vld [vmem:[%s11092_s22 + $0xa8] sm:$0xff] }
 0x17a   : > { %v850_v58 = vpop.xlane.xlu0 %849  ;;  %v852_v3 = vpop.xlane.xlu1 %851  ;;  %1443 = vmatpush1.bf16.msra.mxu0 %v9532_v4  ;;  %9064 = vmatpush1.bf16.msra.mxu1 %v9532_v4 }
 0x17b   : > { %v964_v15 = vmul.f32 %v11320_v6, %v11320_v6  ;;  %v902_v16 = vmul.f32 0.0078125, %v850_v58  ;;  %1444 = vmatprep.subr.bf16.mxu0 %v9533_v11  ;;  %9057 = vmatprep.subr.bf16.mxu1 %v9533_v11  ;;  %v903_v21 = vmul.f32 0.0078125, %v852_v3  ;;  %v965_v43 = vmul.f32 %v11331_v17, %v11331_v17 }
 0x17d   : > { %996 = vadd.xlane.f32.xlu1 %v959_v24  ;;  %857 = vadd.xlane.f32.xlu0 %v11279_v27  ;;  %v11342_v25 = vsub.f32 %v11194_v44, %v902_v16  ;;  %v11348_v30 = vsub.f32 %v11197_v45, %v903_v21 }
 0x17e   : > { %v854_v10 = vpop.xlane.xlu0 %853  ;;  %v856_v18 = vpop.xlane.xlu1 %855  ;;  %1445 = vmatpush1.bf16.msra.mxu0 %v9535_v14  ;;  %9065 = vmatpush1.bf16.msra.mxu1 %v9535_v14 }
 0x17f   : > { %v904_v24 = vmul.f32 0.0078125, %v854_v10  ;;  %v905_v29 = vmul.f32 0.0078125, %v856_v18  ;;  %v966_v32 = vmul.f32 %v11342_v25, %v11342_v25  ;;  %v967_v38 = vmul.f32 %v11348_v30, %v11348_v30 }
 0x181   : > { %859 = vadd.xlane.f32.xlu1 %v11290_v34  ;;  %998 = vadd.xlane.f32.xlu0 %v960_v31  ;;  %v11354_v36 = vsub.f32 %v11202_v46, %v904_v24  ;;  %v11362_v45 = vsub.f32 %v11207_v47, %v905_v29 }
 0x182   : > { %v874_v22 = vpop.xlane.xlu0 %873  ;;  %v876_v31 = vpop.xlane.xlu1 %875 }
 0x183   : > { %v914_v35 = vmul.f32 0.0078125, %v874_v22  ;;  %v915_v39 = vmul.f32 0.0078125, %v876_v31  ;;  %v969_v58 = vmul.f32 %v11362_v45, %v11362_v45 }
 0x185   : > { %1000 = vadd.xlane.f32.xlu1 %v961_v52  ;;  %861 = vadd.xlane.f32.xlu0 %v11301_v54  ;;  %v968_v52 = vmul.f32 %v11354_v36, %v11354_v36  ;;  %v11368_v46 = vsub.f32 %v11210_v48, %v914_v35 }
 0x186   : > { %v878_v44 = vpop.xlane.xlu0 %877  ;;  %v880_v56 = vpop.xlane.xlu1 %879 }
 0x187   : > { %v916_v55 = vmul.f32 0.0078125, %v878_v44  ;;  %v978_v47 = vmul.f32 %v11368_v46, %v11368_v46  ;;  %v917_v59 = vmul.f32 0.0078125, %v880_v56 }
 0x189   : > { %863 = vadd.xlane.f32.xlu1 %v11312_v62  ;;  %1002 = vadd.xlane.f32.xlu0 %v962_v60  ;;  %v11375_v60 = vsub.f32 %v11215_v49, %v915_v39  ;;  %v11378_v40 = vsub.f32 %v11218_v50, %v916_v55  ;;  %v11385_v3 = vsub.f32 %v11221_v51, %v917_v59 }
 0x18b   : > { %v979_v48 = vmul.f32 %v11375_v60, %v11375_v60  ;;  %v980_v0 = vmul.f32 %v11378_v40, %v11378_v40  ;;  %v981_v49 = vmul.f32 %v11385_v3, %v11385_v3 }
 0x18d   : > { %1004 = vadd.xlane.f32.xlu1 %v963_v5  ;;  %865 = vadd.xlane.f32.xlu0 %v11323_v9 }
 0x191   : > { %867 = vadd.xlane.f32.xlu1 %v11334_v42  ;;  %1006 = vadd.xlane.f32.xlu0 %v964_v15 }
 0x195   : > { %1008 = vadd.xlane.f32.xlu1 %v965_v43  ;;  %869 = vadd.xlane.f32.xlu0 %v11345_v28 }
 0x199   : > { %871 = vadd.xlane.f32.xlu1 %v11357_v37  ;;  %1010 = vadd.xlane.f32.xlu0 %v966_v32 }
 0x19d   : > { %1012 = vadd.xlane.f32.xlu1 %v967_v38  ;;  %1014 = vadd.xlane.f32.xlu0 %v968_v52 }
 0x1a1   : > { %1016 = vadd.xlane.f32.xlu1 %v969_v58  ;;  %1034 = vadd.xlane.f32.xlu0 %v978_v47 }
 0x1a5   : > { %1036 = vadd.xlane.f32.xlu1 %v979_v48  ;;  %1038 = vadd.xlane.f32.xlu0 %v980_v0 }
 0x1a9   : > { %1040 = vadd.xlane.f32.xlu1 %v981_v49 }
 0x1f2   : > { %v987_v4 = vpop.xlane.xlu0 %986 }
 0x1f3   : > { %v1050_v50 = vmul.f32 0.0078125, %v987_v4 }
 0x1f5   : > { %v1082_v5 = vadd.f32 1e-05, %v1050_v50 }
 0x1f6   : > { %v989_v41 = vpop.xlane.xlu1 %988  ;;  %v882_v10 = vpop.xlane.xlu0 %881 }
 0x1f7   : > { %9592 = vrsqrt.f32 %v1082_v5  ;;  %v1051_v11 = vmul.f32 0.0078125, %v989_v41  ;;  %v918_v14 = vmul.f32 0.0078125, %v882_v10  ;;  %v11412_v41 = vld [vmem:[%s15200_s3] ss:$0 sm:$0xff]  ;;  %s10560_s3 = scalar_lea.vmem %s14879_s15, 4096 }
 0x1f8   : > { %p10561_p4 = scmp.ne.s32.totalorder %s14879_s15, %s10560_s3  ;;  %p10568_p10 = scmp.lt.s32.totalorder %s10566_s13, %s10560_s3 }
 0x1f9   : > { %v1083_v15 = vadd.f32 1e-05, %v1051_v11  ;;  %v11390_v16 = vsub.f32 %v11238_v2, %v918_v14 }
 0x1fa   : > { %v884_v51 = vpop.xlane.xlu1 %883  ;;  %v991_v18 = vpop.xlane.xlu0 %990  ;;  %p10562_p6 = pnand %p10561_p4, %p15593_p0  ;;  %p10569_p11 = por %p10568_p10, %p10567_p8 }
 0x1fb   : > { %9594 = vrsqrt.f32 %v1083_v15  ;;  %v919_v21 = vmul.f32 0.0078125, %v884_v51  ;;  %v1052_v22 = vmul.f32 0.0078125, %v991_v18  ;;  %v982_v43 = vmul.f32 %v11390_v16, %v11390_v16 }
 0x1fc   : > { %p10563_p2 = pneg %p10562_p6 }
 0x1fd   : > { %v1084_v24 = vadd.f32 1e-05, %v1052_v22  ;;  %1042 = vadd.xlane.f32.xlu0 %v982_v43  ;;  %v11395_v29 = vsub.f32 %v11248_v8, %v919_v21  ;;  %v11426_v43 = vld [vmem:[%s15202_s11] ss:$0 sm:$0xff] }
 0x1fe   : > { %v993_v31 = vpop.xlane.xlu1 %992  ;;  %v886_v32 = vpop.xlane.xlu0 %885  ;;  %p10570_p1 = pnand %p10569_p11, %p10563_p2 }
 0x1ff   : > { %9596 = vrsqrt.f32 %v1084_v24  ;;  %v1053_v35 = vmul.f32 0.0078125, %v993_v31  ;;  %v920_v44 = vmul.f32 0.0078125, %v886_v32  ;;  %v983_v2 = vmul.f32 %v11395_v29, %v11395_v29 }
 0x201   : > { %v1085_v38 = vadd.f32 1e-05, %v1053_v35  ;;  %1044 = vadd.xlane.f32.xlu1 %v983_v2  ;;  %v11400_v52 = vsub.f32 %v11257_v13, %v920_v44 }
 0x202   : > { %v888_v39 = vpop.xlane.xlu1 %887  ;;  %v995_v55 = vpop.xlane.xlu0 %994 }
 0x203   : > { %9598 = vrsqrt.f32 %v1085_v38  ;;  %v921_v56 = vmul.f32 0.0078125, %v888_v39  ;;  %v1054_v8 = vmul.f32 0.0078125, %v995_v55  ;;  %v984_v58 = vmul.f32 %v11400_v52, %v11400_v52 }
 0x204   : > { %v9593_v47 = vpop.eup %9592 }
 0x205   : > { %v1086_v59 = vadd.f32 1e-05, %v1054_v8  ;;  %1046 = vadd.xlane.f32.xlu0 %v984_v58  ;;  %v11405_v48 = vsub.f32 %v11268_v20, %v921_v56  ;;  %v1146_v13 = vmul.f32 %v9593_v47, %v11229_v57 }
 0x206   : > { %v997_v0 = vpop.xlane.xlu1 %996  ;;  %v858_v49 = vpop.xlane.xlu0 %857 }
 0x207   : > { %9600 = vrsqrt.f32 %v1086_v59  ;;  %v1055_v4 = vmul.f32 0.0078125, %v997_v0  ;;  %v906_v50 = vmul.f32 0.0078125, %v858_v49  ;;  %v985_v5 = vmul.f32 %v11405_v48, %v11405_v48 }
 0x208   : > { %v9595_v10 = vpop.eup %9594  ;;  %v1184_v51 = vmul.f32 %v11412_v41, %v1146_v13 }
 0x209   : > { %v1087_v11 = vadd.f32 1e-05, %v1055_v4  ;;  %1048 = vadd.xlane.f32.xlu1 %v985_v5  ;;  %v11415_v20 = vsub.f32 %v11279_v27, %v906_v50  ;;  %v1147_v14 = vmul.f32 %v9595_v10, %v11233_v63  ;;  %v11450_v10 = vld [vmem:[%s11042_s24 + $0xb0] ss:$12 sps:$4 sm:$0xff]  }
 0x20a   : > { %v860_v15 = vpop.xlane.xlu1 %859  ;;  %v999_v57 = vpop.xlane.xlu0 %998  ;;  %v1222_v44 = vadd.f32 %v11426_v43, %v1184_v51  ;;  %8442 = vmatprep.subr.bf16.mxu1 %v11450_v10 }
 0x20b   : > { %9602 = vrsqrt.f32 %v1087_v11  ;;  %v907_v18 = vmul.f32 0.0078125, %v860_v15  ;;  %v1056_v21 = vmul.f32 0.0078125, %v999_v57  ;;  %v970_v22 = vmul.f32 %v11415_v20, %v11415_v20 }
 0x20c   : > { %v9597_v27 = vpop.eup %9596  ;;  %v1185_v24 = vmul.f32 %v11412_v41, %v1147_v14 }
 0x20d   : > { %v1088_v63 = vadd.f32 1e-05, %v1056_v21  ;;  %1018 = vadd.xlane.f32.xlu0 %v970_v22  ;;  %v11430_v31 = vsub.f32 %v11290_v34, %v907_v18  ;;  %v1148_v38 = vmul.f32 %v9597_v27, %v11235_v1 }
 0x20e   : > { %v1001_v32 = vpop.xlane.xlu1 %1000  ;;  %v862_v35 = vpop.xlane.xlu0 %861  ;;  %v1223_v2 = vadd.f32 %v11426_v43, %v1185_v24 }
 0x20f   : > { %9604 = vrsqrt.f32 %v1088_v63  ;;  %v1057_v39 = vmul.f32 0.0078125, %v1001_v32  ;;  %v908_v55 = vmul.f32 0.0078125, %v862_v35  ;;  %v971_v56 = vmul.f32 %v11430_v31, %v11430_v31 }
 0x210   : > { %v9599_v8 = vpop.eup %9598  ;;  %v11437_v58 = vpack.c.bf16 %v1223_v2, %v1222_v44  ;;  %v1186_v49 = vmul.f32 %v11412_v41, %v1148_v38 }
 0x211   : > { %v1089_v34 = vadd.f32 1e-05, %v1057_v39  ;;  %1020 = vadd.xlane.f32.xlu1 %v971_v56  ;;  %v11440_v47 = vsub.f32 %v11301_v54, %v908_v55  ;;  %v1149_v59 = vmul.f32 %v9599_v8, %v11245_v7 }
 0x212   : > { %1463 = vmatmul.mubr.bf16.vlgmr.msra.gmra.mxu0 %v11437_v58  ;;  %v864_v1 = vpop.xlane.xlu1 %863  ;;  %v1003_v0 = vpop.xlane.xlu0 %1002  ;;  %v1224_v57 = vadd.f32 %v11426_v43, %v1186_v49 }
 0x213   : > { %9606 = vrsqrt.f32 %v1089_v34  ;;  %v909_v13 = vmul.f32 0.0078125, %v864_v1  ;;  %v1058_v4 = vmul.f32 0.0078125, %v1003_v0  ;;  %v972_v50 = vmul.f32 %v11440_v47, %v11440_v47  ;;  %1472 = vmatprep.mubr.bf16.mxu0 %v14983_v23 }
 0x214   : > { %v9601_v5 = vpop.eup %9600  ;;  %v1187_v54 = vmul.f32 %v11412_v41, %v1149_v59 }
 0x215   : > { %v1090_v7 = vadd.f32 1e-05, %v1058_v4  ;;  %1022 = vadd.xlane.f32.xlu0 %v972_v50  ;;  %v11453_v11 = vsub.f32 %v11312_v62, %v909_v13  ;;  %v1150_v18 = vmul.f32 %v9601_v5, %v11254_v12 }
 0x216   : > { %v1005_v14 = vpop.xlane.xlu1 %1004  ;;  %v866_v15 = vpop.xlane.xlu0 %865  ;;  %v1225_v51 = vadd.f32 %v11426_v43, %v1187_v54 }
 0x217   : > { %9608 = vrsqrt.f32 %v1090_v7  ;;  %v1059_v21 = vmul.f32 0.0078125, %v1005_v14  ;;  %v910_v22 = vmul.f32 0.0078125, %v866_v15  ;;  %v973_v27 = vmul.f32 %v11453_v11, %v11453_v11 }
 0x218   : > { %v9603_v24 = vpop.eup %9602  ;;  %v11461_v63 = vpack.c.bf16 %v1225_v51, %v1224_v57  ;;  %v1188_v2 = vmul.f32 %v11412_v41, %v1150_v18 }
 0x219   : > { %v1091_v62 = vadd.f32 1e-05, %v1059_v21  ;;  %1024 = vadd.xlane.f32.xlu1 %v973_v27  ;;  %v11464_v32 = vsub.f32 %v11323_v9, %v910_v22  ;;  %v1151_v35 = vmul.f32 %v9603_v24, %v11265_v19 }
 0x21a   : > { %1473 = vmatmul.mubr.bf16.gmra.mxu0 %v11461_v63  ;;  %v868_v12 = vpop.xlane.xlu1 %867  ;;  %v1007_v44 = vpop.xlane.xlu0 %1006  ;;  %v1226_v1 = vadd.f32 %v11426_v43, %v1188_v2 }
 0x21b   : > { %9610 = vrsqrt.f32 %v1091_v62  ;;  %v911_v38 = vmul.f32 0.0078125, %v868_v12  ;;  %v1060_v39 = vmul.f32 0.0078125, %v1007_v44  ;;  %v974_v55 = vmul.f32 %v11464_v32, %v11464_v32  ;;  %1482 = vmatprep.mubr.bf16.mxu0 %v14983_v23 }
 0x21c   : > { %v9605_v56 = vpop.eup %9604  ;;  %v1189_v9 = vmul.f32 %v11412_v41, %v1151_v35 }
 0x21d   : > { %v1092_v8 = vadd.f32 1e-05, %v1060_v39  ;;  %1026 = vadd.xlane.f32.xlu0 %v974_v55  ;;  %v11474_v19 = vsub.f32 %v11334_v42, %v911_v38  ;;  %v1152_v49 = vmul.f32 %v9605_v56, %v11276_v26 }
 0x21e   : > { %v1009_v34 = vpop.xlane.xlu1 %1008  ;;  %v870_v59 = vpop.xlane.xlu0 %869  ;;  %v1227_v0 = vadd.f32 %v11426_v43, %v1189_v9 }
 0x21f   : > { %9612 = vrsqrt.f32 %v1092_v8  ;;  %v1061_v13 = vmul.f32 0.0078125, %v1009_v34  ;;  %v912_v4 = vmul.f32 0.0078125, %v870_v59  ;;  %v975_v50 = vmul.f32 %v11474_v19, %v11474_v19 }
 0x220   : > { %v9607_v5 = vpop.eup %9606  ;;  %v11481_v54 = vpack.c.bf16 %v1227_v0, %v1226_v1  ;;  %v1190_v57 = vmul.f32 %v11412_v41, %v1152_v49 }
 0x221   : > { %v1093_v7 = vadd.f32 1e-05, %v1061_v13  ;;  %1028 = vadd.xlane.f32.xlu1 %v975_v50  ;;  %v11484_v42 = vsub.f32 %v11345_v28, %v912_v4  ;;  %v1153_v14 = vmul.f32 %v9607_v5, %v11287_v33 }
 0x222   : > { %1483 = vmatmul.mubr.bf16.gmra.mxu0 %v11481_v54  ;;  %v872_v15 = vpop.xlane.xlu1 %871  ;;  %v1011_v26 = vpop.xlane.xlu0 %1010  ;;  %v1228_v12 = vadd.f32 %v11426_v43, %v1190_v57 }
 0x223   : > { %9614 = vrsqrt.f32 %v1093_v7  ;;  %v913_v51 = vmul.f32 0.0078125, %v872_v15  ;;  %v1062_v18 = vmul.f32 0.0078125, %v1011_v26  ;;  %v976_v21 = vmul.f32 %v11484_v42, %v11484_v42  ;;  %1492 = vmatprep.mubr.bf16.mxu0 %v14983_v23 }
 0x224   : > { %v9609_v22 = vpop.eup %9608  ;;  %v1191_v28 = vmul.f32 %v11412_v41, %v1153_v14 }
 0x225   : > { %v1094_v27 = vadd.f32 1e-05, %v1062_v18  ;;  %1030 = vadd.xlane.f32.xlu0 %v976_v21  ;;  %v11494_v33 = vsub.f32 %v11357_v37, %v913_v51  ;;  %v1154_v24 = vmul.f32 %v9609_v22, %v11298_v53 }
 0x226   : > { %v1013_v62 = vpop.xlane.xlu1 %1012  ;;  %v1015_v35 = vpop.xlane.xlu0 %1014  ;;  %v1229_v44 = vadd.f32 %v11426_v43, %v1191_v28 }
 0x227   : > { %9616 = vrsqrt.f32 %v1094_v27  ;;  %v1063_v2 = vmul.f32 0.0078125, %v1013_v62  ;;  %v1064_v38 = vmul.f32 0.0078125, %v1015_v35  ;;  %v977_v39 = vmul.f32 %v11494_v33, %v11494_v33 }
 0x228   : > { %v9611_v55 = vpop.eup %9610  ;;  %v11501_v56 = vpack.c.bf16 %v1229_v44, %v1228_v12  ;;  %v1192_v37 = vmul.f32 %v11412_v41, %v1154_v24 }
 0x229   : > { %v1095_v9 = vadd.f32 1e-05, %v1063_v2  ;;  %1032 = vadd.xlane.f32.xlu1 %v977_v39  ;;  %v1155_v53 = vmul.f32 %v9611_v55, %v11309_v61  ;;  %v1096_v8 = vadd.f32 1e-05, %v1064_v38 }
 0x22a   : > { %1493 = vmatmul.mubr.bf16.gmra.mxu0 %v11501_v56  ;;  %v1017_v34 = vpop.xlane.xlu1 %1016  ;;  %v1035_v59 = vpop.xlane.xlu0 %1034  ;;  %v1230_v4 = vadd.f32 %v11426_v43, %v1192_v37 }
 0x22b   : > { %9618 = vrsqrt.f32 %v1095_v9  ;;  %v1065_v1 = vmul.f32 0.0078125, %v1017_v34  ;;  %v1074_v0 = vmul.f32 0.0078125, %v1035_v59  ;;  %1502 = vmatprep.mubr.bf16.mxu0 %v14983_v23  ;;  %v1193_v49 = vmul.f32 %v11412_v41, %v1155_v53 }
 0x22c   : > { %v9613_v13 = vpop.eup %9612  ;;  %9620 = vrsqrt.f32 %v1096_v8 }
 0x22d   : > { %v1097_v50 = vadd.f32 1e-05, %v1065_v1  ;;  %v1106_v5 = vadd.f32 1e-05, %v1074_v0  ;;  %v1231_v7 = vadd.f32 %v11426_v43, %v1193_v49  ;;  %v1156_v61 = vmul.f32 %v9613_v13, %v11320_v6 }
 0x22e   : > { %v1037_v14 = vpop.xlane.xlu1 %1036  ;;  %v1039_v15 = vpop.xlane.xlu0 %1038 }
 0x22f   : > { %9622 = vrsqrt.f32 %v1097_v50  ;;  %v1075_v26 = vmul.f32 0.0078125, %v1037_v14  ;;  %v1076_v57 = vmul.f32 0.0078125, %v1039_v15  ;;  %v11511_v51 = vpack.c.bf16 %v1231_v7, %v1230_v4 }
 0x230   : > { %v9615_v18 = vpop.eup %9614  ;;  %9624 = vrsqrt.f32 %v1106_v5  ;;  %v1194_v21 = vmul.f32 %v11412_v41, %v1156_v61 }
 0x231   : > { %v1107_v22 = vadd.f32 1e-05, %v1075_v26  ;;  %v1108_v28 = vadd.f32 1e-05, %v1076_v57  ;;  %v1157_v27 = vmul.f32 %v9615_v18, %v11331_v17 }
 0x232   : > { %1503 = vmatmul.mubr.bf16.gmra.mxu0 %v11511_v51  ;;  %v1041_v24 = vpop.xlane.xlu1 %1040  ;;  %v1232_v12 = vadd.f32 %v11426_v43, %v1194_v21 }
 0x233   : > { %9626 = vrsqrt.f32 %v1107_v22  ;;  %v1077_v6 = vmul.f32 0.0078125, %v1041_v24  ;;  %1512 = vmatprep.mubr.bf16.mxu0 %v14983_v23  ;;  %v1195_v62 = vmul.f32 %v11412_v41, %v1157_v27 }
 0x234   : > { %v9617_v35 = vpop.eup %9616  ;;  %9628 = vrsqrt.f32 %v1108_v28  ;;  %v9537_v28 = vld [vmem:[%s11042_s24 + $0x98] ss:$12 sps:$4 sm:$0xff]  }
 0x235   : > { %v1109_v44 = vadd.f32 1e-05, %v1077_v6  ;;  %v1233_v2 = vadd.f32 %v11426_v43, %v1195_v62  ;;  %v1158_v38 = vmul.f32 %v9617_v35, %v11342_v25  ;;  %v9539_v62 = vld [vmem:[%s11042_s24 + $0x68] ss:$12 sps:$4 sm:$0xff]   ;;  %v9541_v35 = vld [vmem:[%s11042_s24 + $0x38] ss:$12 sps:$4 sm:$0xff]  }
 0x237   : > { %9630 = vrsqrt.f32 %v1109_v44  ;;  %v11521_v17 = vpack.c.bf16 %v1233_v2, %v1232_v12  ;;  %v1196_v37 = vmul.f32 %v11412_v41, %v1158_v38  ;;  %v9542_v12 = vld [vmem:[%s11042_s24 + $0x20] ss:$12 sps:$4 sm:$0xff]   ;;  %v9543_v44 = vld [vmem:[%s11042_s24 + $0x8] ss:$12 sps:$4 sm:$0xff]  }
 0x238   : > { %v9619_v39 = vpop.eup %9618 }
 0x239   : > { %v1159_v55 = vmul.f32 %v9619_v39, %v11348_v30  ;;  %v9621_v9 = vpop.eup %9620  ;;  %v1234_v59 = vadd.f32 %v11426_v43, %v1196_v37 }
 0x23a   : > { %1513 = vmatmul.mubr.bf16.gmra.mxu0 %v11521_v17  ;;  %v1160_v0 = vmul.f32 %v9621_v9, %v11354_v36 }
 0x23b   : > { %1522 = vmatprep.mubr.bf16.mxu0 %v14983_v23  ;;  %v1197_v53 = vmul.f32 %v11412_v41, %v1159_v55 }
 0x23c   : > { %v9623_v8 = vpop.eup %9622  ;;  %v1198_v61 = vmul.f32 %v11412_v41, %v1160_v0 }
 0x23d   : > { %v9625_v34 = vpop.eup %9624  ;;  %v1235_v25 = vadd.f32 %v11426_v43, %v1197_v53  ;;  %v1161_v1 = vmul.f32 %v9623_v8, %v11362_v45 }
 0x23e   : > { %v1170_v30 = vmul.f32 %v9625_v34, %v11368_v46  ;;  %v1236_v57 = vadd.f32 %v11426_v43, %v1198_v61 }
 0x23f   : > { %v11533_v49 = vpack.c.bf16 %v1235_v25, %v1234_v59  ;;  %v1199_v4 = vmul.f32 %v11412_v41, %v1161_v1 }
 0x240   : > { %v9627_v13 = vpop.eup %9626  ;;  %v1208_v5 = vmul.f32 %v11412_v41, %v1170_v30 }
 0x241   : > { %v1171_v50 = vmul.f32 %v9627_v13, %v11375_v60  ;;  %v9629_v7 = vpop.eup %9628  ;;  %v1237_v46 = vadd.f32 %v11426_v43, %v1199_v4 }
 0x242   : > { %1523 = vmatmul.mubr.bf16.gmra.mxu0 %v11533_v49  ;;  %v1246_v14 = vadd.f32 %v11426_v43, %v1208_v5  ;;  %v1172_v60 = vmul.f32 %v9629_v7, %v11378_v40 }
 0x243   : > { %1532 = vmatprep.mubr.bf16.mxu0 %v14983_v23  ;;  %v1209_v36 = vmul.f32 %v11412_v41, %v1171_v50  ;;  %v11551_v22 = vpack.c.bf16 %v1237_v46, %v1236_v57 }
 0x244   : > { %v9631_v45 = vpop.eup %9630  ;;  %v1210_v27 = vmul.f32 %v11412_v41, %v1172_v60 }
 0x245   : > { %v1247_v15 = vadd.f32 %v11426_v43, %v1209_v36  ;;  %v1173_v26 = vmul.f32 %v9631_v45, %v11385_v3  ;;  %v9538_v3 = vld [vmem:[%s11042_s24 + $0x80] ss:$12 sps:$4 sm:$0xff]  }
 0x246   : > { %v1248_v24 = vadd.f32 %v11426_v43, %v1210_v27 }
 0x247   : > { %v11548_v18 = vpack.c.bf16 %v1247_v15, %v1246_v14  ;;  %v1211_v21 = vmul.f32 %v11412_v41, %v1173_v26 }
 0x249   : > { %1583 = vmatmul.mubr.bf16.vlgmr.msra.gmra.mxu1 %v11548_v18  ;;  %v1249_v40 = vadd.f32 %v11426_v43, %v1211_v21 }
 0x24a   : > { %1533 = vmatmul.mubr.bf16.gmra.mxu0 %v11551_v22  ;;  %1592 = vmatprep.mubr.bf16.mxu1 %v14983_v23 }
 0x24b   : > { %8443 = vmatpush3.bf16.msra.mxu1 %v11450_v10  ;;  %1542 = vmatprep.mubr.bf16.mxu0 %v14983_v23  ;;  %v11563_v6 = vpack.c.bf16 %v1249_v40, %v1248_v24  ;;  %v9540_v10 = vld [vmem:[%s11042_s24 + $0x50] ss:$12 sps:$4 sm:$0xff]  }
 0x24c   : > { %8444 = vmatprep.subr.bf16.mxu1 %v9537_v28 }
 0x24f   : > { %8445 = vmatpush3.bf16.msra.mxu1 %v9537_v28 }
 0x250   : > { %8446 = vmatprep.subr.bf16.mxu1 %v9538_v3 }
 0x251   : > { %1593 = vmatmul.mubr.bf16.gmra.mxu1 %v11563_v6 }
 0x252   : > { %1602 = vmatprep.mubr.bf16.mxu1 %v14983_v23 }
 0x253   : > { %8447 = vmatpush3.bf16.msra.mxu1 %v9538_v3 }
 0x254   : > { %8448 = vmatprep.subr.bf16.mxu1 %v9539_v62 }
 0x257   : > { %8449 = vmatpush3.bf16.msra.mxu1 %v9539_v62 }
 0x258   : > { %8450 = vmatprep.subr.bf16.mxu1 %v9540_v10 }
 0x25b   : > { %8451 = vmatpush3.bf16.msra.mxu1 %v9540_v10 }
 0x25c   : > { %8452 = vmatprep.subr.bf16.mxu1 %v9541_v35 }
 0x25f   : > { %8453 = vmatpush3.bf16.msra.mxu1 %v9541_v35 }
 0x260   : > { %8454 = vmatprep.subr.bf16.mxu1 %v9542_v12 }
 0x263   : > { %8455 = vmatpush3.bf16.msra.mxu1 %v9542_v12 }
 0x264   : > { %8456 = vmatprep.subr.bf16.mxu1 %v9543_v44 }
 0x267   : > { %8457 = vmatpush3.bf16.msra.mxu1 %v9543_v44 }
 0x286   : > { %v1043_v2 = vpop.xlane.xlu0 %1042 }
 0x287   : > { %v1078_v38 = vmul.f32 0.0078125, %v1043_v2 }
 0x289   : > { %v1110_v39 = vadd.f32 1e-05, %v1078_v38 }
 0x28a   : > { %v1045_v55 = vpop.xlane.xlu1 %1044 }
 0x28b   : > { %9632 = vrsqrt.f32 %v1110_v39  ;;  %v1079_v37 = vmul.f32 0.0078125, %v1045_v55 }
 0x28d   : > { %v1111_v9 = vadd.f32 1e-05, %v1079_v37 }
 0x28e   : > { %v1047_v53 = vpop.xlane.xlu0 %1046 }
 0x28f   : > { %9634 = vrsqrt.f32 %v1111_v9  ;;  %v1080_v8 = vmul.f32 0.0078125, %v1047_v53 }
 0x291   : > { %v1112_v34 = vadd.f32 1e-05, %v1080_v8 }
 0x292   : > { %v1049_v59 = vpop.xlane.xlu1 %1048 }
 0x293   : > { %9636 = vrsqrt.f32 %v1112_v34  ;;  %v1081_v25 = vmul.f32 0.0078125, %v1049_v59 }
 0x295   : > { %v1113_v1 = vadd.f32 1e-05, %v1081_v25 }
 0x296   : > { %v1019_v0 = vpop.xlane.xlu0 %1018 }
 0x297   : > { %9638 = vrsqrt.f32 %v1113_v1  ;;  %v1066_v30 = vmul.f32 0.0078125, %v1019_v0 }
 0x298   : > { %v9633_v13 = vpop.eup %9632 }
 0x299   : > { %v1098_v4 = vadd.f32 1e-05, %v1066_v30  ;;  %v1174_v50 = vmul.f32 %v9633_v13, %v11390_v16 }
 0x29a   : > { %v1021_v5 = vpop.xlane.xlu1 %1020 }
 0x29b   : > { %9640 = vrsqrt.f32 %v1098_v4  ;;  %v1067_v7 = vmul.f32 0.0078125, %v1021_v5  ;;  %v1212_v46 = vmul.f32 %v11412_v41, %v1174_v50 }
 0x29c   : > { %v9635_v61 = vpop.eup %9634 }
 0x29d   : > { %v1099_v36 = vadd.f32 1e-05, %v1067_v7  ;;  %v1175_v45 = vmul.f32 %v9635_v61, %v11395_v29  ;;  %v1250_v21 = vadd.f32 %v11426_v43, %v1212_v46 }
 0x29e   : > { %v1023_v14 = vpop.xlane.xlu0 %1022 }
 0x29f   : > { %9642 = vrsqrt.f32 %v1099_v36  ;;  %v1068_v15 = vmul.f32 0.0078125, %v1023_v14  ;;  %v1213_v60 = vmul.f32 %v11412_v41, %v1175_v45 }
 0x2a0   : > { %v9637_v26 = vpop.eup %9636 }
 0x2a1   : > { %v1100_v57 = vadd.f32 1e-05, %v1068_v15  ;;  %v1251_v16 = vadd.f32 %v11426_v43, %v1213_v60  ;;  %v1176_v28 = vmul.f32 %v9637_v26, %v11400_v52 }
 0x2a2   : > { %v1025_v27 = vpop.xlane.xlu1 %1024 }
 0x2a3   : > { %9644 = vrsqrt.f32 %v1100_v57  ;;  %v1069_v40 = vmul.f32 0.0078125, %v1025_v27  ;;  %v11579_v3 = vpack.c.bf16 %v1251_v16, %v1250_v21  ;;  %v1214_v10 = vmul.f32 %v11412_v41, %v1176_v28 }
 0x2a4   : > { %v9639_v29 = vpop.eup %9638 }
 0x2a5   : > { %v1101_v24 = vadd.f32 1e-05, %v1069_v40  ;;  %1603 = vmatmul.mubr.bf16.gmra.mxu1 %v11579_v3  ;;  %v1177_v62 = vmul.f32 %v9639_v29, %v11405_v48  ;;  %v1252_v38 = vadd.f32 %v11426_v43, %v1214_v10 }
 0x2a6   : > { %v1027_v35 = vpop.xlane.xlu0 %1026  ;;  %1612 = vmatprep.mubr.bf16.mxu1 %v14983_v23 }
 0x2a7   : > { %9646 = vrsqrt.f32 %v1101_v24  ;;  %v1070_v12 = vmul.f32 0.0078125, %v1027_v35  ;;  %v1215_v52 = vmul.f32 %v11412_v41, %v1177_v62 }
 0x2a8   : > { %v9641_v44 = vpop.eup %9640 }
 0x2a9   : > { %v1102_v2 = vadd.f32 1e-05, %v1070_v12  ;;  %v1253_v39 = vadd.f32 %v11426_v43, %v1215_v52  ;;  %v1162_v55 = vmul.f32 %v9641_v44, %v11415_v20 }
 0x2aa   : > { %v1029_v37 = vpop.xlane.xlu1 %1028 }
 0x2ab   : > { %9648 = vrsqrt.f32 %v1102_v2  ;;  %v1071_v48 = vmul.f32 0.0078125, %v1029_v37  ;;  %v11589_v9 = vpack.c.bf16 %v1253_v39, %v1252_v38  ;;  %v1200_v59 = vmul.f32 %v11412_v41, %v1162_v55 }
 0x2ac   : > { %v9643_v53 = vpop.eup %9642 }
 0x2ad   : > { %v1103_v8 = vadd.f32 1e-05, %v1071_v48  ;;  %1613 = vmatmul.mubr.bf16.gmra.mxu1 %v11589_v9  ;;  %v1163_v34 = vmul.f32 %v9643_v53, %v11430_v31  ;;  %v1238_v13 = vadd.f32 %v11426_v43, %v1200_v59 }
 0x2ae   : > { %8458 = vmatprep.mubr.bf16.mxu1 %v11437_v58  ;;  %v1031_v25 = vpop.xlane.xlu0 %1030 }
 0x2af   : > { %9650 = vrsqrt.f32 %v1103_v8  ;;  %v1072_v1 = vmul.f32 0.0078125, %v1031_v25  ;;  %v1201_v20 = vmul.f32 %v11412_v41, %v1163_v34 }
 0x2b0   : > { %v9645_v0 = vpop.eup %9644 }
 0x2b1   : > { %v1104_v30 = vadd.f32 1e-05, %v1072_v1  ;;  %v1239_v4 = vadd.f32 %v11426_v43, %v1201_v20  ;;  %v1164_v50 = vmul.f32 %v9645_v0, %v11440_v47 }
 0x2b2   : > { %v1033_v5 = vpop.xlane.xlu1 %1032 }
 0x2b3   : > { %9652 = vrsqrt.f32 %v1104_v30  ;;  %v1073_v31 = vmul.f32 0.0078125, %v1033_v5  ;;  %v1262_v7 = vpack.c.bf16 %v1239_v4, %v1238_v13  ;;  %v1202_v45 = vmul.f32 %v11412_v41, %v1164_v50 }
 0x2b4   : > { %v9647_v61 = vpop.eup %9646 }
 0x2b5   : > { %v1105_v36 = vadd.f32 1e-05, %v1073_v31  ;;  %1543 = vmatmul.mubr.bf16.gmra.mxu0 %v1262_v7  ;;  %8459 = vmatmul.mubr.bf16.vlgmr.msra.gmra.mxu1 %v11461_v63  ;;  %v1165_v58 = vmul.f32 %v9647_v61, %v11453_v11  ;;  %v1240_v14 = vadd.f32 %v11426_v43, %v1202_v45 }
 0x2b6   : > { %8462 = vmatprep.mubr.bf16.mxu1 %v11481_v54  ;;  %1552 = vmatprep.mubr.bf16.mxu0 %v14983_v23 }
 0x2b7   : > { %9654 = vrsqrt.f32 %v1105_v36  ;;  %v1203_v47 = vmul.f32 %v11412_v41, %v1165_v58 }
 0x2b8   : > { %v9649_v46 = vpop.eup %9648 }
 0x2b9   : > { %v1241_v15 = vadd.f32 %v11426_v43, %v1203_v47  ;;  %v1166_v60 = vmul.f32 %v9649_v46, %v11464_v32 }
 0x2bb   : > { %v1263_v26 = vpack.c.bf16 %v1241_v15, %v1240_v14  ;;  %v1204_v54 = vmul.f32 %v11412_v41, %v1166_v60 }
 0x2bc   : > { %v9651_v63 = vpop.eup %9650 }
 0x2bd   : > { %1553 = vmatmul.mubr.bf16.gmra.mxu0 %v1263_v26  ;;  %8463 = vmatmul.mubr.bf16.gmra.mxu1 %v11501_v56  ;;  %v1167_v11 = vmul.f32 %v9651_v63, %v11474_v19  ;;  %v1242_v16 = vadd.f32 %v11426_v43, %v1204_v54 }
 0x2be   : > { %8466 = vmatprep.mubr.bf16.mxu1 %v11511_v51  ;;  %1562 = vmatprep.mubr.bf16.mxu0 %v14983_v23 }
 0x2bf   : > { %v1205_v57 = vmul.f32 %v11412_v41, %v1167_v11 }
 0x2c0   : > { %v9653_v21 = vpop.eup %9652 }
 0x2c1   : > { %v1243_v32 = vadd.f32 %v11426_v43, %v1205_v57  ;;  %v1168_v28 = vmul.f32 %v9653_v21, %v11484_v42 }
 0x2c3   : > { %v1264_v27 = vpack.c.bf16 %v1243_v32, %v1242_v16  ;;  %v1206_v56 = vmul.f32 %v11412_v41, %v1168_v28 }
 0x2c4   : > { %v9655_v40 = vpop.eup %9654 }
 0x2c5   : > { %1563 = vmatmul.mubr.bf16.gmra.mxu0 %v1264_v27  ;;  %8467 = vmatmul.mubr.bf16.gmra.mxu1 %v11521_v17  ;;  %v1169_v19 = vmul.f32 %v9655_v40, %v11494_v33  ;;  %v1244_v29 = vadd.f32 %v11426_v43, %v1206_v56 }
 0x2c6   : > { %8470 = vmatprep.mubr.bf16.mxu1 %v11533_v49  ;;  %1572 = vmatprep.mubr.bf16.mxu0 %v14983_v23 }
 0x2c7   : > { %v1207_v51 = vmul.f32 %v11412_v41, %v1169_v19 }
 0x2c9   : > { %v1245_v24 = vadd.f32 %v11426_v43, %v1207_v51 }
 0x2cb   : > { %v1265_v42 = vpack.c.bf16 %v1245_v24, %v1244_v29 }
 0x2cd   : > { %1573 = vmatmul.mubr.bf16.gmra.mxu0 %v1265_v42  ;;  %8471 = vmatmul.mubr.bf16.gmra.mxu1 %v11551_v22 }
 0x2ce   : > { %8474 = vmatprep.mubr.bf16.mxu1 %v1262_v7 }
 0x2d2   : > { %v1464_v17 = vpop.f32.mrf.mxu0 }
 0x2d4   : > { %v1466_v62 = vpop.f32.mrf.mxu0 }
 0x2d5   : > { %8475 = vmatmul.mubr.bf16.gmra.mxu1 %v1263_v26 }
 0x2d6   : > { %v1468_v33 = vpop.f32.mrf.mxu0  ;;  %8478 = vmatprep.mubr.bf16.mxu1 %v1264_v27 }
 0x2d7   : > { %v11645_v48 = vpack.c.bf16 %v1468_v33, %v1464_v17 }
 0x2d8   : > { %v1470_v10 = vpop.f32.mrf.mxu0 }
 0x2d9   : > { %v11626_v49 = vpack.c.bf16 %v1470_v10, %v1466_v62  ;;  %15208 = vst [vmem:[#allocation42_spill] sm:$0xff] %v11645_v48 }
 0x2da   : > { %v1474_v35 = vpop.f32.mrf.mxu0 }
 0x2db   : > { %15203 = vst [vmem:[#allocation37_spill] sm:$0xff] %v11626_v49  ;;  %2653 = vrot.lane.b32.xlu1 %v11626_v49, %s10707_s2  ;;  %v1858_v62 = vsel %vm1832_vm0, %v11626_v49, 0 }
 0x2dc   : > { %v1476_v41 = vpop.f32.mrf.mxu0 }
 0x2dd   : > { %8479 = vmatmul.mubr.bf16.gmra.mxu1 %v1265_v42 }
 0x2de   : > { %v1478_v43 = vpop.f32.mrf.mxu0  ;;  %8482 = vmatprep.mubr.bf16.mxu1 %v11548_v18 }
 0x2df   : > { %v11631_v22 = vpack.c.bf16 %v1478_v43, %v1474_v35 }
 0x2e0   : > { %v1480_v12 = vpop.f32.mrf.mxu0 }
 0x2e1   : > { %15204 = vst [vmem:[#allocation38_spill] sm:$0xff] %v11631_v22  ;;  %v11633_v52 = vpack.c.bf16 %v1480_v12, %v1476_v41 }
 0x2e2   : > { %v1484_v44 = vpop.f32.mrf.mxu0 }
 0x2e3   : > { %15205 = vst [vmem:[#allocation39_spill] sm:$0xff] %v11633_v52  ;;  %2655 = vrot.lane.b32.xlu1 %v11633_v52, %s10707_s2  ;;  %v1861_v17 = vsel %vm1832_vm0, %v11633_v52, 0 }
 0x2e4   : > { %v1486_v2 = vpop.f32.mrf.mxu0 }
 0x2e5   : > { %8483 = vmatmul.mubr.bf16.gmra.mxu1 %v11563_v6 }
 0x2e6   : > { %v1488_v38 = vpop.f32.mrf.mxu0  ;;  %8486 = vmatprep.mubr.bf16.mxu1 %v11579_v3 }
 0x2e7   : > { %v11639_v39 = vpack.c.bf16 %v1488_v38, %v1484_v44 }
 0x2e8   : > { %v1490_v55 = vpop.f32.mrf.mxu0 }
 0x2e9   : > { %15206 = vst [vmem:[#allocation40_spill] sm:$0xff] %v11639_v39  ;;  %v11641_v37 = vpack.c.bf16 %v1490_v55, %v1486_v2 }
 0x2ea   : > { %v1494_v18 = vpop.f32.mrf.mxu0 }
 0x2eb   : > { %15207 = vst [vmem:[#allocation41_spill] sm:$0xff] %v11641_v37  ;;  %2657 = vrot.lane.b32.xlu1 %v11641_v37, %s10707_s2  ;;  %v1864_v42 = vsel %vm1832_vm0, %v11641_v37, 0 }
 0x2ec   : > { %v1496_v53 = vpop.f32.mrf.mxu0 }
 0x2ed   : > { %8487 = vmatmul.mubr.bf16.gmra.mxu1 %v11589_v9 }
 0x2ee   : > { %v1498_v8 = vpop.f32.mrf.mxu0  ;;  %8506 = vmatprep.mubr.msk.bf16.mxu1 %vm1832_vm0, %v11645_v48 }
 0x2ef   : > { %v11650_v6 = vpack.c.bf16 %v1498_v8, %v1494_v18 }
 0x2f0   : > { %v1500_v3 = vpop.f32.mrf.mxu0 }
 0x2f1   : > { %15209 = vst [vmem:[#allocation43_spill] sm:$0xff] %v11650_v6  ;;  %v11652_v34 = vpack.c.bf16 %v1500_v3, %v1496_v53 }
 0x2f2   : > { %v1504_v59 = vpop.f32.mrf.mxu0 }
 0x2f3   : > { %15210 = vst [vmem:[#allocation44_spill] sm:$0xff] %v11652_v34  ;;  %2659 = vrot.lane.b32.xlu0 %v11652_v34, %s10707_s2  ;;  %v1867_v24 = vsel %vm1832_vm0, %v11652_v34, 0 }
 0x2f4   : > { %v1506_v25 = vpop.f32.mrf.mxu0 }
 0x2f6   : > { %v1508_v1 = vpop.f32.mrf.mxu0 }
 0x2f7   : > { %v11656_v20 = vpack.c.bf16 %v1508_v1, %v1504_v59 }
 0x2f8   : > { %v1510_v0 = vpop.f32.mrf.mxu0 }
 0x2f9   : > { %15211 = vst [vmem:[#allocation45_spill] sm:$0xff] %v11656_v20  ;;  %v11658_v9 = vpack.c.bf16 %v1510_v0, %v1506_v25 }
 0x2fa   : > { %v1514_v30 = vpop.f32.mrf.mxu0 }
 0x2fb   : > { %15212 = vst [vmem:[#allocation46_spill] sm:$0xff] %v11658_v9  ;;  %2661 = vrot.lane.b32.xlu1 %v11658_v9, %s10707_s2  ;;  %v1870_v29 = vsel %vm1832_vm0, %v11658_v9, 0 }
 0x2fc   : > { %v1516_v13 = vpop.f32.mrf.mxu0 }
 0x2fe   : > { %v1518_v4 = vpop.f32.mrf.mxu0 }
 0x2ff   : > { %v11662_v50 = vpack.c.bf16 %v1518_v4, %v1514_v30 }
 0x300   : > { %v1520_v5 = vpop.f32.mrf.mxu0 }
 0x301   : > { %15213 = vst [vmem:[#allocation47_spill] sm:$0xff] %v11662_v50  ;;  %v11664_v31 = vpack.c.bf16 %v1520_v5, %v1516_v13 }
 0x302   : > { %v1524_v7 = vpop.f32.mrf.mxu0 }
 0x303   : > { %15214 = vst [vmem:[#allocation48_spill] sm:$0xff] %v11664_v31  ;;  %2663 = vrot.lane.b32.xlu0 %v11664_v31, %s10707_s2  ;;  %v1873_v51 = vsel %vm1832_vm0, %v11664_v31, 0 }
 0x304   : > { %v1526_v61 = vpop.f32.mrf.mxu0 }
 0x306   : > { %v1528_v36 = vpop.f32.mrf.mxu0 }
 0x307   : > { %v11668_v58 = vpack.c.bf16 %v1528_v36, %v1524_v7 }
 0x308   : > { %v1530_v45 = vpop.f32.mrf.mxu0 }
 0x309   : > { %15215 = vst [vmem:[#allocation49_spill] sm:$0xff] %v11668_v58  ;;  %v11670_v47 = vpack.c.bf16 %v1530_v45, %v1526_v61  ;;  %v1584_v46 = vpop.f32.mrf.mxu1 }
 0x30a   : > { %v1534_v14 = vpop.f32.mrf.mxu0 }
 0x30b   : > { %15216 = vst [vmem:[#allocation50_spill] sm:$0xff] %v11670_v47  ;;  %2665 = vrot.lane.b32.xlu1 %v11670_v47, %s10707_s2  ;;  %v11674_v15 = vpop.f32.mrf.mxu1  ;;  %v1876_v56 = vsel %vm1832_vm0, %v11670_v47, 0 }
 0x30c   : > { %v1536_v60 = vpop.f32.mrf.mxu0 }
 0x30d   : > { %v1588_v26 = vpop.f32.mrf.mxu1 }
 0x30e   : > { %v1538_v63 = vpop.f32.mrf.mxu0  ;;  %v11676_v11 = vpack.c.bf16 %v1588_v26, %v1584_v46 }
 0x30f   : > { %v11678_v54 = vpack.c.bf16 %v1538_v63, %v1534_v14  ;;  %v11680_v57 = vpop.f32.mrf.mxu1 }
 0x310   : > { %15217 = vst [vmem:[#allocation51_spill] sm:$0xff] %v11676_v11  ;;  %v1540_v21 = vpop.f32.mrf.mxu0 }
 0x311   : > { %15218 = vst [vmem:[#allocation52_spill] sm:$0xff] %v11678_v54  ;;  %v11682_v16 = vpack.c.bf16 %v1540_v21, %v1536_v60  ;;  %v1594_v32 = vpop.f32.mrf.mxu1 }
 0x313   : > { %15219 = vst [vmem:[#allocation53_spill] sm:$0xff] %v11682_v16  ;;  %2667 = vrot.lane.b32.xlu0 %v11682_v16, %s10707_s2  ;;  %9066 = vmatprep.subr.msk.bf16.mxu1 %vm1832_vm0, %v11682_v16  ;;  %v1596_v28 = vpop.f32.mrf.mxu1  ;;  %v1879_v27 = vsel %vm1832_vm0, %v11682_v16, 0 }
 0x314   : > { %8491 = vmatpush3.bf16.xpose.msra.mxu1 %v1879_v27 }
 0x315   : > { %9067 = vmatprep.subr.msk.bf16.mxu1 %vm1832_vm0, %v11670_v47  ;;  %v1598_v40 = vpop.f32.mrf.mxu1 }
 0x316   : > { %v11692_v19 = vpack.c.bf16 %v1598_v40, %v1594_v32 }
 0x317   : > { %v1600_v33 = vpop.f32.mrf.mxu1 }
 0x318   : > { %15220 = vst [vmem:[#allocation54_spill] sm:$0xff] %v11692_v19  ;;  %v11766_v36 = vpack.c.bf16 %v1600_v33, %v1596_v28  ;;  %v11778_v28 = vpack.c.bf16 %v11680_v57, %v11674_v15 }
 0x31a   : > { %15226 = vst [vmem:[#allocation60_spill] sm:$0xff] %v11766_v36  ;;  %15227 = vst [vmem:[#allocation61_spill] sm:$0xff] %v11778_v28  ;;  %v2015_v15 = vsel %vm1832_vm0, %v11778_v28, 0 }
 0x31c   : > { %8493 = vmatpush3.bf16.xpose.msra.mxu1 %v1876_v56  ;;  %v2018_v56 = vsel %vm1832_vm0, %v11766_v36, 0 }
 0x31d   : > { %9068 = vmatprep.subr.msk.bf16.mxu1 %vm1832_vm0, %v11664_v31 }
 0x324   : > { %8495 = vmatpush3.bf16.xpose.msra.mxu1 %v1873_v51 }
 0x325   : > { %9069 = vmatprep.subr.msk.bf16.mxu1 %vm1832_vm0, %v11658_v9 }
 0x32c   : > { %8497 = vmatpush3.bf16.xpose.msra.mxu1 %v1870_v29 }
 0x32d   : > { %9070 = vmatprep.subr.msk.bf16.mxu1 %vm1832_vm0, %v11652_v34 }
 0x334   : > { %8499 = vmatpush3.bf16.xpose.msra.mxu1 %v1867_v24 }
 0x335   : > { %9071 = vmatprep.subr.msk.bf16.mxu1 %vm1832_vm0, %v11641_v37 }
 0x33c   : > { %8501 = vmatpush3.bf16.xpose.msra.mxu1 %v1864_v42 }
 0x33d   : > { %9072 = vmatprep.subr.msk.bf16.mxu1 %vm1832_vm0, %v11633_v52 }
 0x344   : > { %8503 = vmatpush3.bf16.xpose.msra.mxu1 %v1861_v17 }
 0x345   : > { %9073 = vmatprep.subr.msk.bf16.mxu1 %vm1832_vm0, %v11626_v49 }
 0x34c   : > { %8505 = vmatpush3.bf16.xpose.msra.mxu1 %v1858_v62 }
 0x353   : > { %8507 = vmatmul.mubr.msk.bf16.vlgmr.msra.gmra.mxu1 %vm1832_vm0, %v11631_v22 }
 0x354   : > { %8510 = vmatprep.mubr.msk.bf16.mxu1 %vm1832_vm0, %v11639_v39 }
 0x35b   : > { %8511 = vmatmul.mubr.msk.bf16.gmra.mxu1 %vm1832_vm0, %v11650_v6 }
 0x35c   : > { %8514 = vmatprep.mubr.msk.bf16.mxu1 %vm1832_vm0, %v11656_v20 }
 0x363   : > { %8515 = vmatmul.mubr.msk.bf16.gmra.mxu1 %vm1832_vm0, %v11662_v50 }
 0x364   : > { %8518 = vmatprep.mubr.msk.bf16.mxu1 %vm1832_vm0, %v11668_v58 }
 0x365   : > { %v1604_v10 = vpop.f32.mrf.mxu1 }
 0x367   : > { %v1606_v35 = vpop.f32.mrf.mxu1 }
 0x369   : > { %v1608_v41 = vpop.f32.mrf.mxu1 }
 0x36a   : > { %v11732_v43 = vpack.c.bf16 %v1608_v41, %v1604_v10 }
 0x36b   : > { %8519 = vmatmul.mubr.msk.bf16.gmra.mxu1 %vm1832_vm0, %v11678_v54  ;;  %v1610_v12 = vpop.f32.mrf.mxu1 }
 0x36c   : > { %15221 = vst [vmem:[#allocation55_spill] sm:$0xff] %v11732_v43  ;;  %v11740_v3 = vpack.c.bf16 %v1610_v12, %v1606_v35 }
 0x36d   : > { %v1614_v44 = vpop.f32.mrf.mxu1 }
 0x36e   : > { %15224 = vst [vmem:[#allocation58_spill] sm:$0xff] %v11740_v3  ;;  %v2021_v46 = vsel %vm1832_vm0, %v11740_v3, 0 }
 0x36f   : > { %v1616_v2 = vpop.f32.mrf.mxu1 }
 0x371   : > { %v1618_v38 = vpop.f32.mrf.mxu1 }
 0x372   : > { %v11736_v55 = vpack.c.bf16 %v1618_v38, %v1614_v44 }
 0x373   : > { %v1620_v18 = vpop.f32.mrf.mxu1 }
 0x374   : > { %15222 = vst [vmem:[#allocation56_spill] sm:$0xff] %v11736_v55  ;;  %v11738_v53 = vpack.c.bf16 %v1620_v18, %v1616_v2 }
 0x375   : > { %v1544_v8 = vpop.f32.mrf.mxu0  ;;  %v11742_v59 = vpop.f32.mrf.mxu1 }
 0x376   : > { %15223 = vst [vmem:[#allocation57_spill] sm:$0xff] %v11738_v53  ;;  %9074 = vmatprep.subr.msk.bf16.mxu0 %vm1832_vm0, %v11738_v53  ;;  %v2024_v25 = vsel %vm1832_vm0, %v11738_v53, 0 }
 0x377   : > { %v11748_v1 = vpop.f32.mrf.mxu0  ;;  %8523 = vmatpush3.bf16.xpose.msra.mxu0 %v2024_v25  ;;  %v11750_v0 = vpop.f32.mrf.mxu1 }
 0x378   : > { %9075 = vmatprep.subr.msk.bf16.mxu0 %vm1832_vm0, %v11740_v3 }
 0x379   : > { %v1548_v30 = vpop.f32.mrf.mxu0  ;;  %v11756_v4 = vpop.f32.mrf.mxu1 }
 0x37a   : > { %v11754_v13 = vpack.c.bf16 %v1548_v30, %v1544_v8 }
 0x37b   : > { %v11758_v5 = vpop.f32.mrf.mxu0  ;;  %v11760_v7 = vpop.f32.mrf.mxu1 }
 0x37c   : > { %15225 = vst [vmem:[#allocation59_spill] sm:$0xff] %v11754_v13  ;;  %8538 = vmatprep.mubr.msk.bf16.mxu0 %vm1832_vm0, %v11754_v13 }
 0x37d   : > { %v11764_v61 = vpop.f32.mrf.mxu0  ;;  %v8464_v45 = vpop.f32.mrf.mxu1 }
 0x37f   : > { %v1556_v14 = vpop.f32.mrf.mxu0  ;;  %8525 = vmatpush3.bf16.xpose.msra.mxu0 %v2021_v46  ;;  %v1673_v60 = vpop.f32.mrf.mxu1 }
 0x380   : > { %9076 = vmatprep.subr.msk.bf16.mxu0 %vm1832_vm0, %v11766_v36 }
 0x381   : > { %v11772_v26 = vpop.f32.mrf.mxu0  ;;  %v8465_v63 = vpop.f32.mrf.mxu1 }
 0x382   : > { %v11879_v49 = vpack.c.bf16 %v11772_v26, %v11764_v61 }
 0x383   : > { %v1560_v21 = vpop.f32.mrf.mxu0  ;;  %v1676_v32 = vpop.f32.mrf.mxu1 }
 0x384   : > { %15248 = vst [vmem:[#allocation82_spill] sm:$0xff] %v11879_v49 }
 0x385   : > { %v11774_v27 = vpop.f32.mrf.mxu0  ;;  %v8468_v40 = vpop.f32.mrf.mxu1 }
 0x387   : > { %v1566_v51 = vpop.f32.mrf.mxu0  ;;  %8527 = vmatpush3.bf16.xpose.msra.mxu0 %v2018_v56  ;;  %v1689_v29 = vpop.f32.mrf.mxu1 }
 0x388   : > { %9077 = vmatprep.subr.msk.bf16.mxu0 %vm1832_vm0, %v11778_v28 }
 0x389   : > { %v11784_v24 = vpop.f32.mrf.mxu0  ;;  %v8469_v42 = vpop.f32.mrf.mxu1 }
 0x38a   : > { %v11883_v52 = vpack.c.bf16 %v11784_v24, %v11774_v27 }
 0x38b   : > { %v1570_v17 = vpop.f32.mrf.mxu0  ;;  %v1692_v62 = vpop.f32.mrf.mxu1 }
 0x38c   : > { %v11799_v25 = vpack.c.bf16 %v1570_v17, %v1566_v51  ;;  %15249 = vst [vmem:[#allocation83_spill] sm:$0xff] %v11883_v52 }
 0x38d   : > { %v11786_v33 = vpop.f32.mrf.mxu0  ;;  %v8472_v10 = vpop.f32.mrf.mxu1 }
 0x38e   : > { %15231 = vst [vmem:[#allocation65_spill] sm:$0xff] %v11799_v25 }
 0x38f   : > { %v1576_v57 = vpop.f32.mrf.mxu0  ;;  %8529 = vmatpush3.bf16.xpose.msra.mxu0 %v2015_v15  ;;  %v1705_v35 = vpop.f32.mrf.mxu1 }
 0x391   : > { %v11790_v41 = vpop.f32.mrf.mxu0  ;;  %v8473_v12 = vpop.f32.mrf.mxu1 }
 0x392   : > { %v11792_v44 = vpack.c.bf16 %v8473_v12, %v8472_v10  ;;  %v11811_v10 = vpack.c.bf16 %v8469_v42, %v8468_v40  ;;  %v2009_v40 = vsel %vm1832_vm0, %v11799_v25, 0  ;;  %v11894_v61 = vpack.c.bf16 %v11790_v41, %v11786_v33 }
 0x393   : > { %v1580_v2 = vpop.f32.mrf.mxu0  ;;  %v1708_v18 = vpop.f32.mrf.mxu1 }
 0x394   : > { %15228 = vst [vmem:[#allocation62_spill] sm:$0xff] %v11792_v44  ;;  %v11794_v38 = vpack.c.bf16 %v1580_v2, %v1576_v57  ;;  %v11796_v8 = vpack.c.bf16 %v1708_v18, %v1705_v35  ;;  %8554 = vmatprep.subr.bf16.mxu1 %v11792_v44  ;;  %15233 = vst [vmem:[#allocation67_spill] sm:$0xff] %v11811_v10  ;;  %v11819_v57 = vpack.c.bf16 %v1692_v62, %v1689_v29 }
 0x395   : > { %v8476_v30 = vpop.f32.mrf.mxu1  ;;  %8555 = vmatpush3.bf16.msra.mxu1 %v11792_v44  ;;  %v11821_v35 = vpack.c.bf16 %v1560_v21, %v1556_v14  ;;  %v11831_v2 = vpack.c.bf16 %v8465_v63, %v8464_v45  ;;  %v11839_v62 = vpack.c.bf16 %v1676_v32, %v1673_v60  ;;  %v11843_v18 = vpack.c.bf16 %v11758_v5, %v11748_v1  ;;  %v2654_v63 = vpop.permute.xlu1 %2653 }
 0x396   : > { %15229 = vst [vmem:[#allocation63_spill] sm:$0xff] %v11794_v38  ;;  %15230 = vst [vmem:[#allocation64_spill] sm:$0xff] %v11796_v8  ;;  %9078 = vmatprep.subr.msk.bf16.mxu0 %vm1832_vm0, %v11794_v38  ;;  %v2012_v46 = vsel %vm1832_vm0, %v11794_v38, 0  ;;  %8556 = vmatprep.subr.bf16.mxu1 %v11796_v8  ;;  %v11855_v1 = vpack.c.bf16 %v11756_v4, %v11742_v59  ;;  %v2694_v41 = vsel %vm1832_vm0, %v2654_v63, 0 }
 0x397   : > { %8531 = vmatpush3.bf16.xpose.msra.mxu0 %v2012_v46  ;;  %v11807_v56 = vpop.f32.mrf.mxu1  ;;  %15236 = vst [vmem:[#allocation70_spill] sm:$0xff] %v11819_v57  ;;  %15237 = vst [vmem:[#allocation71_spill] sm:$0xff] %v11821_v35  ;;  %v2006_v45 = vsel %vm1832_vm0, %v11821_v35, 0  ;;  %v2660_v46 = vpop.permute.xlu0 %2659  ;;  %v2003_v59 = vsel %vm1832_vm0, %v11843_v18, 0 }
 0x398   : > { %15232 = vst [vmem:[#allocation66_spill] sm:$0xff] %v11807_v56  ;;  %9079 = vmatprep.subr.msk.bf16.mxu0 %vm1832_vm0, %v11799_v25  ;;  %15239 = vst [vmem:[#allocation73_spill] sm:$0xff] %v11831_v2  ;;  %v2703_v27 = vsel %vm1832_vm0, %v2660_v46, 0 }
 0x399   : > { %v8477_v51 = vpop.f32.mrf.mxu1  ;;  %8557 = vmatpush3.bf16.msra.mxu1 %v11796_v8  ;;  %15242 = vst [vmem:[#allocation76_spill] sm:$0xff] %v11839_v62  ;;  %15243 = vst [vmem:[#allocation77_spill] sm:$0xff] %v11843_v18  ;;  %v2656_v60 = vpop.permute.xlu1 %2655 }
 0x39a   : > { %v11814_v17 = vpack.c.bf16 %v8477_v51, %v8476_v30  ;;  %8558 = vmatprep.subr.bf16.mxu1 %v11811_v10  ;;  %15244 = vst [vmem:[#allocation78_spill] sm:$0xff] %v11855_v1  ;;  %15250 = vst [vmem:[#allocation84_spill] sm:$0xff] %v11894_v61  ;;  %v2697_v33 = vsel %vm1832_vm0, %v2656_v60, 0 }
 0x39b   : > { %v11817_v15 = vpop.f32.mrf.mxu1  ;;  %v2664_v32 = vpop.permute.xlu0 %2663 }
 0x39c   : > { %15234 = vst [vmem:[#allocation68_spill] sm:$0xff] %v11814_v17  ;;  %15235 = vst [vmem:[#allocation69_spill] sm:$0xff] %v11817_v15 }
 0x39d   : > { %v8480_v12 = vpop.f32.mrf.mxu1  ;;  %8559 = vmatpush3.bf16.msra.mxu1 %v11811_v10  ;;  %v2658_v4 = vpop.permute.xlu1 %2657 }
 0x39e   : > { %8560 = vmatprep.subr.bf16.mxu1 %v11819_v57  ;;  %v2700_v24 = vsel %vm1832_vm0, %v2658_v4, 0 }
 0x39f   : > { %8533 = vmatpush3.bf16.xpose.msra.mxu0 %v2009_v40  ;;  %v11827_v42 = vpop.f32.mrf.mxu1  ;;  %v2668_v23 = vpop.permute.xlu0 %2667 }
 0x3a0   : > { %15238 = vst [vmem:[#allocation72_spill] sm:$0xff] %v11827_v42  ;;  %9080 = vmatprep.subr.msk.bf16.mxu0 %vm1832_vm0, %v11821_v35 }
 0x3a1   : > { %v8481_v29 = vpop.f32.mrf.mxu1  ;;  %8561 = vmatpush3.bf16.msra.mxu1 %v11819_v57 }
 0x3a2   : > { %v11834_v14 = vpack.c.bf16 %v8481_v29, %v8480_v12  ;;  %8562 = vmatprep.subr.bf16.mxu1 %v11831_v2  ;;  %v11865_v29 = vpack.c.bf16 %v11760_v7, %v11750_v0  ;;  %v2662_v0 = vpop.permute.xlu1 %2661 }
 0x3a3   : > { %v11837_v21 = vpop.f32.mrf.mxu1 }
 0x3a4   : > { %15240 = vst [vmem:[#allocation74_spill] sm:$0xff] %v11834_v14  ;;  %15241 = vst [vmem:[#allocation75_spill] sm:$0xff] %v11837_v21 }
 0x3a5   : > { %v8484_v30 = vpop.f32.mrf.mxu1  ;;  %8563 = vmatpush3.bf16.msra.mxu1 %v11831_v2  ;;  %15246 = vst [vmem:[#allocation80_spill] sm:$0xff] %v11865_v29 }
 0x3a6   : > { %8564 = vmatprep.subr.bf16.mxu1 %v11839_v62  ;;  %v2666_v34 = vpop.permute.xlu1 %2665 }
 0x3a7   : > { %8535 = vmatpush3.bf16.xpose.msra.mxu0 %v2006_v45  ;;  %v11849_v51 = vpop.f32.mrf.mxu1  ;;  %v2712_v26 = vsel %vm1832_vm0, %v2666_v34, 0 }
 0x3a8   : > { %9081 = vmatprep.subr.msk.bf16.mxu0 %vm1832_vm0, %v11843_v18 }
 0x3a9   : > { %v8485_v5 = vpop.f32.mrf.mxu1  ;;  %8565 = vmatpush3.bf16.msra.mxu1 %v11839_v62 }
 0x3aa   : > { %v11858_v12 = vpack.c.bf16 %v8485_v5, %v8484_v30  ;;  %8566 = vmatprep.subr.bf16.mxu1 %v11855_v1 }
 0x3ab   : > { %v11861_v40 = vpop.f32.mrf.mxu1 }
 0x3ac   : > { %15245 = vst [vmem:[#allocation79_spill] sm:$0xff] %v11858_v12 }
 0x3ad   : > { %v8488_v45 = vpop.f32.mrf.mxu1  ;;  %8567 = vmatpush3.bf16.msra.mxu1 %v11855_v1 }
 0x3ae   : > { %8568 = vmatprep.subr.bf16.mxu1 %v11865_v29 }
 0x3af   : > { %8537 = vmatpush3.bf16.xpose.msra.mxu0 %v2003_v59  ;;  %v11871_v30 = vpop.f32.mrf.mxu1  ;;  %v2715_v59 = vsel %vm1832_vm0, %v2668_v23, 0 }
 0x3b0   : > { %9082 = vmatprep.subr.msk.bf16.mxu0 %vm1832_vm0, %v2668_v23  ;;  %v2709_v23 = vsel %vm1832_vm0, %v2664_v32, 0 }
 0x3b1   : > { %v8489_v5 = vpop.f32.mrf.mxu1  ;;  %8569 = vmatpush3.bf16.msra.mxu1 %v11865_v29 }
 0x3b2   : > { %v11875_v7 = vpack.c.bf16 %v8489_v5, %v8488_v45 }
 0x3b4   : > { %15247 = vst [vmem:[#allocation81_spill] sm:$0xff] %v11875_v7  ;;  %8586 = vmatprep.subr.bf16.mxu1 %v11875_v7 }
 0x3b6   : > { %8539 = vmatmul.mubr.msk.bf16.vlgmr.msra.gmra.mxu0 %vm1832_vm0, %v11879_v49 }
 0x3b7   : > { %8542 = vmatprep.mubr.msk.bf16.mxu0 %vm1832_vm0, %v11883_v52  ;;  %8619 = vmatpush3.bf16.xpose.msra.mxu0 %v2715_v59 }
 0x3b8   : > { %9083 = vmatprep.subr.msk.bf16.mxu0 %vm1832_vm0, %v2666_v34  ;;  %v2706_v34 = vsel %vm1832_vm0, %v2662_v0, 0 }
 0x3be   : > { %8543 = vmatmul.mubr.msk.bf16.gmra.mxu0 %vm1832_vm0, %v11894_v61 }
 0x3bf   : > { %8546 = vmatprep.mubr.msk.bf16.mxu0 %vm1832_vm0, %v11676_v11  ;;  %8621 = vmatpush3.bf16.xpose.msra.mxu0 %v2712_v26 }
 0x3c0   : > { %9084 = vmatprep.subr.msk.bf16.mxu0 %vm1832_vm0, %v2664_v32  ;;  %v11919_v32 = vpop.f32.mrf.mxu1 }
 0x3c6   : > { %8547 = vmatmul.mubr.msk.bf16.gmra.mxu0 %vm1832_vm0, %v11692_v19 }
 0x3c7   : > { %8550 = vmatprep.mubr.msk.bf16.mxu0 %vm1832_vm0, %v11732_v43  ;;  %8623 = vmatpush3.bf16.xpose.msra.mxu0 %v2709_v23 }
 0x3c8   : > { %9085 = vmatprep.subr.msk.bf16.mxu0 %vm1832_vm0, %v2662_v0 }
 0x3ce   : > { %8551 = vmatmul.mubr.msk.bf16.gmra.mxu0 %vm1832_vm0, %v11736_v55 }
 0x3cf   : > { %8625 = vmatpush3.bf16.xpose.msra.mxu0 %v2706_v34 }
 0x3d0   : > { %9086 = vmatprep.subr.msk.bf16.mxu0 %vm1832_vm0, %v2660_v46 }
 0x3d7   : > { %8627 = vmatpush3.bf16.xpose.msra.mxu0 %v2703_v27 }
 0x3d8   : > { %9087 = vmatprep.subr.msk.bf16.mxu0 %vm1832_vm0, %v2658_v4 }
 0x3df   : > { %8629 = vmatpush3.bf16.xpose.msra.mxu0 %v2700_v24 }
 0x3e0   : > { %9088 = vmatprep.subr.msk.bf16.mxu0 %vm1832_vm0, %v2656_v60 }
 0x3e7   : > { %8631 = vmatpush3.bf16.xpose.msra.mxu0 %v2697_v33 }
 0x3e8   : > { %9089 = vmatprep.subr.msk.bf16.mxu0 %vm1832_vm0, %v2654_v63 }
 0x3ef   : > { %8633 = vmatpush3.bf16.xpose.msra.mxu0 %v2694_v41 }
 0x413   : > { %v8508_v45 = vpop.f32.mrf.mxu1 }
 0x414   : > { %2127 = vmax.xlane.f32.xlu0 %v8508_v45 }
 0x415   : > { %v11921_v46 = vpop.f32.mrf.mxu1 }
 0x417   : > { %v11923_v5 = vpop.f32.mrf.mxu1 }
 0x418   : > { %2129 = vmax.xlane.f32.xlu1 %v11923_v5 }
 0x419   : > { %v11931_v0 = vpop.f32.mrf.mxu1 }
 0x41b   : > { %v11937_v59 = vpop.f32.mrf.mxu1 }
 0x41d   : > { %v11943_v23 = vpop.f32.mrf.mxu1 }
 0x41f   : > { %v11949_v27 = vpop.f32.mrf.mxu1 }
 0x421   : > { %v11955_v33 = vpop.f32.mrf.mxu1 }
 0x423   : > { %v11961_v31 = vpop.f32.mrf.mxu1 }
 0x425   : > { %v11967_v16 = vpop.f32.mrf.mxu1 }
 0x427   : > { %v11973_v9 = vpop.f32.mrf.mxu1 }
 0x429   : > { %v11983_v57 = vpop.f32.mrf.mxu1 }
 0x42b   : > { %v11987_v29 = vpop.f32.mrf.mxu1 }
 0x42d   : > { %v11993_v62 = vpop.f32.mrf.mxu1 }
 0x476   : > { %v11926_v4 = vpop.f32.mrf.mxu0 }
 0x477   : > { %2159 = vmax.xlane.f32.xlu0 %v11926_v4 }
 0x478   : > { %v11929_v60 = vpop.f32.mrf.mxu0 }
 0x47a   : > { %v11933_v63 = vpop.f32.mrf.mxu0 }
 0x47b   : > { %2123 = vmax.xlane.f32.xlu0 %v11921_v46  ;;  %2161 = vmax.xlane.f32.xlu1 %v11933_v63 }
 0x47c   : > { %v11939_v26 = vpop.f32.mrf.mxu0 }
 0x47e   : > { %v11945_v34 = vpop.f32.mrf.mxu0 }
 0x47f   : > { %2155 = vmax.xlane.f32.xlu0 %v11929_v60  ;;  %2125 = vmax.xlane.f32.xlu1 %v11931_v0 }
 0x480   : > { %v11951_v24 = vpop.f32.mrf.mxu0 }
 0x482   : > { %v11957_v41 = vpop.f32.mrf.mxu0 }
 0x483   : > { %2135 = vmax.xlane.f32.xlu0 %v11937_v59  ;;  %2157 = vmax.xlane.f32.xlu1 %v11939_v26 }
 0x484   : > { %v11963_v37 = vpop.f32.mrf.mxu0 }
 0x486   : > { %v11969_v1 = vpop.f32.mrf.mxu0 }
 0x487   : > { %2137 = vmax.xlane.f32.xlu1 %v11949_v27  ;;  %2167 = vmax.xlane.f32.xlu0 %v11945_v34 }
 0x488   : > { %v11975_v2 = vpop.f32.mrf.mxu0 }
 0x48a   : > { %v11979_v47 = vpop.f32.mrf.mxu0 }
 0x48b   : > { %2131 = vmax.xlane.f32.xlu0 %v11943_v23  ;;  %2169 = vmax.xlane.f32.xlu1 %v11957_v41 }
 0x48c   : > { %v11989_v10 = vpop.f32.mrf.mxu0 }
 0x48e   : > { %v11995_v44 = vpop.f32.mrf.mxu0 }
 0x48f   : > { %2163 = vmax.xlane.f32.xlu0 %v11951_v24  ;;  %2133 = vmax.xlane.f32.xlu1 %v11955_v33 }
 0x490   : > { %v12010_v49 = vpop.f32.mrf.mxu0 }
 0x493   : > { %2143 = vmax.xlane.f32.xlu0 %v11961_v31  ;;  %2165 = vmax.xlane.f32.xlu1 %v11963_v37 }
 0x497   : > { %2145 = vmax.xlane.f32.xlu1 %v11973_v9  ;;  %2175 = vmax.xlane.f32.xlu0 %v11969_v1 }
 0x49b   : > { %2139 = vmax.xlane.f32.xlu0 %v11967_v16  ;;  %2177 = vmax.xlane.f32.xlu1 %v11979_v47 }
 0x49d   : > { %v2128_v8 = vpop.xlane.xlu0 %2127 }
 0x49e   : > { %v2189_v55 = vsub.f32 %v8508_v45, %v2128_v8 }
 0x49f   : > { %2171 = vmax.xlane.f32.xlu0 %v11975_v2  ;;  %2141 = vmax.xlane.f32.xlu1 %v11983_v57 }
 0x4a0   : > { %v2223_v19 = vmul.f32 1.442695, %v2189_v55 }
 0x4a1   : > { %v2130_v55 = vpop.xlane.xlu1 %2129 }
 0x4a2   : > { %9656 = vpow2.f32 %v2223_v19  ;;  %v2190_v15 = vsub.f32 %v11923_v5, %v2130_v55 }
 0x4a3   : > { %2151 = vmax.xlane.f32.xlu0 %v11987_v29  ;;  %2173 = vmax.xlane.f32.xlu1 %v11989_v10 }
 0x4a4   : > { %v2225_v14 = vmul.f32 1.442695, %v2190_v15 }
 0x4a7   : > { %2147 = vmax.xlane.f32.xlu0 %v11993_v62  ;;  %2183 = vmax.xlane.f32.xlu1 %v11995_v44 }
 0x4af   : > { %v12007_v61 = vpop.eup %9656 }
 0x4b8   : > { %2631 = vrot.lane.b32.xlu1 %v11631_v22, %s10707_s2  ;;  %v12013_v22 = vpop.f32.mrf.mxu1 }
 0x4bc   : > { %2860 = vrot.lane.b32.xlu1 %v11738_v53, %s10707_s2  ;;  %v12016_v53 = vpop.f32.mrf.mxu0 }
 0x4bd   : > { %2629 = vrot.lane.b32.xlu0 %v11645_v48, %s10707_s2 }
 0x4be   : > { %v12022_v19 = vpop.f32.mrf.mxu0 }
 0x4c0   : > { %2858 = vrot.lane.b32.xlu1 %v11740_v3, %s10707_s2  ;;  %v12019_v3 = vpop.f32.mrf.mxu1 }
 0x4dc   : > { %2287 = vadd.xlane.f32.xlu0 %v12007_v61 }
 0x4e4   : > { %2179 = vmax.xlane.f32.xlu1 %v12010_v49 }
 0x4e8   : > { %2153 = vmax.xlane.f32.xlu1 %v12013_v22 }
 0x4ec   : > { %2185 = vmax.xlane.f32.xlu1 %v12016_v53 }
 0x4f0   : > { %2149 = vmax.xlane.f32.xlu1 %v12019_v3 }
 0x4f4   : > { %2181 = vmax.xlane.f32.xlu1 %v12022_v19 }
 0x500   : > { %v2160_v8 = vpop.xlane.xlu0 %2159 }
 0x501   : > { %v2205_v45 = vsub.f32 %v11926_v4, %v2160_v8 }
 0x503   : > { %v2255_v48 = vmul.f32 1.442695, %v2205_v45 }
 0x504   : > { %v2162_v18 = vpop.xlane.xlu1 %2161  ;;  %v2124_v58 = vpop.xlane.xlu0 %2123 }
 0x505   : > { %9658 = vpow2.f32 %v2255_v48  ;;  %v2187_v50 = vsub.f32 %v11921_v46, %v2124_v58  ;;  %v2206_v8 = vsub.f32 %v11933_v63, %v2162_v18 }
 0x507   : > { %v2219_v25 = vmul.f32 1.442695, %v2187_v50  ;;  %v2257_v5 = vmul.f32 1.442695, %v2206_v8 }
 0x508   : > { %v2126_v6 = vpop.xlane.xlu1 %2125  ;;  %v2156_v38 = vpop.xlane.xlu0 %2155 }
 0x509   : > { %v2203_v56 = vsub.f32 %v11929_v60, %v2156_v38  ;;  %9660 = vpow2.f32 %v2219_v25  ;;  %v2188_v38 = vsub.f32 %v11931_v0, %v2126_v6 }
 0x50b   : > { %v2251_v17 = vmul.f32 1.442695, %v2203_v56 }
 0x50c   : > { %v2158_v21 = vpop.xlane.xlu1 %2157  ;;  %v2136_v42 = vpop.xlane.xlu0 %2135 }
 0x50d   : > { %v2193_v4 = vsub.f32 %v11937_v59, %v2136_v42  ;;  %9662 = vpow2.f32 %v2251_v17  ;;  %v2221_v17 = vmul.f32 1.442695, %v2188_v38  ;;  %v2204_v42 = vsub.f32 %v11939_v26, %v2158_v21 }
 0x50e   : > { %9664 = vpow2.f32 %v2225_v14 }
 0x50f   : > { %v2231_v48 = vmul.f32 1.442695, %v2193_v4  ;;  %v2253_v6 = vmul.f32 1.442695, %v2204_v42 }
 0x510   : > { %v2138_v45 = vpop.xlane.xlu1 %2137  ;;  %v2168_v58 = vpop.xlane.xlu0 %2167 }
 0x511   : > { %v2194_v50 = vsub.f32 %v11949_v27, %v2138_v45  ;;  %9666 = vpow2.f32 %v2231_v48  ;;  %v2209_v0 = vsub.f32 %v11945_v34, %v2168_v58 }
 0x512   : > { %v12032_v46 = vpop.eup %9658 }
 0x513   : > { %v2233_v25 = vmul.f32 1.442695, %v2194_v50  ;;  %2319 = vadd.xlane.f32.xlu0 %v12032_v46 }
 0x514   : > { %v2170_v56 = vpop.xlane.xlu1 %2169  ;;  %v2132_v15 = vpop.xlane.xlu0 %2131 }
 0x515   : > { %9668 = vpow2.f32 %v2233_v25  ;;  %v2191_v48 = vsub.f32 %v11943_v23, %v2132_v15 }
 0x516   : > { %9670 = vpow2.f32 %v2257_v5  ;;  %v12037_v18 = vpop.eup %9660 }
 0x517   : > { %2283 = vadd.xlane.f32.xlu1 %v12037_v18  ;;  %9672 = vpow2.f32 %v2221_v17  ;;  %v2210_v17 = vsub.f32 %v11957_v41, %v2170_v56 }
 0x518   : > { %v2134_v14 = vpop.xlane.xlu1 %2133  ;;  %v2164_v60 = vpop.xlane.xlu0 %2163 }
 0x519   : > { %v2192_v63 = vsub.f32 %v11955_v33, %v2134_v14  ;;  %v2263_v33 = vmul.f32 1.442695, %v2209_v0  ;;  %v2207_v38 = vsub.f32 %v11951_v24, %v2164_v60  ;;  %v2265_v0 = vmul.f32 1.442695, %v2210_v17 }
 0x51a   : > { %v12042_v59 = vpop.eup %9662 }
 0x51b   : > { %v2229_v27 = vmul.f32 1.442695, %v2192_v63  ;;  %2315 = vadd.xlane.f32.xlu1 %v12042_v59  ;;  %v12047_v8 = vpop.eup %9664  ;;  %v2259_v42 = vmul.f32 1.442695, %v2207_v38 }
 0x51c   : > { %v2166_v55 = vpop.xlane.xlu1 %2165  ;;  %v2144_v4 = vpop.xlane.xlu0 %2143 }
 0x51d   : > { %9674 = vpow2.f32 %v2229_v27  ;;  %v2208_v21 = vsub.f32 %v11963_v37, %v2166_v55  ;;  %v2197_v26 = vsub.f32 %v11961_v31, %v2144_v4  ;;  %v2227_v31 = vmul.f32 1.442695, %v2191_v48 }
 0x51e   : > { %9676 = vpow2.f32 %v2253_v6  ;;  %v12050_v45 = vpop.eup %9666 }
 0x51f   : > { %v2261_v34 = vmul.f32 1.442695, %v2208_v21  ;;  %2289 = vadd.xlane.f32.xlu1 %v12047_v8  ;;  %2295 = vadd.xlane.f32.xlu0 %v12050_v45  ;;  %v2239_v37 = vmul.f32 1.442695, %v2197_v26 }
 0x520   : > { %v2146_v58 = vpop.xlane.xlu1 %2145  ;;  %v12054_v50 = vpop.xlane.xlu0 %2175 }
 0x521   : > { %9678 = vpow2.f32 %v2261_v34 }
 0x522   : > { %v12056_v5 = vpop.eup %9668  ;;  %9680 = vpow2.f32 %v2263_v33 }
 0x523   : > { %v12059_v25 = vpop.eup %9670  ;;  %2297 = vadd.xlane.f32.xlu0 %v12056_v5  ;;  %9682 = vpow2.f32 %v2239_v37 }
 0x524   : > { %2321 = vadd.xlane.f32.xlu1 %v12059_v25  ;;  %v12063_v23 = vpop.xlane.xlu1 %2177  ;;  %v2140_v15 = vpop.xlane.xlu0 %2139  ;;  %9684 = vpow2.f32 %v2227_v31 }
 0x525   : > { %v12066_v14 = vpop.eup %9672  ;;  %v2195_v60 = vsub.f32 %v11967_v16, %v2140_v15  ;;  %9686 = vpow2.f32 %v2259_v42  ;;  %v2198_v16 = vsub.f32 %v11973_v9, %v2146_v58 }
 0x526   : > { %9688 = vpow2.f32 %v2265_v0 }
 0x527   : > { %v2235_v55 = vmul.f32 1.442695, %v2195_v60  ;;  %v2241_v31 = vmul.f32 1.442695, %v2198_v16 }
 0x528   : > { %2285 = vadd.xlane.f32.xlu1 %v12066_v14  ;;  %v2142_v63 = vpop.xlane.xlu1 %2141  ;;  %v2172_v24 = vpop.xlane.xlu0 %2171 }
 0x529   : > { %9690 = vpow2.f32 %v2235_v55 }
 0x52a   : > { %v12070_v6 = vpop.eup %9674 }
 0x52b   : > { %v12072_v27 = vpop.eup %9676  ;;  %2293 = vadd.xlane.f32.xlu0 %v12070_v6 }
 0x52c   : > { %2317 = vadd.xlane.f32.xlu1 %v12072_v27  ;;  %v2174_v41 = vpop.xlane.xlu1 %2173  ;;  %v2152_v56 = vpop.xlane.xlu0 %2151 }
 0x52d   : > { %v2201_v4 = vsub.f32 %v11987_v29, %v2152_v56  ;;  %v2196_v29 = vsub.f32 %v11983_v57, %v2142_v63  ;;  %v2211_v57 = vsub.f32 %v11975_v2, %v2172_v24  ;;  %v2212_v55 = vsub.f32 %v11989_v10, %v2174_v41 }
 0x52e   : > { %v12077_v21 = vpop.eup %9678  ;;  %v2213_v2 = vsub.f32 %v11969_v1, %v12054_v50  ;;  %v2214_v10 = vsub.f32 %v11979_v47, %v12063_v23 }
 0x52f   : > { %v12080_v26 = vpop.eup %9680  ;;  %v2247_v33 = vmul.f32 1.442695, %v2201_v4  ;;  %2325 = vadd.xlane.f32.xlu0 %v12077_v21  ;;  %v2237_v15 = vmul.f32 1.442695, %v2196_v29  ;;  %v2267_v56 = vmul.f32 1.442695, %v2211_v57 }
 0x530   : > { %2327 = vadd.xlane.f32.xlu1 %v12080_v26  ;;  %v12084_v48 = vpop.xlane.xlu1 %2183  ;;  %v2148_v34 = vpop.xlane.xlu0 %2147  ;;  %v2269_v24 = vmul.f32 1.442695, %v2212_v55  ;;  %v2271_v16 = vmul.f32 1.442695, %v2213_v2 }
 0x531   : > { %v12086_v37 = vpop.eup %9682  ;;  %9692 = vpow2.f32 %v2247_v33  ;;  %v2199_v17 = vsub.f32 %v11993_v62, %v2148_v34  ;;  %v2273_v33 = vmul.f32 1.442695, %v2214_v10 }
 0x532   : > { %v12089_v38 = vpop.eup %9684  ;;  %9694 = vpow2.f32 %v2241_v31 }
 0x533   : > { %2303 = vadd.xlane.f32.xlu0 %v12086_v37  ;;  %v12096_v42 = vpop.eup %9686  ;;  %9696 = vpow2.f32 %v2237_v15  ;;  %v2243_v63 = vmul.f32 1.442695, %v2199_v17 }
 0x534   : > { %2291 = vadd.xlane.f32.xlu1 %v12089_v38  ;;  %v2632_v9 = vpop.permute.xlu1 %2631  ;;  %v2630_v58 = vpop.permute.xlu0 %2629 }
 0x535   : > { %8634 = vmatprep.mubr.msk.bf16.mxu0 %vm1832_vm0, %v2630_v58  ;;  %v12100_v60 = vpop.eup %9688  ;;  %9698 = vpow2.f32 %v2243_v63 }
 0x536   : > { %8635 = vmatmul.mubr.msk.bf16.vlgmr.msra.gmra.mxu0 %vm1832_vm0, %v2632_v9  ;;  %v12103_v0 = vpop.eup %9690  ;;  %9700 = vpow2.f32 %v2267_v56 }
 0x537   : > { %9702 = vpow2.f32 %v2269_v24 }
 0x538   : > { %2323 = vadd.xlane.f32.xlu1 %v12096_v42  ;;  %9704 = vpow2.f32 %v2271_v16  ;;  %v12135_v31 = vpop.permute.xlu1 %2860 }
 0x539   : > { %9706 = vpow2.f32 %v2273_v33 }
 0x53c   : > { %2329 = vadd.xlane.f32.xlu1 %v12100_v60  ;;  %v12137_v29 = vpop.permute.xlu1 %2858 }
 0x53e   : > { %v12106_v62 = vpop.eup %9692 }
 0x53f   : > { %2311 = vadd.xlane.f32.xlu0 %v12106_v62  ;;  %v12112_v4 = vpop.eup %9694 }
 0x540   : > { %2299 = vadd.xlane.f32.xlu1 %v12103_v0  ;;  %v12117_v41 = vpop.eup %9696 }
 0x542   : > { %v12120_v34 = vpop.eup %9698 }
 0x543   : > { %v12123_v1 = vpop.eup %9700 }
 0x544   : > { %2305 = vadd.xlane.f32.xlu1 %v12112_v4  ;;  %v12126_v50 = vpop.eup %9702 }
 0x545   : > { %v12129_v47 = vpop.eup %9704 }
 0x546   : > { %v12132_v23 = vpop.eup %9706 }
 0x548   : > { %2301 = vadd.xlane.f32.xlu1 %v12117_v41 }
 0x54c   : > { %2307 = vadd.xlane.f32.xlu1 %v12120_v34 }
 0x550   : > { %2331 = vadd.xlane.f32.xlu1 %v12123_v1 }
 0x554   : > { %2333 = vadd.xlane.f32.xlu1 %v12126_v50 }
 0x558   : > { %2335 = vadd.xlane.f32.xlu1 %v12129_v47 }
 0x55c   : > { %2337 = vadd.xlane.f32.xlu1 %v12132_v23 }
 0x56d   : > { %2854 = vrot.lane.b32.xlu1 %v11778_v28, %s10707_s2  ;;  %v2180_v9 = vpop.xlane.xlu1 %2179 }
 0x571   : > { %2633 = vrot.lane.b32.xlu1 %v11639_v39, %s10707_s2  ;;  %v2154_v58 = vpop.xlane.xlu1 %2153 }
 0x572   : > { %v2202_v15 = vsub.f32 %v12013_v22, %v2154_v58  ;;  %v2288_v58 = vpop.xlane.xlu0 %2287 }
 0x574   : > { %v2249_v17 = vmul.f32 1.442695, %v2202_v15 }
 0x575   : > { %2637 = vrot.lane.b32.xlu1 %v11656_v20, %s10707_s2  ;;  %v2186_v57 = vpop.xlane.xlu1 %2185 }
 0x576   : > { %9708 = vpow2.f32 %v2249_v17  ;;  %v2215_v17 = vsub.f32 %v12010_v49, %v2180_v9 }
 0x579   : > { %2848 = vrot.lane.b32.xlu1 %v11821_v35, %s10707_s2  ;;  %v2150_v63 = vpop.xlane.xlu1 %2149 }
 0x57a   : > { %v2200_v56 = vsub.f32 %v12019_v3, %v2150_v63 }
 0x57c   : > { %v2245_v55 = vmul.f32 1.442695, %v2200_v56 }
 0x57d   : > { %2643 = vrot.lane.b32.xlu1 %v11678_v54, %s10707_s2  ;;  %v2182_v3 = vpop.xlane.xlu1 %2181 }
 0x57e   : > { %9710 = vpow2.f32 %v2245_v55  ;;  %v2216_v24 = vsub.f32 %v12022_v19, %v2182_v3  ;;  %v2217_v19 = vsub.f32 %v11995_v44, %v12084_v48  ;;  %v2275_v3 = vmul.f32 1.442695, %v2215_v17 }
 0x580   : > { %v2277_v16 = vmul.f32 1.442695, %v2216_v24  ;;  %v2279_v49 = vmul.f32 1.442695, %v2217_v19 }
 0x581   : > { %2822 = vrot.lane.b32.xlu1 %v11754_v13, %s10707_s2 }
 0x582   : > { %9712 = vpow2.f32 %v2277_v16 }
 0x583   : > { %v12153_v22 = vpop.eup %9708 }
 0x584   : > { %2313 = vadd.xlane.f32.xlu0 %v12153_v22 }
 0x585   : > { %2826 = vrot.lane.b32.xlu1 %v11883_v52, %s10707_s2 }
 0x589   : > { %2830 = vrot.lane.b32.xlu1 %v11676_v11, %s10707_s2  ;;  %v2218_v11 = vsub.f32 %v12016_v53, %v2186_v57 }
 0x58b   : > { %v12160_v2 = vpop.eup %9710  ;;  %v2281_v13 = vmul.f32 1.442695, %v2218_v11 }
 0x58c   : > { %2309 = vadd.xlane.f32.xlu0 %v12160_v2 }
 0x58f   : > { %v12171_v56 = vpop.eup %9712 }
 0x59c   : > { %v12169_v63 = vpop.xlane.xlu0 %2319 }
 0x5a0   : > { %v2284_v10 = vpop.xlane.xlu1 %2283 }
 0x5a2   : > { %2856 = vrot.lane.b32.xlu0 %v11766_v36, %s10707_s2 }
 0x5a4   : > { %v12166_v33 = vpop.xlane.xlu1 %2315 }
 0x5a8   : > { %v2290_v15 = vpop.xlane.xlu1 %2289  ;;  %v2296_v24 = vpop.xlane.xlu0 %2295 }
 0x5a9   : > { %9714 = vrcp.f32 %v2290_v15 }
 0x5aa   : > { %9716 = vrcp.f32 %v2284_v10 }
 0x5ab   : > { %9718 = vrcp.f32 %v2288_v58 }
 0x5ac   : > { %v2298_v9 = vpop.xlane.xlu0 %2297 }
 0x5ad   : > { %v12173_v55 = vpop.xlane.xlu1 %2321  ;;  %2341 = vadd.xlane.f32.xlu1 %v12171_v56 }
 0x5b1   : > { %v2286_v16 = vpop.xlane.xlu1 %2285 }
 0x5b2   : > { %9720 = vrcp.f32 %v2286_v16 }
 0x5b3   : > { %9722 = vpow2.f32 %v2275_v3 }
 0x5b4   : > { %9724 = vpow2.f32 %v2279_v49  ;;  %v2294_v54 = vpop.xlane.xlu0 %2293 }
 0x5b5   : > { %v12179_v52 = vpop.xlane.xlu1 %2317  ;;  %9726 = vpow2.f32 %v2281_v13 }
 0x5b6   : > { %9728 = vrcp.f32 %v2298_v9  ;;  %v9715_v44 = vpop.eup %9714 }
 0x5b7   : > { %9730 = vrcp.f32 %v2294_v54  ;;  %v9717_v48 = vpop.eup %9716  ;;  %v2382_v57 = vmul.f32 %v9715_v44, %v12047_v8  ;;  %v12198_v8 = vpack.c.bf16 %v11919_v32, %v11871_v30 }
 0x5b8   : > { %9732 = vrcp.f32 %v2296_v24  ;;  %v9719_v58 = vpop.eup %9718  ;;  %v2379_v15 = vmul.f32 %v9717_v48, %v12037_v18 }
 0x5b9   : > { %v12181_v35 = vpop.xlane.xlu1 %2327  ;;  %v2381_v54 = vmul.f32 %v9719_v58, %v12007_v61  ;;  %15251 = vst [vmem:[#allocation85_spill] sm:$0xff] %v12198_v8  ;;  %v12217_v58 = vpack.c.bf16 %v11861_v40, %v11849_v51  ;;  %v15253_v51 = vld [vmem:[#allocation74_spill] sm:$0xff]  ;;  %v15254_v40 = vld [vmem:[#allocation72_spill] sm:$0xff] }
 0x5bb   : > { %v2412_v3 = vpack.c.bf16 %v2382_v57, %v2381_v54  ;;  %15252 = vst [vmem:[#allocation86_spill] sm:$0xff] %v12217_v58 }
 0x5bd   : > { %v2292_v10 = vpop.xlane.xlu1 %2291 }
 0x5be   : > { %9734 = vrcp.f32 %v2292_v10  ;;  %2834 = vrot.lane.b32.xlu1 %v11732_v43, %s10707_s2 }
 0x5bf   : > { %v9721_v53 = vpop.eup %9720 }
 0x5c0   : > { %v12186_v11 = vpop.eup %9722  ;;  %v2380_v13 = vmul.f32 %v9721_v53, %v12066_v14  ;;  %v12207_v14 = vpop.xlane.xlu0 %2325 }
 0x5c1   : > { %v12190_v17 = vpop.xlane.xlu1 %2323  ;;  %2339 = vadd.xlane.f32.xlu0 %v12186_v11  ;;  %v12194_v24 = vpop.eup %9724 }
 0x5c2   : > { %v2411_v19 = vpack.c.bf16 %v2380_v13, %v2379_v15  ;;  %v12204_v18 = vpop.eup %9726 }
 0x5c3   : > { %v9729_v61 = vpop.eup %9728 }
 0x5c4   : > { %8570 = vmatprep.mubr.bf16.mxu1 %v2411_v19  ;;  %v9731_v49 = vpop.eup %9730  ;;  %v2386_v44 = vmul.f32 %v9729_v61, %v12056_v5  ;;  %v2304_v15 = vpop.xlane.xlu0 %2303 }
 0x5c5   : > { %v12200_v16 = vpop.xlane.xlu1 %2329  ;;  %8571 = vmatmul.mubr.bf16.vlgmr.msra.gmra.mxu1 %v2412_v3  ;;  %2343 = vadd.xlane.f32.xlu0 %v12194_v24  ;;  %v9733_v30 = vpop.eup %9732  ;;  %v2384_v10 = vmul.f32 %v9731_v49, %v12070_v6  ;;  %v15257_v3 = vld [vmem:[#allocation68_spill] sm:$0xff] }
 0x5c6   : > { %8587 = vmatpush3.bf16.msra.mxu1 %v11875_v7  ;;  %v2385_v57 = vmul.f32 %v9733_v30, %v12050_v45  ;;  %v15255_v45 = vld [vmem:[#allocation75_spill] sm:$0xff]  ;;  %v15259_v30 = vld [vmem:[#allocation69_spill] sm:$0xff] }
 0x5c7   : > { %8588 = vmatprep.subr.bf16.mxu1 %v12198_v8  ;;  %v12226_v6 = vpack.c.bf16 %v15255_v45, %v15254_v40  ;;  %v15262_v45 = vld [vmem:[#allocation43_spill] sm:$0xff] }
 0x5c8   : > { %v2414_v54 = vpack.c.bf16 %v2386_v44, %v2385_v57 }
 0x5c9   : > { %v2300_v9 = vpop.xlane.xlu1 %2299  ;;  %2345 = vadd.xlane.f32.xlu0 %v12204_v18  ;;  %15256 = vst [vmem:[#allocation72_spill] sm:$0xff] %v12226_v6 }
 0x5ca   : > { %8589 = vmatpush3.bf16.msra.mxu1 %v12198_v8 }
 0x5cb   : > { %v9735_v32 = vpop.eup %9734  ;;  %8590 = vmatprep.subr.bf16.mxu1 %v11858_v12 }
 0x5cc   : > { %v2383_v48 = vmul.f32 %v9735_v32, %v12089_v38 }
 0x5cd   : > { %v2306_v53 = vpop.xlane.xlu1 %2305 }
 0x5ce   : > { %8591 = vmatpush3.bf16.msra.mxu1 %v11858_v12  ;;  %v2413_v13 = vpack.c.bf16 %v2384_v10, %v2383_v48  ;;  %9736 = vrcp.f32 %v2306_v53  ;;  %v15261_v53 = vld [vmem:[#allocation63_spill] sm:$0xff] }
 0x5cf   : > { %8592 = vmatprep.subr.bf16.mxu1 %v12217_v58  ;;  %9738 = vrcp.f32 %v2300_v9  ;;  %v15258_v9 = vld [vmem:[#allocation66_spill] sm:$0xff] }
 0x5d0   : > { %8574 = vmatprep.mubr.bf16.mxu1 %v2413_v13  ;;  %9740 = vrcp.f32 %v2304_v15  ;;  %v12236_v32 = vpack.c.bf16 %v15259_v30, %v15258_v9  ;;  %v15266_v30 = vld [vmem:[#allocation77_spill] sm:$0xff] }
 0x5d1   : > { %v2302_v5 = vpop.xlane.xlu1 %2301  ;;  %8575 = vmatmul.mubr.bf16.gmra.mxu1 %v2414_v54 }
 0x5d2   : > { %9742 = vrcp.f32 %v2302_v5  ;;  %8593 = vmatpush3.bf16.msra.mxu1 %v12217_v58  ;;  %15260 = vst [vmem:[#allocation75_spill] sm:$0xff] %v12236_v32 }
 0x5d3   : > { %8594 = vmatprep.subr.bf16.mxu1 %v15253_v51  ;;  %9744 = vrcp.f32 %v12166_v33 }
 0x5d4   : > { %9746 = vrcp.f32 %v12179_v52 }
 0x5d5   : > { %v2308_v38 = vpop.xlane.xlu1 %2307 }
 0x5d6   : > { %8595 = vmatpush3.bf16.msra.mxu1 %v15253_v51 }
 0x5d7   : > { %8596 = vmatprep.subr.bf16.mxu1 %v12226_v6 }
 0x5d9   : > { %v12230_v19 = vpop.xlane.xlu1 %2331 }
 0x5da   : > { %8597 = vmatpush3.bf16.msra.mxu1 %v12226_v6 }
 0x5db   : > { %8598 = vmatprep.subr.bf16.mxu1 %v15257_v3  ;;  %v9737_v61 = vpop.eup %9736 }
 0x5dc   : > { %v9739_v49 = vpop.eup %9738  ;;  %v2390_v57 = vmul.f32 %v9737_v61, %v12112_v4 }
 0x5dd   : > { %v2334_v44 = vpop.xlane.xlu1 %2333  ;;  %v9741_v48 = vpop.eup %9740  ;;  %v2387_v15 = vmul.f32 %v9739_v49, %v12103_v0  ;;  %v15263_v0 = vld [vmem:[#allocation65_spill] sm:$0xff] }
 0x5de   : > { %8599 = vmatpush3.bf16.msra.mxu1 %v15257_v3  ;;  %v2389_v5 = vmul.f32 %v9741_v48, %v12086_v37  ;;  %v15264_v37 = vld [vmem:[#allocation47_spill] sm:$0xff]  ;;  %v15265_v49 = vld [vmem:[#allocation49_spill] sm:$0xff] }
 0x5df   : > { %v9743_v10 = vpop.eup %9742  ;;  %8600 = vmatprep.subr.bf16.mxu1 %v12236_v32  ;;  %2852 = vrot.lane.b32.xlu0 %v15261_v53, %s10707_s2 }
 0x5e0   : > { %v2388_v13 = vmul.f32 %v9743_v10, %v12117_v41  ;;  %v2416_v9 = vpack.c.bf16 %v2390_v57, %v2389_v5  ;;  %v15267_v10 = vld [vmem:[#allocation82_spill] sm:$0xff] }
 0x5e1   : > { %v12245_v54 = vpop.xlane.xlu1 %2335  ;;  %v15269_v5 = vld [vmem:[#allocation54_spill] sm:$0xff] }
 0x5e2   : > { %8601 = vmatpush3.bf16.msra.mxu1 %v12236_v32  ;;  %v2415_v40 = vpack.c.bf16 %v2388_v13, %v2387_v15  ;;  %v15268_v15 = vld [vmem:[#allocation84_spill] sm:$0xff] }
 0x5e3   : > { %9090 = vmatprep.subr.msk.bf16.mxu1 %vm1832_vm0, %v12135_v31  ;;  %2635 = vrot.lane.b32.xlu0 %v15262_v45, %s10707_s2 }
 0x5e4   : > { %8578 = vmatprep.mubr.bf16.mxu1 %v2415_v40  ;;  %v15270_v40 = vld [vmem:[#allocation56_spill] sm:$0xff] }
 0x5e5   : > { %v2338_v4 = vpop.xlane.xlu1 %2337  ;;  %8579 = vmatmul.mubr.bf16.gmra.mxu1 %v2416_v9  ;;  %v2312_v9 = vpop.xlane.xlu0 %2311 }
 0x5e7   : > { %2850 = vrot.lane.b32.xlu0 %v15263_v0, %s10707_s2 }
 0x5e9   : > { %v12255_v41 = vpop.permute.xlu1 %2854 }
 0x5eb   : > { %2639 = vrot.lane.b32.xlu0 %v15264_v37, %s10707_s2 }
 0x5ed   : > { %v2634_v61 = vpop.permute.xlu1 %2633 }
 0x5ee   : > { %8638 = vmatprep.mubr.msk.bf16.mxu0 %vm1832_vm0, %v2634_v61 }
 0x5ef   : > { %2641 = vrot.lane.b32.xlu0 %v15265_v49, %s10707_s2 }
 0x5f3   : > { %2846 = vrot.lane.b32.xlu0 %v15266_v30, %s10707_s2 }
 0x5f6   : > { %v12264_v48 = vpop.f32.mrf.mxu0 }
 0x5f7   : > { %2824 = vrot.lane.b32.xlu0 %v15267_v10, %s10707_s2 }
 0x5f8   : > { %v12268_v57 = vpop.f32.mrf.mxu0 }
 0x5f9   : > { %3007 = vmax.xlane.f32.xlu1 %v12268_v57 }
 0x5fa   : > { %v12273_v13 = vpop.f32.mrf.mxu0 }
 0x5fb   : > { %2828 = vrot.lane.b32.xlu0 %v15268_v15, %s10707_s2 }
 0x5fc   : > { %v12286_v33 = vpop.f32.mrf.mxu0 }
 0x5fd   : > { %3013 = vmax.xlane.f32.xlu1 %v12273_v13 }
 0x5ff   : > { %2832 = vrot.lane.b32.xlu0 %v15269_v5, %s10707_s2  ;;  %v9745_v5 = vpop.eup %9744 }
 0x603   : > { %2836 = vrot.lane.b32.xlu0 %v15270_v40, %s10707_s2  ;;  %v9747_v40 = vpop.eup %9746 }
 0x60d   : > { %v2314_v61 = vpop.xlane.xlu0 %2313 }
 0x60e   : > { %9748 = vrcp.f32 %v2314_v61 }
 0x60f   : > { %9750 = vrcp.f32 %v2308_v38 }
 0x610   : > { %9752 = vrcp.f32 %v2312_v9 }
 0x615   : > { %v2310_v43 = vpop.xlane.xlu0 %2309 }
 0x616   : > { %9754 = vrcp.f32 %v2310_v43 }
 0x617   : > { %9756 = vrcp.f32 %v12173_v55  ;;  %v12291_v55 = vpop.permute.xlu1 %2637 }
 0x618   : > { %9758 = vrcp.f32 %v12190_v17 }
 0x619   : > { %9760 = vrcp.f32 %v12169_v63 }
 0x61a   : > { %9762 = vrcp.f32 %v12207_v14  ;;  %v2396_v14 = vmul.f32 %v9747_v40, %v12072_v27 }
 0x61b   : > { %v9749_v15 = vpop.eup %9748  ;;  %9764 = vrcp.f32 %v12200_v16 }
 0x61c   : > { %v9751_v10 = vpop.eup %9750  ;;  %v2394_v43 = vmul.f32 %v9749_v15, %v12153_v22  ;;  %9766 = vrcp.f32 %v2334_v44  ;;  %v2395_v22 = vmul.f32 %v9745_v5, %v12042_v59 }
 0x61d   : > { %v9753_v52 = vpop.eup %9752  ;;  %v2391_v63 = vmul.f32 %v9751_v10, %v12120_v34  ;;  %9768 = vrcp.f32 %v12181_v35  ;;  %v12301_v10 = vpop.permute.xlu1 %2848 }
 0x61e   : > { %v2393_v9 = vmul.f32 %v9753_v52, %v12106_v62  ;;  %9770 = vrcp.f32 %v12230_v19  ;;  %v2419_v61 = vpack.c.bf16 %v2396_v14, %v2395_v22 }
 0x61f   : > { %9772 = vrcp.f32 %v2338_v4  ;;  %v2908_v4 = vsel %vm1832_vm0, %v12135_v31, 0  ;;  %v2905_v31 = vsel %vm1832_vm0, %v12137_v29, 0 }
 0x620   : > { %v2418_v44 = vpack.c.bf16 %v2394_v43, %v2393_v9  ;;  %9774 = vrcp.f32 %v12245_v54 }
 0x621   : > { %v12308_v52 = vpop.permute.xlu1 %2643 }
 0x622   : > { %3009 = vmax.xlane.f32.xlu0 %v12286_v33 }
 0x623   : > { %v9755_v38 = vpop.eup %9754 }
 0x624   : > { %v2392_v17 = vmul.f32 %v9755_v38, %v12160_v2  ;;  %v9757_v15 = vpop.eup %9756 }
 0x625   : > { %v9759_v34 = vpop.eup %9758  ;;  %v2398_v27 = vmul.f32 %v9757_v15, %v12059_v25  ;;  %v2823_v54 = vpop.permute.xlu1 %2822 }
 0x626   : > { %3011 = vmax.xlane.f32.xlu0 %v12264_v48  ;;  %v2417_v16 = vpack.c.bf16 %v2392_v17, %v2391_v63  ;;  %v9761_v2 = vpop.eup %9760  ;;  %v2399_v62 = vmul.f32 %v9759_v34, %v12096_v42  ;;  %v2899_v34 = vsel %vm1832_vm0, %v12255_v41, 0 }
 0x627   : > { %v9763_v35 = vpop.eup %9762  ;;  %v2397_v59 = vmul.f32 %v9761_v2, %v12032_v46 }
 0x628   : > { %8582 = vmatprep.mubr.bf16.mxu1 %v2417_v16  ;;  %v2400_v19 = vmul.f32 %v9763_v35, %v12077_v21  ;;  %v9765_v40 = vpop.eup %9764 }
 0x629   : > { %8583 = vmatmul.mubr.bf16.gmra.mxu1 %v2418_v44  ;;  %v2420_v5 = vpack.c.bf16 %v2398_v27, %v2397_v59  ;;  %v9767_v43 = vpop.eup %9766  ;;  %v2402_v46 = vmul.f32 %v9765_v40, %v12100_v60  ;;  %v2857_v44 = vpop.permute.xlu0 %2856 }
 0x62a   : > { %8602 = vmatprep.mubr.bf16.mxu1 %v2419_v61  ;;  %v2421_v38 = vpack.c.bf16 %v2400_v19, %v2399_v62  ;;  %v9769_v63 = vpop.eup %9768  ;;  %v2404_v21 = vmul.f32 %v9767_v43, %v12126_v50  ;;  %v2827_v50 = vpop.permute.xlu1 %2826 }
 0x62b   : > { %v9771_v25 = vpop.eup %9770  ;;  %v2401_v42 = vmul.f32 %v9769_v63, %v12080_v26 }
 0x62c   : > { %v2403_v17 = vmul.f32 %v9771_v25, %v12123_v1  ;;  %v9773_v9 = vpop.eup %9772  ;;  %v2902_v1 = vsel %vm1832_vm0, %v2857_v44, 0 }
 0x62d   : > { %v2422_v14 = vpack.c.bf16 %v2402_v46, %v2401_v42  ;;  %v9775_v22 = vpop.eup %9774  ;;  %v2406_v60 = vmul.f32 %v9773_v9, %v12132_v23 }
 0x62e   : > { %v2423_v16 = vpack.c.bf16 %v2404_v21, %v2403_v17  ;;  %v2405_v26 = vmul.f32 %v9775_v22, %v12129_v47  ;;  %v2831_v61 = vpop.permute.xlu1 %2830  ;;  %v2890_v21 = vsel %vm1832_vm0, %v12301_v10, 0 }
 0x630   : > { %v2424_v15 = vpack.c.bf16 %v2406_v60, %v2405_v26 }
 0x631   : > { %8603 = vmatmul.mubr.bf16.vlgmr.msra.gmra.mxu1 %v2420_v5 }
 0x632   : > { %8651 = vmatpush3.bf16.xpose.msra.mxu1 %v2908_v4  ;;  %8606 = vmatprep.mubr.bf16.mxu1 %v2421_v38 }
 0x633   : > { %9091 = vmatprep.subr.msk.bf16.mxu1 %vm1832_vm0, %v12137_v29 }
 0x636   : > { %v2342_v29 = vpop.xlane.xlu1 %2341 }
 0x637   : > { %9776 = vrcp.f32 %v2342_v29 }
 0x639   : > { %8607 = vmatmul.mubr.bf16.gmra.mxu1 %v2422_v14 }
 0x63a   : > { %8653 = vmatpush3.bf16.xpose.msra.mxu1 %v2905_v31  ;;  %8610 = vmatprep.mubr.bf16.mxu1 %v2423_v16  ;;  %v2835_v17 = vpop.permute.xlu1 %2834 }
 0x63b   : > { %9092 = vmatprep.subr.msk.bf16.mxu1 %vm1832_vm0, %v2857_v44 }
 0x641   : > { %8611 = vmatmul.mubr.bf16.gmra.mxu1 %v2424_v15 }
 0x642   : > { %8655 = vmatpush3.bf16.xpose.msra.mxu1 %v2902_v1 }
 0x643   : > { %9093 = vmatprep.subr.msk.bf16.mxu1 %vm1832_vm0, %v12255_v41 }
 0x644   : > { %v9777_v35 = vpop.eup %9776 }
 0x645   : > { %v2408_v5 = vmul.f32 %v9777_v35, %v12171_v56 }
 0x64a   : > { %8657 = vmatpush3.bf16.xpose.msra.mxu1 %v2899_v34  ;;  %v2340_v2 = vpop.xlane.xlu0 %2339  ;;  %v15272_v34 = vld [vmem:[#allocation64_spill] sm:$0xff] }
 0x64b   : > { %9778 = vrcp.f32 %v2340_v2 }
 0x64e   : > { %v2344_v23 = vpop.xlane.xlu0 %2343 }
 0x64f   : > { %9780 = vrcp.f32 %v2344_v23  ;;  %v15274_v23 = vld [vmem:[#allocation62_spill] sm:$0xff] }
 0x652   : > { %v2346_v47 = vpop.xlane.xlu0 %2345 }
 0x653   : > { %9782 = vrcp.f32 %v2346_v47  ;;  %v15275_v47 = vld [vmem:[#allocation76_spill] sm:$0xff] }
 0x656   : > { %v2853_v27 = vpop.permute.xlu0 %2852 }
 0x657   : > { %9094 = vmatprep.subr.msk.bf16.mxu1 %vm1832_vm0, %v2853_v27  ;;  %v2896_v62 = vsel %vm1832_vm0, %v2853_v27, 0  ;;  %v15277_v27 = vld [vmem:[#allocation67_spill] sm:$0xff] }
 0x658   : > { %v9779_v59 = vpop.eup %9778  ;;  %8659 = vmatpush3.bf16.xpose.msra.mxu1 %v2896_v62  ;;  %v15278_v62 = vld [vmem:[#allocation80_spill] sm:$0xff] }
 0x659   : > { %v2407_v19 = vmul.f32 %v9779_v59, %v12186_v11 }
 0x65a   : > { %v2636_v41 = vpop.permute.xlu0 %2635 }
 0x65b   : > { %8639 = vmatmul.mubr.msk.bf16.gmra.mxu0 %vm1832_vm0, %v2636_v41  ;;  %v2425_v40 = vpack.c.bf16 %v2408_v5, %v2407_v19  ;;  %v15280_v19 = vld [vmem:[#allocation70_spill] sm:$0xff] }
 0x65c   : > { %8642 = vmatprep.mubr.msk.bf16.mxu0 %vm1832_vm0, %v12291_v55  ;;  %v9781_v38 = vpop.eup %9780  ;;  %v15282_v41 = vld [vmem:[#allocation50_spill] sm:$0xff] }
 0x65d   : > { %8614 = vmatprep.mubr.bf16.mxu1 %v2425_v40  ;;  %v2409_v56 = vmul.f32 %v9781_v38, %v12194_v24  ;;  %v15283_v40 = vld [vmem:[#allocation73_spill] sm:$0xff] }
 0x65e   : > { %v2851_v43 = vpop.permute.xlu0 %2850 }
 0x65f   : > { %9095 = vmatprep.subr.msk.bf16.mxu1 %vm1832_vm0, %v2851_v43  ;;  %v2893_v4 = vsel %vm1832_vm0, %v2851_v43, 0  ;;  %v15285_v43 = vld [vmem:[#allocation46_spill] sm:$0xff] }
 0x660   : > { %v9783_v63 = vpop.eup %9782  ;;  %8661 = vmatpush3.bf16.xpose.msra.mxu1 %v2893_v4  ;;  %v15286_v4 = vld [vmem:[#allocation78_spill] sm:$0xff] }
 0x661   : > { %9096 = vmatprep.subr.msk.bf16.mxu1 %vm1832_vm0, %v12301_v10  ;;  %v2410_v11 = vmul.f32 %v9783_v63, %v12204_v18 }
 0x662   : > { %v2640_v25 = vpop.permute.xlu0 %2639 }
 0x663   : > { %8643 = vmatmul.mubr.msk.bf16.gmra.mxu0 %vm1832_vm0, %v2640_v25  ;;  %v2426_v55 = vpack.c.bf16 %v2410_v11, %v2409_v56  ;;  %v15288_v56 = vld [vmem:[#allocation53_spill] sm:$0xff] }
 0x664   : > { %v15290_v25 = vld [vmem:[#allocation41_spill] sm:$0xff] }
 0x665   : > { %8615 = vmatmul.mubr.bf16.gmra.mxu1 %v2426_v55 }
 0x666   : > { %8666 = vmatprep.mubr.msk.bf16.mxu1 %vm1832_vm0, %v2823_v54  ;;  %v2642_v46 = vpop.permute.xlu0 %2641 }
 0x667   : > { %8646 = vmatprep.mubr.msk.bf16.mxu0 %vm1832_vm0, %v2642_v46  ;;  %v15292_v46 = vld [vmem:[#allocation48_spill] sm:$0xff] }
 0x668   : > { %8663 = vmatpush3.bf16.xpose.msra.mxu1 %v2890_v21 }
 0x66a   : > { %v2847_v42 = vpop.permute.xlu0 %2846 }
 0x66b   : > { %8647 = vmatmul.mubr.msk.bf16.gmra.mxu0 %vm1832_vm0, %v12308_v52  ;;  %9097 = vmatprep.subr.msk.bf16.mxu1 %vm1832_vm0, %v2847_v42  ;;  %v2887_v24 = vsel %vm1832_vm0, %v2847_v42, 0 }
 0x66e   : > { %v2825_v18 = vpop.permute.xlu0 %2824 }
 0x670   : > { %8665 = vmatpush3.bf16.xpose.msra.mxu1 %v2887_v24  ;;  %v15295_v24 = vld [vmem:[#allocation44_spill] sm:$0xff] }
 0x672   : > { %v2829_v54 = vpop.permute.xlu0 %2828 }
 0x676   : > { %v2833_v10 = vpop.permute.xlu0 %2832 }
 0x677   : > { %8667 = vmatmul.mubr.msk.bf16.vlgmr.msra.gmra.mxu1 %vm1832_vm0, %v2825_v18  ;;  %v15296_v18 = vld [vmem:[#allocation39_spill] sm:$0xff] }
 0x678   : > { %8670 = vmatprep.mubr.msk.bf16.mxu1 %vm1832_vm0, %v2827_v50 }
 0x67a   : > { %v2837_v52 = vpop.permute.xlu0 %2836 }
 0x67f   : > { %8671 = vmatmul.mubr.msk.bf16.gmra.mxu1 %vm1832_vm0, %v2829_v54 }
 0x680   : > { %8674 = vmatprep.mubr.msk.bf16.mxu1 %vm1832_vm0, %v2831_v61 }
 0x685   : > { %v12393_v29 = vpop.f32.mrf.mxu1 }
 0x686   : > { %15271 = vst [vmem:[#allocation66_spill] sm:$0xff] %v12393_v29 }
 0x687   : > { %8675 = vmatmul.mubr.msk.bf16.gmra.mxu1 %vm1832_vm0, %v2833_v10  ;;  %v12397_v2 = vpop.f32.mrf.mxu1 }
 0x688   : > { %8678 = vmatprep.mubr.msk.bf16.mxu1 %vm1832_vm0, %v2835_v17  ;;  %15273 = vst [vmem:[#allocation69_spill] sm:$0xff] %v12397_v2  ;;  %v3008_v2 = vpop.xlane.xlu1 %3007 }
 0x689   : > { %v12403_v35 = vpop.f32.mrf.mxu1  ;;  %v3071_v29 = vsub.f32 %v12268_v57, %v3008_v2 }
 0x68a   : > { %15276 = vst [vmem:[#allocation49_spill] sm:$0xff] %v12403_v35 }
 0x68b   : > { %v12409_v59 = vpop.f32.mrf.mxu1 }
 0x68c   : > { %15279 = vst [vmem:[#allocation77_spill] sm:$0xff] %v12409_v59 }
 0x68f   : > { %8679 = vmatmul.mubr.msk.bf16.gmra.mxu1 %vm1832_vm0, %v2837_v52  ;;  %v15300_v52 = vld [vmem:[#allocation37_spill] sm:$0xff] }
 0x691   : > { %v12413_v5 = vpop.f32.mrf.mxu1 }
 0x692   : > { %15281 = vst [vmem:[#allocation87_spill] sm:$0xff] %v12413_v5 }
 0x693   : > { %v12419_v38 = vpop.f32.mrf.mxu1 }
 0x694   : > { %15284 = vst [vmem:[#allocation88_spill] sm:$0xff] %v12419_v38 }
 0x695   : > { %v12425_v63 = vpop.f32.mrf.mxu1 }
 0x696   : > { %15287 = vst [vmem:[#allocation89_spill] sm:$0xff] %v12425_v63 }
 0x697   : > { %v12431_v11 = vpop.f32.mrf.mxu1 }
 0x698   : > { %15289 = vst [vmem:[#allocation90_spill] sm:$0xff] %v12431_v11 }
 0x6a5   : > { %v12435_v55 = vpop.f32.mrf.mxu1 }
 0x6a6   : > { %15291 = vst [vmem:[#allocation91_spill] sm:$0xff] %v12435_v55 }
 0x6a7   : > { %v12441_v21 = vpop.f32.mrf.mxu1 }
 0x6a8   : > { %15293 = vst [vmem:[#allocation92_spill] sm:$0xff] %v12441_v21 }
 0x6a9   : > { %v12447_v42 = vpop.f32.mrf.mxu1 }
 0x6aa   : > { %15294 = vst [vmem:[#allocation93_spill] sm:$0xff] %v12447_v42  ;;  %v15305_v42 = vld [vmem:[#allocation57_spill] sm:$0xff] }
 0x6ab   : > { %v12453_v54 = vpop.f32.mrf.mxu1  ;;  %v3010_v11 = vpop.xlane.xlu0 %3009 }
 0x6ac   : > { %15297 = vst [vmem:[#allocation94_spill] sm:$0xff] %v12453_v54  ;;  %v15302_v54 = vld [vmem:[#allocation42_spill] sm:$0xff] }
 0x6af   : > { %v3012_v5 = vpop.xlane.xlu0 %3011 }
 0x6e9   : > { %v12457_v10 = vpop.f32.mrf.mxu1 }
 0x6ea   : > { %15298 = vst [vmem:[#allocation95_spill] sm:$0xff] %v12457_v10  ;;  %v15303_v10 = vld [vmem:[#allocation38_spill] sm:$0xff] }
 0x6eb   : > { %v12463_v17 = vpop.f32.mrf.mxu1 }
 0x6ec   : > { %15299 = vst [vmem:[#allocation96_spill] sm:$0xff] %v12463_v17  ;;  %v15306_v17 = vld [vmem:[#allocation58_spill] sm:$0xff] }
 0x6ed   : > { %v12469_v21 = vpop.f32.mrf.mxu1 }
 0x6ee   : > { %15301 = vst [vmem:[#allocation97_spill] sm:$0xff] %v12469_v21 }
 0x6ef   : > { %v12475_v55 = vpop.f32.mrf.mxu1 }
 0x6f0   : > { %15304 = vst [vmem:[#allocation98_spill] sm:$0xff] %v12475_v55 }
 0x6f1   : > { %v12481_v38 = vpop.f32.mrf.mxu1 }
 0x6f2   : > { %15307 = vst [vmem:[#allocation99_spill] sm:$0xff] %v12481_v38 }
 0x6f3   : > { %v12487_v21 = vpop.f32.mrf.mxu1 }
 0x6f4   : > { %15308 = vst [vmem:[#allocation100_spill] sm:$0xff] %v12487_v21 }
 0x6f5   : > { %v12493_v55 = vpop.f32.mrf.mxu1 }
 0x6f6   : > { %15309 = vst [vmem:[#allocation101_spill] sm:$0xff] %v12493_v55  ;;  %v3073_v55 = vsub.f32 %v12264_v48, %v3012_v5 }
 0x6f7   : > { %v12499_v38 = vpop.f32.mrf.mxu1 }
 0x6f8   : > { %15310 = vst [vmem:[#allocation102_spill] sm:$0xff] %v12499_v38  ;;  %v3107_v35 = vmul.f32 1.442695, %v3073_v55  ;;  %v3103_v38 = vmul.f32 1.442695, %v3071_v29 }
 0x6f9   : > { %v12503_v21 = vpop.f32.mrf.mxu1 }
 0x6fa   : > { %15311 = vst [vmem:[#allocation103_spill] sm:$0xff] %v12503_v21  ;;  %9784 = vpow2.f32 %v3107_v35 }
 0x6fb   : > { %v12505_v63 = vpop.f32.mrf.mxu1  ;;  %9786 = vpow2.f32 %v3103_v38 }
 0x6fc   : > { %15312 = vst [vmem:[#allocation104_spill] sm:$0xff] %v12505_v63  ;;  %v3072_v63 = vsub.f32 %v12286_v33, %v3010_v11 }
 0x6fd   : > { %v12508_v59 = vpop.f32.mrf.mxu1 }
 0x6fe   : > { %15313 = vst [vmem:[#allocation105_spill] sm:$0xff] %v12508_v59  ;;  %v3105_v48 = vmul.f32 1.442695, %v3072_v63 }
 0x707   : > { %v12521_v2 = vpop.eup %9784 }
 0x708   : > { %v12530_v38 = vpop.eup %9786 }
 0x71b   : > { %v12357_v14 = vpop.f32.mrf.mxu0 }
 0x71d   : > { %v12359_v9 = vpop.f32.mrf.mxu0 }
 0x71e   : > { %3015 = vmax.xlane.f32.xlu0 %v12359_v9 }
 0x71f   : > { %v12362_v16 = vpop.f32.mrf.mxu0 }
 0x721   : > { %v12364_v31 = vpop.f32.mrf.mxu0 }
 0x722   : > { %3019 = vmax.xlane.f32.xlu0 %v12357_v14  ;;  %3017 = vmax.xlane.f32.xlu1 %v12364_v31 }
 0x723   : > { %v12368_v22 = vpop.f32.mrf.mxu0 }
 0x725   : > { %v12370_v44 = vpop.f32.mrf.mxu0 }
 0x726   : > { %3021 = vmax.xlane.f32.xlu1 %v12362_v16  ;;  %3023 = vmax.xlane.f32.xlu0 %v12370_v44 }
 0x727   : > { %v12374_v60 = vpop.f32.mrf.mxu0 }
 0x729   : > { %v12376_v50 = vpop.f32.mrf.mxu0 }
 0x72a   : > { %3027 = vmax.xlane.f32.xlu0 %v12368_v22  ;;  %3025 = vmax.xlane.f32.xlu1 %v12376_v50 }
 0x72b   : > { %v12380_v26 = vpop.f32.mrf.mxu0 }
 0x72d   : > { %v12382_v15 = vpop.f32.mrf.mxu0 }
 0x72e   : > { %3029 = vmax.xlane.f32.xlu1 %v12374_v60  ;;  %3031 = vmax.xlane.f32.xlu0 %v12382_v15 }
 0x72f   : > { %v12386_v1 = vpop.f32.mrf.mxu0 }
 0x731   : > { %v12388_v61 = vpop.f32.mrf.mxu0 }
 0x732   : > { %3035 = vmax.xlane.f32.xlu0 %v12380_v26  ;;  %3033 = vmax.xlane.f32.xlu1 %v12388_v61 }
 0x736   : > { %3037 = vmax.xlane.f32.xlu1 %v12386_v1 }
 0x747   : > { %3331 = vrot.lane.b32.xlu1 %v15272_v34, %s10707_s2 }
 0x748   : > { %3333 = vrot.lane.b32.xlu0 %v15274_v23, %s10707_s2 }
 0x74b   : > { %3323 = vrot.lane.b32.xlu1 %v15275_v47, %s10707_s2 }
 0x74c   : > { %3329 = vrot.lane.b32.xlu0 %v15277_v27, %s10707_s2 }
 0x74f   : > { %3319 = vrot.lane.b32.xlu1 %v15278_v62, %s10707_s2 }
 0x750   : > { %3327 = vrot.lane.b32.xlu0 %v15280_v19, %s10707_s2 }
 0x753   : > { %3597 = vrot.lane.b32.xlu1 %v15282_v41, %s10708_s18 }
 0x754   : > { %3325 = vrot.lane.b32.xlu0 %v15283_v40, %s10707_s2 }
 0x757   : > { %3593 = vrot.lane.b32.xlu1 %v15285_v43, %s10708_s18 }
 0x758   : > { %3321 = vrot.lane.b32.xlu0 %v15286_v4, %s10707_s2 }
 0x75b   : > { %3460 = vrot.lane.b32.xlu1 %v12198_v8, %s10707_s2 }
 0x75c   : > { %3599 = vrot.lane.b32.xlu0 %v15288_v56, %s10708_s18 }
 0x75f   : > { %3589 = vrot.lane.b32.xlu1 %v15290_v25, %s10708_s18 }
 0x760   : > { %3595 = vrot.lane.b32.xlu0 %v15292_v46, %s10708_s18 }
 0x763   : > { %3456 = vrot.lane.b32.xlu1 %v12217_v58, %s10707_s2 }
 0x764   : > { %3462 = vrot.lane.b32.xlu0 %v11875_v7, %s10707_s2 }
 0x767   : > { %3454 = vrot.lane.b32.xlu1 %v15253_v51, %s10707_s2  ;;  %v15324_v51 = vld [vmem:[#allocation71_spill] sm:$0xff] }
 0x768   : > { %3591 = vrot.lane.b32.xlu0 %v15295_v24, %s10708_s18 }
 0x76b   : > { %3587 = vrot.lane.b32.xlu1 %v15296_v18, %s10708_s18 }
 0x76c   : > { %3458 = vrot.lane.b32.xlu0 %v11858_v12, %s10707_s2 }
 0x76f   : > { %3452 = vrot.lane.b32.xlu1 %v12226_v6, %s10707_s2 }
 0x770   : > { %3450 = vrot.lane.b32.xlu0 %v15257_v3, %s10707_s2 }
 0x773   : > { %3585 = vrot.lane.b32.xlu1 %v15300_v52, %s10708_s18 }
 0x774   : > { %3448 = vrot.lane.b32.xlu0 %v12236_v32, %s10707_s2 }
 0x777   : > { %3569 = vrot.lane.b32.xlu1 %v15302_v54, %s10708_s18 }
 0x778   : > { %3571 = vrot.lane.b32.xlu0 %v15303_v10, %s10708_s18 }
 0x77b   : > { %3776 = vrot.lane.b32.xlu1 %v15305_v42, %s10708_s18 }
 0x77c   : > { %3774 = vrot.lane.b32.xlu0 %v15306_v17, %s10708_s18 }
 0x77f   : > { %3770 = vrot.lane.b32.xlu1 %v11778_v28, %s10708_s18 }
 0x780   : > { %3772 = vrot.lane.b32.xlu0 %v11766_v36, %s10708_s18 }
 0x783   : > { %3573 = vrot.lane.b32.xlu1 %v11639_v39, %s10708_s18 }
 0x784   : > { %3768 = vrot.lane.b32.xlu0 %v15261_v53, %s10708_s18  ;;  %v12511_v53 = vpop.f32.mrf.mxu1 }
 0x785   : > { %15314 = vst [vmem:[#allocation106_spill] sm:$0xff] %v12511_v53 }
 0x787   : > { %3577 = vrot.lane.b32.xlu1 %v11656_v20, %s10708_s18  ;;  %v3014_v20 = vpop.xlane.xlu1 %3013 }
 0x788   : > { %3575 = vrot.lane.b32.xlu0 %v15262_v45, %s10708_s18  ;;  %v3074_v39 = vsub.f32 %v12273_v13, %v3014_v20 }
 0x78a   : > { %v3109_v21 = vmul.f32 1.442695, %v3074_v39 }
 0x78c   : > { %3766 = vrot.lane.b32.xlu0 %v15263_v0, %s10708_s18  ;;  %v12514_v0 = vpop.f32.mrf.mxu1  ;;  %9788 = vpow2.f32 %v3109_v21 }
 0x78d   : > { %15315 = vst [vmem:[#allocation107_spill] sm:$0xff] %v12514_v0  ;;  %9790 = vpow2.f32 %v3105_v48 }
 0x78e   : > { %v12517_v28 = vpop.f32.mrf.mxu1 }
 0x78f   : > { %15316 = vst [vmem:[#allocation108_spill] sm:$0xff] %v12517_v28 }
 0x790   : > { %v12519_v5 = vpop.f32.mrf.mxu1 }
 0x791   : > { %15317 = vst [vmem:[#allocation109_spill] sm:$0xff] %v12519_v5 }
 0x792   : > { %v12523_v29 = vpop.f32.mrf.mxu1 }
 0x793   : > { %15318 = vst [vmem:[#allocation110_spill] sm:$0xff] %v12523_v29 }
 0x794   : > { %v12526_v35 = vpop.f32.mrf.mxu1 }
 0x795   : > { %15319 = vst [vmem:[#allocation111_spill] sm:$0xff] %v12526_v35 }
 0x796   : > { %v12533_v21 = vpop.f32.mrf.mxu1 }
 0x797   : > { %15320 = vst [vmem:[#allocation112_spill] sm:$0xff] %v12533_v21 }
 0x799   : > { %v12536_v29 = vpop.eup %9788 }
 0x79a   : > { %v12544_v0 = vpop.eup %9790 }
 0x7a7   : > { %v3016_v57 = vpop.xlane.xlu0 %3015 }
 0x7a8   : > { %v3075_v33 = vsub.f32 %v12359_v9, %v3016_v57  ;;  %v12539_v9 = vpop.f32.mrf.mxu1 }
 0x7a9   : > { %15321 = vst [vmem:[#allocation113_spill] sm:$0xff] %v12539_v9 }
 0x7aa   : > { %v3111_v28 = vmul.f32 1.442695, %v3075_v33 }
 0x7ab   : > { %v3018_v20 = vpop.xlane.xlu1 %3017  ;;  %3171 = vadd.xlane.f32.xlu1 %v12521_v2  ;;  %v3020_v13 = vpop.xlane.xlu0 %3019 }
 0x7ac   : > { %v3077_v39 = vsub.f32 %v12357_v14, %v3020_v13  ;;  %v3076_v57 = vsub.f32 %v12364_v31, %v3018_v20 }
 0x7ae   : > { %v3115_v63 = vmul.f32 1.442695, %v3077_v39  ;;  %v3113_v5 = vmul.f32 1.442695, %v3076_v57 }
 0x7af   : > { %v3022_v11 = vpop.xlane.xlu1 %3021  ;;  %3167 = vadd.xlane.f32.xlu1 %v12530_v38  ;;  %v3024_v55 = vpop.xlane.xlu0 %3023 }
 0x7b0   : > { %v3078_v48 = vsub.f32 %v12362_v16, %v3022_v11  ;;  %9792 = vpow2.f32 %v3115_v63  ;;  %v3079_v21 = vsub.f32 %v12370_v44, %v3024_v55  ;;  %v12547_v11 = vpop.f32.mrf.mxu1 }
 0x7b1   : > { %9794 = vpow2.f32 %v3111_v28  ;;  %15322 = vst [vmem:[#allocation114_spill] sm:$0xff] %v12547_v11 }
 0x7b2   : > { %v3117_v13 = vmul.f32 1.442695, %v3078_v48  ;;  %v3119_v31 = vmul.f32 1.442695, %v3079_v21  ;;  %v12551_v28 = vpop.f32.mrf.mxu1 }
 0x7b3   : > { %v3026_v35 = vpop.xlane.xlu1 %3025  ;;  %3173 = vadd.xlane.f32.xlu1 %v12536_v29  ;;  %v3028_v14 = vpop.xlane.xlu0 %3027 }
 0x7b4   : > { %v3081_v39 = vsub.f32 %v12368_v22, %v3028_v14  ;;  %9796 = vpow2.f32 %v3117_v13  ;;  %v3080_v9 = vsub.f32 %v12376_v50, %v3026_v35  ;;  %v12556_v57 = vpop.f32.mrf.mxu1 }
 0x7b6   : > { %v3123_v16 = vmul.f32 1.442695, %v3081_v39  ;;  %v3121_v55 = vmul.f32 1.442695, %v3080_v9 }
 0x7b7   : > { %v3030_v33 = vpop.xlane.xlu1 %3029  ;;  %3169 = vadd.xlane.f32.xlu1 %v12544_v0  ;;  %v3032_v63 = vpop.xlane.xlu0 %3031 }
 0x7b8   : > { %9798 = vpow2.f32 %v3123_v16  ;;  %v3082_v22 = vsub.f32 %v12374_v60, %v3030_v33 }
 0x7b9   : > { %9800 = vpow2.f32 %v3113_v5  ;;  %v3083_v5 = vsub.f32 %v12382_v15, %v3032_v63 }
 0x7ba   : > { %9802 = vpow2.f32 %v3119_v31  ;;  %v3125_v48 = vmul.f32 1.442695, %v3082_v22 }
 0x7bb   : > { %v3034_v44 = vpop.xlane.xlu1 %3033  ;;  %v3036_v20 = vpop.xlane.xlu0 %3035  ;;  %9804 = vpow2.f32 %v3121_v55 }
 0x7bc   : > { %v3085_v14 = vsub.f32 %v12380_v26, %v3036_v20  ;;  %9806 = vpow2.f32 %v3125_v48  ;;  %v12563_v26 = vpop.f32.mrf.mxu1  ;;  %v3084_v22 = vsub.f32 %v12388_v61, %v3034_v44 }
 0x7bd   : > { %v12554_v39 = vpop.eup %9792 }
 0x7be   : > { %3179 = vadd.xlane.f32.xlu0 %v12554_v39  ;;  %v3131_v21 = vmul.f32 1.442695, %v3085_v14  ;;  %v12561_v9 = vpop.eup %9794  ;;  %v12571_v63 = vpop.f32.mrf.mxu1  ;;  %v3129_v14 = vmul.f32 1.442695, %v3084_v22 }
 0x7bf   : > { %v3038_v50 = vpop.xlane.xlu1 %3037  ;;  %v3334_v35 = vpop.permute.xlu0 %3333 }
 0x7c0   : > { %v3086_v60 = vsub.f32 %v12386_v1, %v3038_v50  ;;  %8682 = vmatprep.subr.bf16.mxu0 %v3334_v35  ;;  %v3127_v1 = vmul.f32 1.442695, %v3083_v5  ;;  %v12579_v61 = vpop.f32.mrf.mxu1 }
 0x7c1   : > { %8683 = vmatpush3.bf16.msra.mxu0 %v3334_v35  ;;  %v12566_v31 = vpop.eup %9796 }
 0x7c2   : > { %v3133_v13 = vmul.f32 1.442695, %v3086_v60  ;;  %3175 = vadd.xlane.f32.xlu0 %v12561_v9 }
 0x7c3   : > { %v3332_v16 = vpop.permute.xlu1 %3331  ;;  %v3330_v33 = vpop.permute.xlu0 %3329 }
 0x7c4   : > { %9808 = vpow2.f32 %v3133_v13  ;;  %8684 = vmatprep.subr.bf16.mxu0 %v3332_v16 }
 0x7c5   : > { %9810 = vpow2.f32 %v3131_v21  ;;  %8685 = vmatpush3.bf16.msra.mxu0 %v3332_v16  ;;  %v12569_v15 = vpop.eup %9798  ;;  %v12587_v21 = vpop.f32.mrf.mxu1 }
 0x7c6   : > { %8686 = vmatprep.subr.bf16.mxu0 %v3330_v33  ;;  %3181 = vadd.xlane.f32.xlu0 %v12566_v31  ;;  %v12575_v48 = vpop.eup %9800  ;;  %9812 = vpow2.f32 %v3127_v1 }
 0x7c7   : > { %3187 = vadd.xlane.f32.xlu1 %v12569_v15  ;;  %v3324_v20 = vpop.permute.xlu1 %3323  ;;  %v3328_v55 = vpop.permute.xlu0 %3327  ;;  %9814 = vpow2.f32 %v3129_v14 }
 0x7c8   : > { %v12577_v50 = vpop.eup %9802  ;;  %v12597_v22 = vpop.f32.mrf.mxu1 }
 0x7c9   : > { %8687 = vmatpush3.bf16.msra.mxu0 %v3330_v33  ;;  %v12583_v60 = vpop.eup %9804 }
 0x7ca   : > { %8688 = vmatprep.subr.bf16.mxu0 %v3328_v55  ;;  %3177 = vadd.xlane.f32.xlu0 %v12575_v48  ;;  %v12585_v5 = vpop.eup %9806  ;;  %v12607_v53 = vpop.f32.mrf.mxu1 }
 0x7cb   : > { %3183 = vadd.xlane.f32.xlu1 %v12577_v50  ;;  %v3320_v44 = vpop.permute.xlu1 %3319  ;;  %v3326_v35 = vpop.permute.xlu0 %3325 }
 0x7cc   : > { %v12615_v45 = vpop.f32.mrf.mxu1 }
 0x7cd   : > { %8689 = vmatpush3.bf16.msra.mxu0 %v3328_v55 }
 0x7ce   : > { %8690 = vmatprep.subr.bf16.mxu0 %v3326_v35  ;;  %3185 = vadd.xlane.f32.xlu0 %v12583_v60  ;;  %v12621_v42 = vpop.f32.mrf.mxu1 }
 0x7cf   : > { %3189 = vadd.xlane.f32.xlu1 %v12585_v5  ;;  %v12591_v13 = vpop.permute.xlu1 %3597  ;;  %v3322_v16 = vpop.permute.xlu0 %3321 }
 0x7d0   : > { %v12629_v54 = vpop.f32.mrf.mxu1 }
 0x7d1   : > { %v12593_v33 = vpop.eup %9808  ;;  %8691 = vmatpush3.bf16.msra.mxu0 %v3326_v35 }
 0x7d2   : > { %v12595_v1 = vpop.eup %9810  ;;  %8692 = vmatprep.subr.bf16.mxu0 %v3324_v20  ;;  %v12633_v32 = vpop.f32.mrf.mxu1 }
 0x7d3   : > { %3197 = vadd.xlane.f32.xlu1 %v12593_v33  ;;  %3195 = vadd.xlane.f32.xlu0 %v12595_v1  ;;  %v12601_v55 = vpop.permute.xlu1 %3593  ;;  %v12603_v14 = vpop.permute.xlu0 %3599 }
 0x7d4   : > { %v12605_v11 = vpop.eup %9812 }
 0x7d5   : > { %8693 = vmatpush3.bf16.msra.mxu0 %v3324_v20  ;;  %v12613_v36 = vpop.eup %9814 }
 0x7d6   : > { %8694 = vmatprep.subr.bf16.mxu0 %v3322_v16 }
 0x7d7   : > { %3045 = vmax.xlane.f32.xlu1 %v12563_v26  ;;  %3191 = vadd.xlane.f32.xlu0 %v12605_v11  ;;  %v3461_v35 = vpop.permute.xlu1 %3460  ;;  %v12611_v59 = vpop.permute.xlu0 %3595 }
 0x7d9   : > { %8695 = vmatpush3.bf16.msra.mxu0 %v3322_v16 }
 0x7da   : > { %8696 = vmatprep.subr.bf16.mxu0 %v3320_v44 }
 0x7db   : > { %3041 = vmax.xlane.f32.xlu1 %v12571_v63  ;;  %3193 = vadd.xlane.f32.xlu0 %v12613_v36  ;;  %v12619_v20 = vpop.permute.xlu1 %3589  ;;  %v3463_v17 = vpop.permute.xlu0 %3462 }
 0x7dc   : > { %8714 = vmatprep.subr.bf16.mxu1 %v3463_v17 }
 0x7dd   : > { %8697 = vmatpush3.bf16.msra.mxu0 %v3320_v44  ;;  %8715 = vmatpush3.bf16.msra.mxu1 %v3463_v17 }
 0x7de   : > { %8716 = vmatprep.subr.bf16.mxu1 %v3461_v35  ;;  %9098 = vmatprep.subr.msk.bf16.mxu0 %vm1832_vm0, %v12603_v14 }
 0x7df   : > { %3049 = vmax.xlane.f32.xlu1 %v12607_v53  ;;  %3043 = vmax.xlane.f32.xlu0 %v12551_v28  ;;  %v3457_v16 = vpop.permute.xlu1 %3456  ;;  %v12627_v10 = vpop.permute.xlu0 %3591 }
 0x7e1   : > { %8717 = vmatpush3.bf16.msra.mxu1 %v3461_v35  ;;  %v12639_v35 = vpop.f32.mrf.mxu1 }
 0x7e3   : > { %3059 = vmax.xlane.f32.xlu1 %v12615_v45  ;;  %3039 = vmax.xlane.f32.xlu0 %v12556_v57  ;;  %v3455_v17 = vpop.permute.xlu1 %3454  ;;  %v3459_v44 = vpop.permute.xlu0 %3458 }
 0x7e4   : > { %8718 = vmatprep.subr.bf16.mxu1 %v3459_v44 }
 0x7e5   : > { %8719 = vmatpush3.bf16.msra.mxu1 %v3459_v44  ;;  %v12643_v44 = vpop.f32.mrf.mxu1 }
 0x7e6   : > { %8720 = vmatprep.subr.bf16.mxu1 %v3457_v16 }
 0x7e7   : > { %3055 = vmax.xlane.f32.xlu1 %v12621_v42  ;;  %3051 = vmax.xlane.f32.xlu0 %v12579_v61  ;;  %v12637_v52 = vpop.permute.xlu1 %3587  ;;  %v3451_v6 = vpop.permute.xlu0 %3450 }
 0x7e8   : > { %v12655_v24 = vpop.f32.mrf.mxu1 }
 0x7e9   : > { %8721 = vmatpush3.bf16.msra.mxu1 %v3457_v16 }
 0x7ea   : > { %8722 = vmatprep.subr.bf16.mxu1 %v3455_v17 }
 0x7eb   : > { %3067 = vmax.xlane.f32.xlu1 %v12639_v35  ;;  %3047 = vmax.xlane.f32.xlu0 %v12587_v21  ;;  %v3453_v3 = vpop.permute.xlu1 %3452  ;;  %v3449_v18 = vpop.permute.xlu0 %3448 }
 0x7ed   : > { %8723 = vmatpush3.bf16.msra.mxu1 %v3455_v17 }
 0x7ee   : > { %8724 = vmatprep.subr.bf16.mxu1 %v3453_v3 }
 0x7ef   : > { %3063 = vmax.xlane.f32.xlu1 %v12643_v44  ;;  %3053 = vmax.xlane.f32.xlu0 %v12597_v22  ;;  %v12647_v12 = vpop.permute.xlu1 %3585 }
 0x7f1   : > { %8725 = vmatpush3.bf16.msra.mxu1 %v3453_v3  ;;  %v12660_v3 = vpop.f32.mrf.mxu1 }
 0x7f2   : > { %8726 = vmatprep.subr.bf16.mxu1 %v3451_v6 }
 0x7f3   : > { %3061 = vmax.xlane.f32.xlu0 %v12629_v54  ;;  %v12650_v16 = vpop.permute.xlu1 %3569 }
 0x7f5   : > { %8727 = vmatpush3.bf16.msra.mxu1 %v3451_v6 }
 0x7f6   : > { %8728 = vmatprep.subr.bf16.mxu1 %v3449_v18 }
 0x7f7   : > { %3057 = vmax.xlane.f32.xlu0 %v12633_v32  ;;  %v12653_v17 = vpop.permute.xlu1 %3776 }
 0x7f8   : > { %15323 = vst [vmem:[#allocation115_spill] sm:$0xff] %v12653_v17 }
 0x7f9   : > { %8729 = vmatpush3.bf16.msra.mxu1 %v3449_v18  ;;  %v12669_v18 = vpop.permute.xlu0 %3571 }
 0x7fa   : > { %9106 = vmatprep.subr.msk.bf16.mxu1 %vm1832_vm0, %v12653_v17  ;;  %v3647_v17 = vsel %vm1832_vm0, %v12603_v14, 0 }
 0x7fb   : > { %3069 = vmax.xlane.f32.xlu0 %v12655_v24  ;;  %v12667_v6 = vpop.permute.xlu1 %3770 }
 0x7fc   : > { %15325 = vst [vmem:[#allocation116_spill] sm:$0xff] %v12667_v6 }
 0x7fd   : > { %v12673_v58 = vpop.permute.xlu0 %3774 }
 0x7fe   : > { %15326 = vst [vmem:[#allocation117_spill] sm:$0xff] %v12673_v58 }
 0x7ff   : > { %3065 = vmax.xlane.f32.xlu0 %v12660_v3  ;;  %v12671_v7 = vpop.permute.xlu1 %3573 }
 0x800   : > { %3764 = vrot.lane.b32.xlu1 %v15324_v51, %s10708_s18 }
 0x801   : > { %v12677_v25 = vpop.permute.xlu0 %3772 }
 0x802   : > { %15327 = vst [vmem:[#allocation118_spill] sm:$0xff] %v12677_v25 }
 0x803   : > { %v12675_v46 = vpop.permute.xlu1 %3577 }
 0x805   : > { %v12679_v8 = vpop.permute.xlu0 %3768 }
 0x806   : > { %15328 = vst [vmem:[#allocation119_spill] sm:$0xff] %v12679_v8 }
 0x809   : > { %v12681_v43 = vpop.permute.xlu0 %3575 }
 0x80d   : > { %v12683_v40 = vpop.permute.xlu0 %3766 }
 0x80e   : > { %15329 = vst [vmem:[#allocation120_spill] sm:$0xff] %v12683_v40 }
 0x815   : > { %3579 = vrot.lane.b32.xlu0 %v15264_v37, %s10708_s18 }
 0x834   : > { %v3172_v56 = vpop.xlane.xlu1 %3171 }
 0x838   : > { %v3168_v4 = vpop.xlane.xlu1 %3167 }
 0x83c   : > { %v3174_v51 = vpop.xlane.xlu1 %3173 }
 0x83d   : > { %9816 = vrcp.f32 %v3174_v51 }
 0x83e   : > { %9818 = vrcp.f32 %v3168_v4 }
 0x83f   : > { %9820 = vrcp.f32 %v3172_v56 }
 0x840   : > { %v3170_v37 = vpop.xlane.xlu1 %3169 }
 0x841   : > { %9822 = vrcp.f32 %v3170_v37 }
 0x847   : > { %v3180_v41 = vpop.xlane.xlu0 %3179 }
 0x84a   : > { %v9817_v19 = vpop.eup %9816 }
 0x84b   : > { %v9819_v62 = vpop.eup %9818  ;;  %v3176_v27 = vpop.xlane.xlu0 %3175  ;;  %v3266_v34 = vmul.f32 %v9817_v19, %v12536_v29 }
 0x84c   : > { %v9821_v47 = vpop.eup %9820  ;;  %v3263_v8 = vmul.f32 %v9819_v62, %v12530_v38  ;;  %v3641_v38 = vsel %vm1832_vm0, %v12611_v59, 0 }
 0x84d   : > { %v3265_v4 = vmul.f32 %v9821_v47, %v12521_v2  ;;  %v3644_v47 = vsel %vm1832_vm0, %v12591_v13, 0 }
 0x84e   : > { %v9823_v23 = vpop.eup %9822 }
 0x84f   : > { %v3264_v6 = vmul.f32 %v9823_v23, %v12544_v0  ;;  %v3182_v51 = vpop.xlane.xlu0 %3181  ;;  %v3296_v37 = vpack.c.bf16 %v3266_v34, %v3265_v4 }
 0x850   : > { %v3188_v25 = vpop.xlane.xlu1 %3187  ;;  %9824 = vrcp.f32 %v3182_v51 }
 0x851   : > { %v3295_v56 = vpack.c.bf16 %v3264_v6, %v3263_v8  ;;  %9826 = vrcp.f32 %v3176_v27 }
 0x852   : > { %9828 = vrcp.f32 %v3180_v41 }
 0x853   : > { %8698 = vmatprep.mubr.bf16.mxu0 %v3295_v56  ;;  %v3178_v58 = vpop.xlane.xlu0 %3177 }
 0x854   : > { %v3184_v40 = vpop.xlane.xlu1 %3183  ;;  %8699 = vmatmul.mubr.bf16.vlgmr.msra.gmra.mxu0 %v3296_v37  ;;  %9830 = vrcp.f32 %v3178_v58 }
 0x855   : > { %8747 = vmatpush3.bf16.xpose.msra.mxu0 %v3647_v17  ;;  %9832 = vrcp.f32 %v3184_v40 }
 0x856   : > { %9099 = vmatprep.subr.msk.bf16.mxu0 %vm1832_vm0, %v12591_v13 }
 0x857   : > { %v3186_v23 = vpop.xlane.xlu0 %3185 }
 0x858   : > { %v3190_v0 = vpop.xlane.xlu1 %3189  ;;  %9834 = vrcp.f32 %v3186_v23 }
 0x859   : > { %9836 = vrcp.f32 %v3190_v0 }
 0x85a   : > { %9838 = vrcp.f32 %v3188_v25 }
 0x85c   : > { %v3198_v8 = vpop.xlane.xlu1 %3197  ;;  %v3196_v34 = vpop.xlane.xlu0 %3195 }
 0x85d   : > { %8749 = vmatpush3.bf16.xpose.msra.mxu0 %v3644_v47  ;;  %v9825_v27 = vpop.eup %9824  ;;  %9840 = vrcp.f32 %v3198_v8 }
 0x85e   : > { %9100 = vmatprep.subr.msk.bf16.mxu0 %vm1832_vm0, %v12611_v59  ;;  %v9827_v62 = vpop.eup %9826  ;;  %9842 = vrcp.f32 %v3196_v34  ;;  %v3270_v2 = vmul.f32 %v9825_v27, %v12566_v31  ;;  %v3638_v27 = vsel %vm1832_vm0, %v12601_v55, 0 }
 0x85f   : > { %v9829_v19 = vpop.eup %9828  ;;  %v3267_v25 = vmul.f32 %v9827_v62, %v12561_v9 }
 0x860   : > { %v3192_v58 = vpop.xlane.xlu0 %3191  ;;  %v3046_v41 = vpop.xlane.xlu1 %3045  ;;  %v3269_v17 = vmul.f32 %v9829_v19, %v12554_v39 }
 0x861   : > { %v9831_v40 = vpop.eup %9830  ;;  %9844 = vrcp.f32 %v3192_v58 }
 0x862   : > { %v3268_v13 = vmul.f32 %v9831_v40, %v12575_v48  ;;  %v9833_v14 = vpop.eup %9832  ;;  %v3298_v31 = vpack.c.bf16 %v3270_v2, %v3269_v17  ;;  %v3090_v48 = vsub.f32 %v12563_v26, %v3046_v41 }
 0x863   : > { %v3271_v59 = vmul.f32 %v9833_v14, %v12577_v50  ;;  %v3635_v14 = vsel %vm1832_vm0, %v12627_v10, 0 }
 0x864   : > { %v3194_v29 = vpop.xlane.xlu0 %3193  ;;  %v3297_v6 = vpack.c.bf16 %v3268_v13, %v3267_v25  ;;  %v3042_v56 = vpop.xlane.xlu1 %3041  ;;  %v3141_v58 = vmul.f32 1.442695, %v3090_v48 }
 0x865   : > { %8751 = vmatpush3.bf16.xpose.msra.mxu0 %v3641_v38  ;;  %9846 = vrcp.f32 %v3194_v29  ;;  %v9835_v51 = vpop.eup %9834  ;;  %v3088_v50 = vsub.f32 %v12571_v63, %v3042_v56 }
 0x866   : > { %9101 = vmatprep.subr.msk.bf16.mxu0 %vm1832_vm0, %v12601_v55  ;;  %v9837_v4 = vpop.eup %9836  ;;  %8702 = vmatprep.mubr.bf16.mxu0 %v3297_v6  ;;  %v3272_v9 = vmul.f32 %v9835_v51, %v12583_v60 }
 0x867   : > { %8703 = vmatmul.mubr.bf16.gmra.mxu0 %v3298_v31  ;;  %v9839_v0 = vpop.eup %9838  ;;  %v3274_v34 = vmul.f32 %v9837_v4, %v12585_v5  ;;  %v3137_v55 = vmul.f32 1.442695, %v3088_v50 }
 0x868   : > { %v3044_v37 = vpop.xlane.xlu0 %3043  ;;  %v3299_v23 = vpack.c.bf16 %v3272_v9, %v3271_v59  ;;  %v3273_v26 = vmul.f32 %v9839_v0, %v12569_v15  ;;  %v3050_v62 = vpop.xlane.xlu1 %3049 }
 0x869   : > { %v3089_v39 = vsub.f32 %v12551_v28, %v3044_v37  ;;  %v3092_v63 = vsub.f32 %v12607_v53, %v3050_v62 }
 0x86a   : > { %8706 = vmatprep.mubr.bf16.mxu0 %v3299_v23  ;;  %v9841_v28 = vpop.eup %9840  ;;  %v3300_v19 = vpack.c.bf16 %v3274_v34, %v3273_v26 }
 0x86b   : > { %v3139_v8 = vmul.f32 1.442695, %v3089_v39  ;;  %v9843_v41 = vpop.eup %9842  ;;  %v3278_v25 = vmul.f32 %v9841_v28, %v12593_v33  ;;  %v3145_v53 = vmul.f32 1.442695, %v3092_v63  ;;  %v15332_v63 = vld [vmem:[#allocation82_spill] sm:$0xff] }
 0x86c   : > { %v3040_v47 = vpop.xlane.xlu0 %3039  ;;  %v3277_v38 = vmul.f32 %v9843_v41, %v12595_v1  ;;  %v3060_v0 = vpop.xlane.xlu1 %3059 }
 0x86d   : > { %v3087_v60 = vsub.f32 %v12556_v57, %v3040_v47  ;;  %8753 = vmatpush3.bf16.xpose.msra.mxu0 %v3638_v27  ;;  %9848 = vpow2.f32 %v3139_v8  ;;  %v15330_v47 = vld [vmem:[#allocation52_spill] sm:$0xff] }
 0x86e   : > { %9102 = vmatprep.subr.msk.bf16.mxu0 %vm1832_vm0, %v12627_v10  ;;  %v9845_v2 = vpop.eup %9844  ;;  %9850 = vpow2.f32 %v3141_v58  ;;  %v3302_v33 = vpack.c.bf16 %v3278_v25, %v3277_v38  ;;  %v3097_v58 = vsub.f32 %v12615_v45, %v3060_v0  ;;  %v15336_v38 = vld [vmem:[#allocation54_spill] sm:$0xff]  ;;  %v15337_v25 = vld [vmem:[#allocation56_spill] sm:$0xff] }
 0x86f   : > { %v3135_v5 = vmul.f32 1.442695, %v3087_v60  ;;  %8707 = vmatmul.mubr.bf16.gmra.mxu0 %v3300_v19  ;;  %v3275_v17 = vmul.f32 %v9845_v2, %v12605_v11 }
 0x870   : > { %v3052_v40 = vpop.xlane.xlu0 %3051  ;;  %v3056_v8 = vpop.xlane.xlu1 %3055  ;;  %v3155_v60 = vmul.f32 1.442695, %v3097_v58 }
 0x871   : > { %v3093_v57 = vsub.f32 %v12579_v61, %v3052_v40  ;;  %9852 = vpow2.f32 %v3135_v5  ;;  %v3095_v26 = vsub.f32 %v12621_v42, %v3056_v8 }
 0x872   : > { %v9847_v15 = vpop.eup %9846  ;;  %9854 = vpow2.f32 %v3137_v55  ;;  %v15331_v55 = vld [vmem:[#allocation59_spill] sm:$0xff] }
 0x873   : > { %v3147_v29 = vmul.f32 1.442695, %v3093_v57  ;;  %v3276_v6 = vmul.f32 %v9847_v15, %v12613_v36  ;;  %v3151_v28 = vmul.f32 1.442695, %v3095_v26  ;;  %v15333_v57 = vld [vmem:[#allocation83_spill] sm:$0xff]  ;;  %v15334_v15 = vld [vmem:[#allocation84_spill] sm:$0xff] }
 0x874   : > { %v3048_v13 = vpop.xlane.xlu0 %3047 }
 0x875   : > { %v3091_v51 = vsub.f32 %v12587_v21, %v3048_v13  ;;  %8755 = vmatpush3.bf16.xpose.msra.mxu0 %v3635_v14  ;;  %9856 = vpow2.f32 %v3147_v29  ;;  %v3301_v61 = vpack.c.bf16 %v3276_v6, %v3275_v17  ;;  %v3632_v21 = vsel %vm1832_vm0, %v12619_v20, 0  ;;  %v15335_v29 = vld [vmem:[#allocation51_spill] sm:$0xff] }
 0x876   : > { %9103 = vmatprep.subr.msk.bf16.mxu0 %vm1832_vm0, %v12619_v20  ;;  %9858 = vpow2.f32 %v3145_v53  ;;  %v3629_v20 = vsel %vm1832_vm0, %v12637_v52, 0 }
 0x877   : > { %v3143_v1 = vmul.f32 1.442695, %v3091_v51  ;;  %8710 = vmatprep.mubr.bf16.mxu0 %v3301_v61 }
 0x878   : > { %v3054_v31 = vpop.xlane.xlu0 %3053  ;;  %8711 = vmatmul.mubr.bf16.gmra.mxu0 %v3302_v33 }
 0x879   : > { %v3094_v10 = vsub.f32 %v12597_v22, %v3054_v31  ;;  %9860 = vpow2.f32 %v3143_v1  ;;  %8762 = vmatprep.mubr.msk.bf16.mxu0 %vm1832_vm0, %v12650_v16 }
 0x87a   : > { %v12731_v36 = vpop.eup %9848 }
 0x87b   : > { %v3149_v11 = vmul.f32 1.442695, %v3094_v10  ;;  %3203 = vadd.xlane.f32.xlu1 %v12731_v36  ;;  %v12736_v4 = vpop.eup %9850 }
 0x87c   : > { %v3062_v48 = vpop.xlane.xlu0 %3061 }
 0x87d   : > { %8757 = vmatpush3.bf16.xpose.msra.mxu0 %v3632_v21  ;;  %9862 = vpow2.f32 %v3149_v11  ;;  %v3098_v5 = vsub.f32 %v12629_v54, %v3062_v48 }
 0x87e   : > { %9104 = vmatprep.subr.msk.bf16.mxu0 %vm1832_vm0, %v12637_v52  ;;  %v12740_v22 = vpop.eup %9852  ;;  %v3626_v52 = vsel %vm1832_vm0, %v12647_v12, 0 }
 0x87f   : > { %3205 = vadd.xlane.f32.xlu1 %v12736_v4  ;;  %3199 = vadd.xlane.f32.xlu0 %v12740_v22  ;;  %v12744_v16 = vpop.eup %9854 }
 0x880   : > { %v3058_v39 = vpop.xlane.xlu0 %3057 }
 0x881   : > { %v3096_v45 = vsub.f32 %v12633_v32, %v3058_v39 }
 0x882   : > { %v12746_v56 = vpop.eup %9856 }
 0x883   : > { %3201 = vadd.xlane.f32.xlu1 %v12744_v16  ;;  %3211 = vadd.xlane.f32.xlu0 %v12746_v56  ;;  %v12752_v37 = vpop.eup %9858 }
 0x884   : > { %v3070_v23 = vpop.xlane.xlu0 %3069 }
 0x885   : > { %8759 = vmatpush3.bf16.xpose.msra.mxu0 %v3629_v20  ;;  %v3102_v62 = vsub.f32 %v12655_v24, %v3070_v23  ;;  %v15382_v23 = vld [vmem:[#allocation86_spill] sm:$0xff] }
 0x886   : > { %9105 = vmatprep.subr.msk.bf16.mxu0 %vm1832_vm0, %v12647_v12  ;;  %v12756_v59 = vpop.eup %9860  ;;  %v3068_v12 = vpop.xlane.xlu1 %3067 }
 0x887   : > { %3209 = vadd.xlane.f32.xlu0 %v12752_v37  ;;  %3207 = vadd.xlane.f32.xlu1 %v12756_v59  ;;  %v3165_v19 = vmul.f32 1.442695, %v3102_v62 }
 0x888   : > { %v3066_v34 = vpop.xlane.xlu0 %3065 }
 0x889   : > { %v3100_v13 = vsub.f32 %v12660_v3, %v3066_v34 }
 0x88a   : > { %v12760_v9 = vpop.eup %9862  ;;  %v3064_v27 = vpop.xlane.xlu1 %3063 }
 0x88b   : > { %3213 = vadd.xlane.f32.xlu1 %v12760_v9  ;;  %v3099_v50 = vsub.f32 %v12643_v44, %v3064_v27  ;;  %v3153_v44 = vmul.f32 1.442695, %v3096_v45  ;;  %v3161_v14 = vmul.f32 1.442695, %v3100_v13  ;;  %v15346_v13 = vld [vmem:[#allocation118_spill] sm:$0xff] }
 0x88d   : > { %8761 = vmatpush3.bf16.xpose.msra.mxu0 %v3626_v52 }
 0x88e   : > { %v12823_v17 = vpop.permute.xlu1 %3764 }
 0x894   : > { %8763 = vmatmul.mubr.msk.bf16.vlgmr.msra.gmra.mxu0 %vm1832_vm0, %v12669_v18  ;;  %v3580_v18 = vpop.permute.xlu0 %3579 }
 0x895   : > { %8766 = vmatprep.mubr.msk.bf16.mxu0 %vm1832_vm0, %v12671_v7  ;;  %v3101_v7 = vsub.f32 %v12639_v35, %v3068_v12  ;;  %v3157_v35 = vmul.f32 1.442695, %v3098_v5 }
 0x89c   : > { %8767 = vmatmul.mubr.msk.bf16.gmra.mxu0 %vm1832_vm0, %v12681_v43  ;;  %3583 = vrot.lane.b32.xlu1 %v15330_v47, %s10708_s18  ;;  %v3163_v43 = vmul.f32 1.442695, %v3101_v7 }
 0x89d   : > { %8770 = vmatprep.mubr.msk.bf16.mxu0 %vm1832_vm0, %v12675_v46  ;;  %3581 = vrot.lane.b32.xlu0 %v15265_v49, %s10708_s18  ;;  %v3159_v46 = vmul.f32 1.442695, %v3099_v50 }
 0x89e   : > { %9864 = vpow2.f32 %v3163_v43 }
 0x89f   : > { %9866 = vpow2.f32 %v3155_v60 }
 0x8a0   : > { %9868 = vpow2.f32 %v3159_v46 }
 0x8a1   : > { %9870 = vpow2.f32 %v3151_v28  ;;  %v15342_v28 = vld [vmem:[#allocation115_spill] sm:$0xff] }
 0x8a2   : > { %9872 = vpow2.f32 %v3165_v19  ;;  %v15343_v19 = vld [vmem:[#allocation117_spill] sm:$0xff] }
 0x8a3   : > { %9874 = vpow2.f32 %v3157_v35 }
 0x8a4   : > { %8771 = vmatmul.mubr.msk.bf16.gmra.mxu0 %vm1832_vm0, %v3580_v18  ;;  %9876 = vpow2.f32 %v3153_v44  ;;  %v15341_v18 = vld [vmem:[#allocation55_spill] sm:$0xff] }
 0x8a5   : > { %9878 = vpow2.f32 %v3161_v14 }
 0x8ab   : > { %v12785_v41 = vpop.eup %9864 }
 0x8ac   : > { %v12788_v42 = vpop.eup %9866 }
 0x8ad   : > { %v12790_v24 = vpop.eup %9868 }
 0x8ae   : > { %v12794_v54 = vpop.eup %9870 }
 0x8af   : > { %v12796_v40 = vpop.eup %9872 }
 0x8b0   : > { %v12800_v32 = vpop.eup %9874 }
 0x8b1   : > { %v12803_v2 = vpop.eup %9876 }
 0x8b2   : > { %v12825_v53 = vpop.eup %9878 }
 0x8bc   : > { %3227 = vadd.xlane.f32.xlu0 %v12785_v41 }
 0x8c0   : > { %3223 = vadd.xlane.f32.xlu0 %v12790_v24  ;;  %3219 = vadd.xlane.f32.xlu1 %v12788_v42 }
 0x8c4   : > { %3215 = vadd.xlane.f32.xlu1 %v12794_v54  ;;  %3229 = vadd.xlane.f32.xlu0 %v12796_v40 }
 0x8c8   : > { %3221 = vadd.xlane.f32.xlu1 %v12800_v32 }
 0x8cc   : > { %3217 = vadd.xlane.f32.xlu1 %v12803_v2 }
 0x8da   : > { %3762 = vrot.lane.b32.xlu0 %v15266_v30, %s10708_s18 }
 0x8dd   : > { %3746 = vrot.lane.b32.xlu1 %v15331_v55, %s10708_s18 }
 0x8de   : > { %3748 = vrot.lane.b32.xlu0 %v15332_v63, %s10708_s18 }
 0x8e1   : > { %3750 = vrot.lane.b32.xlu1 %v15333_v57, %s10708_s18 }
 0x8e2   : > { %3752 = vrot.lane.b32.xlu0 %v15334_v15, %s10708_s18 }
 0x8e5   : > { %3754 = vrot.lane.b32.xlu1 %v15335_v29, %s10708_s18 }
 0x8e6   : > { %3756 = vrot.lane.b32.xlu0 %v15336_v38, %s10708_s18 }
 0x8ea   : > { %3760 = vrot.lane.b32.xlu0 %v15337_v25, %s10708_s18 }
 0x904   : > { %v3204_v6 = vpop.xlane.xlu1 %3203 }
 0x908   : > { %v3206_v51 = vpop.xlane.xlu1 %3205  ;;  %v3200_v61 = vpop.xlane.xlu0 %3199 }
 0x909   : > { %3225 = vadd.xlane.f32.xlu1 %v12825_v53  ;;  %9880 = vrcp.f32 %v3206_v51 }
 0x90a   : > { %9882 = vrcp.f32 %v3200_v61  ;;  %v3818_v61 = vsel %vm1832_vm0, %v15346_v13, 0 }
 0x90b   : > { %9884 = vrcp.f32 %v3204_v6 }
 0x90c   : > { %v3202_v1 = vpop.xlane.xlu1 %3201  ;;  %v3212_v33 = vpop.xlane.xlu0 %3211 }
 0x90d   : > { %9886 = vrcp.f32 %v3202_v1  ;;  %v15351_v1 = vld [vmem:[#allocation116_spill] sm:$0xff] }
 0x910   : > { %v3208_v31 = vpop.xlane.xlu1 %3207  ;;  %v3210_v10 = vpop.xlane.xlu0 %3209 }
 0x911   : > { %9888 = vrcp.f32 %v3208_v31 }
 0x912   : > { %9890 = vrcp.f32 %v3210_v10  ;;  %v15379_v10 = vld [vmem:[#allocation53_spill] sm:$0xff] }
 0x913   : > { %9892 = vrcp.f32 %v3212_v33 }
 0x914   : > { %v12828_v3 = vpop.f32.mrf.mxu0  ;;  %v3214_v11 = vpop.xlane.xlu1 %3213 }
 0x915   : > { %15338 = vst [vmem:[#allocation52_spill] sm:$0xff] %v12828_v3  ;;  %v3582_v21 = vpop.permute.xlu0 %3581  ;;  %9894 = vrcp.f32 %v3214_v11 }
 0x916   : > { %8774 = vmatprep.mubr.msk.bf16.mxu0 %vm1832_vm0, %v3582_v21  ;;  %v12831_v20 = vpop.f32.mrf.mxu0  ;;  %v9881_v48 = vpop.eup %9880 }
 0x917   : > { %15339 = vst [vmem:[#allocation121_spill] sm:$0xff] %v12831_v20  ;;  %v9883_v39 = vpop.eup %9882  ;;  %v3282_v12 = vmul.f32 %v9881_v48, %v12736_v4  ;;  %v3824_v4 = vsel %vm1832_vm0, %v15342_v28, 0  ;;  %v3815_v48 = vsel %vm1832_vm0, %v15351_v1, 0 }
 0x918   : > { %v12833_v52 = vpop.f32.mrf.mxu0  ;;  %v3584_v0 = vpop.permute.xlu1 %3583  ;;  %v3279_v7 = vmul.f32 %v9883_v39, %v12740_v22  ;;  %v15356_v39 = vld [vmem:[#allocation119_spill] sm:$0xff] }
 0x919   : > { %15340 = vst [vmem:[#allocation122_spill] sm:$0xff] %v12833_v52  ;;  %v9885_v8 = vpop.eup %9884  ;;  %8775 = vmatmul.mubr.msk.bf16.gmra.mxu0 %vm1832_vm0, %v3584_v0 }
 0x91a   : > { %v9887_v34 = vpop.eup %9886  ;;  %3758 = vrot.lane.b32.xlu1 %v15341_v18, %s10708_s18  ;;  %v3281_v58 = vmul.f32 %v9885_v8, %v12731_v36 }
 0x91b   : > { %v3280_v27 = vmul.f32 %v9887_v34, %v12744_v16  ;;  %v15378_v34 = vld [vmem:[#allocation85_spill] sm:$0xff] }
 0x91c   : > { %v3304_v60 = vpack.c.bf16 %v3282_v12, %v3281_v58  ;;  %v3812_v12 = vsel %vm1832_vm0, %v15356_v39, 0 }
 0x91d   : > { %v3303_v43 = vpack.c.bf16 %v3280_v27, %v3279_v7  ;;  %v15359_v7 = vld [vmem:[#allocation120_spill] sm:$0xff] }
 0x91e   : > { %v9889_v50 = vpop.eup %9888  ;;  %v3809_v58 = vsel %vm1832_vm0, %v15359_v7, 0 }
 0x91f   : > { %v9891_v26 = vpop.eup %9890  ;;  %8730 = vmatprep.mubr.bf16.mxu1 %v3303_v43  ;;  %v3283_v46 = vmul.f32 %v9889_v50, %v12756_v59  ;;  %v12852_v59 = vpop.f32.mrf.mxu0 }
 0x920   : > { %v9893_v62 = vpop.eup %9892  ;;  %8731 = vmatmul.mubr.bf16.vlgmr.msra.gmra.mxu1 %v3304_v60  ;;  %v3284_v5 = vmul.f32 %v9891_v26, %v12752_v37  ;;  %15344 = vst [vmem:[#allocation115_spill] sm:$0xff] %v12852_v59  ;;  %v3821_v37 = vsel %vm1832_vm0, %v15343_v19, 0 }
 0x921   : > { %8779 = vmatpush3.bf16.xpose.msra.mxu1 %v3824_v4  ;;  %v3285_v16 = vmul.f32 %v9893_v62, %v12746_v56  ;;  %v3806_v62 = vsel %vm1832_vm0, %v12823_v17, 0  ;;  %v15380_v56 = vld [vmem:[#allocation41_spill] sm:$0xff] }
 0x922   : > { %v9895_v22 = vpop.eup %9894  ;;  %9107 = vmatprep.subr.msk.bf16.mxu1 %vm1832_vm0, %v15343_v19  ;;  %v3305_v36 = vpack.c.bf16 %v3284_v5, %v3283_v46 }
 0x923   : > { %v3286_v35 = vmul.f32 %v9895_v22, %v12760_v9 }
 0x924   : > { %8734 = vmatprep.mubr.bf16.mxu1 %v3305_v36 }
 0x925   : > { %v3306_v45 = vpack.c.bf16 %v3286_v35, %v3285_v16 }
 0x927   : > { %v12854_v44 = vpop.f32.mrf.mxu0 }
 0x928   : > { %15345 = vst [vmem:[#allocation117_spill] sm:$0xff] %v12854_v44  ;;  %8735 = vmatmul.mubr.bf16.gmra.mxu1 %v3306_v45 }
 0x929   : > { %8781 = vmatpush3.bf16.xpose.msra.mxu1 %v3821_v37  ;;  %v12860_v14 = vpop.f32.mrf.mxu0 }
 0x92a   : > { %9108 = vmatprep.subr.msk.bf16.mxu1 %vm1832_vm0, %v15346_v13  ;;  %15347 = vst [vmem:[#allocation118_spill] sm:$0xff] %v12860_v14 }
 0x92b   : > { %v12862_v6 = vpop.f32.mrf.mxu0 }
 0x92c   : > { %15348 = vst [vmem:[#allocation123_spill] sm:$0xff] %v12862_v6 }
 0x92d   : > { %v12866_v9 = vpop.f32.mrf.mxu0 }
 0x92e   : > { %15349 = vst [vmem:[#allocation124_spill] sm:$0xff] %v12866_v9 }
 0x92f   : > { %v12868_v51 = vpop.f32.mrf.mxu0 }
 0x930   : > { %15350 = vst [vmem:[#allocation125_spill] sm:$0xff] %v12868_v51 }
 0x931   : > { %8783 = vmatpush3.bf16.xpose.msra.mxu1 %v3818_v61  ;;  %v12874_v33 = vpop.f32.mrf.mxu0 }
 0x932   : > { %9109 = vmatprep.subr.msk.bf16.mxu1 %vm1832_vm0, %v15351_v1  ;;  %15352 = vst [vmem:[#allocation116_spill] sm:$0xff] %v12874_v33 }
 0x933   : > { %v12876_v31 = vpop.f32.mrf.mxu0 }
 0x934   : > { %15353 = vst [vmem:[#allocation126_spill] sm:$0xff] %v12876_v31 }
 0x935   : > { %v12880_v11 = vpop.f32.mrf.mxu0 }
 0x936   : > { %15354 = vst [vmem:[#allocation127_spill] sm:$0xff] %v12880_v11 }
 0x938   : > { %v12882_v21 = vpop.f32.mrf.mxu0 }
 0x939   : > { %15355 = vst [vmem:[#allocation128_spill] sm:$0xff] %v12882_v21  ;;  %8785 = vmatpush3.bf16.xpose.msra.mxu1 %v3815_v48 }
 0x93a   : > { %9110 = vmatprep.subr.msk.bf16.mxu1 %vm1832_vm0, %v15356_v39  ;;  %v12888_v0 = vpop.f32.mrf.mxu0 }
 0x93b   : > { %15357 = vst [vmem:[#allocation119_spill] sm:$0xff] %v12888_v0  ;;  %v15396_v0 = vld [vmem:[#allocation57_spill] sm:$0xff] }
 0x93c   : > { %v12890_v8 = vpop.f32.mrf.mxu0 }
 0x93d   : > { %15358 = vst [vmem:[#allocation129_spill] sm:$0xff] %v12890_v8 }
 0x93e   : > { %v12902_v46 = vpop.f32.mrf.mxu0 }
 0x93f   : > { %15360 = vst [vmem:[#allocation120_spill] sm:$0xff] %v12902_v46 }
 0x941   : > { %8787 = vmatpush3.bf16.xpose.msra.mxu1 %v3812_v12 }
 0x942   : > { %9111 = vmatprep.subr.msk.bf16.mxu1 %vm1832_vm0, %v15359_v7 }
 0x945   : > { %v3228_v27 = vpop.xlane.xlu0 %3227 }
 0x949   : > { %8789 = vmatpush3.bf16.xpose.msra.mxu1 %v3809_v58  ;;  %v3220_v43 = vpop.xlane.xlu1 %3219  ;;  %v3224_v50 = vpop.xlane.xlu0 %3223 }
 0x94a   : > { %9112 = vmatprep.subr.msk.bf16.mxu1 %vm1832_vm0, %v12823_v17 }
 0x94d   : > { %v3216_v60 = vpop.xlane.xlu1 %3215  ;;  %v3230_v26 = vpop.xlane.xlu0 %3229 }
 0x951   : > { %8791 = vmatpush3.bf16.xpose.msra.mxu1 %v3806_v62  ;;  %v3222_v28 = vpop.xlane.xlu1 %3221  ;;  %v3763_v4 = vpop.permute.xlu0 %3762 }
 0x952   : > { %9113 = vmatprep.subr.msk.bf16.mxu1 %vm1832_vm0, %v3763_v4  ;;  %9896 = vrcp.f32 %v3222_v28  ;;  %v3803_v17 = vsel %vm1832_vm0, %v3763_v4, 0 }
 0x953   : > { %9898 = vrcp.f32 %v3216_v60 }
 0x954   : > { %v12907_v5 = vpop.f32.mrf.mxu0  ;;  %9900 = vrcp.f32 %v3220_v43 }
 0x955   : > { %v3218_v22 = vpop.xlane.xlu1 %3217 }
 0x956   : > { %9902 = vrcp.f32 %v3218_v22  ;;  %v12909_v19 = vpop.f32.mrf.mxu0 }
 0x957   : > { %3923 = vmax.xlane.f32.xlu1 %v12909_v19  ;;  %9904 = vrcp.f32 %v3230_v26 }
 0x958   : > { %v12912_v36 = vpop.f32.mrf.mxu0  ;;  %9906 = vrcp.f32 %v3224_v50 }
 0x959   : > { %8793 = vmatpush3.bf16.xpose.msra.mxu1 %v3803_v17  ;;  %9908 = vrcp.f32 %v3228_v27  ;;  %v3749_v27 = vpop.permute.xlu0 %3748 }
 0x95a   : > { %v12915_v16 = vpop.f32.mrf.mxu0 }
 0x95b   : > { %3925 = vmax.xlane.f32.xlu0 %v12915_v16  ;;  %3929 = vmax.xlane.f32.xlu1 %v12912_v36 }
 0x95c   : > { %v12919_v35 = vpop.f32.mrf.mxu0 }
 0x95d   : > { %v3753_v50 = vpop.permute.xlu0 %3752 }
 0x95e   : > { %v12921_v45 = vpop.f32.mrf.mxu0 }
 0x95f   : > { %3927 = vmax.xlane.f32.xlu0 %v12907_v5  ;;  %v9897_v37 = vpop.eup %9896 }
 0x960   : > { %v12924_v13 = vpop.f32.mrf.mxu0  ;;  %v9899_v61 = vpop.eup %9898  ;;  %v3290_v12 = vmul.f32 %v9897_v37, %v12800_v32 }
 0x961   : > { %v9901_v1 = vpop.eup %9900  ;;  %v3287_v58 = vmul.f32 %v9899_v61, %v12794_v54 }
 0x962   : > { %v12926_v48 = vpop.f32.mrf.mxu0  ;;  %v3289_v60 = vmul.f32 %v9901_v1, %v12788_v42  ;;  %v3747_v42 = vpop.permute.xlu1 %3746 }
 0x963   : > { %v9903_v39 = vpop.eup %9902  ;;  %3931 = vmax.xlane.f32.xlu0 %v12921_v45  ;;  %3933 = vmax.xlane.f32.xlu1 %v12926_v48 }
 0x964   : > { %v12931_v7 = vpop.f32.mrf.mxu0  ;;  %v3288_v43 = vmul.f32 %v9903_v39, %v12803_v2  ;;  %v3308_v4 = vpack.c.bf16 %v3290_v12, %v3289_v60  ;;  %v9905_v37 = vpop.eup %9904 }
 0x965   : > { %v9907_v61 = vpop.eup %9906  ;;  %v3294_v12 = vmul.f32 %v9905_v37, %v12796_v40 }
 0x966   : > { %v12936_v62 = vpop.f32.mrf.mxu0  ;;  %v3307_v28 = vpack.c.bf16 %v3288_v43, %v3287_v58  ;;  %v3751_v54 = vpop.permute.xlu1 %3750  ;;  %v3291_v58 = vmul.f32 %v9907_v61, %v12790_v24  ;;  %v15377_v61 = vld [vmem:[#allocation78_spill] sm:$0xff] }
 0x967   : > { %3935 = vmax.xlane.f32.xlu0 %v12919_v35  ;;  %3937 = vmax.xlane.f32.xlu1 %v12924_v13  ;;  %v9909_v1 = vpop.eup %9908  ;;  %v3757_v24 = vpop.permute.xlu0 %3756 }
 0x968   : > { %8738 = vmatprep.mubr.bf16.mxu1 %v3307_v28  ;;  %v12940_v22 = vpop.f32.mrf.mxu0  ;;  %v3293_v60 = vmul.f32 %v9909_v1, %v12785_v41 }
 0x969   : > { %8739 = vmatmul.mubr.bf16.gmra.mxu1 %v3308_v4 }
 0x96a   : > { %v12942_v32 = vpop.f32.mrf.mxu0  ;;  %v3755_v2 = vpop.permute.xlu1 %3754  ;;  %v3310_v4 = vpack.c.bf16 %v3294_v12, %v3293_v60  ;;  %v15368_v60 = vld [vmem:[#allocation64_spill] sm:$0xff] }
 0x96b   : > { %3939 = vmax.xlane.f32.xlu0 %v12936_v62  ;;  %3941 = vmax.xlane.f32.xlu1 %v12942_v32  ;;  %v3761_v41 = vpop.permute.xlu0 %3760 }
 0x96f   : > { %3943 = vmax.xlane.f32.xlu0 %v12931_v7  ;;  %3945 = vmax.xlane.f32.xlu1 %v12940_v22 }
 0x992   : > { %v3226_v17 = vpop.xlane.xlu1 %3225 }
 0x993   : > { %9910 = vrcp.f32 %v3226_v17 }
 0x996   : > { %v3759_v40 = vpop.permute.xlu1 %3758 }
 0x9a0   : > { %v9911_v39 = vpop.eup %9910 }
 0x9a1   : > { %v3292_v43 = vmul.f32 %v9911_v39, %v12825_v53 }
 0x9a3   : > { %v3309_v28 = vpack.c.bf16 %v3292_v43, %v3291_v58  ;;  %v15376_v43 = vld [vmem:[#allocation46_spill] sm:$0xff] }
 0x9a5   : > { %8742 = vmatprep.mubr.bf16.mxu1 %v3309_v28  ;;  %v15369_v28 = vld [vmem:[#allocation62_spill] sm:$0xff] }
 0x9a6   : > { %8743 = vmatmul.mubr.bf16.gmra.mxu1 %v3310_v4  ;;  %v15370_v4 = vld [vmem:[#allocation76_spill] sm:$0xff] }
 0x9a7   : > { %8794 = vmatprep.mubr.msk.bf16.mxu1 %vm1832_vm0, %v3747_v42 }
 0x9ae   : > { %8795 = vmatmul.mubr.msk.bf16.vlgmr.msra.gmra.mxu1 %vm1832_vm0, %v3749_v27  ;;  %v15371_v27 = vld [vmem:[#allocation67_spill] sm:$0xff] }
 0x9af   : > { %8798 = vmatprep.mubr.msk.bf16.mxu1 %vm1832_vm0, %v3751_v54 }
 0x9b6   : > { %8799 = vmatmul.mubr.msk.bf16.gmra.mxu1 %vm1832_vm0, %v3753_v50  ;;  %v15372_v50 = vld [vmem:[#allocation80_spill] sm:$0xff] }
 0x9b7   : > { %8802 = vmatprep.mubr.msk.bf16.mxu1 %vm1832_vm0, %v3755_v2 }
 0x9be   : > { %8803 = vmatmul.mubr.msk.bf16.gmra.mxu1 %vm1832_vm0, %v3757_v24  ;;  %v15373_v24 = vld [vmem:[#allocation70_spill] sm:$0xff] }
 0x9bf   : > { %8806 = vmatprep.mubr.msk.bf16.mxu1 %vm1832_vm0, %v3759_v40  ;;  %v15374_v40 = vld [vmem:[#allocation50_spill] sm:$0xff] }
 0x9c6   : > { %8807 = vmatmul.mubr.msk.bf16.gmra.mxu1 %vm1832_vm0, %v3761_v41  ;;  %v15375_v41 = vld [vmem:[#allocation73_spill] sm:$0xff] }
 0x9d9   : > { %v12960_v53 = vpop.f32.mrf.mxu0 }
 0x9db   : > { %v12962_v26 = vpop.f32.mrf.mxu0 }
 0x9dc   : > { %3947 = vmax.xlane.f32.xlu0 %v12962_v26 }
 0x9dd   : > { %v12965_v42 = vpop.f32.mrf.mxu0 }
 0x9df   : > { %v12967_v54 = vpop.f32.mrf.mxu0 }
 0x9e0   : > { %v12969_v2 = vpop.f32.mrf.mxu1  ;;  %3951 = vmax.xlane.f32.xlu0 %v12960_v53  ;;  %3949 = vmax.xlane.f32.xlu1 %v12967_v54  ;;  %v3924_v8 = vpop.xlane.xlu1 %3923 }
 0x9e1   : > { %15361 = vst [vmem:[#allocation130_spill] sm:$0xff] %v12969_v2  ;;  %v15389_v2 = vld [vmem:[#allocation68_spill] sm:$0xff] }
 0x9e2   : > { %v12973_v17 = vpop.f32.mrf.mxu1 }
 0x9e3   : > { %15362 = vst [vmem:[#allocation131_spill] sm:$0xff] %v12973_v17  ;;  %v15392_v17 = vld [vmem:[#allocation42_spill] sm:$0xff] }
 0x9e4   : > { %v12975_v37 = vpop.f32.mrf.mxu1  ;;  %3953 = vmax.xlane.f32.xlu1 %v12965_v42 }
 0x9e5   : > { %15363 = vst [vmem:[#allocation132_spill] sm:$0xff] %v12975_v37  ;;  %v15390_v37 = vld [vmem:[#allocation37_spill] sm:$0xff] }
 0x9e6   : > { %v12980_v1 = vpop.f32.mrf.mxu1 }
 0x9e7   : > { %15364 = vst [vmem:[#allocation133_spill] sm:$0xff] %v12980_v1  ;;  %v15391_v1 = vld [vmem:[#allocation75_spill] sm:$0xff] }
 0x9e8   : > { %v12982_v39 = vpop.f32.mrf.mxu1 }
 0x9e9   : > { %15365 = vst [vmem:[#allocation134_spill] sm:$0xff] %v12982_v39  ;;  %v15384_v39 = vld [vmem:[#allocation74_spill] sm:$0xff] }
 0x9ea   : > { %v12984_v12 = vpop.f32.mrf.mxu1 }
 0x9eb   : > { %15366 = vst [vmem:[#allocation135_spill] sm:$0xff] %v12984_v12  ;;  %v3926_v12 = vpop.xlane.xlu0 %3925 }
 0x9ec   : > { %v12986_v58 = vpop.f32.mrf.mxu1 }
 0x9ed   : > { %15367 = vst [vmem:[#allocation136_spill] sm:$0xff] %v12986_v58  ;;  %v15385_v58 = vld [vmem:[#allocation44_spill] sm:$0xff] }
 0x9ee   : > { %v13042_v21 = vpop.f32.mrf.mxu1 }
 0x9ef   : > { %15394 = vst [vmem:[#allocation50_spill] sm:$0xff] %v13042_v21 }
 0x9f5   : > { %4239 = vrot.lane.b32.xlu1 %v15368_v60, %s10708_s18 }
 0x9f6   : > { %4241 = vrot.lane.b32.xlu0 %v15369_v28, %s10708_s18 }
 0x9f9   : > { %4231 = vrot.lane.b32.xlu1 %v15370_v4, %s10708_s18 }
 0x9fa   : > { %4237 = vrot.lane.b32.xlu0 %v15371_v27, %s10708_s18 }
 0x9fd   : > { %4227 = vrot.lane.b32.xlu1 %v15372_v50, %s10708_s18 }
 0x9fe   : > { %4235 = vrot.lane.b32.xlu0 %v15373_v24, %s10708_s18 }
 0xa01   : > { %4497 = vrot.lane.b32.xlu1 %v15374_v40, %s10709_s12  ;;  %v15381_v40 = vld [vmem:[#allocation48_spill] sm:$0xff] }
 0xa02   : > { %4233 = vrot.lane.b32.xlu0 %v15375_v41, %s10708_s18 }
 0xa05   : > { %4493 = vrot.lane.b32.xlu1 %v15376_v43, %s10709_s12  ;;  %v15383_v43 = vld [vmem:[#allocation81_spill] sm:$0xff] }
 0xa06   : > { %4229 = vrot.lane.b32.xlu0 %v15377_v61, %s10708_s18 }
 0xa09   : > { %4360 = vrot.lane.b32.xlu1 %v15378_v34, %s10708_s18 }
 0xa0a   : > { %4499 = vrot.lane.b32.xlu0 %v15379_v10, %s10709_s12  ;;  %v15386_v10 = vld [vmem:[#allocation39_spill] sm:$0xff] }
 0xa0d   : > { %4489 = vrot.lane.b32.xlu1 %v15380_v56, %s10709_s12  ;;  %v15387_v56 = vld [vmem:[#allocation79_spill] sm:$0xff] }
 0xa0e   : > { %4495 = vrot.lane.b32.xlu0 %v15381_v40, %s10709_s12  ;;  %v15388_v40 = vld [vmem:[#allocation72_spill] sm:$0xff] }
 0xa11   : > { %4356 = vrot.lane.b32.xlu1 %v15382_v23, %s10708_s18 }
 0xa12   : > { %4362 = vrot.lane.b32.xlu0 %v15383_v43, %s10708_s18 }
 0xa15   : > { %4354 = vrot.lane.b32.xlu1 %v15384_v39, %s10708_s18 }
 0xa16   : > { %4491 = vrot.lane.b32.xlu0 %v15385_v58, %s10709_s12  ;;  %v3928_v58 = vpop.xlane.xlu0 %3927 }
 0xa17   : > { %v3989_v6 = vsub.f32 %v12907_v5, %v3928_v58 }
 0xa19   : > { %4487 = vrot.lane.b32.xlu1 %v15386_v10, %s10709_s12  ;;  %v15393_v10 = vld [vmem:[#allocation38_spill] sm:$0xff]  ;;  %v4023_v3 = vmul.f32 1.442695, %v3989_v6 }
 0xa1a   : > { %4358 = vrot.lane.b32.xlu0 %v15387_v56, %s10708_s18  ;;  %v3932_v51 = vpop.xlane.xlu0 %3931 }
 0xa1d   : > { %4352 = vrot.lane.b32.xlu1 %v15388_v40, %s10708_s18 }
 0xa1e   : > { %4350 = vrot.lane.b32.xlu0 %v15389_v2, %s10708_s18  ;;  %v3936_v33 = vpop.xlane.xlu0 %3935 }
 0xa1f   : > { %v3993_v44 = vsub.f32 %v12919_v35, %v3936_v33 }
 0xa21   : > { %4485 = vrot.lane.b32.xlu1 %v15390_v37, %s10709_s12  ;;  %v15397_v37 = vld [vmem:[#allocation58_spill] sm:$0xff]  ;;  %v4031_v9 = vmul.f32 1.442695, %v3993_v44 }
 0xa22   : > { %4348 = vrot.lane.b32.xlu0 %v15391_v1, %s10708_s18 }
 0xa23   : > { %9912 = vpow2.f32 %v4031_v9 }
 0xa24   : > { %9914 = vpow2.f32 %v4023_v3 }
 0xa25   : > { %4469 = vrot.lane.b32.xlu1 %v15392_v17, %s10709_s12  ;;  %v3930_v17 = vpop.xlane.xlu1 %3929 }
 0xa26   : > { %4471 = vrot.lane.b32.xlu0 %v15393_v10, %s10709_s12  ;;  %v3990_v10 = vsub.f32 %v12912_v36, %v3930_v17 }
 0xa28   : > { %v4025_v44 = vmul.f32 1.442695, %v3990_v10 }
 0xa29   : > { %v13044_v46 = vpop.f32.mrf.mxu1  ;;  %4676 = vrot.lane.b32.xlu1 %v15396_v0, %s10709_s12  ;;  %v3934_v21 = vpop.xlane.xlu1 %3933  ;;  %v3991_v0 = vsub.f32 %v12921_v45, %v3932_v51  ;;  %v3988_v51 = vsub.f32 %v12915_v16, %v3926_v12 }
 0xa2a   : > { %15395 = vst [vmem:[#allocation46_spill] sm:$0xff] %v13044_v46  ;;  %4674 = vrot.lane.b32.xlu0 %v15397_v37, %s10709_s12  ;;  %v3987_v37 = vsub.f32 %v12909_v19, %v3924_v8  ;;  %v3940_v46 = vpop.xlane.xlu0 %3939  ;;  %v3992_v33 = vsub.f32 %v12926_v48, %v3934_v21 }
 0xa2b   : > { %v13050_v31 = vpop.f32.mrf.mxu1  ;;  %v4021_v9 = vmul.f32 1.442695, %v3988_v51 }
 0xa2c   : > { %15398 = vst [vmem:[#allocation53_spill] sm:$0xff] %v13050_v31  ;;  %v4027_v31 = vmul.f32 1.442695, %v3991_v0  ;;  %v4019_v59 = vmul.f32 1.442695, %v3987_v37 }
 0xa2d   : > { %v13052_v11 = vpop.f32.mrf.mxu1  ;;  %v3938_v14 = vpop.xlane.xlu1 %3937  ;;  %v4029_v8 = vmul.f32 1.442695, %v3992_v33 }
 0xa2e   : > { %15399 = vst [vmem:[#allocation41_spill] sm:$0xff] %v13052_v11  ;;  %v3994_v52 = vsub.f32 %v12924_v13, %v3938_v14  ;;  %9916 = vpow2.f32 %v4027_v31  ;;  %v3944_v14 = vpop.xlane.xlu0 %3943  ;;  %v15408_v11 = vld [vmem:[#allocation40_spill] sm:$0xff] }
 0xa2f   : > { %9918 = vpow2.f32 %v4019_v59  ;;  %v3997_v3 = vsub.f32 %v12931_v7, %v3944_v14  ;;  %v3995_v59 = vsub.f32 %v12936_v62, %v3940_v46  ;;  %v13103_v0 = vpop.f32.mrf.mxu1  ;;  %v15405_v14 = vld [vmem:[#allocation43_spill] sm:$0xff] }
 0xa30   : > { %v4033_v5 = vmul.f32 1.442695, %v3994_v52  ;;  %v13066_v36 = vpop.eup %9912  ;;  %15400 = vst [vmem:[#allocation48_spill] sm:$0xff] %v13103_v0 }
 0xa31   : > { %v3942_v35 = vpop.xlane.xlu1 %3941  ;;  %v13069_v52 = vpop.eup %9914  ;;  %v4039_v31 = vmul.f32 1.442695, %v3997_v3  ;;  %v4035_v13 = vmul.f32 1.442695, %v3995_v59 }
 0xa32   : > { %9920 = vpow2.f32 %v4033_v5  ;;  %v3996_v6 = vsub.f32 %v12942_v32, %v3942_v35 }
 0xa33   : > { %9922 = vpow2.f32 %v4025_v44 }
 0xa34   : > { %9924 = vpow2.f32 %v4029_v8  ;;  %v4037_v19 = vmul.f32 1.442695, %v3996_v6 }
 0xa35   : > { %9926 = vpow2.f32 %v4021_v9  ;;  %v3946_v16 = vpop.xlane.xlu1 %3945 }
 0xa36   : > { %9928 = vpow2.f32 %v4037_v19  ;;  %v3998_v48 = vsub.f32 %v12940_v22, %v3946_v16 }
 0xa37   : > { %9930 = vpow2.f32 %v4039_v31 }
 0xa38   : > { %9932 = vpow2.f32 %v4035_v13  ;;  %v4041_v62 = vmul.f32 1.442695, %v3998_v48 }
 0xa3a   : > { %9934 = vpow2.f32 %v4041_v62 }
 0xa3b   : > { %v13072_v21 = vpop.eup %9916 }
 0xa3c   : > { %v13076_v45 = vpop.eup %9918 }
 0xa3f   : > { %v13079_v7 = vpop.eup %9920 }
 0xa40   : > { %v13083_v46 = vpop.eup %9922 }
 0xa41   : > { %v13085_v32 = vpop.eup %9924 }
 0xa42   : > { %v13089_v12 = vpop.eup %9926 }
 0xa43   : > { %v13091_v22 = vpop.eup %9928 }
 0xa44   : > { %v13095_v58 = vpop.eup %9930 }
 0xa45   : > { %v13098_v17 = vpop.eup %9932 }
 0xa47   : > { %v13101_v10 = vpop.eup %9934 }
 0xa49   : > { %4095 = vadd.xlane.f32.xlu0 %v13066_v36 }
 0xa4d   : > { %4087 = vadd.xlane.f32.xlu1 %v13069_v52  ;;  %4091 = vadd.xlane.f32.xlu0 %v13072_v21 }
 0xa51   : > { %4083 = vadd.xlane.f32.xlu1 %v13076_v45  ;;  %4097 = vadd.xlane.f32.xlu0 %v13079_v7 }
 0xa55   : > { %4089 = vadd.xlane.f32.xlu1 %v13083_v46  ;;  %4093 = vadd.xlane.f32.xlu0 %v13085_v32 }
 0xa59   : > { %4085 = vadd.xlane.f32.xlu1 %v13089_v12  ;;  %4101 = vadd.xlane.f32.xlu0 %v13091_v22 }
 0xa5d   : > { %4103 = vadd.xlane.f32.xlu1 %v13095_v58 }
 0xa61   : > { %4099 = vadd.xlane.f32.xlu1 %v13098_v17 }
 0xa65   : > { %4105 = vadd.xlane.f32.xlu1 %v13101_v10  ;;  %v3948_v37 = vpop.xlane.xlu0 %3947 }
 0xa66   : > { %v13106_v33 = vpop.f32.mrf.mxu1  ;;  %v3999_v6 = vsub.f32 %v12962_v26, %v3948_v37 }
 0xa67   : > { %15401 = vst [vmem:[#allocation44_spill] sm:$0xff] %v13106_v33 }
 0xa68   : > { %v13108_v5 = vpop.f32.mrf.mxu1  ;;  %v4043_v31 = vmul.f32 1.442695, %v3999_v6 }
 0xa69   : > { %15402 = vst [vmem:[#allocation39_spill] sm:$0xff] %v13108_v5  ;;  %v3950_v35 = vpop.xlane.xlu1 %3949  ;;  %v3952_v44 = vpop.xlane.xlu0 %3951 }
 0xa6a   : > { %v4001_v51 = vsub.f32 %v12960_v53, %v3952_v44  ;;  %v13111_v8 = vpop.f32.mrf.mxu1  ;;  %v4000_v16 = vsub.f32 %v12967_v54, %v3950_v35 }
 0xa6b   : > { %15403 = vst [vmem:[#allocation37_spill] sm:$0xff] %v13111_v8 }
 0xa6c   : > { %v4047_v9 = vmul.f32 1.442695, %v4001_v51  ;;  %v4045_v26 = vmul.f32 1.442695, %v4000_v16 }
 0xa6d   : > { %v3954_v19 = vpop.xlane.xlu1 %3953  ;;  %v4242_v3 = vpop.permute.xlu0 %4241 }
 0xa6e   : > { %v4002_v59 = vsub.f32 %v12965_v42, %v3954_v19  ;;  %8810 = vmatprep.subr.bf16.mxu0 %v4242_v3  ;;  %9936 = vpow2.f32 %v4047_v9 }
 0xa6f   : > { %8811 = vmatpush3.bf16.msra.mxu0 %v4242_v3 }
 0xa70   : > { %v4049_v13 = vmul.f32 1.442695, %v4002_v59 }
 0xa71   : > { %v4240_v53 = vpop.permute.xlu1 %4239  ;;  %v4238_v48 = vpop.permute.xlu0 %4237 }
 0xa72   : > { %9938 = vpow2.f32 %v4049_v13  ;;  %8812 = vmatprep.subr.bf16.mxu0 %v4240_v53 }
 0xa73   : > { %9940 = vpow2.f32 %v4043_v31  ;;  %8813 = vmatpush3.bf16.msra.mxu0 %v4240_v53  ;;  %v13135_v31 = vpop.f32.mrf.mxu1 }
 0xa74   : > { %8814 = vmatprep.subr.bf16.mxu0 %v4238_v48  ;;  %9942 = vpow2.f32 %v4045_v26  ;;  %15404 = vst [vmem:[#allocation42_spill] sm:$0xff] %v13135_v31  ;;  %v15407_v31 = vld [vmem:[#allocation61_spill] sm:$0xff] }
 0xa75   : > { %v4232_v62 = vpop.permute.xlu1 %4231  ;;  %v4236_v37 = vpop.permute.xlu0 %4235 }
 0xa76   : > { %v13140_v53 = vpop.f32.mrf.mxu1 }
 0xa77   : > { %8815 = vmatpush3.bf16.msra.mxu0 %v4238_v48 }
 0xa78   : > { %8816 = vmatprep.subr.bf16.mxu0 %v4236_v37 }
 0xa79   : > { %v4228_v42 = vpop.permute.xlu1 %4227  ;;  %v4234_v44 = vpop.permute.xlu0 %4233 }
 0xa7b   : > { %8817 = vmatpush3.bf16.msra.mxu0 %v4236_v37  ;;  %v13118_v54 = vpop.eup %9936 }
 0xa7c   : > { %8818 = vmatprep.subr.bf16.mxu0 %v4234_v44  ;;  %4111 = vadd.xlane.f32.xlu0 %v13118_v54 }
 0xa7d   : > { %v13121_v35 = vpop.permute.xlu1 %4497  ;;  %v4230_v51 = vpop.permute.xlu0 %4229 }
 0xa7f   : > { %v13123_v6 = vpop.eup %9938  ;;  %8819 = vmatpush3.bf16.msra.mxu0 %v4234_v44 }
 0xa80   : > { %v13125_v9 = vpop.eup %9940  ;;  %4113 = vadd.xlane.f32.xlu1 %v13123_v6  ;;  %8820 = vmatprep.subr.bf16.mxu0 %v4232_v62 }
 0xa81   : > { %4107 = vadd.xlane.f32.xlu0 %v13125_v9  ;;  %v13129_v19 = vpop.permute.xlu1 %4493  ;;  %v13131_v3 = vpop.permute.xlu0 %4499 }
 0xa82   : > { %v13133_v59 = vpop.eup %9942 }
 0xa83   : > { %8821 = vmatpush3.bf16.msra.mxu0 %v4232_v62  ;;  %v13145_v62 = vpop.f32.mrf.mxu1 }
 0xa84   : > { %8822 = vmatprep.subr.bf16.mxu0 %v4230_v51 }
 0xa85   : > { %4109 = vadd.xlane.f32.xlu0 %v13133_v59  ;;  %v4361_v16 = vpop.permute.xlu1 %4360  ;;  %v13138_v13 = vpop.permute.xlu0 %4495 }
 0xa87   : > { %8823 = vmatpush3.bf16.msra.mxu0 %v4230_v51 }
 0xa88   : > { %8824 = vmatprep.subr.bf16.mxu0 %v4228_v42 }
 0xa89   : > { %3959 = vmax.xlane.f32.xlu0 %v13140_v53  ;;  %v13143_v48 = vpop.permute.xlu1 %4489  ;;  %v4363_v26 = vpop.permute.xlu0 %4362 }
 0xa8a   : > { %8842 = vmatprep.subr.bf16.mxu1 %v4363_v26 }
 0xa8b   : > { %8825 = vmatpush3.bf16.msra.mxu0 %v4228_v42  ;;  %8843 = vmatpush3.bf16.msra.mxu1 %v4363_v26  ;;  %v15406_v26 = vld [vmem:[#allocation60_spill] sm:$0xff] }
 0xa8c   : > { %8844 = vmatprep.subr.bf16.mxu1 %v4361_v16  ;;  %9114 = vmatprep.subr.msk.bf16.mxu0 %vm1832_vm0, %v13131_v3 }
 0xa8d   : > { %3955 = vmax.xlane.f32.xlu0 %v13145_v62  ;;  %v4357_v37 = vpop.permute.xlu1 %4356  ;;  %v13150_v44 = vpop.permute.xlu0 %4491 }
 0xa8f   : > { %8845 = vmatpush3.bf16.msra.mxu1 %v4361_v16 }
 0xa91   : > { %v4355_v51 = vpop.permute.xlu1 %4354  ;;  %4475 = vrot.lane.b32.xlu1 %v15405_v14, %s10709_s12  ;;  %v4359_v33 = vpop.permute.xlu0 %4358 }
 0xa92   : > { %8846 = vmatprep.subr.bf16.mxu1 %v4359_v33 }
 0xa93   : > { %8847 = vmatpush3.bf16.msra.mxu1 %v4359_v33 }
 0xa94   : > { %8848 = vmatprep.subr.bf16.mxu1 %v4357_v37 }
 0xa95   : > { %v13154_v42 = vpop.permute.xlu1 %4487  ;;  %4672 = vrot.lane.b32.xlu1 %v15406_v26, %s10709_s12  ;;  %v4351_v16 = vpop.permute.xlu0 %4350 }
 0xa97   : > { %8849 = vmatpush3.bf16.msra.mxu1 %v4357_v37  ;;  %v13166_v37 = vpop.f32.mrf.mxu1 }
 0xa98   : > { %8850 = vmatprep.subr.bf16.mxu1 %v4355_v51 }
 0xa99   : > { %v4353_v8 = vpop.permute.xlu1 %4352  ;;  %4670 = vrot.lane.b32.xlu1 %v15407_v31, %s10709_s12  ;;  %v4349_v14 = vpop.permute.xlu0 %4348 }
 0xa9a   : > { %v13172_v31 = vpop.f32.mrf.mxu1 }
 0xa9b   : > { %8851 = vmatpush3.bf16.msra.mxu1 %v4355_v51 }
 0xa9c   : > { %8852 = vmatprep.subr.bf16.mxu1 %v4353_v8 }
 0xa9d   : > { %v13160_v5 = vpop.permute.xlu1 %4485  ;;  %v13193_v1 = vpop.permute.xlu0 %4471 }
 0xa9f   : > { %8853 = vmatpush3.bf16.msra.mxu1 %v4353_v8  ;;  %v13174_v8 = vpop.f32.mrf.mxu1 }
 0xaa0   : > { %8854 = vmatprep.subr.bf16.mxu1 %v4351_v16 }
 0xaa1   : > { %v13162_v33 = vpop.permute.xlu1 %4469  ;;  %v13176_v51 = vpop.f32.mrf.mxu1 }
 0xaa2   : > { %v13202_v40 = vpop.permute.xlu0 %4674 }
 0xaa3   : > { %4473 = vrot.lane.b32.xlu0 %v15408_v11, %s10709_s12  ;;  %8855 = vmatpush3.bf16.msra.mxu1 %v4351_v16  ;;  %v13178_v0 = vpop.f32.mrf.mxu1  ;;  %15410 = vst [vmem:[#allocation57_spill] sm:$0xff] %v13202_v40 }
 0xaa4   : > { %8856 = vmatprep.subr.bf16.mxu1 %v4349_v14 }
 0xaa5   : > { %v13168_v26 = vpop.permute.xlu1 %4676  ;;  %v13180_v20 = vpop.f32.mrf.mxu1 }
 0xaa6   : > { %15409 = vst [vmem:[#allocation38_spill] sm:$0xff] %v13168_v26 }
 0xaa7   : > { %8857 = vmatpush3.bf16.msra.mxu1 %v4349_v14  ;;  %v13182_v11 = vpop.f32.mrf.mxu1 }
 0xaa8   : > { %9122 = vmatprep.subr.msk.bf16.mxu1 %vm1832_vm0, %v13168_v26 }
 0xaa9   : > { %v13185_v16 = vpop.f32.mrf.mxu1 }
 0xaab   : > { %v13189_v14 = vpop.f32.mrf.mxu1 }
 0xaad   : > { %v13195_v2 = vpop.f32.mrf.mxu1 }
 0xaaf   : > { %v13199_v56 = vpop.f32.mrf.mxu1 }
 0xab1   : > { %v13205_v39 = vpop.f32.mrf.mxu1 }
 0xab3   : > { %v13209_v43 = vpop.f32.mrf.mxu1 }
 0xab5   : > { %v13213_v50 = vpop.f32.mrf.mxu1 }
 0xabd   : > { %3961 = vmax.xlane.f32.xlu1 %v13166_v37 }
 0xac1   : > { %3957 = vmax.xlane.f32.xlu1 %v13172_v31 }
 0xac2   : > { %3967 = vmax.xlane.f32.xlu0 %v13174_v8 }
 0xac5   : > { %3965 = vmax.xlane.f32.xlu1 %v13180_v20 }
 0xac6   : > { %3963 = vmax.xlane.f32.xlu0 %v13176_v51 }
 0xac9   : > { %3975 = vmax.xlane.f32.xlu1 %v13182_v11 }
 0xaca   : > { %3969 = vmax.xlane.f32.xlu0 %v13178_v0 }
 0xacd   : > { %3971 = vmax.xlane.f32.xlu1 %v13185_v16 }
 0xace   : > { %3977 = vmax.xlane.f32.xlu0 %v13189_v14 }
 0xad1   : > { %3983 = vmax.xlane.f32.xlu1 %v13199_v56 }
 0xad2   : > { %3973 = vmax.xlane.f32.xlu0 %v13195_v2  ;;  %v4096_v23 = vpop.xlane.xlu0 %4095 }
 0xad5   : > { %3979 = vmax.xlane.f32.xlu1 %v13205_v39 }
 0xad6   : > { %3985 = vmax.xlane.f32.xlu0 %v13209_v43  ;;  %v4088_v34 = vpop.xlane.xlu1 %4087  ;;  %v4092_v61 = vpop.xlane.xlu0 %4091 }
 0xad7   : > { %9944 = vrcp.f32 %v4088_v34 }
 0xada   : > { %3981 = vmax.xlane.f32.xlu0 %v13213_v50  ;;  %v4084_v24 = vpop.xlane.xlu1 %4083  ;;  %v4098_v4 = vpop.xlane.xlu0 %4097 }
 0xadb   : > { %9946 = vrcp.f32 %v4084_v24 }
 0xade   : > { %v4090_v27 = vpop.xlane.xlu1 %4089  ;;  %v4094_v41 = vpop.xlane.xlu0 %4093 }
 0xadf   : > { %9948 = vrcp.f32 %v4090_v27 }
 0xae0   : > { %9950 = vrcp.f32 %v4094_v41 }
 0xae1   : > { %9952 = vrcp.f32 %v4092_v61 }
 0xae2   : > { %v4086_v28 = vpop.xlane.xlu1 %4085  ;;  %v4102_v40 = vpop.xlane.xlu0 %4101 }
 0xae3   : > { %9954 = vrcp.f32 %v4086_v28 }
 0xae4   : > { %9956 = vrcp.f32 %v4098_v4  ;;  %v9945_v18 = vpop.eup %9944 }
 0xae5   : > { %9958 = vrcp.f32 %v4096_v23  ;;  %v4181_v23 = vmul.f32 %v9945_v18, %v13069_v52 }
 0xae6   : > { %v4104_v60 = vpop.xlane.xlu1 %4103  ;;  %9960 = vrcp.f32 %v4102_v40 }
 0xae8   : > { %v9947_v29 = vpop.eup %9946 }
 0xae9   : > { %v4179_v61 = vmul.f32 %v9947_v29, %v13076_v45 }
 0xaea   : > { %v4100_v26 = vpop.xlane.xlu1 %4099 }
 0xaeb   : > { %9962 = vrcp.f32 %v4100_v26 }
 0xaec   : > { %v9949_v57 = vpop.eup %9948 }
 0xaed   : > { %v9951_v55 = vpop.eup %9950  ;;  %v4182_v27 = vmul.f32 %v9949_v57, %v13083_v46  ;;  %v4547_v57 = vsel %vm1832_vm0, %v13131_v3, 0  ;;  %v4544_v46 = vsel %vm1832_vm0, %v13121_v35, 0 }
 0xaee   : > { %v4106_v34 = vpop.xlane.xlu1 %4105  ;;  %v9953_v25 = vpop.eup %9952  ;;  %v4184_v4 = vmul.f32 %v9951_v55, %v13085_v32 }
 0xaef   : > { %9964 = vrcp.f32 %v4106_v34  ;;  %v4183_v41 = vmul.f32 %v9953_v25, %v13072_v21  ;;  %v4212_v40 = vpack.c.bf16 %v4182_v27, %v4181_v23  ;;  %v4535_v27 = vsel %vm1832_vm0, %v13150_v44, 0 }
 0xaf0   : > { %v9955_v38 = vpop.eup %9954  ;;  %9966 = vrcp.f32 %v4104_v60 }
 0xaf1   : > { %v4180_v28 = vmul.f32 %v9955_v38, %v13089_v12  ;;  %v9957_v26 = vpop.eup %9956  ;;  %v4213_v15 = vpack.c.bf16 %v4184_v4, %v4183_v41  ;;  %v4541_v12 = vsel %vm1832_vm0, %v13138_v13, 0 }
 0xaf2   : > { %v9959_v63 = vpop.eup %9958  ;;  %v4186_v55 = vmul.f32 %v9957_v26, %v13079_v7 }
 0xaf3   : > { %v4211_v24 = vpack.c.bf16 %v4180_v28, %v4179_v61  ;;  %v9961_v29 = vpop.eup %9960  ;;  %v4185_v18 = vmul.f32 %v9959_v63, %v13066_v36 }
 0xaf4   : > { %v4188_v60 = vmul.f32 %v9961_v29, %v13091_v22  ;;  %v15411_v29 = vld [vmem:[#allocation47_spill] sm:$0xff] }
 0xaf5   : > { %8826 = vmatprep.mubr.bf16.mxu0 %v4211_v24  ;;  %v4214_v52 = vpack.c.bf16 %v4186_v55, %v4185_v18  ;;  %v15413_v55 = vld [vmem:[#allocation65_spill] sm:$0xff] }
 0xaf6   : > { %8827 = vmatmul.mubr.bf16.vlgmr.msra.gmra.mxu0 %v4212_v40 }
 0xaf7   : > { %8875 = vmatpush3.bf16.xpose.msra.mxu0 %v4547_v57  ;;  %8830 = vmatprep.mubr.bf16.mxu0 %v4213_v15 }
 0xaf8   : > { %v9963_v38 = vpop.eup %9962  ;;  %9115 = vmatprep.subr.msk.bf16.mxu0 %vm1832_vm0, %v13121_v35 }
 0xaf9   : > { %v4187_v25 = vmul.f32 %v9963_v38, %v13098_v17 }
 0xafb   : > { %v4215_v45 = vpack.c.bf16 %v4188_v60, %v4187_v25 }
 0xafc   : > { %v9965_v21 = vpop.eup %9964 }
 0xafd   : > { %v9967_v15 = vpop.eup %9966  ;;  %v4190_v7 = vmul.f32 %v9965_v21, %v13101_v10  ;;  %v4538_v10 = vsel %vm1832_vm0, %v13129_v19, 0 }
 0xafe   : > { %8831 = vmatmul.mubr.bf16.gmra.mxu0 %v4214_v52  ;;  %v4189_v32 = vmul.f32 %v9967_v15, %v13095_v58 }
 0xaff   : > { %8877 = vmatpush3.bf16.xpose.msra.mxu0 %v4544_v46  ;;  %8834 = vmatprep.mubr.bf16.mxu0 %v4215_v45 }
 0xb00   : > { %9116 = vmatprep.subr.msk.bf16.mxu0 %vm1832_vm0, %v13138_v13  ;;  %v4216_v63 = vpack.c.bf16 %v4190_v7, %v4189_v32 }
 0xb05   : > { %v4112_v36 = vpop.xlane.xlu0 %4111 }
 0xb06   : > { %8835 = vmatmul.mubr.bf16.gmra.mxu0 %v4216_v63 }
 0xb07   : > { %8879 = vmatpush3.bf16.xpose.msra.mxu0 %v4541_v12 }
 0xb08   : > { %9117 = vmatprep.subr.msk.bf16.mxu0 %vm1832_vm0, %v13129_v19 }
 0xb09   : > { %v4114_v22 = vpop.xlane.xlu1 %4113 }
 0xb0a   : > { %v4108_v17 = vpop.xlane.xlu0 %4107  ;;  %9968 = vrcp.f32 %v4114_v22 }
 0xb0b   : > { %9970 = vrcp.f32 %v4108_v17 }
 0xb0c   : > { %9972 = vrcp.f32 %v4112_v36 }
 0xb0e   : > { %v4110_v35 = vpop.xlane.xlu0 %4109 }
 0xb0f   : > { %9974 = vrcp.f32 %v4110_v35  ;;  %8881 = vmatpush3.bf16.xpose.msra.mxu0 %v4538_v10 }
 0xb10   : > { %9118 = vmatprep.subr.msk.bf16.mxu0 %vm1832_vm0, %v13150_v44  ;;  %v4532_v44 = vsel %vm1832_vm0, %v13143_v48, 0 }
 0xb12   : > { %v3960_v58 = vpop.xlane.xlu0 %3959 }
 0xb13   : > { %v4005_v3 = vsub.f32 %v13140_v53, %v3960_v58 }
 0xb15   : > { %v4055_v13 = vmul.f32 1.442695, %v4005_v3 }
 0xb16   : > { %v3956_v34 = vpop.xlane.xlu0 %3955 }
 0xb17   : > { %9976 = vpow2.f32 %v4055_v13  ;;  %v4003_v61 = vsub.f32 %v13145_v62, %v3956_v34  ;;  %8883 = vmatpush3.bf16.xpose.msra.mxu0 %v4535_v27  ;;  %v9969_v19 = vpop.eup %9968 }
 0xb18   : > { %9119 = vmatprep.subr.msk.bf16.mxu0 %vm1832_vm0, %v13143_v48  ;;  %v9971_v4 = vpop.eup %9970  ;;  %v4194_v53 = vmul.f32 %v9969_v19, %v13123_v6  ;;  %v4476_v48 = vpop.permute.xlu1 %4475 }
 0xb19   : > { %v4051_v28 = vmul.f32 1.442695, %v4003_v61  ;;  %v9973_v23 = vpop.eup %9972  ;;  %v4191_v41 = vmul.f32 %v9971_v4, %v13125_v9  ;;  %v4529_v9 = vsel %vm1832_vm0, %v13154_v42, 0 }
 0xb1a   : > { %v4193_v62 = vmul.f32 %v9973_v23, %v13118_v54 }
 0xb1b   : > { %9978 = vpow2.f32 %v4051_v28 }
 0xb1c   : > { %v9975_v24 = vpop.eup %9974  ;;  %v4218_v57 = vpack.c.bf16 %v4194_v53, %v4193_v62  ;;  %v13279_v38 = vpop.permute.xlu1 %4672 }
 0xb1d   : > { %v4192_v40 = vmul.f32 %v9975_v24, %v13133_v59  ;;  %v4526_v59 = vsel %vm1832_vm0, %v13160_v5, 0 }
 0xb1f   : > { %8885 = vmatpush3.bf16.xpose.msra.mxu0 %v4532_v44  ;;  %v4217_v26 = vpack.c.bf16 %v4192_v40, %v4191_v41 }
 0xb20   : > { %9120 = vmatprep.subr.msk.bf16.mxu0 %vm1832_vm0, %v13154_v42  ;;  %v15412_v42 = vld [vmem:[#allocation63_spill] sm:$0xff]  ;;  %v13286_v25 = vpop.permute.xlu1 %4670 }
 0xb21   : > { %8838 = vmatprep.mubr.bf16.mxu0 %v4217_v26 }
 0xb22   : > { %8839 = vmatmul.mubr.bf16.gmra.mxu0 %v4218_v57 }
 0xb23   : > { %8890 = vmatprep.mubr.msk.bf16.mxu0 %vm1832_vm0, %v13162_v33  ;;  %v4474_v33 = vpop.permute.xlu0 %4473 }
 0xb24   : > { %v13260_v6 = vpop.eup %9976 }
 0xb25   : > { %4119 = vadd.xlane.f32.xlu1 %v13260_v6 }
 0xb27   : > { %8887 = vmatpush3.bf16.xpose.msra.mxu0 %v4529_v9 }
 0xb28   : > { %v13265_v54 = vpop.eup %9978  ;;  %9121 = vmatprep.subr.msk.bf16.mxu0 %vm1832_vm0, %v13160_v5  ;;  %v15414_v5 = vld [vmem:[#allocation45_spill] sm:$0xff] }
 0xb29   : > { %4115 = vadd.xlane.f32.xlu0 %v13265_v54 }
 0xb2f   : > { %8889 = vmatpush3.bf16.xpose.msra.mxu0 %v4526_v59 }
 0xb36   : > { %8891 = vmatmul.mubr.msk.bf16.vlgmr.msra.gmra.mxu0 %vm1832_vm0, %v13193_v1  ;;  %4479 = vrot.lane.b32.xlu1 %v15411_v29, %s10709_s12 }
 0xb37   : > { %8894 = vmatprep.mubr.msk.bf16.mxu0 %vm1832_vm0, %v4474_v33 }
 0xb3a   : > { %4668 = vrot.lane.b32.xlu1 %v15412_v42, %s10709_s12 }
 0xb3e   : > { %4666 = vrot.lane.b32.xlu1 %v15413_v55, %s10709_s12  ;;  %8895 = vmatmul.mubr.msk.bf16.gmra.mxu0 %vm1832_vm0, %v4476_v48  ;;  %v15416_v55 = vld [vmem:[#allocation84_spill] sm:$0xff] }
 0xb3f   : > { %4477 = vrot.lane.b32.xlu0 %v15414_v5, %s10709_s12 }
 0xb42   : > { %4481 = vrot.lane.b32.xlu1 %v15265_v49, %s10709_s12 }
 0xb46   : > { %v3962_v1 = vpop.xlane.xlu1 %3961 }
 0xb47   : > { %v4006_v7 = vsub.f32 %v13166_v37, %v3962_v1 }
 0xb49   : > { %v4057_v12 = vmul.f32 1.442695, %v4006_v7 }
 0xb4a   : > { %v3958_v18 = vpop.xlane.xlu1 %3957 }
 0xb4b   : > { %v3968_v60 = vpop.xlane.xlu0 %3967  ;;  %v4004_v22 = vsub.f32 %v13172_v31, %v3958_v18 }
 0xb4c   : > { %v4009_v52 = vsub.f32 %v13174_v8, %v3968_v60 }
 0xb4d   : > { %v4053_v10 = vmul.f32 1.442695, %v4004_v22 }
 0xb4e   : > { %v4063_v21 = vmul.f32 1.442695, %v4009_v52  ;;  %v3966_v45 = vpop.xlane.xlu1 %3965 }
 0xb4f   : > { %v4008_v46 = vsub.f32 %v13180_v20, %v3966_v45  ;;  %v13292_v15 = vpop.xlane.xlu0 %3963 }
 0xb50   : > { %9980 = vpow2.f32 %v4063_v21  ;;  %v4007_v9 = vsub.f32 %v13176_v51, %v13292_v15 }
 0xb51   : > { %v4061_v32 = vmul.f32 1.442695, %v4008_v46  ;;  %v15419_v46 = vld [vmem:[#allocation71_spill] sm:$0xff] }
 0xb52   : > { %v3976_v63 = vpop.xlane.xlu1 %3975  ;;  %v4059_v59 = vmul.f32 1.442695, %v4007_v9 }
 0xb53   : > { %9982 = vpow2.f32 %v4061_v32  ;;  %v4013_v36 = vsub.f32 %v13182_v11, %v3976_v63  ;;  %v3970_v49 = vpop.xlane.xlu0 %3969 }
 0xb54   : > { %v4010_v48 = vsub.f32 %v13178_v0, %v3970_v49  ;;  %v15417_v0 = vld [vmem:[#allocation54_spill] sm:$0xff] }
 0xb55   : > { %v4071_v17 = vmul.f32 1.442695, %v4013_v36  ;;  %v15420_v36 = vld [vmem:[#allocation59_spill] sm:$0xff] }
 0xb56   : > { %v3972_v8 = vpop.xlane.xlu1 %3971  ;;  %v4065_v33 = vmul.f32 1.442695, %v4010_v48 }
 0xb57   : > { %9984 = vpow2.f32 %v4071_v17  ;;  %v4011_v35 = vsub.f32 %v13185_v16, %v3972_v8  ;;  %v3978_v20 = vpop.xlane.xlu0 %3977  ;;  %v15421_v17 = vld [vmem:[#allocation83_spill] sm:$0xff] }
 0xb58   : > { %9986 = vpow2.f32 %v4057_v12  ;;  %v4014_v37 = vsub.f32 %v13189_v14, %v3978_v20 }
 0xb59   : > { %v4067_v58 = vmul.f32 1.442695, %v4011_v35 }
 0xb5a   : > { %v3984_v3 = vpop.xlane.xlu1 %3983  ;;  %v4073_v11 = vmul.f32 1.442695, %v4014_v37 }
 0xb5b   : > { %9988 = vpow2.f32 %v4067_v58  ;;  %v3974_v13 = vpop.xlane.xlu0 %3973  ;;  %v4017_v34 = vsub.f32 %v13199_v56, %v3984_v3  ;;  %v15423_v3 = vld [vmem:[#allocation55_spill] sm:$0xff] }
 0xb5c   : > { %9990 = vpow2.f32 %v4053_v10  ;;  %v4012_v29 = vsub.f32 %v13195_v2, %v3974_v13  ;;  %v15422_v10 = vld [vmem:[#allocation51_spill] sm:$0xff] }
 0xb5d   : > { %v13300_v27 = vpop.eup %9980  ;;  %9992 = vpow2.f32 %v4073_v11  ;;  %v4079_v19 = vmul.f32 1.442695, %v4017_v34 }
 0xb5e   : > { %4127 = vadd.xlane.f32.xlu0 %v13300_v27  ;;  %v3980_v31 = vpop.xlane.xlu1 %3979  ;;  %v4069_v42 = vmul.f32 1.442695, %v4012_v29 }
 0xb5f   : > { %v3986_v61 = vpop.xlane.xlu0 %3985  ;;  %v4015_v14 = vsub.f32 %v13205_v39, %v3980_v31  ;;  %9994 = vpow2.f32 %v4079_v19 }
 0xb60   : > { %v13303_v16 = vpop.eup %9982  ;;  %v4018_v56 = vsub.f32 %v13209_v43, %v3986_v61 }
 0xb61   : > { %v4075_v4 = vmul.f32 1.442695, %v4015_v14 }
 0xb62   : > { %4125 = vadd.xlane.f32.xlu0 %v13303_v16  ;;  %v4081_v41 = vmul.f32 1.442695, %v4018_v56 }
 0xb63   : > { %v3982_v24 = vpop.xlane.xlu0 %3981  ;;  %9996 = vpow2.f32 %v4075_v4 }
 0xb64   : > { %v13307_v28 = vpop.eup %9984  ;;  %v4016_v39 = vsub.f32 %v13213_v50, %v3982_v24  ;;  %9998 = vpow2.f32 %v4081_v41 }
 0xb65   : > { %v13310_v23 = vpop.eup %9986 }
 0xb66   : > { %4121 = vadd.xlane.f32.xlu1 %v13310_v23  ;;  %4135 = vadd.xlane.f32.xlu0 %v13307_v28  ;;  %v4077_v43 = vmul.f32 1.442695, %v4016_v39 }
 0xb68   : > { %v13314_v53 = vpop.eup %9988  ;;  %10000 = vpow2.f32 %v4077_v43 }
 0xb69   : > { %v13317_v40 = vpop.eup %9990  ;;  %10002 = vpow2.f32 %v4059_v59 }
 0xb6a   : > { %4117 = vadd.xlane.f32.xlu1 %v13317_v40  ;;  %4131 = vadd.xlane.f32.xlu0 %v13314_v53  ;;  %v13321_v44 = vpop.eup %9992  ;;  %10004 = vpow2.f32 %v4065_v33 }
 0xb6b   : > { %10006 = vpow2.f32 %v4069_v42 }
 0xb6c   : > { %v13324_v62 = vpop.eup %9994 }
 0xb6e   : > { %4137 = vadd.xlane.f32.xlu0 %v13321_v44 }
 0xb70   : > { %v13327_v26 = vpop.eup %9996 }
 0xb71   : > { %v13330_v50 = vpop.eup %9998 }
 0xb72   : > { %4143 = vadd.xlane.f32.xlu0 %v13324_v62 }
 0xb75   : > { %v13335_v57 = vpop.eup %10000 }
 0xb76   : > { %4139 = vadd.xlane.f32.xlu0 %v13327_v26  ;;  %v13348_v51 = vpop.eup %10002 }
 0xb77   : > { %v13353_v2 = vpop.eup %10004 }
 0xb78   : > { %v13358_v5 = vpop.eup %10006 }
 0xb7a   : > { %4145 = vadd.xlane.f32.xlu0 %v13330_v50 }
 0xb7b   : > { %4483 = vrot.lane.b32.xlu1 %v15330_v47, %s10709_s12  ;;  %v15415_v47 = vld [vmem:[#allocation82_spill] sm:$0xff] }
 0xb7e   : > { %4141 = vadd.xlane.f32.xlu0 %v13335_v57 }
 0xb94   : > { %4662 = vrot.lane.b32.xlu0 %v15266_v30, %s10709_s12  ;;  %v15418_v30 = vld [vmem:[#allocation56_spill] sm:$0xff] }
 0xb98   : > { %4648 = vrot.lane.b32.xlu0 %v15415_v47, %s10709_s12 }
 0xb9c   : > { %4652 = vrot.lane.b32.xlu0 %v15416_v55, %s10709_s12 }
 0xb9f   : > { %4123 = vadd.xlane.f32.xlu1 %v13348_v51 }
 0xba0   : > { %4656 = vrot.lane.b32.xlu0 %v15417_v0, %s10709_s12 }
 0xba3   : > { %4129 = vadd.xlane.f32.xlu1 %v13353_v2 }
 0xba4   : > { %4660 = vrot.lane.b32.xlu0 %v15418_v30, %s10709_s12 }
 0xba7   : > { %4133 = vadd.xlane.f32.xlu1 %v13358_v5 }
 0xbae   : > { %v4120_v1 = vpop.xlane.xlu1 %4119 }
 0xbb2   : > { %v4480_v18 = vpop.permute.xlu1 %4479  ;;  %v4116_v60 = vpop.xlane.xlu0 %4115 }
 0xbb6   : > { %v13361_v52 = vpop.permute.xlu1 %4668  ;;  %v4478_v21 = vpop.permute.xlu0 %4477 }
 0xbb7   : > { %v13363_v45 = vpop.f32.mrf.mxu0  ;;  %8898 = vmatprep.mubr.msk.bf16.mxu0 %vm1832_vm0, %v4478_v21 }
 0xbb8   : > { %4664 = vrot.lane.b32.xlu1 %v15419_v46, %s10709_s12  ;;  %8899 = vmatmul.mubr.msk.bf16.gmra.mxu0 %vm1832_vm0, %v4480_v18 }
 0xbb9   : > { %v13369_v15 = vpop.f32.mrf.mxu0 }
 0xbba   : > { %v13371_v7 = vpop.permute.xlu1 %4666 }
 0xbbb   : > { %v13373_v32 = vpop.f32.mrf.mxu0 }
 0xbbc   : > { %4646 = vrot.lane.b32.xlu1 %v15420_v36, %s10709_s12 }
 0xbbd   : > { %v13379_v49 = vpop.f32.mrf.mxu0 }
 0xbbe   : > { %v4482_v12 = vpop.permute.xlu1 %4481 }
 0xbbf   : > { %v13381_v22 = vpop.f32.mrf.mxu0  ;;  %8902 = vmatprep.mubr.msk.bf16.mxu0 %vm1832_vm0, %v4482_v12 }
 0xbc0   : > { %4650 = vrot.lane.b32.xlu1 %v15421_v17, %s10709_s12 }
 0xbc1   : > { %v13386_v8 = vpop.f32.mrf.mxu0 }
 0xbc3   : > { %v13388_v35 = vpop.f32.mrf.mxu0 }
 0xbc4   : > { %4654 = vrot.lane.b32.xlu1 %v15422_v10, %s10709_s12 }
 0xbc5   : > { %v13394_v37 = vpop.f32.mrf.mxu0 }
 0xbc7   : > { %v13396_v58 = vpop.f32.mrf.mxu0 }
 0xbc8   : > { %4658 = vrot.lane.b32.xlu1 %v15423_v3, %s10709_s12 }
 0xbc9   : > { %v13400_v13 = vpop.f32.mrf.mxu0 }
 0xbcb   : > { %v13402_v11 = vpop.f32.mrf.mxu0 }
 0xbcd   : > { %v13406_v31 = vpop.f32.mrf.mxu0 }
 0xbe2   : > { %v13408_v61 = vpop.f32.mrf.mxu0 }
 0xbe3   : > { %15424 = vst [vmem:[#allocation58_spill] sm:$0xff] %v13408_v61 }
 0xbe4   : > { %v13410_v19 = vpop.f32.mrf.mxu0 }
 0xbe6   : > { %v13412_v14 = vpop.f32.mrf.mxu0 }
 0xbe7   : > { %15425 = vst [vmem:[#allocation43_spill] sm:$0xff] %v13412_v14  ;;  %v4128_v47 = vpop.xlane.xlu0 %4127 }
 0xbe8   : > { %v13416_v41 = vpop.f32.mrf.mxu0 }
 0xbeb   : > { %v4126_v17 = vpop.xlane.xlu0 %4125 }
 0xbef   : > { %v4122_v56 = vpop.xlane.xlu1 %4121 }
 0xbf0   : > { %10008 = vrcp.f32 %v4122_v56 }
 0xbf1   : > { %10010 = vrcp.f32 %v4116_v60 }
 0xbf2   : > { %10012 = vrcp.f32 %v4120_v1 }
 0xbf3   : > { %v4118_v24 = vpop.xlane.xlu1 %4117 }
 0xbf4   : > { %10014 = vrcp.f32 %v4118_v24 }
 0xbf5   : > { %10016 = vrcp.f32 %v4126_v17 }
 0xbf6   : > { %v13418_v39 = vpop.f32.mrf.mxu0 }
 0xbf7   : > { %v4484_v43 = vpop.permute.xlu1 %4483 }
 0xbf8   : > { %v13420_v9 = vpop.f32.mrf.mxu0  ;;  %8903 = vmatmul.mubr.msk.bf16.gmra.mxu0 %vm1832_vm0, %v4484_v43  ;;  %v4718_v43 = vsel %vm1832_vm0, %v13279_v38, 0 }
 0xbf9   : > { %4823 = vmax.xlane.f32.xlu1 %v13420_v9 }
 0xbfa   : > { %v13424_v59 = vpop.f32.mrf.mxu0 }
 0xbfc   : > { %v13426_v48 = vpop.f32.mrf.mxu0 }
 0xbfd   : > { %4829 = vmax.xlane.f32.xlu1 %v13424_v59  ;;  %4825 = vmax.xlane.f32.xlu0 %v13426_v48  ;;  %v10009_v33 = vpop.eup %10008 }
 0xbfe   : > { %v13430_v29 = vpop.f32.mrf.mxu0  ;;  %v10011_v42 = vpop.eup %10010  ;;  %v4198_v1 = vmul.f32 %v10009_v33, %v13310_v23  ;;  %v15426_v23 = vld [vmem:[#allocation38_spill] sm:$0xff] }
 0xbff   : > { %v10013_v55 = vpop.eup %10012  ;;  %v4195_v60 = vmul.f32 %v10011_v42, %v13265_v54  ;;  %v4724_v3 = vsel %vm1832_vm0, %v15426_v23, 0  ;;  %v15427_v54 = vld [vmem:[#allocation57_spill] sm:$0xff]  ;;  %v4715_v42 = vsel %vm1832_vm0, %v13286_v25, 0 }
 0xc00   : > { %v13432_v0 = vpop.f32.mrf.mxu0  ;;  %v4197_v46 = vmul.f32 %v10013_v55, %v13260_v6  ;;  %v4136_v6 = vpop.xlane.xlu0 %4135 }
 0xc01   : > { %v10015_v30 = vpop.eup %10014  ;;  %4827 = vmax.xlane.f32.xlu0 %v13418_v39 }
 0xc02   : > { %v13436_v18 = vpop.f32.mrf.mxu0  ;;  %v4196_v21 = vmul.f32 %v10015_v30, %v13317_v40  ;;  %v4220_v10 = vpack.c.bf16 %v4198_v1, %v4197_v46  ;;  %v4721_v40 = vsel %vm1832_vm0, %v15427_v54, 0  ;;  %v4712_v30 = vsel %vm1832_vm0, %v13361_v52, 0 }
 0xc04   : > { %v13441_v36 = vpop.f32.mrf.mxu0  ;;  %v4219_v12 = vpack.c.bf16 %v4196_v21, %v4195_v60  ;;  %v4132_v56 = vpop.xlane.xlu0 %4131  ;;  %v4709_v21 = vsel %vm1832_vm0, %v13371_v7, 0 }
 0xc05   : > { %4833 = vmax.xlane.f32.xlu1 %v13441_v36  ;;  %4831 = vmax.xlane.f32.xlu0 %v13432_v0 }
 0xc06   : > { %8858 = vmatprep.mubr.bf16.mxu1 %v4219_v12 }
 0xc07   : > { %8859 = vmatmul.mubr.bf16.vlgmr.msra.gmra.mxu1 %v4220_v10 }
 0xc08   : > { %8907 = vmatpush3.bf16.xpose.msra.mxu1 %v4724_v3  ;;  %v4138_v24 = vpop.xlane.xlu0 %4137 }
 0xc09   : > { %9123 = vmatprep.subr.msk.bf16.mxu1 %vm1832_vm0, %v15427_v54  ;;  %4837 = vmax.xlane.f32.xlu1 %v13436_v18 }
 0xc0a   : > { %4835 = vmax.xlane.f32.xlu0 %v13430_v29 }
 0xc0c   : > { %v4144_v33 = vpop.xlane.xlu0 %4143 }
 0xc10   : > { %8909 = vmatpush3.bf16.xpose.msra.mxu1 %v4721_v40  ;;  %v4140_v55 = vpop.xlane.xlu0 %4139 }
 0xc11   : > { %9124 = vmatprep.subr.msk.bf16.mxu1 %vm1832_vm0, %v13279_v38 }
 0xc14   : > { %v4146_v38 = vpop.xlane.xlu0 %4145 }
 0xc18   : > { %8911 = vmatpush3.bf16.xpose.msra.mxu1 %v4718_v43 }
 0xc19   : > { %9125 = vmatprep.subr.msk.bf16.mxu1 %vm1832_vm0, %v13286_v25  ;;  %v4142_v25 = vpop.xlane.xlu0 %4141 }
 0xc20   : > { %8913 = vmatpush3.bf16.xpose.msra.mxu1 %v4715_v42 }
 0xc21   : > { %9126 = vmatprep.subr.msk.bf16.mxu1 %vm1832_vm0, %v13361_v52  ;;  %v10017_v52 = vpop.eup %10016 }
 0xc22   : > { %v4200_v23 = vmul.f32 %v10017_v52, %v13303_v16 }
 0xc28   : > { %8915 = vmatpush3.bf16.xpose.msra.mxu1 %v4712_v30  ;;  %v4124_v1 = vpop.xlane.xlu1 %4123 }
 0xc29   : > { %10018 = vrcp.f32 %v4124_v1  ;;  %9127 = vmatprep.subr.msk.bf16.mxu1 %vm1832_vm0, %v13371_v7  ;;  %v4663_v7 = vpop.permute.xlu0 %4662 }
 0xc2a   : > { %10020 = vrcp.f32 %v4128_v47  ;;  %v4703_v16 = vsel %vm1832_vm0, %v4663_v7, 0 }
 0xc2c   : > { %v4130_v60 = vpop.xlane.xlu1 %4129 }
 0xc2d   : > { %10022 = vrcp.f32 %v4130_v60 }
 0xc2e   : > { %10024 = vrcp.f32 %v4132_v56 }
 0xc2f   : > { %10026 = vrcp.f32 %v4138_v24 }
 0xc30   : > { %8917 = vmatpush3.bf16.xpose.msra.mxu1 %v4709_v21  ;;  %v4134_v46 = vpop.xlane.xlu1 %4133 }
 0xc31   : > { %10028 = vrcp.f32 %v4134_v46 }
 0xc32   : > { %10030 = vrcp.f32 %v4142_v25 }
 0xc33   : > { %10032 = vrcp.f32 %v4136_v6 }
 0xc34   : > { %10034 = vrcp.f32 %v4140_v55  ;;  %v4665_v12 = vpop.permute.xlu1 %4664 }
 0xc35   : > { %9128 = vmatprep.subr.msk.bf16.mxu1 %vm1832_vm0, %v4665_v12  ;;  %v4706_v47 = vsel %vm1832_vm0, %v4665_v12, 0  ;;  %10036 = vrcp.f32 %v4146_v38 }
 0xc36   : > { %v10019_v17 = vpop.eup %10018  ;;  %10038 = vrcp.f32 %v4144_v33 }
 0xc37   : > { %v4199_v10 = vmul.f32 %v10019_v17, %v13348_v51  ;;  %v10021_v3 = vpop.eup %10020 }
 0xc38   : > { %8919 = vmatpush3.bf16.xpose.msra.mxu1 %v4706_v47  ;;  %v4201_v40 = vmul.f32 %v10021_v3, %v13300_v27 }
 0xc39   : > { %9129 = vmatprep.subr.msk.bf16.mxu1 %vm1832_vm0, %v4663_v7  ;;  %v4221_v54 = vpack.c.bf16 %v4200_v23, %v4199_v10  ;;  %v4647_v10 = vpop.permute.xlu1 %4646 }
 0xc3a   : > { %v10023_v6 = vpop.eup %10022 }
 0xc3b   : > { %8862 = vmatprep.mubr.bf16.mxu1 %v4221_v54  ;;  %v4202_v56 = vmul.f32 %v10023_v6, %v13353_v2  ;;  %v10025_v24 = vpop.eup %10024 }
 0xc3c   : > { %v10027_v43 = vpop.eup %10026  ;;  %v4203_v30 = vmul.f32 %v10025_v24, %v13314_v53 }
 0xc3d   : > { %v4222_v42 = vpack.c.bf16 %v4202_v56, %v4201_v40  ;;  %v4206_v27 = vmul.f32 %v10027_v43, %v13321_v44  ;;  %v4649_v44 = vpop.permute.xlu0 %4648 }
 0xc3e   : > { %v10029_v51 = vpop.eup %10028 }
 0xc3f   : > { %v10031_v55 = vpop.eup %10030  ;;  %8863 = vmatmul.mubr.bf16.gmra.mxu1 %v4222_v42  ;;  %v4204_v1 = vmul.f32 %v10029_v51, %v13358_v5 }
 0xc40   : > { %v10033_v38 = vpop.eup %10032  ;;  %8921 = vmatpush3.bf16.xpose.msra.mxu1 %v4703_v16  ;;  %v4208_v2 = vmul.f32 %v10031_v55, %v13335_v57  ;;  %v4651_v57 = vpop.permute.xlu1 %4650 }
 0xc41   : > { %v10035_v33 = vpop.eup %10034  ;;  %v4223_v60 = vpack.c.bf16 %v4204_v1, %v4203_v30  ;;  %v4205_v25 = vmul.f32 %v10033_v38, %v13307_v28  ;;  %v4653_v28 = vpop.permute.xlu0 %4652  ;;  %v15432_v38 = vld [vmem:[#allocation64_spill] sm:$0xff] }
 0xc42   : > { %v4207_v21 = vmul.f32 %v10035_v33, %v13327_v26  ;;  %v10037_v52 = vpop.eup %10036  ;;  %v15433_v33 = vld [vmem:[#allocation62_spill] sm:$0xff] }
 0xc43   : > { %8866 = vmatprep.mubr.bf16.mxu1 %v4223_v60  ;;  %v4224_v46 = vpack.c.bf16 %v4206_v27, %v4205_v25  ;;  %v10039_v53 = vpop.eup %10038  ;;  %v4210_v5 = vmul.f32 %v10037_v52, %v13330_v50  ;;  %v15434_v60 = vld [vmem:[#allocation73_spill] sm:$0xff]  ;;  %v15436_v25 = vld [vmem:[#allocation76_spill] sm:$0xff] }
 0xc44   : > { %v4225_v12 = vpack.c.bf16 %v4208_v2, %v4207_v21  ;;  %v4209_v47 = vmul.f32 %v10039_v53, %v13324_v62  ;;  %v4655_v26 = vpop.permute.xlu1 %4654  ;;  %v15435_v2 = vld [vmem:[#allocation67_spill] sm:$0xff]  ;;  %v15437_v21 = vld [vmem:[#allocation70_spill] sm:$0xff]  ;;  %v15438_v52 = vld [vmem:[#allocation80_spill] sm:$0xff] }
 0xc45   : > { %v4657_v50 = vpop.permute.xlu0 %4656 }
 0xc46   : > { %v4226_v17 = vpack.c.bf16 %v4210_v5, %v4209_v47  ;;  %v15440_v5 = vld [vmem:[#allocation85_spill] sm:$0xff] }
 0xc47   : > { %8867 = vmatmul.mubr.bf16.gmra.mxu1 %v4224_v46 }
 0xc48   : > { %8870 = vmatprep.mubr.bf16.mxu1 %v4225_v12  ;;  %v4659_v23 = vpop.permute.xlu1 %4658  ;;  %v15439_v12 = vld [vmem:[#allocation78_spill] sm:$0xff] }
 0xc49   : > { %v4661_v62 = vpop.permute.xlu0 %4660 }
 0xc4f   : > { %8871 = vmatmul.mubr.bf16.gmra.mxu1 %v4226_v17  ;;  %v15441_v17 = vld [vmem:[#allocation81_spill] sm:$0xff] }
 0xc50   : > { %8922 = vmatprep.mubr.msk.bf16.mxu1 %vm1832_vm0, %v4647_v10 }
 0xc57   : > { %8923 = vmatmul.mubr.msk.bf16.vlgmr.msra.gmra.mxu1 %vm1832_vm0, %v4649_v44 }
 0xc58   : > { %8926 = vmatprep.mubr.msk.bf16.mxu1 %vm1832_vm0, %v4651_v57 }
 0xc5f   : > { %8927 = vmatmul.mubr.msk.bf16.gmra.mxu1 %vm1832_vm0, %v4653_v28 }
 0xc60   : > { %8930 = vmatprep.mubr.msk.bf16.mxu1 %vm1832_vm0, %v4655_v26 }
 0xc67   : > { %8931 = vmatmul.mubr.msk.bf16.gmra.mxu1 %vm1832_vm0, %v4657_v50 }
 0xc68   : > { %8934 = vmatprep.mubr.msk.bf16.mxu1 %vm1832_vm0, %v4659_v23 }
 0xc6f   : > { %8935 = vmatmul.mubr.msk.bf16.gmra.mxu1 %vm1832_vm0, %v4661_v62 }
 0xc78   : > { %v13493_v3 = vpop.f32.mrf.mxu0 }
 0xc7a   : > { %v13495_v7 = vpop.f32.mrf.mxu0 }
 0xc7b   : > { %4839 = vmax.xlane.f32.xlu0 %v13495_v7 }
 0xc7c   : > { %v13498_v54 = vpop.f32.mrf.mxu0 }
 0xc7e   : > { %v13500_v6 = vpop.f32.mrf.mxu0 }
 0xc7f   : > { %4843 = vmax.xlane.f32.xlu0 %v13493_v3  ;;  %4841 = vmax.xlane.f32.xlu1 %v13500_v6 }
 0xc82   : > { %v4824_v53 = vpop.xlane.xlu1 %4823 }
 0xc83   : > { %4845 = vmax.xlane.f32.xlu1 %v13498_v54 }
 0xc86   : > { %v4826_v27 = vpop.xlane.xlu0 %4825  ;;  %v4830_v10 = vpop.xlane.xlu1 %4829 }
 0xc8a   : > { %v4828_v46 = vpop.xlane.xlu0 %4827 }
 0xc8b   : > { %v4889_v26 = vsub.f32 %v13418_v39, %v4828_v46  ;;  %v4888_v39 = vsub.f32 %v13426_v48, %v4826_v27 }
 0xc8e   : > { %v4832_v47 = vpop.xlane.xlu0 %4831  ;;  %v4834_v57 = vpop.xlane.xlu1 %4833 }
 0xc8f   : > { %v4891_v50 = vsub.f32 %v13432_v0, %v4832_v47 }
 0xc92   : > { %v4838_v62 = vpop.xlane.xlu1 %4837 }
 0xc93   : > { %v4836_v44 = vpop.xlane.xlu0 %4835 }
 0xc94   : > { %v4893_v28 = vsub.f32 %v13430_v29, %v4836_v44 }
 0xc96   : > { %v4931_v23 = vmul.f32 1.442695, %v4893_v28 }
 0xc98   : > { %10040 = vpow2.f32 %v4931_v23 }
 0xcb8   : > { %v13505_v40 = vpop.f32.mrf.mxu0 }
 0xcba   : > { %v13507_v56 = vpop.f32.mrf.mxu0 }
 0xcbb   : > { %4847 = vmax.xlane.f32.xlu0 %v13507_v56 }
 0xcbc   : > { %v13510_v24 = vpop.f32.mrf.mxu0 }
 0xcbe   : > { %v13512_v43 = vpop.f32.mrf.mxu0 }
 0xcbf   : > { %4851 = vmax.xlane.f32.xlu0 %v13505_v40  ;;  %4849 = vmax.xlane.f32.xlu1 %v13512_v43 }
 0xcc3   : > { %4853 = vmax.xlane.f32.xlu1 %v13510_v24 }
 0xcc7   : > { %v13517_v42 = vpop.f32.mrf.mxu1 }
 0xcc8   : > { %15428 = vst [vmem:[#allocation60_spill] sm:$0xff] %v13517_v42 }
 0xcc9   : > { %v13519_v51 = vpop.f32.mrf.mxu1 }
 0xcca   : > { %15429 = vst [vmem:[#allocation61_spill] sm:$0xff] %v13519_v51 }
 0xccb   : > { %v13521_v55 = vpop.f32.mrf.mxu1 }
 0xccc   : > { %15430 = vst [vmem:[#allocation40_spill] sm:$0xff] %v13521_v55 }
 0xccd   : > { %v13525_v30 = vpop.f32.mrf.mxu1 }
 0xcce   : > { %15431 = vst [vmem:[#allocation47_spill] sm:$0xff] %v13525_v30 }
 0xcd4   : > { %5139 = vrot.lane.b32.xlu1 %v15432_v38, %s10709_s12  ;;  %v4887_v38 = vsub.f32 %v13420_v9, %v4824_v53  ;;  %v4921_v9 = vmul.f32 1.442695, %v4888_v39 }
 0xcd5   : > { %5141 = vrot.lane.b32.xlu0 %v15433_v33, %s10709_s12  ;;  %v4923_v33 = vmul.f32 1.442695, %v4889_v26 }
 0xcd7   : > { %10042 = vpow2.f32 %v4923_v33 }
 0xcd8   : > { %5133 = vrot.lane.b32.xlu1 %v15434_v60, %s10709_s12  ;;  %v4927_v60 = vmul.f32 1.442695, %v4891_v50 }
 0xcd9   : > { %5137 = vrot.lane.b32.xlu0 %v15435_v2, %s10709_s12  ;;  %v4894_v2 = vsub.f32 %v13436_v18, %v4838_v62  ;;  %v4892_v18 = vsub.f32 %v13441_v36, %v4834_v57 }
 0xcda   : > { %10044 = vpow2.f32 %v4927_v60 }
 0xcdb   : > { %v4929_v47 = vmul.f32 1.442695, %v4892_v18 }
 0xcdc   : > { %5131 = vrot.lane.b32.xlu1 %v15436_v25, %s10709_s12  ;;  %v4919_v25 = vmul.f32 1.442695, %v4887_v38 }
 0xcdd   : > { %5135 = vrot.lane.b32.xlu0 %v15437_v21, %s10709_s12  ;;  %v4890_v21 = vsub.f32 %v13424_v59, %v4830_v10 }
 0xcde   : > { %10046 = vpow2.f32 %v4919_v25 }
 0xcdf   : > { %v4925_v29 = vmul.f32 1.442695, %v4890_v21 }
 0xce0   : > { %5127 = vrot.lane.b32.xlu1 %v15438_v52, %s10709_s12  ;;  %v4933_v52 = vmul.f32 1.442695, %v4894_v2 }
 0xce1   : > { %5129 = vrot.lane.b32.xlu0 %v15439_v12, %s10709_s12  ;;  %v13561_v12 = vpop.eup %10040 }
 0xce2   : > { %10048 = vpow2.f32 %v4933_v52 }
 0xce3   : > { %10050 = vpow2.f32 %v4925_v29 }
 0xce4   : > { %5260 = vrot.lane.b32.xlu1 %v15440_v5, %s10709_s12  ;;  %v13570_v27 = vpop.eup %10042  ;;  %10052 = vpow2.f32 %v4921_v9 }
 0xce5   : > { %5262 = vrot.lane.b32.xlu0 %v15441_v17, %s10709_s12  ;;  %10054 = vpow2.f32 %v4929_v47 }
 0xce7   : > { %v13574_v36 = vpop.eup %10044 }
 0xceb   : > { %v13583_v50 = vpop.eup %10046 }
 0xcef   : > { %v13586_v62 = vpop.eup %10048 }
 0xcf0   : > { %v13599_v52 = vpop.eup %10050 }
 0xcff   : > { %v13556_v0 = vpop.f32.mrf.mxu1 }
 0xd00   : > { %15442 = vst [vmem:[#allocation63_spill] sm:$0xff] %v13556_v0 }
 0xd01   : > { %v13558_v46 = vpop.f32.mrf.mxu1 }
 0xd02   : > { %15443 = vst [vmem:[#allocation65_spill] sm:$0xff] %v13558_v46 }
 0xd03   : > { %v13563_v53 = vpop.f32.mrf.mxu1 }
 0xd04   : > { %15444 = vst [vmem:[#allocation45_spill] sm:$0xff] %v13563_v53  ;;  %4995 = vadd.xlane.f32.xlu0 %v13561_v12  ;;  %v4840_v5 = vpop.xlane.xlu0 %4839 }
 0xd05   : > { %v13568_v48 = vpop.f32.mrf.mxu1  ;;  %v4895_v23 = vsub.f32 %v13495_v7, %v4840_v5  ;;  %v13607_v5 = vpop.eup %10052 }
 0xd06   : > { %15445 = vst [vmem:[#allocation82_spill] sm:$0xff] %v13568_v48  ;;  %v15457_v48 = vld [vmem:[#allocation79_spill] sm:$0xff] }
 0xd07   : > { %v13576_v10 = vpop.f32.mrf.mxu1  ;;  %v4935_v25 = vmul.f32 1.442695, %v4895_v23 }
 0xd08   : > { %15446 = vst [vmem:[#allocation84_spill] sm:$0xff] %v13576_v10  ;;  %v4842_v44 = vpop.xlane.xlu1 %4841  ;;  %4987 = vadd.xlane.f32.xlu1 %v13570_v27  ;;  %4991 = vadd.xlane.f32.xlu0 %v13574_v36  ;;  %v4844_v57 = vpop.xlane.xlu0 %4843 }
 0xd09   : > { %v4897_v28 = vsub.f32 %v13493_v3, %v4844_v57  ;;  %v13581_v26 = vpop.f32.mrf.mxu1  ;;  %v4896_v9 = vsub.f32 %v13500_v6, %v4842_v44 }
 0xd0a   : > { %15447 = vst [vmem:[#allocation54_spill] sm:$0xff] %v13581_v26 }
 0xd0b   : > { %v4939_v38 = vmul.f32 1.442695, %v4897_v28  ;;  %v13588_v33 = vpop.f32.mrf.mxu1  ;;  %v4937_v28 = vmul.f32 1.442695, %v4896_v9 }
 0xd0c   : > { %15448 = vst [vmem:[#allocation56_spill] sm:$0xff] %v13588_v33  ;;  %v4846_v2 = vpop.xlane.xlu1 %4845  ;;  %4983 = vadd.xlane.f32.xlu1 %v13583_v50  ;;  %4997 = vadd.xlane.f32.xlu0 %v13586_v62 }
 0xd0d   : > { %v13594_v3 = vpop.f32.mrf.mxu1  ;;  %10056 = vpow2.f32 %v4939_v38  ;;  %v4898_v21 = vsub.f32 %v13498_v54, %v4846_v2  ;;  %v13618_v38 = vpop.eup %10054 }
 0xd0e   : > { %15449 = vst [vmem:[#allocation71_spill] sm:$0xff] %v13594_v3  ;;  %10058 = vpow2.f32 %v4935_v25 }
 0xd0f   : > { %v13601_v29 = vpop.f32.mrf.mxu1  ;;  %v4941_v18 = vmul.f32 1.442695, %v4898_v21 }
 0xd10   : > { %15450 = vst [vmem:[#allocation59_spill] sm:$0xff] %v13601_v29  ;;  %4989 = vadd.xlane.f32.xlu1 %v13599_v52  ;;  %v15456_v29 = vld [vmem:[#allocation72_spill] sm:$0xff] }
 0xd11   : > { %v13604_v39 = vpop.f32.mrf.mxu1  ;;  %10060 = vpow2.f32 %v4941_v18 }
 0xd12   : > { %15451 = vst [vmem:[#allocation83_spill] sm:$0xff] %v13604_v39  ;;  %10062 = vpow2.f32 %v4937_v28  ;;  %v15454_v39 = vld [vmem:[#allocation86_spill] sm:$0xff] }
 0xd13   : > { %v13609_v47 = vpop.f32.mrf.mxu1 }
 0xd14   : > { %15452 = vst [vmem:[#allocation51_spill] sm:$0xff] %v13609_v47  ;;  %4985 = vadd.xlane.f32.xlu1 %v13607_v5 }
 0xd15   : > { %v13614_v57 = vpop.f32.mrf.mxu1 }
 0xd16   : > { %15453 = vst [vmem:[#allocation55_spill] sm:$0xff] %v13614_v57  ;;  %v15455_v57 = vld [vmem:[#allocation74_spill] sm:$0xff] }
 0xd17   : > { %v13633_v21 = vpop.f32.mrf.mxu1 }
 0xd18   : > { %4993 = vadd.xlane.f32.xlu1 %v13618_v38 }
 0xd19   : > { %v13635_v18 = vpop.f32.mrf.mxu1 }
 0xd1a   : > { %v13621_v6 = vpop.eup %10056 }
 0xd1b   : > { %5003 = vadd.xlane.f32.xlu0 %v13621_v6  ;;  %v13624_v44 = vpop.eup %10058  ;;  %v13639_v60 = vpop.f32.mrf.mxu1 }
 0xd1d   : > { %v13642_v34 = vpop.f32.mrf.mxu1 }
 0xd1e   : > { %v13627_v2 = vpop.eup %10060 }
 0xd1f   : > { %4999 = vadd.xlane.f32.xlu0 %v13624_v44  ;;  %v13630_v25 = vpop.eup %10062 }
 0xd23   : > { %5005 = vadd.xlane.f32.xlu0 %v13627_v2 }
 0xd27   : > { %5001 = vadd.xlane.f32.xlu0 %v13630_v25 }
 0xd44   : > { %v4848_v9 = vpop.xlane.xlu0 %4847 }
 0xd45   : > { %v4899_v17 = vsub.f32 %v13507_v56, %v4848_v9 }
 0xd47   : > { %v4943_v20 = vmul.f32 1.442695, %v4899_v17 }
 0xd48   : > { %v4850_v28 = vpop.xlane.xlu1 %4849  ;;  %v4852_v23 = vpop.xlane.xlu0 %4851 }
 0xd49   : > { %v4900_v54 = vsub.f32 %v13512_v43, %v4850_v28  ;;  %v4901_v7 = vsub.f32 %v13505_v40, %v4852_v23  ;;  %v13645_v40 = vpop.f32.mrf.mxu1 }
 0xd4b   : > { %v4945_v59 = vmul.f32 1.442695, %v4900_v54  ;;  %v4947_v1 = vmul.f32 1.442695, %v4901_v7 }
 0xd4c   : > { %v4854_v16 = vpop.xlane.xlu1 %4853  ;;  %v5142_v4 = vpop.permute.xlu0 %5141 }
 0xd4d   : > { %10064 = vpow2.f32 %v4945_v59  ;;  %8938 = vmatprep.subr.bf16.mxu0 %v5142_v4  ;;  %v4902_v63 = vsub.f32 %v13510_v24, %v4854_v16  ;;  %v13647_v59 = vpop.f32.mrf.mxu1 }
 0xd4e   : > { %10066 = vpow2.f32 %v4947_v1  ;;  %8939 = vmatpush3.bf16.msra.mxu0 %v5142_v4 }
 0xd4f   : > { %10068 = vpow2.f32 %v4943_v20  ;;  %v4949_v56 = vmul.f32 1.442695, %v4902_v63  ;;  %v13651_v4 = vpop.f32.mrf.mxu1 }
 0xd50   : > { %v5140_v43 = vpop.permute.xlu1 %5139  ;;  %v5138_v28 = vpop.permute.xlu0 %5137 }
 0xd51   : > { %8940 = vmatprep.subr.bf16.mxu0 %v5140_v43  ;;  %10070 = vpow2.f32 %v4949_v56  ;;  %v13657_v23 = vpop.f32.mrf.mxu1 }
 0xd52   : > { %8941 = vmatpush3.bf16.msra.mxu0 %v5140_v43 }
 0xd53   : > { %8942 = vmatprep.subr.bf16.mxu0 %v5138_v28 }
 0xd54   : > { %v5134_v7 = vpop.permute.xlu1 %5133  ;;  %v5136_v54 = vpop.permute.xlu0 %5135 }
 0xd56   : > { %8943 = vmatpush3.bf16.msra.mxu0 %v5138_v28  ;;  %v13663_v28 = vpop.f32.mrf.mxu1 }
 0xd57   : > { %8944 = vmatprep.subr.bf16.mxu0 %v5136_v54 }
 0xd58   : > { %v5132_v1 = vpop.permute.xlu1 %5131  ;;  %v5130_v17 = vpop.permute.xlu0 %5129 }
 0xd5a   : > { %v13649_v24 = vpop.eup %10064  ;;  %8945 = vmatpush3.bf16.msra.mxu0 %v5136_v54 }
 0xd5b   : > { %v13653_v16 = vpop.eup %10066  ;;  %5009 = vadd.xlane.f32.xlu1 %v13649_v24  ;;  %8946 = vmatprep.subr.bf16.mxu0 %v5134_v7 }
 0xd5c   : > { %5011 = vadd.xlane.f32.xlu0 %v13653_v16  ;;  %v5128_v63 = vpop.permute.xlu1 %5127  ;;  %v5263_v20 = vpop.permute.xlu0 %5262 }
 0xd5d   : > { %8970 = vmatprep.subr.bf16.mxu1 %v5263_v20  ;;  %v13659_v9 = vpop.eup %10068 }
 0xd5e   : > { %8947 = vmatpush3.bf16.msra.mxu0 %v5134_v7  ;;  %8971 = vmatpush3.bf16.msra.mxu1 %v5263_v20  ;;  %v13665_v56 = vpop.eup %10070  ;;  %v13669_v7 = vpop.f32.mrf.mxu1 }
 0xd5f   : > { %4861 = vmax.xlane.f32.xlu1 %v13639_v60  ;;  %8948 = vmatprep.subr.bf16.mxu0 %v5132_v1 }
 0xd60   : > { %5007 = vadd.xlane.f32.xlu0 %v13659_v9  ;;  %v5261_v43 = vpop.permute.xlu1 %5260  ;;  %v13673_v54 = vpop.f32.mrf.mxu1 }
 0xd61   : > { %8972 = vmatprep.subr.bf16.mxu1 %v5261_v43 }
 0xd62   : > { %8949 = vmatpush3.bf16.msra.mxu0 %v5132_v1  ;;  %8973 = vmatpush3.bf16.msra.mxu1 %v5261_v43  ;;  %v13677_v1 = vpop.f32.mrf.mxu1 }
 0xd63   : > { %4857 = vmax.xlane.f32.xlu1 %v13642_v34  ;;  %8950 = vmatprep.subr.bf16.mxu0 %v5130_v17 }
 0xd64   : > { %5013 = vadd.xlane.f32.xlu0 %v13665_v56  ;;  %v13681_v20 = vpop.f32.mrf.mxu1 }
 0xd66   : > { %8951 = vmatpush3.bf16.msra.mxu0 %v5130_v17  ;;  %v13685_v17 = vpop.f32.mrf.mxu1 }
 0xd67   : > { %4869 = vmax.xlane.f32.xlu1 %v13651_v4  ;;  %8952 = vmatprep.subr.bf16.mxu0 %v5128_v63 }
 0xd68   : > { %4859 = vmax.xlane.f32.xlu0 %v13633_v21 }
 0xd6a   : > { %8953 = vmatpush3.bf16.msra.mxu0 %v5128_v63  ;;  %v13691_v63 = vpop.f32.mrf.mxu1 }
 0xd6b   : > { %4865 = vmax.xlane.f32.xlu1 %v13657_v23 }
 0xd6c   : > { %4855 = vmax.xlane.f32.xlu0 %v13635_v18  ;;  %v13694_v43 = vpop.f32.mrf.mxu1 }
 0xd6f   : > { %4873 = vmax.xlane.f32.xlu1 %v13677_v1 }
 0xd70   : > { %4867 = vmax.xlane.f32.xlu0 %v13645_v40 }
 0xd73   : > { %4883 = vmax.xlane.f32.xlu1 %v13681_v20 }
 0xd74   : > { %4863 = vmax.xlane.f32.xlu0 %v13647_v59 }
 0xd77   : > { %4879 = vmax.xlane.f32.xlu1 %v13685_v17 }
 0xd78   : > { %4875 = vmax.xlane.f32.xlu0 %v13663_v28 }
 0xd7c   : > { %4871 = vmax.xlane.f32.xlu0 %v13669_v7 }
 0xd80   : > { %4877 = vmax.xlane.f32.xlu0 %v13673_v54 }
 0xd84   : > { %4885 = vmax.xlane.f32.xlu0 %v13691_v63 }
 0xd88   : > { %4881 = vmax.xlane.f32.xlu0 %v13694_v43  ;;  %5256 = vrot.lane.b32.xlu1 %v15454_v39, %s10709_s12 }
 0xd8c   : > { %5254 = vrot.lane.b32.xlu1 %v15455_v57, %s10709_s12 }
 0xd8d   : > { %v4996_v26 = vpop.xlane.xlu0 %4995 }
 0xd90   : > { %5252 = vrot.lane.b32.xlu1 %v15456_v29, %s10709_s12 }
 0xd91   : > { %v4988_v47 = vpop.xlane.xlu1 %4987  ;;  %v4992_v33 = vpop.xlane.xlu0 %4991 }
 0xd95   : > { %v4984_v3 = vpop.xlane.xlu1 %4983  ;;  %v4998_v39 = vpop.xlane.xlu0 %4997 }
 0xd99   : > { %v4990_v10 = vpop.xlane.xlu1 %4989 }
 0xd9a   : > { %10072 = vrcp.f32 %v4990_v10 }
 0xd9b   : > { %10074 = vrcp.f32 %v4984_v3 }
 0xd9c   : > { %10076 = vrcp.f32 %v4988_v47 }
 0xd9d   : > { %v4986_v46 = vpop.xlane.xlu1 %4985 }
 0xd9e   : > { %10078 = vrcp.f32 %v4986_v46  ;;  %5258 = vrot.lane.b32.xlu0 %v15457_v48, %s10709_s12 }
 0xd9f   : > { %10080 = vrcp.f32 %v4992_v33 }
 0xda1   : > { %v4994_v0 = vpop.xlane.xlu1 %4993 }
 0xda2   : > { %10082 = vrcp.f32 %v4994_v0 }
 0xda3   : > { %10084 = vrcp.f32 %v4998_v39 }
 0xda4   : > { %10086 = vrcp.f32 %v4996_v26  ;;  %v5004_v29 = vpop.xlane.xlu0 %5003 }
 0xda7   : > { %v10073_v57 = vpop.eup %10072 }
 0xda8   : > { %v10075_v53 = vpop.eup %10074  ;;  %v5000_v51 = vpop.xlane.xlu0 %4999  ;;  %v5082_v10 = vmul.f32 %v10073_v57, %v13599_v52 }
 0xda9   : > { %v10077_v30 = vpop.eup %10076  ;;  %v5079_v3 = vmul.f32 %v10075_v53, %v13583_v50 }
 0xdaa   : > { %v5081_v48 = vmul.f32 %v10077_v30, %v13570_v27 }
 0xdab   : > { %v10079_v42 = vpop.eup %10078 }
 0xdac   : > { %v5080_v46 = vmul.f32 %v10079_v42, %v13607_v5  ;;  %v10081_v47 = vpop.eup %10080  ;;  %v5006_v33 = vpop.xlane.xlu0 %5005  ;;  %v5112_v26 = vpack.c.bf16 %v5082_v10, %v5081_v48 }
 0xdad   : > { %10088 = vrcp.f32 %v5006_v33  ;;  %v5083_v61 = vmul.f32 %v10081_v47, %v13574_v36 }
 0xdae   : > { %v5111_v55 = vpack.c.bf16 %v5080_v46, %v5079_v3  ;;  %10090 = vrcp.f32 %v5000_v51 }
 0xdaf   : > { %v10083_v0 = vpop.eup %10082  ;;  %10092 = vrcp.f32 %v5004_v29 }
 0xdb0   : > { %v10085_v39 = vpop.eup %10084  ;;  %8954 = vmatprep.mubr.bf16.mxu0 %v5111_v55  ;;  %v5084_v14 = vmul.f32 %v10083_v0, %v13618_v38  ;;  %v5002_v52 = vpop.xlane.xlu0 %5001 }
 0xdb1   : > { %8955 = vmatmul.mubr.bf16.vlgmr.msra.gmra.mxu0 %v5112_v26  ;;  %v10087_v53 = vpop.eup %10086  ;;  %10094 = vrcp.f32 %v5002_v52  ;;  %v5086_v30 = vmul.f32 %v10085_v39, %v13586_v62 }
 0xdb2   : > { %v5113_v42 = vpack.c.bf16 %v5084_v14, %v5083_v61  ;;  %v5085_v27 = vmul.f32 %v10087_v53, %v13561_v12 }
 0xdb4   : > { %8958 = vmatprep.mubr.bf16.mxu0 %v5113_v42  ;;  %v5114_v50 = vpack.c.bf16 %v5086_v30, %v5085_v27 }
 0xdb9   : > { %8959 = vmatmul.mubr.bf16.gmra.mxu0 %v5114_v50 }
 0xdba   : > { %v10089_v5 = vpop.eup %10088 }
 0xdbb   : > { %v10091_v51 = vpop.eup %10090  ;;  %v5090_v36 = vmul.f32 %v10089_v5, %v13627_v2 }
 0xdbc   : > { %v10093_v55 = vpop.eup %10092  ;;  %v5087_v38 = vmul.f32 %v10091_v51, %v13624_v44 }
 0xdbd   : > { %v5089_v10 = vmul.f32 %v10093_v55, %v13621_v6 }
 0xdbe   : > { %v10095_v57 = vpop.eup %10094 }
 0xdbf   : > { %v5088_v29 = vmul.f32 %v10095_v57, %v13630_v25  ;;  %v5116_v14 = vpack.c.bf16 %v5090_v36, %v5089_v10 }
 0xdc1   : > { %v5115_v61 = vpack.c.bf16 %v5088_v29, %v5087_v38 }
 0xdc3   : > { %8962 = vmatprep.mubr.bf16.mxu0 %v5115_v61 }
 0xdc4   : > { %8963 = vmatmul.mubr.bf16.gmra.mxu0 %v5116_v14 }
 0xde4   : > { %v5010_v62 = vpop.xlane.xlu1 %5009 }
 0xde5   : > { %v5012_v12 = vpop.xlane.xlu0 %5011  ;;  %10096 = vrcp.f32 %v5010_v62 }
 0xde8   : > { %v4862_v3 = vpop.xlane.xlu1 %4861 }
 0xde9   : > { %v5008_v46 = vpop.xlane.xlu0 %5007  ;;  %v4906_v44 = vsub.f32 %v13639_v60, %v4862_v3 }
 0xdea   : > { %10098 = vrcp.f32 %v5008_v46 }
 0xdeb   : > { %10100 = vrcp.f32 %v5012_v12  ;;  %v4957_v39 = vmul.f32 1.442695, %v4906_v44 }
 0xdec   : > { %v4858_v47 = vpop.xlane.xlu1 %4857 }
 0xded   : > { %v5014_v48 = vpop.xlane.xlu0 %5013  ;;  %v4904_v52 = vsub.f32 %v13642_v34, %v4858_v47 }
 0xdee   : > { %10102 = vrcp.f32 %v5014_v48 }
 0xdf0   : > { %v4870_v2 = vpop.xlane.xlu1 %4869 }
 0xdf1   : > { %v4860_v25 = vpop.xlane.xlu0 %4859  ;;  %v4910_v62 = vsub.f32 %v13651_v4, %v4870_v2 }
 0xdf2   : > { %v4905_v6 = vsub.f32 %v13633_v21, %v4860_v25  ;;  %v10097_v26 = vpop.eup %10096  ;;  %v4953_v21 = vmul.f32 1.442695, %v4904_v52 }
 0xdf3   : > { %v5092_v60 = vmul.f32 %v10097_v26, %v13649_v24  ;;  %v4965_v3 = vmul.f32 1.442695, %v4910_v62  ;;  %v9547_v62 = vld [vmem:[%s11044_s23 + $0x20] sm:$0xff]  }
 0xdf4   : > { %v4955_v33 = vmul.f32 1.442695, %v4905_v6  ;;  %v4866_v0 = vpop.xlane.xlu1 %4865 }
 0xdf5   : > { %v4856_v53 = vpop.xlane.xlu0 %4855  ;;  %v4908_v42 = vsub.f32 %v13657_v23, %v4866_v0 }
 0xdf6   : > { %10104 = vpow2.f32 %v4955_v33  ;;  %v4903_v30 = vsub.f32 %v13635_v18, %v4856_v53 }
 0xdf7   : > { %v10099_v27 = vpop.eup %10098  ;;  %10106 = vpow2.f32 %v4957_v39  ;;  %v4961_v57 = vmul.f32 1.442695, %v4908_v42  ;;  %v15458_v42 = vld [vmem:[#allocation68_spill] sm:$0xff] }
 0xdf8   : > { %v4951_v50 = vmul.f32 1.442695, %v4903_v30  ;;  %v5091_v5 = vmul.f32 %v10099_v27, %v13659_v9  ;;  %v10101_v51 = vpop.eup %10100  ;;  %v4874_v61 = vpop.xlane.xlu1 %4873  ;;  %v15459_v30 = vld [vmem:[#allocation75_spill] sm:$0xff] }
 0xdf9   : > { %v4868_v55 = vpop.xlane.xlu0 %4867  ;;  %v5093_v23 = vmul.f32 %v10101_v51, %v13653_v16  ;;  %v4912_v27 = vsub.f32 %v13677_v1, %v4874_v61  ;;  %v9545_v61 = vld [vmem:[%s11044_s23 + $0x30] sm:$0xff]  }
 0xdfa   : > { %10108 = vpow2.f32 %v4951_v50  ;;  %v4909_v34 = vsub.f32 %v13645_v40, %v4868_v55  ;;  %v5117_v36 = vpack.c.bf16 %v5092_v60, %v5091_v5 }
 0xdfb   : > { %v10103_v38 = vpop.eup %10102  ;;  %10110 = vpow2.f32 %v4953_v21  ;;  %v4969_v50 = vmul.f32 1.442695, %v4912_v27 }
 0xdfc   : > { %8966 = vmatprep.mubr.bf16.mxu0 %v5117_v36  ;;  %v5094_v18 = vmul.f32 %v10103_v38, %v13665_v56  ;;  %10112 = vpow2.f32 %v4961_v57  ;;  %v4963_v9 = vmul.f32 1.442695, %v4909_v34 }
 0xdfd   : > { %v4864_v29 = vpop.xlane.xlu0 %4863 }
 0xdfe   : > { %v4907_v24 = vsub.f32 %v13647_v59, %v4864_v29  ;;  %v5118_v10 = vpack.c.bf16 %v5094_v18, %v5093_v23  ;;  %10114 = vpow2.f32 %v4963_v9  ;;  %v4884_v59 = vpop.xlane.xlu1 %4883  ;;  %v9544_v9 = vld [vmem:[%s11044_s23 + $0x38] sm:$0xff]  }
 0xdff   : > { %v4917_v21 = vsub.f32 %v13681_v20, %v4884_v59  ;;  %9002 = vmatprep.subr.bf16.mxu0 %v9544_v9  ;;  %v9548_v59 = vld [vmem:[%s11044_s23 + $0x18] sm:$0xff]  }
 0xe00   : > { %8967 = vmatmul.mubr.bf16.gmra.mxu0 %v5118_v10  ;;  %v4959_v40 = vmul.f32 1.442695, %v4907_v24 }
 0xe01   : > { %v4876_v14 = vpop.xlane.xlu0 %4875  ;;  %v4979_v34 = vmul.f32 1.442695, %v4917_v21  ;;  %9003 = vmatpush3.bf16.msra.mxu0 %v9544_v9  ;;  %v15468_v21 = vld [vmem:[#allocation123_spill] sm:$0xff]  ;;  %v15472_v9 = vld [vmem:[#allocation116_spill] sm:$0xff] }
 0xe02   : > { %10116 = vpow2.f32 %v4959_v40  ;;  %v4880_v2 = vpop.xlane.xlu1 %4879  ;;  %v4913_v5 = vsub.f32 %v13663_v28, %v4876_v14  ;;  %9004 = vmatprep.subr.bf16.mxu0 %v9545_v61  ;;  %v9546_v14 = vld [vmem:[%s11044_s23 + $0x28] sm:$0xff]   ;;  %v15460_v40 = vld [vmem:[#allocation121_spill] sm:$0xff] }
 0xe03   : > { %v13729_v12 = vpop.eup %10104  ;;  %10118 = vpow2.f32 %v4965_v3  ;;  %v4915_v60 = vsub.f32 %v13685_v17, %v4880_v2  ;;  %v9549_v2 = vld [vmem:[%s11044_s23 + $0x10] sm:$0xff]  }
 0xe04   : > { %5019 = vadd.xlane.f32.xlu1 %v13729_v12  ;;  %v13732_v56 = vpop.eup %10106  ;;  %10120 = vpow2.f32 %v4969_v50  ;;  %v4971_v51 = vmul.f32 1.442695, %v4913_v5 }
 0xe05   : > { %v4872_v16 = vpop.xlane.xlu0 %4871  ;;  %v4975_v55 = vmul.f32 1.442695, %v4915_v60  ;;  %9005 = vmatpush3.bf16.msra.mxu0 %v9545_v61  ;;  %v15467_v60 = vld [vmem:[#allocation124_spill] sm:$0xff]  ;;  %v15473_v61 = vld [vmem:[#allocation127_spill] sm:$0xff] }
 0xe06   : > { %v5257_v0 = vpop.permute.xlu1 %5256  ;;  %10122 = vpow2.f32 %v4971_v51  ;;  %v4911_v57 = vsub.f32 %v13669_v7, %v4872_v16  ;;  %9006 = vmatprep.subr.bf16.mxu0 %v9546_v14  ;;  %v15461_v16 = vld [vmem:[#allocation115_spill] sm:$0xff] }
 0xe07   : > { %v13734_v46 = vpop.eup %10108  ;;  %10124 = vpow2.f32 %v4975_v55  ;;  %v9272_v3 = vpack.i.bf16 %v15461_v16, %v15460_v40  ;;  %v15469_v55 = vld [vmem:[#allocation117_spill] sm:$0xff]  ;;  %v15477_v40 = vpack.i.bf16 %v13402_v11, %v13396_v58  ;;  %v15481_v11 = vld [vmem:[#allocation128_spill] sm:$0xff] }
 0xe08   : > { %5021 = vadd.xlane.f32.xlu1 %v13732_v56  ;;  %5015 = vadd.xlane.f32.xlu0 %v13734_v46  ;;  %v13738_v4 = vpop.eup %10110  ;;  %v4967_v36 = vmul.f32 1.442695, %v4911_v57  ;;  %10126 = vpow2.f32 %v4979_v34  ;;  %v15470_v57 = vpack.i.bf16 %v15468_v21, %v15469_v55  ;;  %v15480_v58 = vld [vmem:[#allocation129_spill] sm:$0xff] }
 0xe09   : > { %v4878_v47 = vpop.xlane.xlu0 %4877  ;;  %v13740_v48 = vpop.eup %10112  ;;  %9007 = vmatpush3.bf16.msra.mxu0 %v9546_v14  ;;  %v9332_v14 = vpack.i.bf16 %v15473_v61, %v15472_v9 }
 0xe0a   : > { %v5255_v52 = vpop.permute.xlu1 %5254  ;;  %v4914_v38 = vsub.f32 %v13673_v54, %v4878_v47  ;;  %10128 = vpow2.f32 %v4967_v36  ;;  %9008 = vmatprep.subr.bf16.mxu0 %v9547_v62  ;;  %v15462_v47 = vpack.i.bf16 %v13373_v32, %v13363_v45  ;;  %v9312_v36 = vpack.i.bf16 %v13394_v37, %v13386_v8  ;;  %v15474_v8 = vld [vmem:[#allocation126_spill] sm:$0xff]  ;;  %v15475_v37 = vld [vmem:[#allocation125_spill] sm:$0xff] }
 0xe0b   : > { %v13744_v25 = vpop.eup %10114 }
 0xe0c   : > { %5017 = vadd.xlane.f32.xlu1 %v13738_v4  ;;  %5025 = vadd.xlane.f32.xlu0 %v13740_v48  ;;  %v4973_v1 = vmul.f32 1.442695, %v4914_v38  ;;  %v15471_v38 = vpack.i.bf16 %v13388_v35, %v13381_v22  ;;  %v9342_v35 = vpack.i.bf16 %v13406_v31, %v13400_v13  ;;  %v15479_v13 = vld [vmem:[#allocation120_spill] sm:$0xff] }
 0xe0d   : > { %v4886_v44 = vpop.xlane.xlu0 %4885  ;;  %9009 = vmatpush3.bf16.msra.mxu0 %v9547_v62  ;;  %v15476_v62 = vpack.i.bf16 %v15474_v8, %v15475_v37 }
 0xe0e   : > { %v5253_v53 = vpop.permute.xlu1 %5252  ;;  %10130 = vpow2.f32 %v4973_v1  ;;  %v4918_v20 = vsub.f32 %v13691_v63, %v4886_v44  ;;  %9010 = vmatprep.subr.bf16.mxu0 %v9548_v59  ;;  %v15463_v44 = vld [vmem:[#allocation122_spill] sm:$0xff] }
 0xe0f   : > { %v13747_v33 = vpop.eup %10116 }
 0xe10   : > { %5027 = vadd.xlane.f32.xlu1 %v13744_v25  ;;  %v13750_v39 = vpop.eup %10118  ;;  %v4981_v18 = vmul.f32 1.442695, %v4918_v20 }
 0xe11   : > { %v4882_v6 = vpop.xlane.xlu0 %4881  ;;  %v13764_v23 = vpop.eup %10120  ;;  %9011 = vmatpush3.bf16.msra.mxu0 %v9548_v59 }
 0xe12   : > { %v4916_v28 = vsub.f32 %v13694_v43, %v4882_v6  ;;  %v15464_v6 = vld [vmem:[#allocation52_spill] sm:$0xff]  ;;  %9012 = vmatprep.subr.bf16.mxu0 %v9549_v2 }
 0xe13   : > { %v13768_v7 = vpop.eup %10122 }
 0xe14   : > { %5023 = vadd.xlane.f32.xlu1 %v13747_v33  ;;  %v4977_v17 = vmul.f32 1.442695, %v4916_v28  ;;  %v13771_v54 = vpop.eup %10124 }
 0xe15   : > { %v5259_v26 = vpop.permute.xlu0 %5258  ;;  %v13774_v43 = vpop.eup %10126  ;;  %9013 = vmatpush3.bf16.msra.mxu0 %v9549_v2 }
 0xe16   : > { %8974 = vmatprep.subr.bf16.mxu1 %v5259_v26  ;;  %10132 = vpow2.f32 %v4977_v17 }
 0xe17   : > { %8975 = vmatpush3.bf16.msra.mxu1 %v5259_v26  ;;  %10134 = vpow2.f32 %v4981_v18  ;;  %v13776_v29 = vpop.eup %10128  ;;  %v9282_v26 = vpack.i.bf16 %v13379_v49, %v13369_v15  ;;  %v15466_v49 = vld [vmem:[#allocation118_spill] sm:$0xff] }
 0xe18   : > { %5029 = vadd.xlane.f32.xlu1 %v13750_v39  ;;  %8976 = vmatprep.subr.bf16.mxu1 %v5257_v0  ;;  %v9302_v51 = vpack.i.bf16 %v15467_v60, %v15466_v49 }
 0xe1b   : > { %8977 = vmatpush3.bf16.msra.mxu1 %v5257_v0  ;;  %v13780_v63 = vpop.eup %10130  ;;  %v15465_v0 = vpack.i.bf16 %v15463_v44, %v15464_v6  ;;  %v15478_v6 = vld [vmem:[#allocation119_spill] sm:$0xff] }
 0xe1c   : > { %8978 = vmatprep.subr.bf16.mxu1 %v5255_v52  ;;  %v9362_v31 = vpack.i.bf16 %v15479_v13, %v15478_v6 }
 0xe1f   : > { %8979 = vmatpush3.bf16.msra.mxu1 %v5255_v52  ;;  %v9550_v52 = vld [vmem:[%s11044_s23 + $0x8] sm:$0xff]  }
 0xe20   : > { %8980 = vmatprep.subr.bf16.mxu1 %v5253_v53  ;;  %9014 = vmatprep.subr.bf16.mxu0 %v9550_v52 }
 0xe21   : > { %9015 = vmatpush3.bf16.msra.mxu0 %v9550_v52 }
 0xe22   : > { %5250 = vrot.lane.b32.xlu0 %v15458_v42, %s10709_s12 }
 0xe23   : > { %8981 = vmatpush3.bf16.msra.mxu1 %v5253_v53  ;;  %v13784_v24 = vpop.eup %10132  ;;  %v9551_v53 = vld [vmem:[%s11044_s23] sm:$0xff]  }
 0xe24   : > { %v13787_v10 = vpop.eup %10134  ;;  %9016 = vmatprep.subr.bf16.mxu0 %v9551_v53 }
 0xe25   : > { %9017 = vmatpush3.bf16.msra.mxu0 %v9551_v53  ;;  %v9372_v53 = vpack.i.bf16 %v13416_v41, %v13410_v19 }
 0xe29   : > { %5248 = vrot.lane.b32.xlu1 %v15459_v30, %s10709_s12 }
 0xe41   : > { %5033 = vadd.xlane.f32.xlu0 %v13764_v23 }
 0xe45   : > { %5035 = vadd.xlane.f32.xlu0 %v13768_v7 }
 0xe49   : > { %5039 = vadd.xlane.f32.xlu0 %v13771_v54 }
 0xe4d   : > { %5043 = vadd.xlane.f32.xlu0 %v13774_v43  ;;  %5031 = vadd.xlane.f32.xlu1 %v13776_v29 }
 0xe51   : > { %5037 = vadd.xlane.f32.xlu1 %v13780_v63 }
 0xe55   : > { %5041 = vadd.xlane.f32.xlu1 %v13784_v24 }
 0xe59   : > { %5045 = vadd.xlane.f32.xlu1 %v13787_v10 }
 0xe63   : > { %9273 = vrot.lane.b32.xlu0 %v9272_v3, %s10709_s12 }
 0xe67   : > { %9288 = vrot.lane.b32.xlu0 %v15462_v47, %s10708_s18 }
 0xe6a   : > { %9278 = vrot.lane.b32.xlu1 %v15465_v0, %s10709_s12  ;;  %v15482_v0 = vpack.i.bf16 %v15480_v58, %v15481_v11 }
 0xe6e   : > { %9283 = vrot.lane.b32.xlu1 %v9282_v26, %s10708_s18 }
 0xe71   : > { %v8956_v45 = vpop.f32.mrf.mxu0 }
 0xe73   : > { %v5185_v32 = vpop.f32.mrf.mxu0 }
 0xe75   : > { %v8957_v42 = vpop.f32.mrf.mxu0 }
 0xe76   : > { %v9297_v30 = vpack.i.bf16 %v8957_v42, %v8956_v45  ;;  %v15483_v45 = vld [vmem:[#allocation43_spill] sm:$0xff] }
 0xe77   : > { %v5188_v27 = vpop.f32.mrf.mxu0 }
 0xe78   : > { %v9292_v50 = vpack.i.bf16 %v5188_v27, %v5185_v32  ;;  %9298 = vrot.lane.b32.xlu0 %v9297_v30, %s10707_s2  ;;  %v15484_v32 = vld [vmem:[#allocation58_spill] sm:$0xff] }
 0xe79   : > { %v8960_v5 = vpop.f32.mrf.mxu0  ;;  %v15485_v42 = vpack.i.bf16 %v15483_v45, %v15484_v32 }
 0xe7a   : > { %9293 = vrot.lane.b32.xlu1 %v9292_v50, %s10707_s2 }
 0xe7b   : > { %v5201_v15 = vpop.f32.mrf.mxu0 }
 0xe7c   : > { %9308 = vrot.lane.b32.xlu0 %v15470_v57, %s10709_s12 }
 0xe7d   : > { %v8961_v34 = vpop.f32.mrf.mxu0 }
 0xe7e   : > { %9303 = vrot.lane.b32.xlu1 %v9302_v51, %s10709_s12  ;;  %v9327_v28 = vpack.i.bf16 %v8961_v34, %v8960_v5 }
 0xe7f   : > { %v5204_v1 = vpop.f32.mrf.mxu0 }
 0xe80   : > { %9318 = vrot.lane.b32.xlu0 %v15471_v38, %s10708_s18  ;;  %v9322_v20 = vpack.i.bf16 %v5204_v1, %v5201_v15 }
 0xe82   : > { %9313 = vrot.lane.b32.xlu1 %v9312_v36, %s10708_s18 }
 0xe84   : > { %9328 = vrot.lane.b32.xlu0 %v9327_v28, %s10707_s2  ;;  %v8964_v17 = vpop.f32.mrf.mxu0 }
 0xe86   : > { %9323 = vrot.lane.b32.xlu1 %v9322_v20, %s10707_s2  ;;  %v5217_v18 = vpop.f32.mrf.mxu0 }
 0xe88   : > { %9338 = vrot.lane.b32.xlu0 %v15476_v62, %s10709_s12  ;;  %v8965_v22 = vpop.f32.mrf.mxu0 }
 0xe89   : > { %v9357_v59 = vpack.i.bf16 %v8965_v22, %v8964_v17  ;;  %v15487_v22 = vld [vmem:[#allocation133_spill] sm:$0xff] }
 0xe8a   : > { %9333 = vrot.lane.b32.xlu1 %v9332_v14, %s10709_s12  ;;  %v5220_v16 = vpop.f32.mrf.mxu0 }
 0xe8b   : > { %v9352_v47 = vpack.i.bf16 %v5220_v16, %v5217_v18 }
 0xe8c   : > { %9348 = vrot.lane.b32.xlu0 %v15477_v40, %s10708_s18  ;;  %v15489_v40 = vld [vmem:[#allocation130_spill] sm:$0xff] }
 0xe8d   : > { %v5020_v3 = vpop.xlane.xlu1 %5019 }
 0xe8e   : > { %9343 = vrot.lane.b32.xlu1 %v9342_v35, %s10708_s18 }
 0xe90   : > { %9358 = vrot.lane.b32.xlu0 %v9357_v59, %s10707_s2  ;;  %v15492_v59 = vld [vmem:[#allocation60_spill] sm:$0xff] }
 0xe91   : > { %v5022_v2 = vpop.xlane.xlu1 %5021  ;;  %v5016_v44 = vpop.xlane.xlu0 %5015 }
 0xe92   : > { %9353 = vrot.lane.b32.xlu1 %v9352_v47, %s10707_s2  ;;  %10136 = vrcp.f32 %v5022_v2  ;;  %v15494_v2 = vld [vmem:[#allocation47_spill] sm:$0xff] }
 0xe93   : > { %10138 = vrcp.f32 %v5016_v44  ;;  %v15495_v44 = vld [vmem:[#allocation61_spill] sm:$0xff] }
 0xe94   : > { %9368 = vrot.lane.b32.xlu0 %v15482_v0, %s10709_s12  ;;  %10140 = vrcp.f32 %v5020_v3  ;;  %v15491_v3 = vld [vmem:[#allocation40_spill] sm:$0xff]  ;;  %v15496_v6 = vpack.i.bf16 %v15494_v2, %v15495_v44 }
 0xe95   : > { %v5018_v26 = vpop.xlane.xlu1 %5017  ;;  %v5026_v52 = vpop.xlane.xlu0 %5025  ;;  %v15493_v47 = vpack.i.bf16 %v15491_v3, %v15492_v59 }
 0xe96   : > { %10142 = vrcp.f32 %v5018_v26  ;;  %9363 = vrot.lane.b32.xlu1 %v9362_v31, %s10709_s12 }
 0xe97   : > { %10144 = vrcp.f32 %v5026_v52 }
 0xe98   : > { %9378 = vrot.lane.b32.xlu0 %v15485_v42, %s10708_s18 }
 0xe99   : > { %v5028_v30 = vpop.xlane.xlu1 %5027  ;;  %v5251_v27 = vpop.permute.xlu0 %5250 }
 0xe9a   : > { %8982 = vmatprep.subr.bf16.mxu1 %v5251_v27  ;;  %9373 = vrot.lane.b32.xlu1 %v9372_v53, %s10708_s18 }
 0xe9b   : > { %8983 = vmatpush3.bf16.msra.mxu1 %v5251_v27 }
 0xe9d   : > { %v5024_v50 = vpop.xlane.xlu1 %5023 }
 0xe9e   : > { %10146 = vrcp.f32 %v5024_v50 }
 0xe9f   : > { %v10137_v5 = vpop.eup %10136  ;;  %10148 = vrcp.f32 %v5028_v30 }
 0xea0   : > { %v10139_v15 = vpop.eup %10138  ;;  %v5098_v41 = vmul.f32 %v10137_v5, %v13732_v56 }
 0xea1   : > { %v5030_v49 = vpop.xlane.xlu1 %5029  ;;  %v10141_v60 = vpop.eup %10140  ;;  %v5095_v51 = vmul.f32 %v10139_v15, %v13734_v46 }
 0xea2   : > { %10150 = vrcp.f32 %v5030_v49  ;;  %v5097_v57 = vmul.f32 %v10141_v60, %v13729_v12 }
 0xea3   : > { %v10143_v19 = vpop.eup %10142 }
 0xea4   : > { %v5096_v21 = vmul.f32 %v10143_v19, %v13738_v4  ;;  %v5120_v36 = vpack.c.bf16 %v5098_v41, %v5097_v57  ;;  %v10145_v38 = vpop.eup %10144 }
 0xea5   : > { %v5249_v55 = vpop.permute.xlu1 %5248  ;;  %v5100_v20 = vmul.f32 %v10145_v38, %v13740_v48  ;;  %v15498_v38 = vld [vmem:[#allocation66_spill] sm:$0xff] }
 0xea6   : > { %8984 = vmatprep.subr.bf16.mxu1 %v5249_v55  ;;  %v5119_v34 = vpack.c.bf16 %v5096_v21, %v5095_v51 }
 0xea7   : > { %8985 = vmatpush3.bf16.msra.mxu1 %v5249_v55 }
 0xea8   : > { %8986 = vmatprep.mubr.bf16.mxu1 %v5119_v34  ;;  %v15497_v34 = vld [vmem:[#allocation49_spill] sm:$0xff] }
 0xeaa   : > { %8987 = vmatmul.mubr.bf16.vlgmr.msra.gmra.mxu1 %v5120_v36 }
 0xeab   : > { %v10147_v1 = vpop.eup %10146 }
 0xeac   : > { %v5099_v28 = vmul.f32 %v10147_v1, %v13747_v33  ;;  %v10149_v56 = vpop.eup %10148  ;;  %v15486_v33 = vld [vmem:[#allocation131_spill] sm:$0xff] }
 0xead   : > { %v5101_v4 = vmul.f32 %v10149_v56, %v13744_v25  ;;  %v9392_v35 = vpack.i.bf16 %v15487_v22, %v15486_v33  ;;  %v15488_v25 = vld [vmem:[#allocation132_spill] sm:$0xff] }
 0xeae   : > { %v5121_v17 = vpack.c.bf16 %v5100_v20, %v5099_v28 }
 0xeaf   : > { %v10151_v46 = vpop.eup %10150 }
 0xeb0   : > { %8990 = vmatprep.mubr.bf16.mxu1 %v5121_v17  ;;  %v5102_v12 = vmul.f32 %v10151_v46, %v13750_v39  ;;  %v15490_v39 = vpack.i.bf16 %v15488_v25, %v15489_v40 }
 0xeb2   : > { %v5122_v18 = vpack.c.bf16 %v5102_v12, %v5101_v4 }
 0xeb4   : > { %8991 = vmatmul.mubr.bf16.gmra.mxu1 %v5122_v18  ;;  %v15499_v18 = vld [vmem:[#allocation77_spill] sm:$0xff] }
 0xec0   : > { %v8968_v9 = vpop.f32.mrf.mxu0 }
 0xec2   : > { %v5233_v61 = vpop.f32.mrf.mxu0 }
 0xec4   : > { %v8969_v14 = vpop.f32.mrf.mxu0 }
 0xec5   : > { %v9387_v8 = vpack.i.bf16 %v8969_v14, %v8968_v9  ;;  %v15500_v9 = vld [vmem:[#allocation69_spill] sm:$0xff] }
 0xec6   : > { %v5236_v37 = vpop.f32.mrf.mxu0 }
 0xec7   : > { %v9382_v62 = vpack.i.bf16 %v5236_v37, %v5233_v61  ;;  %9388 = vrot.lane.b32.xlu0 %v9387_v8, %s10707_s2 }
 0xec9   : > { %9383 = vrot.lane.b32.xlu1 %v9382_v62, %s10707_s2 }
 0xeca   : > { %v5034_v48 = vpop.xlane.xlu0 %5033 }
 0xecb   : > { %9398 = vrot.lane.b32.xlu0 %v15490_v39, %s10709_s12  ;;  %10152 = vrcp.f32 %v5034_v48 }
 0xecd   : > { %9393 = vrot.lane.b32.xlu1 %v9392_v35, %s10709_s12 }
 0xece   : > { %v5036_v16 = vpop.xlane.xlu0 %5035 }
 0xecf   : > { %9408 = vrot.lane.b32.xlu0 %v15493_v47, %s10708_s18 }
 0xed1   : > { %9403 = vrot.lane.b32.xlu1 %v15496_v6, %s10708_s18 }
 0xed2   : > { %v5040_v13 = vpop.xlane.xlu0 %5039 }
 0xed6   : > { %v5032_v31 = vpop.xlane.xlu1 %5031  ;;  %v5044_v58 = vpop.xlane.xlu0 %5043 }
 0xed7   : > { %10154 = vrcp.f32 %v5032_v31 }
 0xed8   : > { %10156 = vrcp.f32 %v5036_v16  ;;  %v10153_v52 = vpop.eup %10152 }
 0xed9   : > { %v5104_v42 = vmul.f32 %v10153_v52, %v13764_v23 }
 0xeda   : > { %v5038_v11 = vpop.xlane.xlu1 %5037  ;;  %v9274_v26 = vpop.permute.xlu0 %9273 }
 0xedb   : > { %10158 = vrcp.f32 %v5038_v11  ;;  %v9276_v41 = vunpack.i.h.bf16 %v9274_v26  ;;  %v9275_v51 = vunpack.i.l.bf16 %v9274_v26 }
 0xedc   : > { %10160 = vrcp.f32 %v5040_v13 }
 0xedd   : > { %v5753_v61 = vsel %vm1832_vm0, %v15500_v9, %v9275_v51  ;;  %v15505_v51 = vld [vmem:[#allocation88_spill] sm:$0xff] }
 0xede   : > { %v5042_v0 = vpop.xlane.xlu1 %5041  ;;  %v9289_v30 = vpop.permute.xlu0 %9288 }
 0xedf   : > { %10162 = vrcp.f32 %v5042_v0  ;;  %v9290_v23 = vunpack.i.l.bf16 %v9289_v30  ;;  %v9291_v4 = vunpack.i.h.bf16 %v9289_v30  ;;  %v15501_v30 = vmov 0  }
 0xee0   : > { %10164 = vrcp.f32 %v5044_v58 }
 0xee2   : > { %v5046_v53 = vpop.xlane.xlu1 %5045 }
 0xee3   : > { %10166 = vrcp.f32 %v5046_v53 }
 0xee4   : > { %v10155_v45 = vpop.eup %10154 }
 0xee5   : > { %v5103_v32 = vmul.f32 %v10155_v45, %v13776_v29  ;;  %v10157_v50 = vpop.eup %10156 }
 0xee6   : > { %v9279_v27 = vpop.permute.xlu1 %9278  ;;  %v5105_v29 = vmul.f32 %v10157_v50, %v13768_v7  ;;  %v5754_v7 = vsel %vm1832_vm0, %v15499_v18, %v9276_v41 }
 0xee7   : > { %v9281_v5 = vunpack.i.h.bf16 %v9279_v27  ;;  %v9280_v15 = vunpack.i.l.bf16 %v9279_v27  ;;  %v5123_v49 = vpack.c.bf16 %v5104_v42, %v5103_v32 }
 0xee8   : > { %v10159_v60 = vpop.eup %10158 }
 0xee9   : > { %8994 = vmatprep.mubr.bf16.mxu1 %v5123_v49  ;;  %v5106_v19 = vmul.f32 %v10159_v60, %v13780_v63  ;;  %v10161_v57 = vpop.eup %10160  ;;  %v5756_v36 = vsel %vm1832_vm0, %v15497_v34, %v9281_v5  ;;  %v5755_v1 = vsel %vm1832_vm0, %v15498_v38, %v9280_v15  ;;  %v15503_v49 = vld [vmem:[#allocation87_spill] sm:$0xff] }
 0xeea   : > { %v9284_v21 = vpop.permute.xlu1 %9283  ;;  %v9299_v55 = vpop.permute.xlu0 %9298  ;;  %v5788_v14 = vsel %vm5785_vm1, %v5755_v1, %v9290_v23  ;;  %v5107_v62 = vmul.f32 %v10161_v57, %v13771_v54  ;;  %v5789_v33 = vsel %vm5785_vm1, %v5756_v36, %v9291_v4 }
 0xeeb   : > { %v9300_v28 = vunpack.i.l.bf16 %v9299_v55  ;;  %v9286_v56 = vunpack.i.h.bf16 %v9284_v21  ;;  %v9285_v17 = vunpack.i.l.bf16 %v9284_v21  ;;  %v9301_v63 = vunpack.i.h.bf16 %v9299_v55 }
 0xeec   : > { %v10163_v20 = vpop.eup %10162  ;;  %v5124_v46 = vpack.c.bf16 %v5106_v19, %v5105_v29  ;;  %v15504_v19 = vld [vmem:[#allocation90_spill] sm:$0xff] }
 0xeed   : > { %v5108_v12 = vmul.f32 %v10163_v20, %v13784_v24  ;;  %v10165_v48 = vpop.eup %10164  ;;  %v5821_v22 = vsel %vm5818_vm2, %v5788_v14, %v9300_v28  ;;  %v5822_v40 = vsel %vm5818_vm2, %v5789_v33, %v9301_v63  ;;  %v5786_v16 = vsel %vm5785_vm1, %v5753_v61, %v9285_v17 }
 0xeee   : > { %8995 = vmatmul.mubr.bf16.gmra.mxu1 %v5124_v46  ;;  %v9294_v8 = vpop.permute.xlu1 %9293  ;;  %v9309_v37 = vpop.permute.xlu0 %9308  ;;  %v5787_v3 = vsel %vm5785_vm1, %v5754_v7, %v9286_v56  ;;  %v5109_v6 = vmul.f32 %v10165_v48, %v13774_v43  ;;  %v5852_v31 = vpack.c.bf16 %v5822_v40, %v5821_v22  ;;  %v15507_v40 = vld [vmem:[#allocation91_spill] sm:$0xff] }
 0xeef   : > { %v9296_v35 = vunpack.i.h.bf16 %v9294_v8  ;;  %v9295_v24 = vunpack.i.l.bf16 %v9294_v8  ;;  %v5125_v39 = vpack.c.bf16 %v5108_v12, %v5107_v62  ;;  %v9311_v11 = vunpack.i.h.bf16 %v9309_v37 }
 0xef0   : > { %v10167_v25 = vpop.eup %10166  ;;  %v9310_v0 = vunpack.i.l.bf16 %v9309_v37 }
 0xef1   : > { %v5819_v59 = vsel %vm5818_vm2, %v5786_v16, %v9295_v24  ;;  %v5820_v47 = vsel %vm5818_vm2, %v5787_v3, %v9296_v35  ;;  %8998 = vmatprep.mubr.bf16.mxu1 %v5125_v39  ;;  %v5110_v13 = vmul.f32 %v10167_v25, %v13787_v10  ;;  %v15502_v10 = vld [vmem:[#allocation89_spill] sm:$0xff]  ;;  %v15508_v16 = vld [vmem:[#allocation94_spill] sm:$0xff] }
 0xef2   : > { %v9304_v54 = vpop.permute.xlu1 %9303  ;;  %v9319_v2 = vpop.permute.xlu0 %9318  ;;  %v5851_v44 = vpack.c.bf16 %v5820_v47, %v5819_v59  ;;  %v5760_v15 = vsel %vm1832_vm0, %v15502_v10, %v9311_v11  ;;  %v5759_v60 = vsel %vm1832_vm0, %v15503_v49, %v9310_v0  ;;  %v15506_v24 = vld [vmem:[#allocation93_spill] sm:$0xff]  ;;  %v15509_v59 = vld [vmem:[#allocation92_spill] sm:$0xff] }
 0xef3   : > { %v5126_v58 = vpack.c.bf16 %v5110_v13, %v5109_v6  ;;  %v9306_v26 = vunpack.i.h.bf16 %v9304_v54  ;;  %v9305_v52 = vunpack.i.l.bf16 %v9304_v54  ;;  %v9321_v32 = vunpack.i.h.bf16 %v9319_v2 }
 0xef4   : > { %9018 = vmatprep.mubr.bf16.mxu0 %v5851_v44  ;;  %v9320_v42 = vunpack.i.l.bf16 %v9319_v2 }
 0xef5   : > { %9019 = vmatmul.mubr.bf16.vlgmr.msra.gmra.mxu0 %v5852_v31  ;;  %v5758_v41 = vsel %vm1832_vm0, %v15504_v19, %v9306_v26  ;;  %v5757_v21 = vsel %vm1832_vm0, %v15505_v51, %v9305_v52  ;;  %v5793_v23 = vsel %vm5785_vm1, %v5760_v15, %v9321_v32 }
 0xef6   : > { %8999 = vmatmul.mubr.bf16.gmra.mxu1 %v5126_v58  ;;  %v9314_v53 = vpop.permute.xlu1 %9313  ;;  %v9329_v45 = vpop.permute.xlu0 %9328  ;;  %v5792_v57 = vsel %vm5785_vm1, %v5759_v60, %v9320_v42 }
 0xef7   : > { %6717 = vmatprep.mubr.bf16.mxu1 %v15501_v30  ;;  %v9316_v27 = vunpack.i.h.bf16 %v9314_v53  ;;  %v9315_v50 = vunpack.i.l.bf16 %v9314_v53  ;;  %v9331_v43 = vunpack.i.h.bf16 %v9329_v45  ;;  %v9330_v5 = vunpack.i.l.bf16 %v9329_v45 }
 0xef9   : > { %v5825_v38 = vsel %vm5818_vm2, %v5792_v57, %v9330_v5  ;;  %v5826_v1 = vsel %vm5818_vm2, %v5793_v23, %v9331_v43  ;;  %v5790_v28 = vsel %vm5785_vm1, %v5757_v21, %v9315_v50  ;;  %v5791_v20 = vsel %vm5785_vm1, %v5758_v41, %v9316_v27  ;;  %v15511_v23 = vld [vmem:[#allocation95_spill] sm:$0xff] }
 0xefa   : > { %v9324_v55 = vpop.permute.xlu1 %9323  ;;  %v9339_v29 = vpop.permute.xlu0 %9338  ;;  %v5854_v12 = vpack.c.bf16 %v5826_v1, %v5825_v38  ;;  %v15513_v1 = vld [vmem:[#allocation96_spill] sm:$0xff] }
 0xefb   : > { %v9326_v34 = vunpack.i.h.bf16 %v9324_v55  ;;  %v9325_v36 = vunpack.i.l.bf16 %v9324_v55  ;;  %v9341_v18 = vunpack.i.h.bf16 %v9339_v29  ;;  %v9340_v7 = vunpack.i.l.bf16 %v9339_v29  ;;  %v15510_v29 = vld [vmem:[#allocation97_spill] sm:$0xff] }
 0xefd   : > { %v5823_v56 = vsel %vm5818_vm2, %v5790_v28, %v9325_v36  ;;  %v5824_v17 = vsel %vm5818_vm2, %v5791_v20, %v9326_v34  ;;  %v5764_v25 = vsel %vm1832_vm0, %v15506_v24, %v9341_v18  ;;  %v5763_v39 = vsel %vm1832_vm0, %v15507_v40, %v9340_v7  ;;  %v15512_v36 = vld [vmem:[#allocation98_spill] sm:$0xff] }
 0xefe   : > { %v9334_v63 = vpop.permute.xlu1 %9333  ;;  %v9349_v46 = vpop.permute.xlu0 %9348  ;;  %v5853_v4 = vpack.c.bf16 %v5824_v17, %v5823_v56  ;;  %v15515_v40 = vld [vmem:[#allocation50_spill] sm:$0xff] }
 0xeff   : > { %v9336_v9 = vunpack.i.h.bf16 %v9334_v63  ;;  %v9335_v61 = vunpack.i.l.bf16 %v9334_v63  ;;  %v9351_v37 = vunpack.i.h.bf16 %v9349_v46  ;;  %v9350_v62 = vunpack.i.l.bf16 %v9349_v46 }
 0xf00   : > { %9022 = vmatprep.mubr.bf16.mxu0 %v5853_v4 }
 0xf01   : > { %9023 = vmatmul.mubr.bf16.gmra.mxu0 %v5854_v12  ;;  %v5762_v3 = vsel %vm1832_vm0, %v15508_v16, %v9336_v9  ;;  %v5761_v47 = vsel %vm1832_vm0, %v15509_v59, %v9335_v61  ;;  %v5796_v2 = vsel %vm5785_vm1, %v5763_v39, %v9350_v62  ;;  %v5797_v44 = vsel %vm5785_vm1, %v5764_v25, %v9351_v37  ;;  %v15514_v25 = vld [vmem:[#allocation135_spill] sm:$0xff]  ;;  %v15516_v16 = vld [vmem:[#allocation136_spill] sm:$0xff] }
 0xf02   : > { %v9344_v14 = vpop.permute.xlu1 %9343  ;;  %v9359_v8 = vpop.permute.xlu0 %9358  ;;  %v9422_v39 = vpack.i.bf16 %v15515_v40, %v15514_v25 }
 0xf03   : > { %v9346_v48 = vunpack.i.h.bf16 %v9344_v14  ;;  %v9345_v33 = vunpack.i.l.bf16 %v9344_v14  ;;  %v9361_v22 = vunpack.i.h.bf16 %v9359_v8  ;;  %v9360_v35 = vunpack.i.l.bf16 %v9359_v8 }
 0xf05   : > { %v5794_v31 = vsel %vm5785_vm1, %v5761_v47, %v9345_v33  ;;  %v5795_v58 = vsel %vm5785_vm1, %v5762_v3, %v9346_v48  ;;  %v5829_v11 = vsel %vm5818_vm2, %v5796_v2, %v9360_v35  ;;  %v5830_v0 = vsel %vm5818_vm2, %v5797_v44, %v9361_v22  ;;  %v15517_v3 = vld [vmem:[#allocation134_spill] sm:$0xff]  ;;  %v15519_v2 = vld [vmem:[#allocation45_spill] sm:$0xff]  ;;  %v15520_v44 = vld [vmem:[#allocation63_spill] sm:$0xff] }
 0xf06   : > { %v9354_v54 = vpop.permute.xlu1 %9353  ;;  %v5856_v45 = vpack.c.bf16 %v5830_v0, %v5829_v11  ;;  %v9369_v32 = vpop.permute.xlu0 %9368  ;;  %v15518_v59 = vpack.i.bf16 %v15516_v16, %v15517_v3  ;;  %v15523_v11 = vld [vmem:[#allocation65_spill] sm:$0xff]  ;;  %v10360_v16 = vld [vmem:[%s11092_s22 + $0x8] sm:$0xff] }
 0xf07   : > { %v9356_v6 = vunpack.i.h.bf16 %v9354_v54  ;;  %v9355_v13 = vunpack.i.l.bf16 %v9354_v54  ;;  %v9371_v43 = vunpack.i.h.bf16 %v9369_v32  ;;  %v9370_v5 = vunpack.i.l.bf16 %v9369_v32  ;;  %v15527_v32 = vld [vmem:[#allocation41_spill] sm:$0xff] }
 0xf09   : > { %v5827_v26 = vsel %vm5818_vm2, %v5794_v31, %v9355_v13  ;;  %v5828_v52 = vsel %vm5818_vm2, %v5795_v58, %v9356_v6  ;;  %v5768_v57 = vsel %vm1832_vm0, %v15510_v29, %v9371_v43  ;;  %v5767_v34 = vsel %vm1832_vm0, %v15511_v23, %v9370_v5  ;;  %v15522_v58 = vld [vmem:[#allocation82_spill] sm:$0xff]  ;;  %v15531_v43 = vld [vmem:[#allocation84_spill] sm:$0xff]  ;;  %v15536_v23 = vld [vmem:[#allocation39_spill] sm:$0xff] }
 0xf0a   : > { %v5855_v53 = vpack.c.bf16 %v5828_v52, %v5827_v26  ;;  %v9364_v42 = vpop.permute.xlu1 %9363  ;;  %v9379_v27 = vpop.permute.xlu0 %9378  ;;  %v15521_v6 = vpack.i.bf16 %v15519_v2, %v15520_v44  ;;  %v15524_v0 = vpack.i.bf16 %v15522_v58, %v15523_v11  ;;  %v15525_v52 = vld [vmem:[#allocation53_spill] sm:$0xff] }
 0xf0b   : > { %v9366_v10 = vunpack.i.h.bf16 %v9364_v42  ;;  %v9365_v15 = vunpack.i.l.bf16 %v9364_v42  ;;  %v9381_v49 = vunpack.i.h.bf16 %v9379_v27  ;;  %v9380_v60 = vunpack.i.l.bf16 %v9379_v27  ;;  %v15528_v42 = vld [vmem:[#allocation46_spill] sm:$0xff] }
 0xf0c   : > { %9026 = vmatprep.mubr.bf16.mxu0 %v5855_v53  ;;  %v15526_v53 = vld [vmem:[#allocation48_spill] sm:$0xff]  ;;  %v15529_v27 = vpack.i.bf16 %v15527_v32, %v15528_v42  ;;  %v15549_v32 = vld [vmem:[#allocation99_spill] sm:$0xff] }
 0xf0d   : > { %9027 = vmatmul.mubr.bf16.gmra.mxu0 %v5856_v45  ;;  %v5766_v38 = vsel %vm1832_vm0, %v15512_v36, %v9366_v10  ;;  %v5765_v28 = vsel %vm1832_vm0, %v15513_v1, %v9365_v15  ;;  %v5800_v56 = vsel %vm5785_vm1, %v5767_v34, %v9380_v60  ;;  %v5801_v17 = vsel %vm5785_vm1, %v5768_v57, %v9381_v49  ;;  %v15533_v10 = vld [vmem:[#allocation71_spill] sm:$0xff]  ;;  %v15534_v15 = vld [vmem:[#allocation54_spill] sm:$0xff]  ;;  %v15539_v1 = vld [vmem:[#allocation44_spill] sm:$0xff] }
 0xf0e   : > { %v9374_v50 = vpop.permute.xlu1 %9373  ;;  %v9452_v45 = vpack.i.bf16 %v15526_v53, %v15525_v52  ;;  %v15535_v49 = vpack.i.bf16 %v15533_v10, %v15534_v15  ;;  %v15537_v34 = vld [vmem:[#allocation42_spill] sm:$0xff]  ;;  %v15548_v53 = vld [vmem:[#allocation101_spill] sm:$0xff]  ;;  %v15551_v15 = vld [vmem:[#allocation100_spill] sm:$0xff] }
 0xf0f   : > { %v9376_v19 = vunpack.i.h.bf16 %v9374_v50  ;;  %v9375_v41 = vunpack.i.l.bf16 %v9374_v50  ;;  %v15530_v50 = vld [vmem:[#allocation56_spill] sm:$0xff]  ;;  %v9482_v36 = vpack.i.bf16 %v15537_v34, %v15536_v23 }
 0xf10   : > { %v15532_v5 = vpack.i.bf16 %v15530_v50, %v15531_v43 }
 0xf11   : > { %v5798_v4 = vsel %vm5785_vm1, %v5765_v28, %v9375_v41  ;;  %v5799_v12 = vsel %vm5785_vm1, %v5766_v38, %v9376_v19  ;;  %v15538_v38 = vld [vmem:[#allocation37_spill] sm:$0xff] }
 0xf12   : > { %v15540_v28 = vpack.i.bf16 %v15538_v38, %v15539_v1 }
 0xf39   : > { %v9389_v51 = vpop.permute.xlu0 %9388 }
 0xf3a   : > { %v9391_v21 = vunpack.i.h.bf16 %v9389_v51  ;;  %v9390_v55 = vunpack.i.l.bf16 %v9389_v51 }
 0xf3b   : > { %v9384_v20 = vpop.permute.xlu1 %9383 }
 0xf3c   : > { %v9386_v63 = vunpack.i.h.bf16 %v9384_v20  ;;  %v9385_v46 = vunpack.i.l.bf16 %v9384_v20  ;;  %v5833_v18 = vsel %vm5818_vm2, %v5800_v56, %v9390_v55  ;;  %v5834_v7 = vsel %vm5818_vm2, %v5801_v17, %v9391_v21  ;;  %v15541_v56 = vld [vmem:[#allocation51_spill] sm:$0xff] }
 0xf3d   : > { %v5858_v8 = vpack.c.bf16 %v5834_v7, %v5833_v18  ;;  %v15542_v17 = vld [vmem:[#allocation59_spill] sm:$0xff] }
 0xf3e   : > { %v5831_v9 = vsel %vm5818_vm2, %v5798_v4, %v9385_v46  ;;  %v5832_v61 = vsel %vm5818_vm2, %v5799_v12, %v9386_v63  ;;  %v15543_v63 = vpack.i.bf16 %v15541_v56, %v15542_v17  ;;  %v15544_v12 = vld [vmem:[#allocation55_spill] sm:$0xff] }
 0xf3f   : > { %v5857_v14 = vpack.c.bf16 %v5832_v61, %v5831_v9  ;;  %v15545_v18 = vld [vmem:[#allocation83_spill] sm:$0xff] }
 0xf40   : > { %v15546_v7 = vpack.i.bf16 %v15544_v12, %v15545_v18 }
 0xf41   : > { %9030 = vmatprep.mubr.bf16.mxu0 %v5857_v14 }
 0xf42   : > { %9031 = vmatmul.mubr.bf16.gmra.mxu0 %v5858_v8 }
 0xf6a   : > { %v8988_v37 = vpop.f32.mrf.mxu1 }
 0xf6c   : > { %v5306_v62 = vpop.f32.mrf.mxu1 }
 0xf6e   : > { %v8989_v48 = vpop.f32.mrf.mxu1 }
 0xf6f   : > { %v9417_v33 = vpack.i.bf16 %v8989_v48, %v8988_v37 }
 0xf70   : > { %v5309_v22 = vpop.f32.mrf.mxu1 }
 0xf71   : > { %v9412_v35 = vpack.i.bf16 %v5309_v22, %v5306_v62  ;;  %9418 = vrot.lane.b32.xlu0 %v9417_v33, %s10707_s2  ;;  %v9399_v33 = vpop.permute.xlu0 %9398  ;;  %v14015_v22 = vld [vmem:[%s707_s20] ss:$0 sm:$0xff] }
 0xf73   : > { %9413 = vrot.lane.b32.xlu1 %v9412_v35, %s10707_s2  ;;  %v9394_v35 = vpop.permute.xlu1 %9393 }
 0xf74   : > { %v8992_v24 = vpop.f32.mrf.mxu1  ;;  %v9396_v2 = vunpack.i.h.bf16 %v9394_v35  ;;  %v9395_v44 = vunpack.i.l.bf16 %v9394_v35 }
 0xf75   : > { %9428 = vrot.lane.b32.xlu0 %v15518_v59, %s10709_s12  ;;  %v9409_v40 = vpop.permute.xlu0 %9408  ;;  %v9401_v59 = vunpack.i.h.bf16 %v9399_v33 }
 0xf76   : > { %v5322_v47 = vpop.f32.mrf.mxu1 }
 0xf77   : > { %9423 = vrot.lane.b32.xlu1 %v9422_v39, %s10709_s12 }
 0xf78   : > { %v8993_v54 = vpop.f32.mrf.mxu1 }
 0xf79   : > { %9438 = vrot.lane.b32.xlu0 %v15521_v6, %s10708_s18  ;;  %v9447_v31 = vpack.i.bf16 %v8993_v54, %v8992_v24  ;;  %v9404_v6 = vpop.permute.xlu1 %9403 }
 0xf7a   : > { %v5325_v13 = vpop.f32.mrf.mxu1  ;;  %v9405_v50 = vunpack.i.l.bf16 %v9404_v6 }
 0xf7b   : > { %9433 = vrot.lane.b32.xlu1 %v15524_v0, %s10708_s18  ;;  %v9442_v26 = vpack.i.bf16 %v5325_v13, %v5322_v47  ;;  %v9400_v47 = vunpack.i.l.bf16 %v9399_v33  ;;  %v9411_v13 = vunpack.i.h.bf16 %v9409_v40  ;;  %v10361_v0 = vld [vmem:[%s11092_s22 + $0x10] sm:$0xff] }
 0xf7d   : > { %9448 = vrot.lane.b32.xlu0 %v9447_v31, %s10707_s2  ;;  %v9410_v31 = vunpack.i.l.bf16 %v9409_v40  ;;  %v5771_v42 = vsel %vm1832_vm0, %v15549_v32, %v9400_v47  ;;  %v10366_v40 = vld [vmem:[%s11092_s22 + $0x28] sm:$0xff]  ;;  %v10369_v32 = vld [vmem:[%s11092_s22 + $0x50] sm:$0xff] }
 0xf7f   : > { %9443 = vrot.lane.b32.xlu1 %v9442_v26, %s10707_s2 }
 0xf81   : > { %9458 = vrot.lane.b32.xlu0 %v15529_v27, %s10709_s12  ;;  %v9406_v27 = vunpack.i.h.bf16 %v9404_v6  ;;  %v10367_v6 = vld [vmem:[%s11092_s22 + $0x40] sm:$0xff] }
 0xf83   : > { %9453 = vrot.lane.b32.xlu1 %v9452_v45, %s10709_s12  ;;  %v5772_v45 = vsel %vm1832_vm0, %v15548_v53, %v9401_v59 }
 0xf85   : > { %9468 = vrot.lane.b32.xlu0 %v15532_v5, %s10708_s18  ;;  %v15550_v5 = vld [vmem:[#allocation102_spill] sm:$0xff] }
 0xf86   : > { %v5770_v10 = vsel %vm1832_vm0, %v15550_v5, %v9396_v2  ;;  %v15552_v5 = vld [vmem:[#allocation105_spill] sm:$0xff] }
 0xf87   : > { %9463 = vrot.lane.b32.xlu1 %v15535_v49, %s10708_s18  ;;  %v5769_v49 = vsel %vm1832_vm0, %v15551_v15, %v9395_v44  ;;  %v5803_v56 = vsel %vm5785_vm1, %v5770_v10, %v9406_v27  ;;  %v15553_v15 = vld [vmem:[#allocation103_spill] sm:$0xff] }
 0xfae   : > { %v8996_v60 = vpop.f32.mrf.mxu1 }
 0xfb0   : > { %v5338_v19 = vpop.f32.mrf.mxu1 }
 0xfb2   : > { %v8997_v41 = vpop.f32.mrf.mxu1 }
 0xfb3   : > { %v9477_v51 = vpack.i.bf16 %v8997_v41, %v8996_v60  ;;  %v5804_v41 = vsel %vm5785_vm1, %v5771_v42, %v9410_v31 }
 0xfb4   : > { %v5341_v21 = vpop.f32.mrf.mxu1 }
 0xfb5   : > { %v9472_v55 = vpack.i.bf16 %v5341_v21, %v5338_v19  ;;  %9478 = vrot.lane.b32.xlu0 %v9477_v51, %s10707_s2  ;;  %v9020_v61 = vpop.f32.mrf.mxu0  ;;  %v5805_v51 = vsel %vm5785_vm1, %v5772_v45, %v9411_v13  ;;  %v10362_v21 = vld [vmem:[%s11092_s22] sm:$0xff] }
 0xfb6   : > { %v9000_v29 = vpop.f32.mrf.mxu1  ;;  %v5981_v39 = vadd.f32 %v9020_v61, %v14015_v22 }
 0xfb7   : > { %9473 = vrot.lane.b32.xlu1 %v9472_v55, %s10707_s2  ;;  %v5972_v14 = vpop.f32.mrf.mxu0 }
 0xfb8   : > { %v5354_v57 = vpop.f32.mrf.mxu1  ;;  %v5973_v58 = vadd.f32 %v14015_v22, %v5972_v14  ;;  %v14025_v26 = vadd.f32 %v10361_v0, %v5981_v39  ;;  %v10368_v0 = vld [vmem:[%s11092_s22 + $0x38] sm:$0xff] }
 0xfb9   : > { %9488 = vrot.lane.b32.xlu0 %v15540_v28, %s10709_s12  ;;  %v9021_v8 = vpop.f32.mrf.mxu0 }
 0xfba   : > { %v9001_v20 = vpop.f32.mrf.mxu1  ;;  %v14040_v55 = vadd.f32 %v10362_v21, %v5973_v58 }
 0xfbb   : > { %9483 = vrot.lane.b32.xlu1 %v9482_v36, %s10709_s12  ;;  %v9507_v4 = vpack.i.bf16 %v9001_v20, %v9000_v29  ;;  %v5975_v37 = vpop.f32.mrf.mxu0  ;;  %v5984_v29 = vadd.f32 %v9021_v8, %v14015_v22  ;;  %v10363_v36 = vld [vmem:[%s11092_s22 + $0x20] sm:$0xff]  ;;  %v5802_v20 = vsel %vm5785_vm1, %v5769_v49, %v9405_v50 }
 0xfbc   : > { %v5357_v46 = vpop.f32.mrf.mxu1  ;;  %v5976_v24 = vadd.f32 %v14015_v22, %v5975_v37  ;;  %v10365_v37 = vld [vmem:[%s11092_s22 + $0x30] sm:$0xff] }
 0xfbd   : > { %9498 = vrot.lane.b32.xlu0 %v15543_v63, %s10708_s18  ;;  %v9502_v9 = vpack.i.bf16 %v5357_v46, %v5354_v57 }
 0xfbe   : > { %v14020_v3 = vadd.f32 %v10360_v16, %v5976_v24 }
 0xfbf   : > { %9493 = vrot.lane.b32.xlu1 %v15546_v7, %s10708_s18  ;;  %v10364_v7 = vld [vmem:[%s11092_s22 + $0x18] sm:$0xff] }
 0xfc1   : > { %9508 = vrot.lane.b32.xlu0 %v9507_v4, %s10707_s2  ;;  %v9024_v62 = vpop.f32.mrf.mxu0 }
 0xfc2   : > { %v5997_v34 = vadd.f32 %v9024_v62, %v14015_v22 }
 0xfc3   : > { %9503 = vrot.lane.b32.xlu1 %v9502_v9, %s10707_s2  ;;  %v5988_v48 = vpop.f32.mrf.mxu0  ;;  %v14057_v9 = vadd.f32 %v10364_v7, %v5984_v29  ;;  %v10371_v7 = vld [vmem:[%s11092_s22 + $0x58] sm:$0xff] }
 0xfc4   : > { %v5989_v52 = vadd.f32 %v14015_v22, %v5988_v48  ;;  %v14060_v62 = vadd.f32 %v10365_v37, %v5997_v34 }
 0xfc5   : > { %v9025_v25 = vpop.f32.mrf.mxu0 }
 0xfc6   : > { %v14045_v38 = vadd.f32 %v10363_v36, %v5989_v52  ;;  %v6000_v35 = vadd.f32 %v9025_v25, %v14015_v22 }
 0xfc7   : > { %v5991_v54 = vpop.f32.mrf.mxu0 }
 0xfc8   : > { %v5992_v4 = vadd.f32 %v14015_v22, %v5991_v54  ;;  %v14074_v52 = vadd.f32 %v10368_v0, %v6000_v35  ;;  %v10372_v35 = vld [vmem:[%s11092_s22 + $0x60] sm:$0xff] }
 0xfca   : > { %v14066_v39 = vadd.f32 %v10366_v40, %v5992_v4 }
 0xfcd   : > { %v9028_v11 = vpop.f32.mrf.mxu0 }
 0xfce   : > { %v6013_v16 = vadd.f32 %v9028_v11, %v14015_v22 }
 0xfcf   : > { %v6004_v57 = vpop.f32.mrf.mxu0 }
 0xfd0   : > { %v6005_v48 = vadd.f32 %v14015_v22, %v6004_v57  ;;  %v14078_v42 = vadd.f32 %v10369_v32, %v6013_v16 }
 0xfd1   : > { %v9029_v61 = vpop.f32.mrf.mxu0 }
 0xfd2   : > { %v14071_v13 = vadd.f32 %v10367_v6, %v6005_v48 }
 0xfd3   : > { %v6007_v59 = vpop.f32.mrf.mxu0 }
 0xfd4   : > { %v6008_v27 = vadd.f32 %v14015_v22, %v6007_v59  ;;  %v10373_v59 = vld [vmem:[%s11092_s22 + $0x70] sm:$0xff] }
 0xfe0   : > { %6135 = vadd.xlane.f32.xlu0 %v14020_v3 }
 0xfe3   : > { %v9419_v43 = vpop.permute.xlu0 %9418 }
 0xfe4   : > { %v9421_v60 = vunpack.i.h.bf16 %v9419_v43  ;;  %v9420_v19 = vunpack.i.l.bf16 %v9419_v43  ;;  %6137 = vadd.xlane.f32.xlu0 %v14025_v26 }
 0xfe5   : > { %v9414_v23 = vpop.permute.xlu1 %9413 }
 0xfe6   : > { %v9416_v1 = vunpack.i.h.bf16 %v9414_v23  ;;  %v9415_v28 = vunpack.i.l.bf16 %v9414_v23  ;;  %v5837_v17 = vsel %vm5818_vm2, %v5804_v41, %v9420_v19  ;;  %v5838_v63 = vsel %vm5818_vm2, %v5805_v51, %v9421_v60  ;;  %v15554_v60 = vld [vmem:[#allocation106_spill] sm:$0xff]  ;;  %v15555_v41 = vld [vmem:[#allocation104_spill] sm:$0xff] }
 0xfe7   : > { %6133 = vadd.xlane.f32.xlu1 %v14040_v55  ;;  %v9429_v46 = vpop.permute.xlu0 %9428  ;;  %v5860_v33 = vpack.c.bf16 %v5838_v63, %v5837_v17  ;;  %v6016_v63 = vadd.f32 %v9029_v61, %v14015_v22 }
 0xfe8   : > { %6141 = vadd.xlane.f32.xlu0 %v14045_v38  ;;  %v5835_v12 = vsel %vm5818_vm2, %v5802_v20, %v9415_v28  ;;  %v5836_v18 = vsel %vm5818_vm2, %v5803_v56, %v9416_v1  ;;  %v9431_v47 = vunpack.i.h.bf16 %v9429_v46  ;;  %v9430_v54 = vunpack.i.l.bf16 %v9429_v46  ;;  %v10370_v46 = vld [vmem:[%s11092_s22 + $0x48] sm:$0xff] }
 0xfe9   : > { %v9424_v14 = vpop.permute.xlu1 %9423  ;;  %v5859_v8 = vpack.c.bf16 %v5836_v18, %v5835_v12  ;;  %v14102_v4 = vadd.f32 %v10370_v46, %v6008_v27 }
 0xfea   : > { %v9426_v2 = vunpack.i.h.bf16 %v9424_v14  ;;  %v9425_v44 = vunpack.i.l.bf16 %v9424_v14  ;;  %v5776_v10 = vsel %vm1832_vm0, %v15552_v5, %v9431_v47  ;;  %v5775_v49 = vsel %vm1832_vm0, %v15553_v15, %v9430_v54 }
 0xfeb   : > { %6139 = vadd.xlane.f32.xlu1 %v14057_v9  ;;  %v9439_v24 = vpop.permute.xlu0 %9438  ;;  %9034 = vmatprep.mubr.bf16.mxu0 %v5859_v8  ;;  %v14106_v14 = vadd.f32 %v10371_v7, %v6016_v63 }
 0xfec   : > { %6145 = vadd.xlane.f32.xlu0 %v14060_v62  ;;  %9035 = vmatmul.mubr.bf16.gmra.mxu0 %v5860_v33  ;;  %v9441_v31 = vunpack.i.h.bf16 %v9439_v24  ;;  %v9440_v58 = vunpack.i.l.bf16 %v9439_v24  ;;  %v5774_v19 = vsel %vm1832_vm0, %v15554_v60, %v9426_v2  ;;  %v5773_v51 = vsel %vm1832_vm0, %v15555_v41, %v9425_v44  ;;  %v10374_v2 = vld [vmem:[%s11092_s22 + $0x68] sm:$0xff] }
 0xfed   : > { %v9434_v25 = vpop.permute.xlu1 %9433 }
 0xfee   : > { %v9436_v53 = vunpack.i.h.bf16 %v9434_v25  ;;  %v9435_v11 = vunpack.i.l.bf16 %v9434_v25  ;;  %v5808_v29 = vsel %vm5785_vm1, %v5775_v49, %v9440_v58  ;;  %v5809_v57 = vsel %vm5785_vm1, %v5776_v10, %v9441_v31  ;;  %v10375_v25 = vld [vmem:[%s11092_s22 + $0x78] sm:$0xff] }
 0xfef   : > { %6143 = vadd.xlane.f32.xlu1 %v14066_v39  ;;  %v9449_v45 = vpop.permute.xlu0 %9448 }
 0xff0   : > { %v9451_v50 = vunpack.i.h.bf16 %v9449_v45  ;;  %v9450_v43 = vunpack.i.l.bf16 %v9449_v45  ;;  %6149 = vadd.xlane.f32.xlu0 %v14071_v13  ;;  %v5806_v36 = vsel %vm5785_vm1, %v5773_v51, %v9435_v11  ;;  %v5807_v1 = vsel %vm5785_vm1, %v5774_v19, %v9436_v53  ;;  %v15556_v19 = vld [vmem:[#allocation109_spill] sm:$0xff]  ;;  %v15557_v51 = vld [vmem:[#allocation107_spill] sm:$0xff] }
 0xff1   : > { %v9444_v21 = vpop.permute.xlu1 %9443 }
 0xff2   : > { %v9446_v23 = vunpack.i.h.bf16 %v9444_v21  ;;  %v9445_v34 = vunpack.i.l.bf16 %v9444_v21  ;;  %v5841_v28 = vsel %vm5818_vm2, %v5808_v29, %v9450_v43  ;;  %v5842_v20 = vsel %vm5818_vm2, %v5809_v57, %v9451_v50  ;;  %v15558_v29 = vld [vmem:[#allocation110_spill] sm:$0xff] }
 0xff3   : > { %6147 = vadd.xlane.f32.xlu1 %v14074_v52  ;;  %v5862_v18 = vpack.c.bf16 %v5842_v20, %v5841_v28  ;;  %v9459_v31 = vpop.permute.xlu0 %9458 }
 0xff4   : > { %6153 = vadd.xlane.f32.xlu0 %v14078_v42  ;;  %v5839_v56 = vsel %vm5818_vm2, %v5806_v36, %v9445_v34  ;;  %v5840_v17 = vsel %vm5818_vm2, %v5807_v1, %v9446_v23  ;;  %v9461_v11 = vunpack.i.h.bf16 %v9459_v31  ;;  %v9460_v45 = vunpack.i.l.bf16 %v9459_v31  ;;  %v15559_v23 = vld [vmem:[#allocation108_spill] sm:$0xff] }
 0xff5   : > { %v5861_v12 = vpack.c.bf16 %v5840_v17, %v5839_v56  ;;  %v9454_v58 = vpop.permute.xlu1 %9453 }
 0xff6   : > { %v9456_v32 = vunpack.i.h.bf16 %v9454_v58  ;;  %v9455_v27 = vunpack.i.l.bf16 %v9454_v58  ;;  %v5780_v41 = vsel %vm1832_vm0, %v15556_v19, %v9461_v11  ;;  %v5779_v21 = vsel %vm1832_vm0, %v15557_v51, %v9460_v45  ;;  %v15560_v45 = vld [vmem:[#allocation113_spill] sm:$0xff] }
 0xff7   : > { %6151 = vadd.xlane.f32.xlu1 %v14102_v4  ;;  %9038 = vmatprep.mubr.bf16.mxu0 %v5861_v12  ;;  %v9469_v0 = vpop.permute.xlu0 %9468 }
 0xff8   : > { %9039 = vmatmul.mubr.bf16.gmra.mxu0 %v5862_v18  ;;  %v9471_v50 = vunpack.i.h.bf16 %v9469_v0  ;;  %v9470_v43 = vunpack.i.l.bf16 %v9469_v0  ;;  %v5778_v57 = vsel %vm1832_vm0, %v15558_v29, %v9456_v32  ;;  %v5777_v34 = vsel %vm1832_vm0, %v15559_v23, %v9455_v27  ;;  %v15561_v27 = vld [vmem:[#allocation111_spill] sm:$0xff] }
 0xff9   : > { %v9464_v53 = vpop.permute.xlu1 %9463 }
 0xffa   : > { %v9466_v5 = vunpack.i.h.bf16 %v9464_v53  ;;  %v9465_v10 = vunpack.i.l.bf16 %v9464_v53  ;;  %v5812_v1 = vsel %vm5785_vm1, %v5779_v21, %v9470_v43  ;;  %v5813_v28 = vsel %vm5785_vm1, %v5780_v41, %v9471_v50  ;;  %v15562_v43 = vld [vmem:[#allocation114_spill] sm:$0xff] }
 0xffb   : > { %6155 = vadd.xlane.f32.xlu1 %v14106_v14 }
 0xffc   : > { %v5810_v17 = vsel %vm5785_vm1, %v5777_v34, %v9465_v10  ;;  %v5811_v63 = vsel %vm5785_vm1, %v5778_v57, %v9466_v5  ;;  %v15563_v10 = vld [vmem:[#allocation112_spill] sm:$0xff] }
0x1002   : > { %v9032_v8 = vpop.f32.mrf.mxu0 }
0x1003   : > { %v6029_v33 = vadd.f32 %v9032_v8, %v14015_v22 }
0x1004   : > { %v6020_v37 = vpop.f32.mrf.mxu0 }
0x1005   : > { %v6021_v61 = vadd.f32 %v14015_v22, %v6020_v37  ;;  %v14117_v47 = vadd.f32 %v10373_v59, %v6029_v33 }
0x1006   : > { %v9033_v48 = vpop.f32.mrf.mxu0 }
0x1007   : > { %v14112_v24 = vadd.f32 %v10372_v35, %v6021_v61  ;;  %v6032_v54 = vadd.f32 %v9033_v48, %v14015_v22 }
0x1008   : > { %v6023_v40 = vpop.f32.mrf.mxu0 }
0x1009   : > { %v6024_v16 = vadd.f32 %v14015_v22, %v6023_v40  ;;  %6157 = vadd.xlane.f32.xlu0 %v14112_v24  ;;  %v14126_v6 = vadd.f32 %v10375_v25, %v6032_v54 }
0x100b   : > { %v14121_v44 = vadd.f32 %v10374_v2, %v6024_v16 }
0x100d   : > { %6161 = vadd.xlane.f32.xlu0 %v14117_v47  ;;  %6159 = vadd.xlane.f32.xlu1 %v14121_v44 }
0x1011   : > { %6163 = vadd.xlane.f32.xlu1 %v14126_v6 }
0x1027   : > { %v9479_v15 = vpop.permute.xlu0 %9478 }
0x1028   : > { %v9481_v49 = vunpack.i.h.bf16 %v9479_v15  ;;  %v9480_v60 = vunpack.i.l.bf16 %v9479_v15 }
0x1029   : > { %v9474_v36 = vpop.permute.xlu1 %9473 }
0x102a   : > { %v9476_v20 = vunpack.i.h.bf16 %v9474_v36  ;;  %v9475_v56 = vunpack.i.l.bf16 %v9474_v36  ;;  %v5845_v46 = vsel %vm5818_vm2, %v5812_v1, %v9480_v60  ;;  %v5846_v12 = vsel %vm5818_vm2, %v5813_v28, %v9481_v49 }
0x102b   : > { %v9489_v18 = vpop.permute.xlu0 %9488  ;;  %v5864_v48 = vpack.c.bf16 %v5846_v12, %v5845_v46 }
0x102c   : > { %v5843_v7 = vsel %vm5818_vm2, %v5810_v17, %v9475_v56  ;;  %v5844_v8 = vsel %vm5818_vm2, %v5811_v63, %v9476_v20  ;;  %v9491_v35 = vunpack.i.h.bf16 %v9489_v18  ;;  %v9490_v40 = vunpack.i.l.bf16 %v9489_v18 }
0x102d   : > { %v9484_v37 = vpop.permute.xlu1 %9483  ;;  %v5863_v61 = vpack.c.bf16 %v5844_v8, %v5843_v7  ;;  %v10376_v8 = vld [vmem:[%s11092_s22 + $0x80] sm:$0xff] }
0x102e   : > { %v9486_v16 = vunpack.i.h.bf16 %v9484_v37  ;;  %v9485_v59 = vunpack.i.l.bf16 %v9484_v37  ;;  %v5784_v32 = vsel %vm1832_vm0, %v15560_v45, %v9491_v35  ;;  %v5783_v50 = vsel %vm1832_vm0, %v15561_v27, %v9490_v40  ;;  %v10377_v40 = vld [vmem:[%s11092_s22 + $0x90] sm:$0xff] }
0x102f   : > { %v9499_v33 = vpop.permute.xlu0 %9498  ;;  %9042 = vmatprep.mubr.bf16.mxu0 %v5863_v61 }
0x1030   : > { %9043 = vmatmul.mubr.bf16.gmra.mxu0 %v5864_v48  ;;  %v9501_v2 = vunpack.i.h.bf16 %v9499_v33  ;;  %v9500_v25 = vunpack.i.l.bf16 %v9499_v33  ;;  %v5782_v5 = vsel %vm1832_vm0, %v15562_v43, %v9486_v16  ;;  %v5781_v15 = vsel %vm1832_vm0, %v15563_v10, %v9485_v59 }
0x1031   : > { %v9494_v54 = vpop.permute.xlu1 %9493 }
0x1032   : > { %v9496_v31 = vunpack.i.h.bf16 %v9494_v54  ;;  %v9495_v58 = vunpack.i.l.bf16 %v9494_v54  ;;  %v5816_v60 = vsel %vm5785_vm1, %v5783_v50, %v9500_v25  ;;  %v5817_v19 = vsel %vm5785_vm1, %v5784_v32, %v9501_v2  ;;  %v10378_v54 = vld [vmem:[%s11092_s22 + $0x88] sm:$0xff] }
0x1033   : > { %v9509_v0 = vpop.permute.xlu0 %9508 }
0x1034   : > { %v9511_v53 = vunpack.i.h.bf16 %v9509_v0  ;;  %v9510_v11 = vunpack.i.l.bf16 %v9509_v0  ;;  %v5814_v21 = vsel %vm5785_vm1, %v5781_v15, %v9495_v58  ;;  %v5815_v29 = vsel %vm5785_vm1, %v5782_v5, %v9496_v31 }
0x1035   : > { %v9504_v49 = vpop.permute.xlu1 %9503 }
0x1036   : > { %v9506_v41 = vunpack.i.h.bf16 %v9504_v49  ;;  %v9505_v51 = vunpack.i.l.bf16 %v9504_v49  ;;  %v5849_v57 = vsel %vm5818_vm2, %v5816_v60, %v9510_v11  ;;  %v5850_v23 = vsel %vm5818_vm2, %v5817_v19, %v9511_v53  ;;  %v10379_v53 = vld [vmem:[%s11092_s22 + $0x98] sm:$0xff]  ;;  %v10380_v49 = vld [vmem:[%s11092_s22 + $0xa0] sm:$0xff] }
0x1037   : > { %v5866_v28 = vpack.c.bf16 %v5850_v23, %v5849_v57  ;;  %v10381_v23 = vld [vmem:[%s11092_s22 + $0xa8] sm:$0xff] }
0x1038   : > { %v5847_v34 = vsel %vm5818_vm2, %v5814_v21, %v9505_v51  ;;  %v5848_v36 = vsel %vm5818_vm2, %v5815_v29, %v9506_v41 }
0x1039   : > { %v5865_v1 = vpack.c.bf16 %v5848_v36, %v5847_v34 }
0x103b   : > { %9046 = vmatprep.mubr.bf16.mxu0 %v5865_v1 }
0x103c   : > { %9047 = vmatmul.mubr.bf16.gmra.mxu0 %v5866_v28  ;;  %v9554_v28 = vld [vmem:[%s11051_s19 + $0x74] ss:$8 sps:$4 sm:$0xff]  }
0x103d   : > { %6685 = vmatprep.subr.bf16.mxu1 %v9554_v28 }
0x1069   : > { %v6136_v46 = vpop.xlane.xlu0 %6135 }
0x106a   : > { %v6198_v33 = vmul.f32 0.0078125, %v6136_v46 }
0x106c   : > { %v14181_v58 = vsub.f32 %v14020_v3, %v6198_v33 }
0x106d   : > { %v6138_v25 = vpop.xlane.xlu0 %6137 }
0x106e   : > { %v6199_v0 = vmul.f32 0.0078125, %v6138_v25  ;;  %v6262_v19 = vmul.f32 %v14181_v58, %v14181_v58 }
0x1070   : > { %v6134_v56 = vpop.xlane.xlu1 %6133  ;;  %v14191_v5 = vsub.f32 %v14025_v26, %v6199_v0  ;;  %v9561_v0 = vld [vmem:[%s11051_s19 + $0x40] ss:$8 sps:$4 sm:$0xff]  }
0x1071   : > { %v6197_v18 = vmul.f32 0.0078125, %v6134_v56  ;;  %v6142_v10 = vpop.xlane.xlu0 %6141 }
0x1072   : > { %v6201_v21 = vmul.f32 0.0078125, %v6142_v10  ;;  %v6263_v36 = vmul.f32 %v14191_v5, %v14191_v5  ;;  %v9573_v10 = vld [vmem:[%s11051_s19] ss:$8 sps:$4 sm:$0xff]  }
0x1073   : > { %v14169_v35 = vsub.f32 %v14040_v55, %v6197_v18 }
0x1074   : > { %v6140_v32 = vpop.xlane.xlu1 %6139  ;;  %v14213_v56 = vsub.f32 %v14045_v38, %v6201_v21 }
0x1075   : > { %v6261_v45 = vmul.f32 %v14169_v35, %v14169_v35  ;;  %v6200_v15 = vmul.f32 0.0078125, %v6140_v32  ;;  %v9569_v32 = vld [vmem:[%s11051_s19 + $0x24] ss:$8 sps:$4 sm:$0xff]  }
0x1077   : > { %v14201_v29 = vsub.f32 %v14057_v9, %v6200_v15  ;;  %v9575_v15 = vld [vmem:[%s11051_s19 + $0x4] ss:$8 sps:$4 sm:$0xff]  }
0x1078   : > { %v6144_v1 = vpop.xlane.xlu1 %6143 }
0x1079   : > { %v6264_v18 = vmul.f32 %v14201_v29, %v14201_v29 }
0x10ac   : > { %v9036_v20 = vpop.f32.mrf.mxu0 }
0x10ad   : > { %v6045_v7 = vadd.f32 %v9036_v20, %v14015_v22  ;;  %v9552_v20 = vld [vmem:[%s11051_s19 + $0x70] ss:$8 sps:$4 sm:$0xff]  }
0x10ae   : > { %v6036_v17 = vpop.f32.mrf.mxu0  ;;  %6686 = vmatpush1.bf16.msra.mxu1 %v9552_v20  ;;  %v10384_v20 = vld [vmem:[%s11092_s22 + $0xc0] sm:$0xff] }
0x10af   : > { %v6037_v63 = vadd.f32 %v14015_v22, %v6036_v17  ;;  %v14172_v16 = vadd.f32 %v10377_v40, %v6045_v7  ;;  %v6202_v17 = vmul.f32 0.0078125, %v6144_v1  ;;  %v9557_v7 = vld [vmem:[%s11051_s19 + $0x64] ss:$8 sps:$4 sm:$0xff]   ;;  %v6265_v40 = vmul.f32 %v14213_v56, %v14213_v56 }
0x10b0   : > { %v9037_v12 = vpop.f32.mrf.mxu0  ;;  %6687 = vmatprep.subr.bf16.mxu1 %v9557_v7 }
0x10b1   : > { %v14164_v37 = vadd.f32 %v10376_v8, %v6037_v63  ;;  %15564 = vst [vmem:[#allocation38_spill] sm:$0xff] %v14172_v16  ;;  %v6048_v59 = vadd.f32 %v9037_v12, %v14015_v22  ;;  %v10382_v63 = vld [vmem:[%s11092_s22 + $0xb0] sm:$0xff]  ;;  %v9555_v8 = vld [vmem:[%s11051_s19 + $0x60] ss:$8 sps:$4 sm:$0xff]  }
0x10b2   : > { %v6039_v61 = vpop.f32.mrf.mxu0  ;;  %6688 = vmatpush1.bf16.msra.mxu1 %v9555_v8 }
0x10b3   : > { %v6040_v48 = vadd.f32 %v14015_v22, %v6039_v61  ;;  %6165 = vadd.xlane.f32.xlu0 %v14164_v37  ;;  %v14184_v11 = vadd.f32 %v10379_v53, %v6048_v59  ;;  %v14225_v61 = vsub.f32 %v14066_v39, %v6202_v17  ;;  %v9560_v59 = vld [vmem:[%s11051_s19 + $0x54] ss:$8 sps:$4 sm:$0xff]  }
0x10b4   : > { %6689 = vmatprep.subr.bf16.mxu1 %v9560_v59  ;;  %v9566_v53 = vld [vmem:[%s11051_s19 + $0x34] ss:$8 sps:$4 sm:$0xff]  }
0x10b5   : > { %v14176_v2 = vadd.f32 %v10378_v54, %v6040_v48  ;;  %15566 = vst [vmem:[#allocation64_spill] sm:$0xff] %v14184_v11  ;;  %v10383_v48 = vld [vmem:[%s11092_s22 + $0xb8] sm:$0xff]  ;;  %v6266_v25 = vmul.f32 %v14225_v61, %v14225_v61 }
0x10b6   : > { %v9558_v54 = vld [vmem:[%s11051_s19 + $0x50] ss:$8 sps:$4 sm:$0xff]  }
0x10b7   : > { %15565 = vst [vmem:[#allocation57_spill] sm:$0xff] %v14176_v2  ;;  %6169 = vadd.xlane.f32.xlu0 %v14172_v16  ;;  %6167 = vadd.xlane.f32.xlu1 %v14176_v2 }
0x10b8   : > { %v9040_v31 = vpop.f32.mrf.mxu0  ;;  %6690 = vmatpush1.bf16.msra.mxu1 %v9558_v54 }
0x10b9   : > { %v6061_v57 = vadd.f32 %v9040_v31, %v14015_v22  ;;  %v9563_v31 = vld [vmem:[%s11051_s19 + $0x44] ss:$8 sps:$4 sm:$0xff]  }
0x10ba   : > { %v6052_v27 = vpop.f32.mrf.mxu0  ;;  %6691 = vmatprep.subr.bf16.mxu1 %v9563_v31 }
0x10bb   : > { %v6053_v50 = vadd.f32 %v14015_v22, %v6052_v27  ;;  %6171 = vadd.xlane.f32.xlu1 %v14184_v11  ;;  %6293 = vadd.xlane.f32.xlu0 %v6261_v45  ;;  %v14216_v46 = vadd.f32 %v10382_v63, %v6061_v57  ;;  %v9564_v45 = vld [vmem:[%s11051_s19 + $0x30] ss:$8 sps:$4 sm:$0xff]   ;;  %v9567_v27 = vld [vmem:[%s11051_s19 + $0x20] ss:$8 sps:$4 sm:$0xff]  }
0x10bc   : > { %v9041_v43 = vpop.f32.mrf.mxu0  ;;  %6692 = vmatpush1.bf16.msra.mxu1 %v9561_v0 }
0x10bd   : > { %v14194_v60 = vadd.f32 %v10380_v49, %v6053_v50  ;;  %15569 = vst [vmem:[#allocation67_spill] sm:$0xff] %v14216_v46  ;;  %v6064_v12 = vadd.f32 %v9041_v43, %v14015_v22  ;;  %6693 = vmatprep.subr.bf16.mxu1 %v9566_v53  ;;  %v9572_v50 = vld [vmem:[%s11051_s19 + $0x14] ss:$8 sps:$4 sm:$0xff]   ;;  %v9570_v43 = vld [vmem:[%s11051_s19 + $0x10] ss:$8 sps:$4 sm:$0xff]   ;;  %v6146_v49 = vpop.xlane.xlu0 %6145 }
0x10be   : > { %v6055_v41 = vpop.f32.mrf.mxu0 }
0x10bf   : > { %15567 = vst [vmem:[#allocation62_spill] sm:$0xff] %v14194_v60  ;;  %v6056_v51 = vadd.f32 %v14015_v22, %v6055_v41  ;;  %6295 = vadd.xlane.f32.xlu1 %v6262_v19  ;;  %6173 = vadd.xlane.f32.xlu0 %v14194_v60  ;;  %v14228_v33 = vadd.f32 %v10383_v48, %v6064_v12  ;;  %v6203_v41 = vmul.f32 0.0078125, %v6146_v49  ;;  %v10385_v48 = vld [vmem:[%s11092_s22 + $0xc8] sm:$0xff] }
0x10c0   : > { %6694 = vmatpush1.bf16.msra.mxu1 %v9564_v45  ;;  %v10386_v45 = vld [vmem:[%s11092_s22 + $0xd0] sm:$0xff] }
0x10c1   : > { %v14205_v34 = vadd.f32 %v10381_v23, %v6056_v51  ;;  %15570 = vst [vmem:[#allocation76_spill] sm:$0xff] %v14228_v33  ;;  %6695 = vmatprep.subr.bf16.mxu1 %v9569_v32  ;;  %v6148_v51 = vpop.xlane.xlu1 %6147  ;;  %v6150_v1 = vpop.xlane.xlu0 %6149 }
0x10c2   : > { %v6204_v28 = vmul.f32 0.0078125, %v6148_v51 }
0x10c3   : > { %15568 = vst [vmem:[#allocation73_spill] sm:$0xff] %v14205_v34  ;;  %6175 = vadd.xlane.f32.xlu1 %v14205_v34  ;;  %6297 = vadd.xlane.f32.xlu0 %v6263_v36  ;;  %v14249_v36 = vsub.f32 %v14060_v62, %v6203_v41  ;;  %v10387_v41 = vld [vmem:[%s11092_s22 + $0xd8] sm:$0xff] }
0x10c4   : > { %6696 = vmatpush1.bf16.msra.mxu1 %v9567_v27  ;;  %v14257_v7 = vsub.f32 %v14074_v52, %v6204_v28 }
0x10c5   : > { %6697 = vmatprep.subr.bf16.mxu1 %v9572_v50  ;;  %v6267_v59 = vmul.f32 %v14249_v36, %v14249_v36  ;;  %v6152_v54 = vpop.xlane.xlu1 %6151  ;;  %v6154_v0 = vpop.xlane.xlu0 %6153 }
0x10c6   : > { %v6206_v53 = vmul.f32 0.0078125, %v6152_v54  ;;  %v6268_v50 = vmul.f32 %v14257_v7, %v14257_v7 }
0x10c7   : > { %6177 = vadd.xlane.f32.xlu0 %v14216_v46  ;;  %6299 = vadd.xlane.f32.xlu1 %v6264_v18  ;;  %v6205_v18 = vmul.f32 0.0078125, %v6150_v1 }
0x10c8   : > { %6698 = vmatpush1.bf16.msra.mxu1 %v9570_v43  ;;  %v14277_v49 = vsub.f32 %v14102_v4, %v6206_v53  ;;  %v10389_v53 = vld [vmem:[%s11092_s22 + $0xe8] sm:$0xff] }
0x10c9   : > { %6699 = vmatprep.subr.bf16.mxu1 %v9575_v15  ;;  %v6158_v28 = vpop.xlane.xlu0 %6157 }
0x10cb   : > { %6301 = vadd.xlane.f32.xlu0 %v6265_v40  ;;  %6179 = vadd.xlane.f32.xlu1 %v14228_v33 }
0x10cc   : > { %6700 = vmatpush1.bf16.msra.mxu1 %v9573_v10  ;;  %v6207_v10 = vmul.f32 0.0078125, %v6154_v0 }
0x10cf   : > { %6303 = vadd.xlane.f32.xlu1 %v6266_v25  ;;  %v14267_v25 = vsub.f32 %v14071_v13, %v6205_v18 }
0x10f0   : > { %v9044_v19 = vpop.f32.mrf.mxu0 }
0x10f1   : > { %v6077_v8 = vadd.f32 %v9044_v19, %v14015_v22  ;;  %v6156_v19 = vpop.xlane.xlu1 %6155 }
0x10f2   : > { %v6068_v21 = vpop.f32.mrf.mxu0  ;;  %v6208_v1 = vmul.f32 0.0078125, %v6156_v19 }
0x10f3   : > { %v6069_v57 = vadd.f32 %v14015_v22, %v6068_v21  ;;  %v14270_v32 = vadd.f32 %v10386_v45, %v6077_v8  ;;  %v6270_v8 = vmul.f32 %v14277_v49, %v14277_v49 }
0x10f4   : > { %v9045_v23 = vpop.f32.mrf.mxu0 }
0x10f5   : > { %v14252_v17 = vadd.f32 %v10384_v20, %v6069_v57  ;;  %15571 = vst [vmem:[#allocation70_spill] sm:$0xff] %v14270_v32  ;;  %v6080_v27 = vadd.f32 %v9045_v23, %v14015_v22  ;;  %v6269_v57 = vmul.f32 %v14267_v25, %v14267_v25  ;;  %v14287_v20 = vsub.f32 %v14078_v42, %v6207_v10  ;;  %v6160_v54 = vpop.xlane.xlu1 %6159 }
0x10f6   : > { %v6071_v63 = vpop.f32.mrf.mxu0 }
0x10f7   : > { %v6072_v12 = vadd.f32 %v14015_v22, %v6071_v63  ;;  %6181 = vadd.xlane.f32.xlu0 %v14252_v17  ;;  %v14280_v51 = vadd.f32 %v10387_v41, %v6080_v27  ;;  %v10388_v63 = vld [vmem:[%s11092_s22 + $0xe0] sm:$0xff]  ;;  %v6271_v27 = vmul.f32 %v14287_v20, %v14287_v20  ;;  %v6210_v41 = vmul.f32 0.0078125, %v6160_v54 }
0x10f9   : > { %v14261_v40 = vadd.f32 %v10385_v48, %v6072_v12  ;;  %15572 = vst [vmem:[#allocation80_spill] sm:$0xff] %v14280_v51  ;;  %v14297_v48 = vsub.f32 %v14106_v14, %v6208_v1 }
0x10fb   : > { %6305 = vadd.xlane.f32.xlu0 %v6267_v59  ;;  %6183 = vadd.xlane.f32.xlu1 %v14261_v40  ;;  %v6209_v59 = vmul.f32 0.0078125, %v6158_v28  ;;  %v6272_v10 = vmul.f32 %v14297_v48, %v14297_v48 }
0x10fc   : > { %v9048_v31 = vpop.f32.mrf.mxu0 }
0x10fd   : > { %v6093_v0 = vadd.f32 %v9048_v31, %v14015_v22  ;;  %v10390_v31 = vld [vmem:[%s11092_s22 + $0xf0] sm:$0xff] }
0x10fe   : > { %v6084_v43 = vpop.f32.mrf.mxu0 }
0x10ff   : > { %6185 = vadd.xlane.f32.xlu0 %v14270_v32  ;;  %6307 = vadd.xlane.f32.xlu1 %v6268_v50  ;;  %v6085_v21 = vadd.f32 %v14015_v22, %v6084_v43  ;;  %v6162_v50 = vpop.xlane.xlu0 %6161  ;;  %v14307_v43 = vsub.f32 %v14112_v24, %v6209_v59 }
0x1100   : > { %v9049_v15 = vpop.f32.mrf.mxu0  ;;  %v6211_v19 = vmul.f32 0.0078125, %v6162_v50 }
0x1101   : > { %v14290_v12 = vadd.f32 %v10388_v63, %v6085_v21  ;;  %v14312_v21 = vadd.f32 %v10390_v31, %v6093_v0  ;;  %v6273_v1 = vmul.f32 %v14307_v43, %v14307_v43  ;;  %v14322_v63 = vsub.f32 %v14121_v44, %v6210_v41 }
0x1102   : > { %v6087_v23 = vpop.f32.mrf.mxu0  ;;  %v14319_v28 = vsub.f32 %v14117_v47, %v6211_v19 }
0x1103   : > { %6309 = vadd.xlane.f32.xlu0 %v6269_v57  ;;  %6187 = vadd.xlane.f32.xlu1 %v14280_v51  ;;  %15573 = vst [vmem:[#allocation78_spill] sm:$0xff] %v14290_v12  ;;  %v6088_v18 = vadd.f32 %v14015_v22, %v6087_v23  ;;  %v6096_v57 = vadd.f32 %v9049_v15, %v14015_v22  ;;  %v6164_v23 = vpop.xlane.xlu1 %6163 }
0x1104   : > { %v6275_v15 = vmul.f32 %v14319_v28, %v14319_v28  ;;  %v6274_v54 = vmul.f32 %v14322_v63, %v14322_v63 }
0x1105   : > { %v14301_v45 = vadd.f32 %v10389_v53, %v6088_v18  ;;  %v6212_v18 = vmul.f32 0.0078125, %v6164_v23 }
0x1107   : > { %6189 = vadd.xlane.f32.xlu0 %v14290_v12  ;;  %6311 = vadd.xlane.f32.xlu1 %v6270_v8  ;;  %15574 = vst [vmem:[#allocation85_spill] sm:$0xff] %v14301_v45  ;;  %v10391_v8 = vld [vmem:[%s11092_s22 + $0xf8] sm:$0xff]  ;;  %v14329_v22 = vsub.f32 %v14126_v6, %v6212_v18 }
0x1108   : > { %v14325_v59 = vadd.f32 %v10391_v8, %v6096_v57 }
0x1109   : > { %v6276_v0 = vmul.f32 %v14329_v22, %v14329_v22 }
0x110a   : > { %15575 = vst [vmem:[#allocation81_spill] sm:$0xff] %v14325_v59 }
0x110b   : > { %6313 = vadd.xlane.f32.xlu0 %v6271_v27  ;;  %6191 = vadd.xlane.f32.xlu1 %v14301_v45 }
0x110f   : > { %6193 = vadd.xlane.f32.xlu0 %v14312_v21  ;;  %6315 = vadd.xlane.f32.xlu1 %v6272_v10 }
0x1113   : > { %6317 = vadd.xlane.f32.xlu0 %v6273_v1  ;;  %6195 = vadd.xlane.f32.xlu1 %v14325_v59 }
0x1117   : > { %6321 = vadd.xlane.f32.xlu0 %v6275_v15  ;;  %6319 = vadd.xlane.f32.xlu1 %v6274_v54 }
0x111b   : > { %6323 = vadd.xlane.f32.xlu1 %v6276_v0 }
0x113c   : > { %v6166_v53 = vpop.xlane.xlu0 %6165 }
0x113d   : > { %v6213_v27 = vmul.f32 0.0078125, %v6166_v53 }
0x113f   : > { %v14338_v50 = vsub.f32 %v14164_v37, %v6213_v27 }
0x1140   : > { %v6170_v10 = vpop.xlane.xlu0 %6169  ;;  %v6168_v19 = vpop.xlane.xlu1 %6167 }
0x1141   : > { %v6215_v41 = vmul.f32 0.0078125, %v6170_v10  ;;  %v6214_v31 = vmul.f32 0.0078125, %v6168_v19  ;;  %v6277_v57 = vmul.f32 %v14338_v50, %v14338_v50 }
0x1143   : > { %v14343_v23 = vsub.f32 %v14172_v16, %v6215_v41  ;;  %v14346_v1 = vsub.f32 %v14176_v2, %v6214_v31  ;;  %6325 = vadd.xlane.f32.xlu0 %v6277_v57 }
0x1144   : > { %v6294_v18 = vpop.xlane.xlu0 %6293  ;;  %v6172_v8 = vpop.xlane.xlu1 %6171 }
0x1145   : > { %v6357_v15 = vmul.f32 0.0078125, %v6294_v18  ;;  %v6216_v54 = vmul.f32 0.0078125, %v6172_v8  ;;  %v6279_v0 = vmul.f32 %v14343_v23, %v14343_v23  ;;  %v6278_v53 = vmul.f32 %v14346_v1, %v14346_v1 }
0x1147   : > { %v6389_v27 = vadd.f32 1e-05, %v6357_v15  ;;  %v14353_v10 = vsub.f32 %v14184_v11, %v6216_v54  ;;  %6329 = vadd.xlane.f32.xlu0 %v6279_v0  ;;  %6327 = vadd.xlane.f32.xlu1 %v6278_v53 }
0x1148   : > { %v6174_v19 = vpop.xlane.xlu0 %6173  ;;  %v6296_v41 = vpop.xlane.xlu1 %6295 }
0x1149   : > { %10168 = vrsqrt.f32 %v6389_v27  ;;  %v6217_v31 = vmul.f32 0.0078125, %v6174_v19  ;;  %v6358_v57 = vmul.f32 0.0078125, %v6296_v41  ;;  %v6280_v18 = vmul.f32 %v14353_v10, %v14353_v10 }
0x114b   : > { %v14358_v8 = vsub.f32 %v14194_v60, %v6217_v31  ;;  %v6390_v16 = vadd.f32 1e-05, %v6358_v57  ;;  %6331 = vadd.xlane.f32.xlu1 %v6280_v18 }
0x114c   : > { %v6298_v2 = vpop.xlane.xlu0 %6297  ;;  %v6176_v15 = vpop.xlane.xlu1 %6175 }
0x114d   : > { %10170 = vrsqrt.f32 %v6390_v16  ;;  %v6359_v54 = vmul.f32 0.0078125, %v6298_v2  ;;  %v6218_v11 = vmul.f32 0.0078125, %v6176_v15  ;;  %v6281_v0 = vmul.f32 %v14358_v8, %v14358_v8 }
0x114f   : > { %v6391_v53 = vadd.f32 1e-05, %v6359_v54  ;;  %v14363_v27 = vsub.f32 %v14205_v34, %v6218_v11  ;;  %6333 = vadd.xlane.f32.xlu0 %v6281_v0 }
0x1150   : > { %v6178_v19 = vpop.xlane.xlu0 %6177  ;;  %v6300_v41 = vpop.xlane.xlu1 %6299 }
0x1151   : > { %10172 = vrsqrt.f32 %v6391_v53  ;;  %v6219_v31 = vmul.f32 0.0078125, %v6178_v19  ;;  %v6360_v60 = vmul.f32 0.0078125, %v6300_v41  ;;  %v6282_v57 = vmul.f32 %v14363_v27, %v14363_v27 }
0x1153   : > { %v14368_v16 = vsub.f32 %v14216_v46, %v6219_v31  ;;  %v6392_v2 = vadd.f32 1e-05, %v6360_v60  ;;  %6335 = vadd.xlane.f32.xlu1 %v6282_v57  ;;  %v14381_v60 = vld [vmem:[%s710_s30] ss:$0 sm:$0xff] }
0x1154   : > { %v6302_v18 = vpop.xlane.xlu0 %6301  ;;  %v6180_v15 = vpop.xlane.xlu1 %6179 }
0x1155   : > { %10174 = vrsqrt.f32 %v6392_v2  ;;  %v6361_v11 = vmul.f32 0.0078125, %v6302_v18  ;;  %v6220_v54 = vmul.f32 0.0078125, %v6180_v15  ;;  %v6283_v0 = vmul.f32 %v14368_v16, %v14368_v16 }
0x1156   : > { %v10169_v53 = vpop.eup %10168 }
0x1157   : > { %v6453_v19 = vmul.f32 %v10169_v53, %v14169_v35  ;;  %v6393_v41 = vadd.f32 1e-05, %v6361_v11  ;;  %v14374_v34 = vsub.f32 %v14228_v33, %v6220_v54  ;;  %6337 = vadd.xlane.f32.xlu0 %v6283_v0  ;;  %v14392_v54 = vld [vmem:[%s713_s8] ss:$0 sm:$0xff] }
0x1158   : > { %v6304_v31 = vpop.xlane.xlu1 %6303 }
0x1159   : > { %10176 = vrsqrt.f32 %v6393_v41  ;;  %v6362_v57 = vmul.f32 0.0078125, %v6304_v31  ;;  %v6284_v2 = vmul.f32 %v14374_v34, %v14374_v34  ;;  %v6491_v35 = vmul.f32 %v14381_v60, %v6453_v19 }
0x115a   : > { %v10171_v18 = vpop.eup %10170 }
0x115b   : > { %v6454_v15 = vmul.f32 %v10171_v18, %v14181_v58  ;;  %v6394_v11 = vadd.f32 1e-05, %v6362_v57  ;;  %6339 = vadd.xlane.f32.xlu1 %v6284_v2  ;;  %v6529_v41 = vadd.f32 %v14392_v54, %v6491_v35 }
0x115d   : > { %v6492_v0 = vmul.f32 %v14381_v60, %v6454_v15  ;;  %10178 = vrsqrt.f32 %v6394_v11 }
0x115e   : > { %v10173_v53 = vpop.eup %10172 }
0x115f   : > { %v6530_v31 = vadd.f32 %v14392_v54, %v6492_v0  ;;  %v6455_v19 = vmul.f32 %v10173_v53, %v14191_v5 }
0x1161   : > { %v6561_v33 = vpack.c.bf16 %v6530_v31, %v6529_v41  ;;  %v6493_v2 = vmul.f32 %v14381_v60, %v6455_v19 }
0x1162   : > { %v10175_v58 = vpop.eup %10174 }
0x1163   : > { %6718 = vmatmul.mubr.bf16.vlgmr.msra.gmra.mxu1 %v6561_v33  ;;  %v6456_v57 = vmul.f32 %v10175_v58, %v14201_v29  ;;  %v6531_v11 = vadd.f32 %v14392_v54, %v6493_v2 }
0x1164   : > { %6727 = vmatprep.mubr.bf16.mxu1 %v15501_v30 }
0x1165   : > { %v6494_v18 = vmul.f32 %v14381_v60, %v6456_v57 }
0x1166   : > { %v10177_v15 = vpop.eup %10176 }
0x1167   : > { %v6532_v35 = vadd.f32 %v14392_v54, %v6494_v18  ;;  %v6457_v0 = vmul.f32 %v10177_v15, %v14213_v56 }
0x1169   : > { %v6562_v46 = vpack.c.bf16 %v6532_v35, %v6531_v11  ;;  %v6495_v29 = vmul.f32 %v14381_v60, %v6457_v0 }
0x116a   : > { %v10179_v5 = vpop.eup %10178 }
0x116b   : > { %6728 = vmatmul.mubr.bf16.gmra.mxu1 %v6562_v46  ;;  %v6458_v33 = vmul.f32 %v10179_v5, %v14225_v61  ;;  %v6533_v41 = vadd.f32 %v14392_v54, %v6495_v29 }
0x116c   : > { %6737 = vmatprep.mubr.bf16.mxu1 %v15501_v30 }
0x116d   : > { %v6496_v53 = vmul.f32 %v14381_v60, %v6458_v33 }
0x116f   : > { %v6534_v31 = vadd.f32 %v14392_v54, %v6496_v53 }
0x1171   : > { %v6563_v19 = vpack.c.bf16 %v6534_v31, %v6533_v41 }
0x1173   : > { %6738 = vmatmul.mubr.bf16.gmra.mxu1 %v6563_v19 }
0x1174   : > { %6747 = vmatprep.mubr.bf16.mxu1 %v15501_v30 }
0x1180   : > { %v6182_v56 = vpop.xlane.xlu0 %6181 }
0x1181   : > { %v6221_v58 = vmul.f32 0.0078125, %v6182_v56 }
0x1183   : > { %v14413_v46 = vsub.f32 %v14252_v17, %v6221_v58 }
0x1184   : > { %v6306_v61 = vpop.xlane.xlu0 %6305  ;;  %v6184_v57 = vpop.xlane.xlu1 %6183 }
0x1185   : > { %v6363_v2 = vmul.f32 0.0078125, %v6306_v61  ;;  %v6222_v18 = vmul.f32 0.0078125, %v6184_v57  ;;  %v6285_v15 = vmul.f32 %v14413_v46, %v14413_v46 }
0x1187   : > { %v6395_v11 = vadd.f32 1e-05, %v6363_v2  ;;  %v14418_v35 = vsub.f32 %v14261_v40, %v6222_v18  ;;  %6341 = vadd.xlane.f32.xlu0 %v6285_v15 }
0x1188   : > { %v6186_v0 = vpop.xlane.xlu0 %6185  ;;  %v6308_v5 = vpop.xlane.xlu1 %6307 }
0x1189   : > { %10180 = vrsqrt.f32 %v6395_v11  ;;  %v6223_v33 = vmul.f32 0.0078125, %v6186_v0  ;;  %v6364_v29 = vmul.f32 0.0078125, %v6308_v5  ;;  %v6286_v53 = vmul.f32 %v14418_v35, %v14418_v35 }
0x118b   : > { %v14423_v41 = vsub.f32 %v14270_v32, %v6223_v33  ;;  %v6396_v31 = vadd.f32 1e-05, %v6364_v29  ;;  %6343 = vadd.xlane.f32.xlu1 %v6286_v53 }
0x118c   : > { %v6310_v19 = vpop.xlane.xlu0 %6309  ;;  %v6188_v56 = vpop.xlane.xlu1 %6187 }
0x118d   : > { %10182 = vrsqrt.f32 %v6396_v31  ;;  %v6365_v58 = vmul.f32 0.0078125, %v6310_v19  ;;  %v6224_v61 = vmul.f32 0.0078125, %v6188_v56  ;;  %v6287_v57 = vmul.f32 %v14423_v41, %v14423_v41 }
0x118f   : > { %v6397_v2 = vadd.f32 1e-05, %v6365_v58  ;;  %v14428_v18 = vsub.f32 %v14280_v51, %v6224_v61  ;;  %6345 = vadd.xlane.f32.xlu0 %v6287_v57 }
0x1190   : > { %v6190_v15 = vpop.xlane.xlu0 %6189  ;;  %v6312_v11 = vpop.xlane.xlu1 %6311 }
0x1191   : > { %10184 = vrsqrt.f32 %v6397_v2  ;;  %v6225_v0 = vmul.f32 0.0078125, %v6190_v15  ;;  %v6366_v5 = vmul.f32 0.0078125, %v6312_v11  ;;  %v6288_v33 = vmul.f32 %v14428_v18, %v14428_v18 }
0x1193   : > { %v14433_v29 = vsub.f32 %v14290_v12, %v6225_v0  ;;  %v6398_v53 = vadd.f32 1e-05, %v6366_v5  ;;  %6347 = vadd.xlane.f32.xlu1 %v6288_v33 }
0x1194   : > { %v6314_v31 = vpop.xlane.xlu0 %6313  ;;  %v6192_v19 = vpop.xlane.xlu1 %6191 }
0x1195   : > { %10186 = vrsqrt.f32 %v6398_v53  ;;  %v6367_v56 = vmul.f32 0.0078125, %v6314_v31  ;;  %v6226_v58 = vmul.f32 0.0078125, %v6192_v19  ;;  %v6289_v61 = vmul.f32 %v14433_v29, %v14433_v29 }
0x1196   : > { %v10181_v57 = vpop.eup %10180 }
0x1197   : > { %v6399_v2 = vadd.f32 1e-05, %v6367_v56  ;;  %v14438_v15 = vsub.f32 %v14301_v45, %v6226_v58  ;;  %6349 = vadd.xlane.f32.xlu0 %v6289_v61  ;;  %v6459_v0 = vmul.f32 %v10181_v57, %v14249_v36 }
0x1198   : > { %v6194_v11 = vpop.xlane.xlu0 %6193  ;;  %v6316_v51 = vpop.xlane.xlu1 %6315 }
0x1199   : > { %10188 = vrsqrt.f32 %v6399_v2  ;;  %v6227_v5 = vmul.f32 0.0078125, %v6194_v11  ;;  %v6368_v33 = vmul.f32 0.0078125, %v6316_v51  ;;  %v6290_v53 = vmul.f32 %v14438_v15, %v14438_v15 }
0x119a   : > { %v10183_v31 = vpop.eup %10182  ;;  %v6497_v45 = vmul.f32 %v14381_v60, %v6459_v0 }
0x119b   : > { %v14444_v19 = vsub.f32 %v14312_v21, %v6227_v5  ;;  %v6400_v12 = vadd.f32 1e-05, %v6368_v33  ;;  %6351 = vadd.xlane.f32.xlu1 %v6290_v53  ;;  %v6460_v56 = vmul.f32 %v10183_v31, %v14257_v7 }
0x119c   : > { %v6318_v58 = vpop.xlane.xlu0 %6317  ;;  %v6196_v61 = vpop.xlane.xlu1 %6195 }
0x119d   : > { %10190 = vrsqrt.f32 %v6400_v12  ;;  %v6369_v36 = vmul.f32 0.0078125, %v6318_v58  ;;  %v6228_v57 = vmul.f32 0.0078125, %v6196_v61  ;;  %v6291_v51 = vmul.f32 %v14444_v19, %v14444_v19 }
0x119e   : > { %v10185_v2 = vpop.eup %10184  ;;  %v6498_v11 = vmul.f32 %v14381_v60, %v6460_v56  ;;  %v6535_v12 = vadd.f32 %v14392_v54, %v6497_v45 }
0x119f   : > { %v6401_v32 = vadd.f32 1e-05, %v6369_v36  ;;  %v14452_v5 = vsub.f32 %v14325_v59, %v6228_v57  ;;  %6353 = vadd.xlane.f32.xlu0 %v6291_v51  ;;  %v6461_v7 = vmul.f32 %v10185_v2, %v14267_v25 }
0x11a0   : > { %v6322_v33 = vpop.xlane.xlu0 %6321  ;;  %v6320_v53 = vpop.xlane.xlu1 %6319  ;;  %v6536_v0 = vadd.f32 %v14392_v54, %v6498_v11  ;;  %v9576_v11 = vld [vmem:[%s11054_s7 + $0x78] sm:$0xff]  }
0x11a1   : > { %10192 = vrsqrt.f32 %v6401_v32  ;;  %v6371_v31 = vmul.f32 0.0078125, %v6322_v33  ;;  %v6370_v58 = vmul.f32 0.0078125, %v6320_v53  ;;  %v6292_v56 = vmul.f32 %v14452_v5, %v14452_v5  ;;  %v9577_v32 = vld [vmem:[%s11054_s7 + $0x38] sm:$0xff]   ;;  %8330 = vmatprep.subr.bf16.mxu0 %v9576_v11 }
0x11a2   : > { %v10187_v61 = vpop.eup %10186  ;;  %v6564_v36 = vpack.c.bf16 %v6536_v0, %v6535_v12  ;;  %v6499_v51 = vmul.f32 %v14381_v60, %v6461_v7  ;;  %8331 = vmatpush3.bf16.msra.mxu0 %v9577_v32  ;;  %v9583_v32 = vld [vmem:[%s11054_s7 + $0x20] sm:$0xff]  }
0x11a3   : > { %v6402_v57 = vadd.f32 1e-05, %v6370_v58  ;;  %6355 = vadd.xlane.f32.xlu1 %v6292_v56  ;;  %v6462_v25 = vmul.f32 %v10187_v61, %v14277_v49  ;;  %v6403_v2 = vadd.f32 1e-05, %v6371_v31  ;;  %v9578_v31 = vld [vmem:[%s11054_s7 + $0x70] sm:$0xff]  }
0x11a4   : > { %6748 = vmatmul.mubr.bf16.gmra.mxu1 %v6564_v36  ;;  %v6324_v45 = vpop.xlane.xlu1 %6323  ;;  %v6537_v49 = vadd.f32 %v14392_v54, %v6499_v51  ;;  %v9579_v58 = vld [vmem:[%s11054_s7 + $0x30] sm:$0xff]   ;;  %8332 = vmatprep.subr.bf16.mxu0 %v9578_v31  ;;  %v9581_v51 = vld [vmem:[%s11054_s7 + $0x28] sm:$0xff]  }
0x11a5   : > { %v6372_v33 = vmul.f32 0.0078125, %v6324_v45  ;;  %6757 = vmatprep.mubr.bf16.mxu1 %v15501_v30  ;;  %v6500_v53 = vmul.f32 %v14381_v60, %v6462_v25  ;;  %10194 = vrsqrt.f32 %v6402_v57  ;;  %v9580_v25 = vld [vmem:[%s11054_s7 + $0x68] sm:$0xff]  }
0x11a6   : > { %v10189_v59 = vpop.eup %10188  ;;  %10196 = vrsqrt.f32 %v6403_v2  ;;  %8333 = vmatpush3.bf16.msra.mxu0 %v9579_v58 }
0x11a7   : > { %v6404_v12 = vadd.f32 1e-05, %v6372_v33  ;;  %v6538_v7 = vadd.f32 %v14392_v54, %v6500_v53  ;;  %v6463_v0 = vmul.f32 %v10189_v59, %v14287_v20  ;;  %8334 = vmatprep.subr.bf16.mxu0 %v9580_v25  ;;  %v9587_v25 = vld [vmem:[%s11054_s7 + $0x10] sm:$0xff]  }
0x11a9   : > { %10198 = vrsqrt.f32 %v6404_v12  ;;  %v6565_v56 = vpack.c.bf16 %v6538_v7, %v6537_v49  ;;  %v6501_v57 = vmul.f32 %v14381_v60, %v6463_v0  ;;  %v9584_v12 = vld [vmem:[%s11054_s7 + $0x58] sm:$0xff]  }
0x11aa   : > { %v10191_v61 = vpop.eup %10190  ;;  %8335 = vmatpush3.bf16.msra.mxu0 %v9581_v51  ;;  %v9585_v0 = vld [vmem:[%s11054_s7 + $0x18] sm:$0xff]  }
0x11ab   : > { %v6464_v36 = vmul.f32 %v10191_v61, %v14297_v48  ;;  %v6539_v2 = vadd.f32 %v14392_v54, %v6501_v57  ;;  %v9582_v48 = vld [vmem:[%s11054_s7 + $0x60] sm:$0xff]   ;;  %v9586_v61 = vld [vmem:[%s11054_s7 + $0x50] sm:$0xff]  }
0x11ac   : > { %6758 = vmatmul.mubr.bf16.gmra.mxu1 %v6565_v56  ;;  %8336 = vmatprep.subr.bf16.mxu0 %v9582_v48  ;;  %v9590_v48 = vld [vmem:[%s11054_s7 + $0x40] sm:$0xff]  }
0x11ad   : > { %6767 = vmatprep.mubr.bf16.mxu1 %v15501_v30  ;;  %v6502_v20 = vmul.f32 %v14381_v60, %v6464_v36 }
0x11ae   : > { %v10193_v59 = vpop.eup %10192  ;;  %8337 = vmatpush3.bf16.msra.mxu0 %v9583_v32 }
0x11af   : > { %v6540_v45 = vadd.f32 %v14392_v54, %v6502_v20  ;;  %v6465_v11 = vmul.f32 %v10193_v59, %v14307_v43  ;;  %8338 = vmatprep.subr.bf16.mxu0 %v9584_v12  ;;  %v9588_v59 = vld [vmem:[%s11054_s7 + $0x48] sm:$0xff]  }
0x11b1   : > { %v6566_v33 = vpack.c.bf16 %v6540_v45, %v6539_v2  ;;  %v6503_v7 = vmul.f32 %v14381_v60, %v6465_v11  ;;  %v9589_v2 = vld [vmem:[%s11054_s7 + $0x8] sm:$0xff]   ;;  %v9591_v11 = vld [vmem:[%s11054_s7] sm:$0xff]  }
0x11b2   : > { %v10195_v53 = vpop.eup %10194  ;;  %8339 = vmatpush3.bf16.msra.mxu0 %v9585_v0 }
0x11b3   : > { %v6466_v49 = vmul.f32 %v10195_v53, %v14322_v63  ;;  %v10197_v31 = vpop.eup %10196  ;;  %v6541_v36 = vadd.f32 %v14392_v54, %v6503_v7  ;;  %8340 = vmatprep.subr.bf16.mxu0 %v9586_v61 }
0x11b4   : > { %6768 = vmatmul.mubr.bf16.gmra.mxu1 %v6566_v33  ;;  %v6467_v57 = vmul.f32 %v10197_v31, %v14319_v28 }
0x11b5   : > { %6777 = vmatprep.mubr.bf16.mxu1 %v15501_v30  ;;  %v6504_v58 = vmul.f32 %v14381_v60, %v6466_v49 }
0x11b6   : > { %v10199_v43 = vpop.eup %10198  ;;  %8341 = vmatpush3.bf16.msra.mxu0 %v9587_v25 }
0x11b7   : > { %v6468_v56 = vmul.f32 %v10199_v43, %v14329_v22  ;;  %v6542_v63 = vadd.f32 %v14392_v54, %v6504_v58  ;;  %v6505_v22 = vmul.f32 %v14381_v60, %v6467_v57  ;;  %8342 = vmatprep.subr.bf16.mxu0 %v9588_v59 }
0x11b9   : > { %v6567_v51 = vpack.c.bf16 %v6542_v63, %v6541_v36  ;;  %v6506_v20 = vmul.f32 %v14381_v60, %v6468_v56  ;;  %v6543_v28 = vadd.f32 %v14392_v54, %v6505_v22 }
0x11ba   : > { %8343 = vmatpush3.bf16.msra.mxu0 %v9589_v2 }
0x11bb   : > { %v6544_v45 = vadd.f32 %v14392_v54, %v6506_v20  ;;  %8344 = vmatprep.subr.bf16.mxu0 %v9590_v48 }
0x11bc   : > { %6778 = vmatmul.mubr.bf16.gmra.mxu1 %v6567_v51 }
0x11bd   : > { %6787 = vmatprep.mubr.bf16.mxu1 %v15501_v30  ;;  %v6568_v32 = vpack.c.bf16 %v6544_v45, %v6543_v28 }
0x11be   : > { %8345 = vmatpush3.bf16.msra.mxu0 %v9591_v11 }
0x11c4   : > { %6788 = vmatmul.mubr.bf16.gmra.mxu1 %v6568_v32 }
0x11c5   : > { %6797 = vmatprep.mubr.bf16.mxu1 %v15501_v30 }
0x11cc   : > { %v6326_v33 = vpop.xlane.xlu0 %6325 }
0x11cd   : > { %v6373_v53 = vmul.f32 0.0078125, %v6326_v33 }
0x11cf   : > { %v6405_v12 = vadd.f32 1e-05, %v6373_v53 }
0x11d0   : > { %v6330_v49 = vpop.xlane.xlu0 %6329  ;;  %v6328_v7 = vpop.xlane.xlu1 %6327 }
0x11d1   : > { %10200 = vrsqrt.f32 %v6405_v12  ;;  %v6375_v0 = vmul.f32 0.0078125, %v6330_v49  ;;  %v6374_v31 = vmul.f32 0.0078125, %v6328_v7 }
0x11d3   : > { %v6406_v43 = vadd.f32 1e-05, %v6374_v31  ;;  %v6407_v58 = vadd.f32 1e-05, %v6375_v0 }
0x11d4   : > { %v6332_v56 = vpop.xlane.xlu1 %6331 }
0x11d5   : > { %v6376_v61 = vmul.f32 0.0078125, %v6332_v56  ;;  %10202 = vrsqrt.f32 %v6406_v43 }
0x11d6   : > { %10204 = vrsqrt.f32 %v6407_v58 }
0x11d7   : > { %v6408_v36 = vadd.f32 1e-05, %v6376_v61 }
0x11d8   : > { %v6334_v63 = vpop.xlane.xlu0 %6333 }
0x11d9   : > { %10206 = vrsqrt.f32 %v6408_v36  ;;  %v6377_v57 = vmul.f32 0.0078125, %v6334_v63 }
0x11db   : > { %v6409_v25 = vadd.f32 1e-05, %v6377_v57 }
0x11dc   : > { %v6336_v51 = vpop.xlane.xlu1 %6335 }
0x11dd   : > { %v6378_v20 = vmul.f32 0.0078125, %v6336_v51  ;;  %10208 = vrsqrt.f32 %v6409_v25 }
0x11de   : > { %v10201_v59 = vpop.eup %10200 }
0x11df   : > { %v6410_v22 = vadd.f32 1e-05, %v6378_v20  ;;  %v6469_v45 = vmul.f32 %v10201_v59, %v14338_v50 }
0x11e0   : > { %v6338_v2 = vpop.xlane.xlu0 %6337 }
0x11e1   : > { %10210 = vrsqrt.f32 %v6410_v22  ;;  %v6379_v48 = vmul.f32 0.0078125, %v6338_v2  ;;  %v6507_v53 = vmul.f32 %v14381_v60, %v6469_v45 }
0x11e2   : > { %v10203_v28 = vpop.eup %10202 }
0x11e3   : > { %v6411_v11 = vadd.f32 1e-05, %v6379_v48  ;;  %v6470_v33 = vmul.f32 %v10203_v28, %v14346_v1  ;;  %v10205_v12 = vpop.eup %10204  ;;  %v6545_v50 = vadd.f32 %v14392_v54, %v6507_v53 }
0x11e4   : > { %v6340_v32 = vpop.xlane.xlu1 %6339  ;;  %v6471_v56 = vmul.f32 %v10205_v12, %v14343_v23 }
0x11e5   : > { %v6380_v49 = vmul.f32 0.0078125, %v6340_v32  ;;  %v6508_v0 = vmul.f32 %v14381_v60, %v6470_v33  ;;  %10212 = vrsqrt.f32 %v6411_v11 }
0x11e6   : > { %v10207_v7 = vpop.eup %10206  ;;  %v6509_v36 = vmul.f32 %v14381_v60, %v6471_v56 }
0x11e7   : > { %v6412_v31 = vadd.f32 1e-05, %v6380_v49  ;;  %v6472_v43 = vmul.f32 %v10207_v7, %v14353_v10  ;;  %v6546_v58 = vadd.f32 %v14392_v54, %v6508_v0 }
0x11e8   : > { %v6547_v51 = vadd.f32 %v14392_v54, %v6509_v36 }
0x11e9   : > { %10214 = vrsqrt.f32 %v6412_v31  ;;  %v6569_v61 = vpack.c.bf16 %v6546_v58, %v6545_v50  ;;  %v6510_v1 = vmul.f32 %v14381_v60, %v6472_v43  ;;  %v6595_v31 = vlaneseq }
0x11ea   : > { %v10209_v63 = vpop.eup %10208 }
0x11eb   : > { %6798 = vmatmul.mubr.bf16.gmra.mxu1 %v6569_v61  ;;  %v6548_v10 = vadd.f32 %v14392_v54, %v6510_v1  ;;  %v6473_v20 = vmul.f32 %v10209_v63, %v14358_v8  ;;  %v6596_v56 = vshrl.u32 %v6595_v31, 7 }
0x11ec   : > { %6807 = vmatprep.mubr.bf16.mxu1 %v15501_v30 }
0x11ed   : > { %v6570_v23 = vpack.c.bf16 %v6548_v10, %v6547_v51  ;;  %v6511_v22 = vmul.f32 %v14381_v60, %v6473_v20  ;;  %v6597_v63 = vsub.s32 0, %v6596_v56  ;;  %v6593_v10 = vld [vmem:[%s11088_s21] sm:$0x3] }
0x11ee   : > { %v10211_v57 = vpop.eup %10210 }
0x11ef   : > { %v6474_v25 = vmul.f32 %v10211_v57, %v14363_v27  ;;  %v6549_v27 = vadd.f32 %v14392_v54, %v6511_v22 }
0x11f1   : > { %v6512_v59 = vmul.f32 %v14381_v60, %v6474_v25  ;;  %v6601_v25 = vsub.s32 1, %v6596_v56 }
0x11f2   : > { %v10213_v2 = vpop.eup %10212 }
0x11f3   : > { %6808 = vmatmul.mubr.bf16.gmra.mxu1 %v6570_v23  ;;  %v6550_v48 = vadd.f32 %v14392_v54, %v6512_v59  ;;  %v6475_v11 = vmul.f32 %v10213_v2, %v14368_v16  ;;  %v14532_v23 = vrot.slane %v6593_v10, %v6597_v63  ;;  %v14534_v2 = vrot.slane %v6593_v10, %v6601_v25 }
0x11f4   : > { %6817 = vmatprep.mubr.bf16.mxu1 %v15501_v30 }
0x11f5   : > { %v6571_v32 = vpack.c.bf16 %v6550_v48, %v6549_v27  ;;  %v6513_v33 = vmul.f32 %v14381_v60, %v6475_v11 }
0x11f6   : > { %v10215_v45 = vpop.eup %10214 }
0x11f7   : > { %v6476_v28 = vmul.f32 %v10215_v45, %v14374_v34  ;;  %v6551_v12 = vadd.f32 %v14392_v54, %v6513_v33 }
0x11f9   : > { %v6514_v8 = vmul.f32 %v14381_v60, %v6476_v28 }
0x11fb   : > { %6818 = vmatmul.mubr.bf16.gmra.mxu1 %v6571_v32  ;;  %v6552_v53 = vadd.f32 %v14392_v54, %v6514_v8 }
0x11fc   : > { %6827 = vmatprep.mubr.bf16.mxu1 %v15501_v30 }
0x11fd   : > { %v6572_v49 = vpack.c.bf16 %v6552_v53, %v6551_v12 }
0x1203   : > { %6828 = vmatmul.mubr.bf16.gmra.mxu1 %v6572_v49 }
0x1204   : > { %6837 = vmatprep.mubr.bf16.mxu1 %v15501_v30 }
0x1210   : > { %v6342_v34 = vpop.xlane.xlu0 %6341 }
0x1211   : > { %v6381_v7 = vmul.f32 0.0078125, %v6342_v34 }
0x1213   : > { %v6413_v16 = vadd.f32 1e-05, %v6381_v7 }
0x1214   : > { %v6344_v0 = vpop.xlane.xlu1 %6343 }
0x1215   : > { %10216 = vrsqrt.f32 %v6413_v16  ;;  %v6382_v43 = vmul.f32 0.0078125, %v6344_v0 }
0x1217   : > { %v6414_v50 = vadd.f32 1e-05, %v6382_v43 }
0x1218   : > { %v6346_v58 = vpop.xlane.xlu0 %6345 }
0x1219   : > { %10218 = vrsqrt.f32 %v6414_v50  ;;  %v6383_v61 = vmul.f32 0.0078125, %v6346_v58 }
0x121b   : > { %v6415_v1 = vadd.f32 1e-05, %v6383_v61 }
0x121c   : > { %v6348_v36 = vpop.xlane.xlu1 %6347 }
0x121d   : > { %10220 = vrsqrt.f32 %v6415_v1  ;;  %v6384_v57 = vmul.f32 0.0078125, %v6348_v36 }
0x121f   : > { %v6416_v51 = vadd.f32 1e-05, %v6384_v57 }
0x1220   : > { %v6350_v20 = vpop.xlane.xlu0 %6349 }
0x1221   : > { %10222 = vrsqrt.f32 %v6416_v51  ;;  %v6385_v59 = vmul.f32 0.0078125, %v6350_v20 }
0x1222   : > { %v10217_v22 = vpop.eup %10216 }
0x1223   : > { %v6417_v45 = vadd.f32 1e-05, %v6385_v59  ;;  %v6719_v48 = vpop.f32.mrf.mxu1  ;;  %v6477_v28 = vmul.f32 %v10217_v22, %v14413_v46 }
0x1224   : > { %v14538_v27 = vadd.f32 %v6719_v48, %v14532_v23  ;;  %v6352_v11 = vpop.xlane.xlu1 %6351 }
0x1225   : > { %10224 = vrsqrt.f32 %v6417_v45  ;;  %v6386_v32 = vmul.f32 0.0078125, %v6352_v11  ;;  %v6721_v8 = vpop.f32.mrf.mxu1  ;;  %v6515_v16 = vmul.f32 %v14381_v60, %v6477_v28 }
0x1226   : > { %v10219_v33 = vpop.eup %10218  ;;  %v6942_v53 = vmul.f32 0.70710677, %v14538_v27  ;;  %v14542_v12 = vadd.f32 %v6721_v8, %v14534_v2 }
0x1227   : > { %v6418_v49 = vadd.f32 1e-05, %v6386_v32  ;;  %v6723_v34 = vpop.f32.mrf.mxu1  ;;  %v6478_v7 = vmul.f32 %v10219_v33, %v14418_v35  ;;  %v6553_v63 = vadd.f32 %v14392_v54, %v6515_v16 }
0x1228   : > { %10226 = verf.f32 %v6942_v53  ;;  %v6943_v46 = vmul.f32 0.70710677, %v14542_v12  ;;  %v6354_v0 = vpop.xlane.xlu0 %6353  ;;  %v6724_v31 = vadd.f32 %v6723_v34, %v14532_v23 }
0x1229   : > { %10228 = vrsqrt.f32 %v6418_v49  ;;  %v6387_v43 = vmul.f32 0.0078125, %v6354_v0  ;;  %v6725_v50 = vpop.f32.mrf.mxu1  ;;  %v6516_v58 = vmul.f32 %v14381_v60, %v6478_v7 }
0x122a   : > { %v10221_v56 = vpop.eup %10220  ;;  %10230 = verf.f32 %v6943_v46  ;;  %v6944_v61 = vmul.f32 0.70710677, %v6724_v31  ;;  %v14550_v1 = vadd.f32 %v6725_v50, %v14534_v2 }
0x122b   : > { %v6419_v35 = vadd.f32 1e-05, %v6387_v43  ;;  %v6729_v36 = vpop.f32.mrf.mxu1  ;;  %v6554_v57 = vadd.f32 %v14392_v54, %v6516_v58  ;;  %v6479_v10 = vmul.f32 %v10221_v56, %v14423_v41 }
0x122c   : > { %10232 = verf.f32 %v6944_v61  ;;  %v6945_v25 = vmul.f32 0.70710677, %v14550_v1  ;;  %v14557_v51 = vadd.f32 %v6729_v36, %v14532_v23  ;;  %v6356_v20 = vpop.xlane.xlu1 %6355 }
0x122d   : > { %10234 = vrsqrt.f32 %v6419_v35  ;;  %v6388_v59 = vmul.f32 0.0078125, %v6356_v20  ;;  %v6731_v22 = vpop.f32.mrf.mxu1  ;;  %v6573_v45 = vpack.c.bf16 %v6554_v57, %v6553_v63  ;;  %v6517_v33 = vmul.f32 %v14381_v60, %v6479_v10 }
0x122e   : > { %v10223_v48 = vpop.eup %10222  ;;  %10236 = verf.f32 %v6945_v25  ;;  %v14560_v28 = vadd.f32 %v6731_v22, %v14534_v2  ;;  %v6946_v11 = vmul.f32 0.70710677, %v14557_v51 }
0x122f   : > { %v6420_v32 = vadd.f32 1e-05, %v6388_v59  ;;  %6838 = vmatmul.mubr.bf16.gmra.mxu1 %v6573_v45  ;;  %v6733_v41 = vpop.f32.mrf.mxu1  ;;  %v6480_v8 = vmul.f32 %v10223_v48, %v14428_v18  ;;  %v6555_v43 = vadd.f32 %v14392_v54, %v6517_v33  ;;  %v6880_v45 = vmul.f32 0.5, %v6724_v31 }
0x1230   : > { %v6947_v53 = vmul.f32 0.70710677, %v14560_v28  ;;  %v14567_v49 = vadd.f32 %v6733_v41, %v14532_v23  ;;  %6847 = vmatprep.mubr.bf16.mxu1 %v15501_v30 }
0x1231   : > { %10238 = vrsqrt.f32 %v6420_v32  ;;  %v6735_v34 = vpop.f32.mrf.mxu1  ;;  %v6518_v7 = vmul.f32 %v14381_v60, %v6480_v8 }
0x1232   : > { %v10225_v16 = vpop.eup %10224  ;;  %10240 = verf.f32 %v6947_v53  ;;  %v6948_v46 = vmul.f32 0.70710677, %v14567_v49  ;;  %v14573_v0 = vadd.f32 %v6735_v34, %v14534_v2 }
0x1233   : > { %10242 = verf.f32 %v6946_v11  ;;  %v6739_v18 = vpop.f32.mrf.mxu1  ;;  %v6556_v50 = vadd.f32 %v14392_v54, %v6518_v7  ;;  %v6481_v58 = vmul.f32 %v10225_v16, %v14433_v29 }
0x1234   : > { %10244 = verf.f32 %v6948_v46  ;;  %v6949_v56 = vmul.f32 0.70710677, %v14573_v0  ;;  %v14580_v61 = vadd.f32 %v6739_v18, %v14532_v23 }
0x1235   : > { %v10227_v35 = vpop.eup %10226  ;;  %v6741_v36 = vpop.f32.mrf.mxu1  ;;  %v6574_v63 = vpack.c.bf16 %v6556_v50, %v6555_v43  ;;  %v6519_v57 = vmul.f32 %v14381_v60, %v6481_v58  ;;  %v6879_v50 = vmul.f32 0.5, %v14542_v12  ;;  %v6881_v58 = vmul.f32 0.5, %v14550_v1 }
0x1236   : > { %v10229_v10 = vpop.eup %10228  ;;  %10246 = verf.f32 %v6949_v56  ;;  %v6950_v25 = vmul.f32 0.70710677, %v14580_v61  ;;  %v14585_v59 = vadd.f32 %v6741_v36, %v14534_v2  ;;  %v7070_v32 = vadd.f32 1.0, %v10227_v35 }
0x1237   : > { %v10231_v20 = vpop.eup %10230  ;;  %6848 = vmatmul.mubr.bf16.gmra.mxu1 %v6574_v63  ;;  %v6743_v29 = vpop.f32.mrf.mxu1  ;;  %v6482_v22 = vmul.f32 %v10229_v10, %v14438_v15  ;;  %v6557_v53 = vadd.f32 %v14392_v54, %v6519_v57  ;;  %v6878_v35 = vmul.f32 0.5, %v14538_v27 }
0x1238   : > { %v14589_v48 = vadd.f32 %v6743_v29, %v14532_v23  ;;  %6857 = vmatprep.mubr.bf16.mxu1 %v15501_v30  ;;  %v6951_v41 = vmul.f32 0.70710677, %v14585_v59  ;;  %v7071_v7 = vadd.f32 1.0, %v10231_v20  ;;  %10248 = verf.f32 %v6950_v25 }
0x1239   : > { %v10233_v11 = vpop.eup %10232  ;;  %v6745_v8 = vpop.f32.mrf.mxu1  ;;  %v6520_v33 = vmul.f32 %v14381_v60, %v6482_v22  ;;  %v7134_v22 = vmul.f32 %v7070_v32, %v6878_v35  ;;  %v6884_v32 = vmul.f32 0.5, %v14567_v49 }
0x123a   : > { %v10235_v34 = vpop.eup %10234  ;;  %v7072_v16 = vadd.f32 1.0, %v10233_v11  ;;  %v6952_v15 = vmul.f32 0.70710677, %v14589_v48  ;;  %10250 = verf.f32 %v6951_v41  ;;  %v6746_v46 = vadd.f32 %v6745_v8, %v14534_v2 }
0x123b   : > { %v10237_v31 = vpop.eup %10236  ;;  %v6558_v18 = vadd.f32 %v14392_v54, %v6520_v33  ;;  %v6483_v43 = vmul.f32 %v10235_v34, %v14444_v19  ;;  %v7135_v25 = vmul.f32 %v7071_v7, %v6879_v50 }
0x123c   : > { %v7073_v56 = vadd.f32 1.0, %v10237_v31  ;;  %10252 = verf.f32 %v6952_v15  ;;  %v7136_v36 = vmul.f32 %v7072_v16, %v6880_v45  ;;  %v6953_v63 = vmul.f32 0.70710677, %v6746_v46 }
0x123d   : > { %v6575_v57 = vpack.c.bf16 %v6558_v18, %v6557_v53  ;;  %v6521_v12 = vmul.f32 %v14381_v60, %v6483_v43  ;;  %v6883_v16 = vmul.f32 0.5, %v14560_v28  ;;  %v6882_v31 = vmul.f32 0.5, %v14557_v51 }
0x123e   : > { %v10239_v10 = vpop.eup %10238  ;;  %v7137_v20 = vmul.f32 %v7073_v56, %v6881_v58  ;;  %10254 = verf.f32 %v6953_v63  ;;  %v7198_v27 = vpack.c.bf16 %v7136_v36, %v7134_v22  ;;  %v6887_v51 = vmul.f32 0.5, %v14585_v59 }
0x123f   : > { %v10241_v29 = vpop.eup %10240  ;;  %6858 = vmatmul.mubr.bf16.gmra.mxu1 %v6575_v57  ;;  %v6484_v19 = vmul.f32 %v10239_v10, %v14452_v5  ;;  %v6559_v5 = vadd.f32 %v14392_v54, %v6521_v12  ;;  %v6888_v10 = vmul.f32 0.5, %v14589_v48 }
0x1240   : > { %v10243_v11 = vpop.eup %10242  ;;  %v7199_v1 = vpack.c.bf16 %v7137_v20, %v7135_v25  ;;  %6867 = vmatprep.mubr.bf16.mxu1 %v15501_v30  ;;  %v7075_v8 = vadd.f32 1.0, %v10241_v29  ;;  %v6885_v30 = vmul.f32 0.5, %v14573_v0  ;;  %v6889_v25 = vmul.f32 0.5, %v6746_v46 }
0x1241   : > { %v10245_v41 = vpop.eup %10244  ;;  %v6522_v45 = vmul.f32 %v14381_v60, %v6484_v19  ;;  %v7074_v34 = vadd.f32 1.0, %v10243_v11  ;;  %v6886_v29 = vmul.f32 0.5, %v14580_v61 }
0x1242   : > { %v7076_v33 = vadd.f32 1.0, %v10245_v41  ;;  %7397 = vmatprep.mubr.bf16.mxu0 %v7199_v1  ;;  %v7139_v43 = vmul.f32 %v7075_v8, %v6883_v16 }
0x1243   : > { %v10247_v53 = vpop.eup %10246  ;;  %7398 = vmatmul.mubr.bf16.vlgmr.msra.gmra.mxu0 %v7198_v27  ;;  %v6560_v7 = vadd.f32 %v14392_v54, %v6522_v45  ;;  %v7138_v56 = vmul.f32 %v7074_v34, %v6882_v31 }
0x1244   : > { %v7077_v15 = vadd.f32 1.0, %v10247_v53  ;;  %v7140_v60 = vmul.f32 %v7076_v33, %v6884_v32 }
0x1245   : > { %v6576_v18 = vpack.c.bf16 %v6560_v7, %v6559_v5  ;;  %v10249_v58 = vpop.eup %10248 }
0x1246   : > { %v7141_v50 = vmul.f32 %v7077_v15, %v6885_v30  ;;  %v7200_v63 = vpack.c.bf16 %v7140_v60, %v7138_v56  ;;  %v7078_v0 = vadd.f32 1.0, %v10249_v58 }
0x1247   : > { %6868 = vmatmul.mubr.bf16.gmra.mxu1 %v6576_v18  ;;  %v10251_v49 = vpop.eup %10250 }
0x1248   : > { %v7201_v35 = vpack.c.bf16 %v7141_v50, %v7139_v43  ;;  %v7079_v54 = vadd.f32 1.0, %v10251_v49  ;;  %v7142_v11 = vmul.f32 %v7078_v0, %v6886_v29 }
0x1249   : > { %v10253_v36 = vpop.eup %10252 }
0x124a   : > { %v7080_v57 = vadd.f32 1.0, %v10253_v36  ;;  %7405 = vmatprep.mubr.bf16.mxu0 %v7201_v35  ;;  %v7143_v19 = vmul.f32 %v7079_v54, %v6887_v51 }
0x124b   : > { %7406 = vmatmul.mubr.bf16.gmra.mxu0 %v7200_v63  ;;  %v10255_v28 = vpop.eup %10254 }
0x124c   : > { %v7081_v20 = vadd.f32 1.0, %v10255_v28  ;;  %v7144_v22 = vmul.f32 %v7080_v57, %v6888_v10 }
0x124e   : > { %v7145_v12 = vmul.f32 %v7081_v20, %v6889_v25  ;;  %v7202_v41 = vpack.c.bf16 %v7144_v22, %v7142_v11 }
0x1250   : > { %v7203_v1 = vpack.c.bf16 %v7145_v12, %v7143_v19 }
0x1252   : > { %7413 = vmatprep.mubr.bf16.mxu0 %v7203_v1 }
0x1253   : > { %7414 = vmatmul.mubr.bf16.gmra.mxu0 %v7202_v41 }
0x1264   : > { %v6749_v27 = vpop.f32.mrf.mxu1 }
0x1265   : > { %v6750_v45 = vadd.f32 %v6749_v27, %v14532_v23 }
0x1266   : > { %v6751_v8 = vpop.f32.mrf.mxu1 }
0x1267   : > { %v6752_v48 = vadd.f32 %v6751_v8, %v14534_v2  ;;  %v6954_v33 = vmul.f32 0.70710677, %v6750_v45 }
0x1268   : > { %v6753_v59 = vpop.f32.mrf.mxu1 }
0x1269   : > { %v6955_v46 = vmul.f32 0.70710677, %v6752_v48  ;;  %v6754_v53 = vadd.f32 %v6753_v59, %v14532_v23  ;;  %v6891_v20 = vmul.f32 0.5, %v6752_v48 }
0x126a   : > { %v6755_v61 = vpop.f32.mrf.mxu1 }
0x126b   : > { %10256 = verf.f32 %v6955_v46  ;;  %v6956_v34 = vmul.f32 0.70710677, %v6754_v53  ;;  %v6756_v32 = vadd.f32 %v6755_v61, %v14534_v2  ;;  %v6892_v27 = vmul.f32 0.5, %v6754_v53 }
0x126c   : > { %10258 = verf.f32 %v6954_v33  ;;  %v6759_v5 = vpop.f32.mrf.mxu1  ;;  %v6890_v61 = vmul.f32 0.5, %v6750_v45 }
0x126d   : > { %10260 = verf.f32 %v6956_v34  ;;  %v6957_v7 = vmul.f32 0.70710677, %v6756_v32  ;;  %v14620_v16 = vadd.f32 %v6759_v5, %v14532_v23  ;;  %v6893_v59 = vmul.f32 0.5, %v6756_v32 }
0x126e   : > { %v6761_v30 = vpop.f32.mrf.mxu1 }
0x126f   : > { %10262 = verf.f32 %v6957_v7  ;;  %v6762_v15 = vadd.f32 %v6761_v30, %v14534_v2  ;;  %v6958_v31 = vmul.f32 0.70710677, %v14620_v16 }
0x1270   : > { %v6763_v60 = vpop.f32.mrf.mxu1 }
0x1271   : > { %v6959_v18 = vmul.f32 0.70710677, %v6762_v15  ;;  %v6764_v43 = vadd.f32 %v6763_v60, %v14532_v23 }
0x1272   : > { %v6765_v50 = vpop.f32.mrf.mxu1 }
0x1273   : > { %10264 = verf.f32 %v6959_v18  ;;  %v6960_v58 = vmul.f32 0.70710677, %v6764_v43  ;;  %v14626_v56 = vadd.f32 %v6765_v50, %v14534_v2 }
0x1274   : > { %10266 = verf.f32 %v6958_v31  ;;  %v6769_v49 = vpop.f32.mrf.mxu1 }
0x1275   : > { %10268 = verf.f32 %v6960_v58  ;;  %v6961_v35 = vmul.f32 0.70710677, %v14626_v56  ;;  %v14630_v36 = vadd.f32 %v6769_v49, %v14532_v23 }
0x1276   : > { %v6771_v63 = vpop.f32.mrf.mxu1 }
0x1277   : > { %10270 = verf.f32 %v6961_v35  ;;  %v6962_v57 = vmul.f32 0.70710677, %v14630_v36  ;;  %v14634_v28 = vadd.f32 %v6771_v63, %v14534_v2 }
0x1278   : > { %v10257_v54 = vpop.eup %10256  ;;  %v6773_v0 = vpop.f32.mrf.mxu1 }
0x1279   : > { %v10259_v10 = vpop.eup %10258  ;;  %v14637_v51 = vadd.f32 %v6773_v0, %v14532_v23  ;;  %v6963_v29 = vmul.f32 0.70710677, %v14634_v28  ;;  %v7083_v19 = vadd.f32 1.0, %v10257_v54  ;;  %10272 = verf.f32 %v6962_v57 }
0x127a   : > { %v10261_v25 = vpop.eup %10260  ;;  %v6775_v22 = vpop.f32.mrf.mxu1  ;;  %v7082_v41 = vadd.f32 1.0, %v10259_v10  ;;  %v6895_v57 = vmul.f32 0.5, %v6762_v15 }
0x127b   : > { %v7084_v12 = vadd.f32 1.0, %v10261_v25  ;;  %v6964_v11 = vmul.f32 0.70710677, %v14637_v51  ;;  %10274 = verf.f32 %v6963_v29  ;;  %v14642_v8 = vadd.f32 %v6775_v22, %v14534_v2 }
0x127c   : > { %v10263_v1 = vpop.eup %10262  ;;  %v6779_v33 = vpop.f32.mrf.mxu1  ;;  %v7147_v30 = vmul.f32 %v7083_v19, %v6891_v20  ;;  %v7146_v53 = vmul.f32 %v7082_v41, %v6890_v61  ;;  %v6896_v19 = vmul.f32 0.5, %v6764_v43 }
0x127d   : > { %v7085_v46 = vadd.f32 1.0, %v10263_v1  ;;  %10276 = verf.f32 %v6964_v11  ;;  %v14645_v48 = vadd.f32 %v6779_v33, %v14532_v23  ;;  %v7148_v34 = vmul.f32 %v7084_v12, %v6892_v27 }
0x127e   : > { %v6965_v5 = vmul.f32 0.70710677, %v14642_v8  ;;  %v6781_v7 = vpop.f32.mrf.mxu1  ;;  %v6897_v1 = vmul.f32 0.5, %v14626_v56  ;;  %v6894_v27 = vmul.f32 0.5, %v14620_v16 }
0x127f   : > { %v7149_v31 = vmul.f32 %v7085_v46, %v6893_v59  ;;  %v6966_v18 = vmul.f32 0.70710677, %v14645_v48  ;;  %v14650_v50 = vadd.f32 %v6781_v7, %v14534_v2  ;;  %v7204_v63 = vpack.c.bf16 %v7148_v34, %v7146_v53 }
0x1280   : > { %v10265_v60 = vpop.eup %10264  ;;  %10278 = verf.f32 %v6965_v5  ;;  %v6783_v32 = vpop.f32.mrf.mxu1 }
0x1281   : > { %v10267_v58 = vpop.eup %10266  ;;  %v14653_v49 = vadd.f32 %v6783_v32, %v14532_v23  ;;  %v7205_v45 = vpack.c.bf16 %v7149_v31, %v7147_v30  ;;  %v6967_v54 = vmul.f32 0.70710677, %v14650_v50  ;;  %v7087_v10 = vadd.f32 1.0, %v10265_v60 }
0x1282   : > { %v10269_v35 = vpop.eup %10268  ;;  %v6785_v0 = vpop.f32.mrf.mxu1  ;;  %10280 = verf.f32 %v6966_v18  ;;  %v7086_v22 = vadd.f32 1.0, %v10267_v58 }
0x1283   : > { %v7088_v25 = vadd.f32 1.0, %v10269_v35  ;;  %v6968_v20 = vmul.f32 0.70710677, %v14653_v49  ;;  %7421 = vmatprep.mubr.bf16.mxu0 %v7205_v45  ;;  %10282 = verf.f32 %v6967_v54  ;;  %v6786_v12 = vadd.f32 %v6785_v0, %v14534_v2 }
0x1284   : > { %v10271_v29 = vpop.eup %10270  ;;  %v6789_v11 = vpop.f32.mrf.mxu1  ;;  %7422 = vmatmul.mubr.bf16.gmra.mxu0 %v7204_v63  ;;  %v7151_v61 = vmul.f32 %v7087_v10, %v6895_v57  ;;  %v7150_v5 = vmul.f32 %v7086_v22, %v6894_v27  ;;  %v6900_v10 = vmul.f32 0.5, %v14637_v51 }
0x1285   : > { %v7089_v15 = vadd.f32 1.0, %v10271_v29  ;;  %10284 = verf.f32 %v6968_v20  ;;  %v14660_v41 = vadd.f32 %v6789_v11, %v14532_v23  ;;  %v7152_v33 = vmul.f32 %v7088_v25, %v6896_v19 }
0x1286   : > { %v6969_v59 = vmul.f32 0.70710677, %v6786_v12  ;;  %v6791_v46 = vpop.f32.mrf.mxu1  ;;  %v10273_v43 = vpop.eup %10272  ;;  %v6899_v20 = vmul.f32 0.5, %v14634_v28  ;;  %v6901_v29 = vmul.f32 0.5, %v14642_v8  ;;  %v6898_v19 = vmul.f32 0.5, %v14630_v36 }
0x1287   : > { %v7153_v34 = vmul.f32 %v7089_v15, %v6897_v1  ;;  %v6970_v7 = vmul.f32 0.70710677, %v14660_v41  ;;  %v6792_v30 = vadd.f32 %v6791_v46, %v14534_v2  ;;  %v7206_v32 = vpack.c.bf16 %v7152_v33, %v7150_v5 }
0x1288   : > { %10286 = verf.f32 %v6969_v59  ;;  %v6793_v56 = vpop.f32.mrf.mxu1  ;;  %v10275_v31 = vpop.eup %10274  ;;  %v7090_v0 = vadd.f32 1.0, %v10273_v43  ;;  %v6904_v8 = vmul.f32 0.5, %v14653_v49  ;;  %v6903_v36 = vmul.f32 0.5, %v14650_v50 }
0x1289   : > { %v6794_v60 = vadd.f32 %v6793_v56, %v14532_v23  ;;  %v7207_v53 = vpack.c.bf16 %v7153_v34, %v7151_v61  ;;  %v6971_v16 = vmul.f32 0.70710677, %v6792_v30  ;;  %10288 = verf.f32 %v6970_v7 }
0x128a   : > { %v10277_v18 = vpop.eup %10276  ;;  %v6795_v58 = vpop.f32.mrf.mxu1  ;;  %v7091_v57 = vadd.f32 1.0, %v10275_v31  ;;  %v7154_v59 = vmul.f32 %v7090_v0, %v6898_v19  ;;  %v6905_v7 = vmul.f32 0.5, %v6786_v12  ;;  %v6902_v31 = vmul.f32 0.5, %v14645_v48 }
0x128b   : > { %v7092_v45 = vadd.f32 1.0, %v10277_v18  ;;  %v6972_v35 = vmul.f32 0.70710677, %v6794_v60  ;;  %v6796_v63 = vadd.f32 %v6795_v58, %v14534_v2  ;;  %7429 = vmatprep.mubr.bf16.mxu0 %v7207_v53  ;;  %10290 = verf.f32 %v6971_v16 }
0x128c   : > { %7430 = vmatmul.mubr.bf16.gmra.mxu0 %v7206_v32  ;;  %v7155_v15 = vmul.f32 %v7091_v57, %v6899_v20  ;;  %v6907_v49 = vmul.f32 0.5, %v6792_v30  ;;  %v6908_v50 = vmul.f32 0.5, %v6794_v60  ;;  %v6906_v48 = vmul.f32 0.5, %v14660_v41 }
0x128d   : > { %v10279_v54 = vpop.eup %10278  ;;  %10292 = verf.f32 %v6972_v35  ;;  %v6973_v25 = vmul.f32 0.70710677, %v6796_v63  ;;  %v7156_v11 = vmul.f32 %v7092_v45, %v6900_v10  ;;  %v6909_v12 = vmul.f32 0.5, %v6796_v63 }
0x128e   : > { %v7093_v22 = vadd.f32 1.0, %v10279_v54 }
0x128f   : > { %10294 = verf.f32 %v6973_v25  ;;  %v10281_v1 = vpop.eup %10280  ;;  %v7208_v34 = vpack.c.bf16 %v7156_v11, %v7154_v59 }
0x1290   : > { %v7157_v27 = vmul.f32 %v7093_v22, %v6901_v29  ;;  %v10283_v33 = vpop.eup %10282  ;;  %v7094_v28 = vadd.f32 1.0, %v10281_v1 }
0x1291   : > { %v7095_v43 = vadd.f32 1.0, %v10283_v33 }
0x1292   : > { %v10285_v46 = vpop.eup %10284  ;;  %v7209_v61 = vpack.c.bf16 %v7157_v27, %v7155_v15  ;;  %v7158_v45 = vmul.f32 %v7094_v28, %v6902_v31 }
0x1293   : > { %v7096_v51 = vadd.f32 1.0, %v10285_v46  ;;  %v7159_v32 = vmul.f32 %v7095_v43, %v6903_v36 }
0x1294   : > { %7437 = vmatprep.mubr.bf16.mxu0 %v7209_v61 }
0x1295   : > { %v10287_v5 = vpop.eup %10286  ;;  %7438 = vmatmul.mubr.bf16.gmra.mxu0 %v7208_v34  ;;  %v7160_v53 = vmul.f32 %v7096_v51, %v6904_v8 }
0x1296   : > { %v7097_v56 = vadd.f32 1.0, %v10287_v5  ;;  %v10289_v18 = vpop.eup %10288 }
0x1297   : > { %v7210_v54 = vpack.c.bf16 %v7160_v53, %v7158_v45  ;;  %v7098_v20 = vadd.f32 1.0, %v10289_v18 }
0x1298   : > { %v7161_v16 = vmul.f32 %v7097_v56, %v6905_v7  ;;  %v10291_v58 = vpop.eup %10290 }
0x1299   : > { %v7099_v0 = vadd.f32 1.0, %v10291_v58  ;;  %v7162_v1 = vmul.f32 %v7098_v20, %v6906_v48 }
0x129a   : > { %v10293_v35 = vpop.eup %10292  ;;  %v7211_v57 = vpack.c.bf16 %v7161_v16, %v7159_v32 }
0x129b   : > { %v7100_v10 = vadd.f32 1.0, %v10293_v35  ;;  %v7163_v22 = vmul.f32 %v7099_v0, %v6907_v49 }
0x129c   : > { %v10295_v25 = vpop.eup %10294  ;;  %7445 = vmatprep.mubr.bf16.mxu0 %v7211_v57 }
0x129d   : > { %v7101_v29 = vadd.f32 1.0, %v10295_v25  ;;  %7446 = vmatmul.mubr.bf16.gmra.mxu0 %v7210_v54  ;;  %v7164_v19 = vmul.f32 %v7100_v10, %v6908_v50 }
0x129f   : > { %v7165_v11 = vmul.f32 %v7101_v29, %v6909_v12  ;;  %v7212_v27 = vpack.c.bf16 %v7164_v19, %v7162_v1 }
0x12a1   : > { %v7213_v15 = vpack.c.bf16 %v7165_v11, %v7163_v22 }
0x12a3   : > { %7453 = vmatprep.mubr.bf16.mxu0 %v7213_v15 }
0x12a5   : > { %7454 = vmatmul.mubr.bf16.gmra.mxu0 %v7212_v27 }
0x12ab   : > { %v6799_v33 = vpop.f32.mrf.mxu1 }
0x12ac   : > { %v6800_v59 = vadd.f32 %v6799_v33, %v14532_v23 }
0x12ad   : > { %v6801_v30 = vpop.f32.mrf.mxu1 }
0x12ae   : > { %v6802_v46 = vadd.f32 %v6801_v30, %v14534_v2  ;;  %v6974_v60 = vmul.f32 0.70710677, %v6800_v59 }
0x12af   : > { %v6803_v63 = vpop.f32.mrf.mxu1 }
0x12b0   : > { %v6975_v61 = vmul.f32 0.70710677, %v6802_v46  ;;  %v6804_v34 = vadd.f32 %v6803_v63, %v14532_v23  ;;  %v6911_v29 = vmul.f32 0.5, %v6802_v46 }
0x12b1   : > { %v6805_v41 = vpop.f32.mrf.mxu1 }
0x12b2   : > { %10296 = verf.f32 %v6975_v61  ;;  %v6976_v51 = vmul.f32 0.70710677, %v6804_v34  ;;  %v6806_v43 = vadd.f32 %v6805_v41, %v14534_v2  ;;  %v6912_v33 = vmul.f32 0.5, %v6804_v34 }
0x12b3   : > { %10298 = verf.f32 %v6974_v60  ;;  %v6809_v5 = vpop.f32.mrf.mxu1  ;;  %v6910_v41 = vmul.f32 0.5, %v6800_v59 }
0x12b4   : > { %10300 = verf.f32 %v6976_v51  ;;  %v6977_v28 = vmul.f32 0.70710677, %v6806_v43  ;;  %v14680_v8 = vadd.f32 %v6809_v5, %v14532_v23  ;;  %v6913_v63 = vmul.f32 0.5, %v6806_v43 }
0x12b5   : > { %v6811_v36 = vpop.f32.mrf.mxu1 }
0x12b6   : > { %10302 = verf.f32 %v6977_v28  ;;  %v14683_v7 = vadd.f32 %v6811_v36, %v14534_v2  ;;  %v6978_v56 = vmul.f32 0.70710677, %v14680_v8 }
0x12b7   : > { %v6813_v31 = vpop.f32.mrf.mxu1 }
0x12b8   : > { %v6979_v53 = vmul.f32 0.70710677, %v14683_v7  ;;  %v6814_v18 = vadd.f32 %v6813_v31, %v14532_v23 }
0x12b9   : > { %v6815_v32 = vpop.f32.mrf.mxu1 }
0x12ba   : > { %10304 = verf.f32 %v6979_v53  ;;  %v6980_v16 = vmul.f32 0.70710677, %v6814_v18  ;;  %v6816_v58 = vadd.f32 %v6815_v32, %v14534_v2 }
0x12bb   : > { %10306 = verf.f32 %v6978_v56  ;;  %v6819_v45 = vpop.f32.mrf.mxu1 }
0x12bc   : > { %10308 = verf.f32 %v6980_v16  ;;  %v6981_v35 = vmul.f32 0.70710677, %v6816_v58  ;;  %v14690_v57 = vadd.f32 %v6819_v45, %v14532_v23 }
0x12bd   : > { %v6821_v54 = vpop.f32.mrf.mxu1 }
0x12be   : > { %10310 = verf.f32 %v6981_v35  ;;  %v6982_v0 = vmul.f32 0.70710677, %v14690_v57  ;;  %v14694_v25 = vadd.f32 %v6821_v54, %v14534_v2 }
0x12bf   : > { %v10297_v10 = vpop.eup %10296  ;;  %v6823_v49 = vpop.f32.mrf.mxu1 }
0x12c0   : > { %v10299_v20 = vpop.eup %10298  ;;  %v14697_v50 = vadd.f32 %v6823_v49, %v14532_v23  ;;  %v6983_v48 = vmul.f32 0.70710677, %v14694_v25  ;;  %v7103_v19 = vadd.f32 1.0, %v10297_v10  ;;  %10312 = verf.f32 %v6982_v0 }
0x12c1   : > { %v10301_v12 = vpop.eup %10300  ;;  %v6825_v22 = vpop.f32.mrf.mxu1  ;;  %v7102_v27 = vadd.f32 1.0, %v10299_v20 }
0x12c2   : > { %v7104_v11 = vadd.f32 1.0, %v10301_v12  ;;  %v6984_v1 = vmul.f32 0.70710677, %v14697_v50  ;;  %10314 = verf.f32 %v6983_v48  ;;  %v6826_v30 = vadd.f32 %v6825_v22, %v14534_v2 }
0x12c3   : > { %v10303_v15 = vpop.eup %10302  ;;  %v6829_v60 = vpop.f32.mrf.mxu1  ;;  %v7167_v36 = vmul.f32 %v7103_v19, %v6911_v29  ;;  %v7166_v53 = vmul.f32 %v7102_v27, %v6910_v41  ;;  %v6916_v22 = vmul.f32 0.5, %v6814_v18  ;;  %v6914_v27 = vmul.f32 0.5, %v14680_v8 }
0x12c4   : > { %v7105_v61 = vadd.f32 1.0, %v10303_v15  ;;  %10316 = verf.f32 %v6984_v1  ;;  %v14703_v46 = vadd.f32 %v6829_v60, %v14532_v23  ;;  %v7168_v51 = vmul.f32 %v7104_v11, %v6912_v33 }
0x12c5   : > { %v6985_v5 = vmul.f32 0.70710677, %v6826_v30  ;;  %v6831_v28 = vpop.f32.mrf.mxu1  ;;  %v6915_v11 = vmul.f32 0.5, %v14683_v7  ;;  %v6917_v1 = vmul.f32 0.5, %v6816_v58  ;;  %v6919_v8 = vmul.f32 0.5, %v14694_v25 }
0x12c6   : > { %v7169_v56 = vmul.f32 %v7105_v61, %v6913_v63  ;;  %v6986_v34 = vmul.f32 0.70710677, %v14703_v46  ;;  %v6832_v32 = vadd.f32 %v6831_v28, %v14534_v2  ;;  %v7214_v0 = vpack.c.bf16 %v7168_v51, %v7166_v53 }
0x12c7   : > { %v10305_v31 = vpop.eup %10304  ;;  %10318 = verf.f32 %v6985_v5  ;;  %v6833_v16 = vpop.f32.mrf.mxu1  ;;  %v6920_v53 = vmul.f32 0.5, %v14697_v50 }
0x12c8   : > { %v10307_v43 = vpop.eup %10306  ;;  %v6834_v45 = vadd.f32 %v6833_v16, %v14532_v23  ;;  %v7215_v35 = vpack.c.bf16 %v7169_v56, %v7167_v36  ;;  %v6987_v59 = vmul.f32 0.70710677, %v6832_v32  ;;  %v7107_v49 = vadd.f32 1.0, %v10305_v31 }
0x12c9   : > { %v10309_v54 = vpop.eup %10308  ;;  %v6835_v10 = vpop.f32.mrf.mxu1  ;;  %10320 = verf.f32 %v6986_v34  ;;  %v7106_v48 = vadd.f32 1.0, %v10307_v43  ;;  %v6921_v34 = vmul.f32 0.5, %v6826_v30  ;;  %v6918_v43 = vmul.f32 0.5, %v14690_v57 }
0x12ca   : > { %v7108_v20 = vadd.f32 1.0, %v10309_v54  ;;  %v6988_v12 = vmul.f32 0.70710677, %v6834_v45  ;;  %7461 = vmatprep.mubr.bf16.mxu0 %v7215_v35  ;;  %10322 = verf.f32 %v6987_v59  ;;  %v6836_v19 = vadd.f32 %v6835_v10, %v14534_v2 }
0x12cb   : > { %v10311_v29 = vpop.eup %10310  ;;  %7462 = vmatmul.mubr.bf16.gmra.mxu0 %v7214_v0  ;;  %v7171_v63 = vmul.f32 %v7107_v49, %v6915_v11  ;;  %v7170_v51 = vmul.f32 %v7106_v48, %v6914_v27  ;;  %v6923_v25 = vmul.f32 0.5, %v6832_v32  ;;  %v6922_v57 = vmul.f32 0.5, %v14703_v46 }
0x12cc   : > { %v7109_v15 = vadd.f32 1.0, %v10311_v29  ;;  %10324 = verf.f32 %v6988_v12  ;;  %v7172_v33 = vmul.f32 %v7108_v20, %v6916_v22  ;;  %v6989_v60 = vmul.f32 0.70710677, %v6836_v19 }
0x12cd   : > { %v10313_v41 = vpop.eup %10312  ;;  %v6925_v30 = vmul.f32 0.5, %v6836_v19 }
0x12ce   : > { %v7173_v61 = vmul.f32 %v7109_v15, %v6917_v1  ;;  %10326 = verf.f32 %v6989_v60  ;;  %v7216_v36 = vpack.c.bf16 %v7172_v33, %v7170_v51  ;;  %v7110_v58 = vadd.f32 1.0, %v10313_v41 }
0x12cf   : > { %v10315_v5 = vpop.eup %10314  ;;  %v6924_v1 = vmul.f32 0.5, %v6834_v45 }
0x12d0   : > { %v7217_v18 = vpack.c.bf16 %v7173_v61, %v7171_v63  ;;  %v7111_v31 = vadd.f32 1.0, %v10315_v5  ;;  %v7174_v49 = vmul.f32 %v7110_v58, %v6918_v43 }
0x12d1   : > { %v10317_v28 = vpop.eup %10316 }
0x12d2   : > { %v7112_v56 = vadd.f32 1.0, %v10317_v28  ;;  %7469 = vmatprep.mubr.bf16.mxu0 %v7217_v18  ;;  %v7175_v0 = vmul.f32 %v7111_v31, %v6919_v8 }
0x12d3   : > { %7470 = vmatmul.mubr.bf16.gmra.mxu0 %v7216_v36 }
0x12d4   : > { %v10319_v7 = vpop.eup %10318  ;;  %v7176_v35 = vmul.f32 %v7112_v56, %v6920_v53 }
0x12d5   : > { %v7113_v16 = vadd.f32 1.0, %v10319_v7 }
0x12d6   : > { %v10321_v54 = vpop.eup %10320  ;;  %v7218_v29 = vpack.c.bf16 %v7176_v35, %v7174_v49 }
0x12d7   : > { %v7177_v59 = vmul.f32 %v7113_v16, %v6921_v34  ;;  %v10323_v10 = vpop.eup %10322  ;;  %v7114_v50 = vadd.f32 1.0, %v10321_v54 }
0x12d8   : > { %v7115_v22 = vadd.f32 1.0, %v10323_v10 }
0x12d9   : > { %v10325_v20 = vpop.eup %10324  ;;  %v7219_v12 = vpack.c.bf16 %v7177_v59, %v7175_v0  ;;  %v7178_v63 = vmul.f32 %v7114_v50, %v6922_v57 }
0x12da   : > { %v7116_v48 = vadd.f32 1.0, %v10325_v20  ;;  %v7179_v33 = vmul.f32 %v7115_v22, %v6923_v25 }
0x12db   : > { %7477 = vmatprep.mubr.bf16.mxu0 %v7219_v12  ;;  %v10327_v11 = vpop.eup %10326 }
0x12dc   : > { %7478 = vmatmul.mubr.bf16.gmra.mxu0 %v7218_v29  ;;  %v7117_v15 = vadd.f32 1.0, %v10327_v11  ;;  %v7180_v27 = vmul.f32 %v7116_v48, %v6924_v1 }
0x12de   : > { %v7181_v60 = vmul.f32 %v7117_v15, %v6925_v30  ;;  %v7220_v41 = vpack.c.bf16 %v7180_v27, %v7178_v63 }
0x12e0   : > { %v7221_v61 = vpack.c.bf16 %v7181_v60, %v7179_v33 }
0x12e2   : > { %7485 = vmatprep.mubr.bf16.mxu0 %v7221_v61 }
0x12e4   : > { %7486 = vmatmul.mubr.bf16.gmra.mxu0 %v7220_v41 }
0x12ef   : > { %v6839_v51 = vpop.f32.mrf.mxu1 }
0x12f0   : > { %v14716_v5 = vadd.f32 %v6839_v51, %v14532_v23  ;;  %v14746_v51 = vld [vmem:[%s720_s25] ss:$0 sm:$0xff]  ;;  %s15588_s25 = sld [smem:[#allocation25_spill]] }
0x12f1   : > { %v6841_v18 = vpop.f32.mrf.mxu1 }
0x12f2   : > { %v6990_v45 = vmul.f32 0.70710677, %v14716_v5  ;;  %v6842_v32 = vadd.f32 %v6841_v18, %v14534_v2 }
0x12f3   : > { %v6843_v19 = vpop.f32.mrf.mxu1 }
0x12f4   : > { %v6991_v28 = vmul.f32 0.70710677, %v6842_v32  ;;  %v6844_v46 = vadd.f32 %v6843_v19, %v14532_v23  ;;  %10328 = verf.f32 %v6990_v45 }
0x12f5   : > { %v6845_v36 = vpop.f32.mrf.mxu1 }
0x12f6   : > { %v6992_v56 = vmul.f32 0.70710677, %v6844_v46  ;;  %v6846_v31 = vadd.f32 %v6845_v36, %v14534_v2  ;;  %10330 = verf.f32 %v6991_v28  ;;  %v6928_v57 = vmul.f32 0.5, %v6844_v46  ;;  %s8025_s14 = sshll.u32 %s15588_s25, 12 }
0x12f7   : > { %v6849_v7 = vpop.f32.mrf.mxu1  ;;  %s14877_s6 = scalar_lea.hbm %s15591_s1, %s8025_s14 }
0x12f8   : > { %10332 = verf.f32 %v6992_v56  ;;  %v6993_v58 = vmul.f32 0.70710677, %v6846_v31  ;;  %v14723_v53 = vadd.f32 %v6849_v7, %v14532_v23  ;;  %v6929_v61 = vmul.f32 0.5, %v6846_v31 }
0x12f9   : > { %v6851_v8 = vpop.f32.mrf.mxu1 }
0x12fa   : > { %10334 = verf.f32 %v6993_v58  ;;  %v6852_v34 = vadd.f32 %v6851_v8, %v14534_v2  ;;  %v6994_v16 = vmul.f32 0.70710677, %v14723_v53  ;;  %v6927_v58 = vmul.f32 0.5, %v6842_v32 }
0x12fb   : > { %v6853_v43 = vpop.f32.mrf.mxu1 }
0x12fc   : > { %v6995_v35 = vmul.f32 0.70710677, %v6852_v34  ;;  %v6854_v54 = vadd.f32 %v6853_v43, %v14532_v23 }
0x12fd   : > { %v6855_v0 = vpop.f32.mrf.mxu1 }
0x12fe   : > { %10336 = verf.f32 %v6995_v35  ;;  %v6996_v59 = vmul.f32 0.70710677, %v6854_v54  ;;  %v6856_v10 = vadd.f32 %v6855_v0, %v14534_v2  ;;  %v6926_v0 = vmul.f32 0.5, %v14716_v5 }
0x12ff   : > { %10338 = verf.f32 %v6994_v16  ;;  %v6859_v49 = vpop.f32.mrf.mxu1 }
0x1300   : > { %10340 = verf.f32 %v6996_v59  ;;  %v6997_v20 = vmul.f32 0.70710677, %v6856_v10  ;;  %v14730_v12 = vadd.f32 %v6859_v49, %v14532_v23 }
0x1301   : > { %v6861_v29 = vpop.f32.mrf.mxu1  ;;  %v10329_v22 = vpop.eup %10328 }
0x1302   : > { %10342 = verf.f32 %v6997_v20  ;;  %v6998_v48 = vmul.f32 0.70710677, %v14730_v12  ;;  %v14734_v11 = vadd.f32 %v6861_v29, %v14534_v2  ;;  %v7118_v56 = vadd.f32 1.0, %v10329_v22 }
0x1303   : > { %v6863_v50 = vpop.f32.mrf.mxu1  ;;  %v8346_v1 = vpop.f32.mrf.mxu0  ;;  %v6931_v20 = vmul.f32 0.5, %v6852_v34 }
0x1304   : > { %v10331_v25 = vpop.eup %10330  ;;  %v14737_v30 = vadd.f32 %v6863_v50, %v14532_v23  ;;  %v6999_v27 = vmul.f32 0.70710677, %v14734_v11  ;;  %10344 = verf.f32 %v6998_v48 }
0x1305   : > { %v10333_v15 = vpop.eup %10332  ;;  %v6865_v33 = vpop.f32.mrf.mxu1  ;;  %v7119_v45 = vadd.f32 1.0, %v10331_v25 }
0x1306   : > { %v8347_v60 = vpop.f32.mrf.mxu0  ;;  %v7120_v63 = vadd.f32 1.0, %v10333_v15  ;;  %v7000_v41 = vmul.f32 0.70710677, %v14737_v30  ;;  %10346 = verf.f32 %v6999_v27  ;;  %v14749_v19 = vadd.f32 %v6865_v33, %v14534_v2 }
0x1307   : > { %v10335_v18 = vpop.eup %10334  ;;  %v8348_v28 = vadd.f32 %v8347_v60, %v8346_v1  ;;  %v6869_v46 = vpop.f32.mrf.mxu1  ;;  %v7183_v48 = vmul.f32 %v7119_v45, %v6927_v58  ;;  %v7182_v15 = vmul.f32 %v7118_v56, %v6926_v0  ;;  %v6933_v60 = vmul.f32 0.5, %v6856_v10 }
0x1308   : > { %v8349_v36 = vpop.f32.mrf.mxu0  ;;  %v7121_v31 = vadd.f32 1.0, %v10335_v18  ;;  %10348 = verf.f32 %v7000_v41  ;;  %v14752_v7 = vadd.f32 %v6869_v46, %v14532_v23  ;;  %v7001_v8 = vmul.f32 0.70710677, %v14749_v19 }
0x1309   : > { %v7400_v16 = vadd.f32 %v8348_v28, %v14746_v51  ;;  %v6871_v43 = vpop.f32.mrf.mxu1  ;;  %v7184_v59 = vmul.f32 %v7120_v63, %v6928_v57  ;;  %v6932_v57 = vmul.f32 0.5, %v6854_v54 }
0x130a   : > { %v8350_v35 = vpop.f32.mrf.mxu0  ;;  %v7185_v49 = vmul.f32 %v7121_v31, %v6929_v61  ;;  %10350 = verf.f32 %v7001_v8  ;;  %v14759_v50 = vadd.f32 %v6871_v43, %v14534_v2  ;;  %v7002_v27 = vmul.f32 0.70710677, %v14752_v7 }
0x130b   : > { %v10337_v29 = vpop.eup %10336  ;;  %v7526_v22 = vadd.f32 %v7400_v16, %v14040_v55  ;;  %v6873_v32 = vpop.f32.mrf.mxu1  ;;  %v8351_v33 = vadd.f32 %v8350_v35, %v8349_v36  ;;  %v7222_v18 = vpack.c.bf16 %v7184_v59, %v7182_v15  ;;  %v6930_v16 = vmul.f32 0.5, %v14723_v53 }
0x130c   : > { %v8352_v1 = vpop.f32.mrf.mxu0  ;;  %v10339_v25 = vpop.eup %10338  ;;  %v14763_v5 = vadd.f32 %v6873_v32, %v14532_v23  ;;  %v7003_v63 = vmul.f32 0.70710677, %v14759_v50  ;;  %v7223_v41 = vpack.c.bf16 %v7185_v49, %v7183_v48  ;;  %v7123_v45 = vadd.f32 1.0, %v10337_v29 }
0x130d   : > { %v10341_v34 = vpop.eup %10340  ;;  %7558 = vst [vmem:[%s11092_s22] sm:$0xff] %v7526_v22  ;;  %v6875_v55 = vpop.f32.mrf.mxu1  ;;  %v7403_v46 = vadd.f32 %v8351_v33, %v14746_v51  ;;  %v7122_v31 = vadd.f32 1.0, %v10339_v25 }
0x130e   : > { %v8353_v61 = vpop.f32.mrf.mxu0  ;;  %v7124_v28 = vadd.f32 1.0, %v10341_v34  ;;  %10352 = verf.f32 %v7003_v63  ;;  %v7004_v36 = vmul.f32 0.70710677, %v14763_v5  ;;  %v14770_v23 = vadd.f32 %v6875_v55, %v14534_v2  ;;  %7493 = vmatprep.mubr.bf16.mxu0 %v7223_v41 }
0x130f   : > { %v10343_v56 = vpop.eup %10342  ;;  %v8354_v54 = vadd.f32 %v8353_v61, %v8352_v1  ;;  %10354 = verf.f32 %v7002_v27  ;;  %v7527_v8 = vadd.f32 %v7403_v46, %v14020_v3  ;;  %7494 = vmatmul.mubr.bf16.gmra.mxu0 %v7222_v18  ;;  %v7187_v0 = vmul.f32 %v7123_v45, %v6931_v20 }
0x1310   : > { %v8355_v10 = vpop.f32.mrf.mxu0  ;;  %v7125_v58 = vadd.f32 1.0, %v10343_v56  ;;  %10356 = verf.f32 %v7004_v36  ;;  %v7005_v43 = vmul.f32 0.70710677, %v14770_v23  ;;  %v7188_v59 = vmul.f32 %v7124_v28, %v6932_v57 }
0x1311   : > { %v7408_v35 = vadd.f32 %v8354_v54, %v14746_v51  ;;  %7559 = vst [vmem:[%s11092_s22 + $0x8] sm:$0xff] %v7527_v8  ;;  %v10345_v48 = vpop.eup %10344  ;;  %v7186_v32 = vmul.f32 %v7122_v31, %v6930_v16  ;;  %v6935_v41 = vmul.f32 0.5, %v14734_v11  ;;  %v6937_v18 = vmul.f32 0.5, %v14749_v19 }
0x1312   : > { %v8356_v2 = vpop.f32.mrf.mxu0  ;;  %v7189_v49 = vmul.f32 %v7125_v58, %v6933_v60  ;;  %10358 = verf.f32 %v7005_v43  ;;  %v7126_v55 = vadd.f32 1.0, %v10345_v48 }
0x1313   : > { %v8357_v29 = vadd.f32 %v8356_v2, %v8355_v10  ;;  %v7528_v22 = vadd.f32 %v7408_v35, %v14025_v26  ;;  %v10347_v3 = vpop.eup %10346  ;;  %v7224_v27 = vpack.c.bf16 %v7188_v59, %v7186_v32  ;;  %v6936_v26 = vmul.f32 0.5, %v14737_v30 }
0x1314   : > { %v8358_v1 = vpop.f32.mrf.mxu0  ;;  %v7225_v25 = vpack.c.bf16 %v7189_v49, %v7187_v0  ;;  %v7127_v57 = vadd.f32 1.0, %v10347_v3  ;;  %v6939_v49 = vmul.f32 0.5, %v14759_v50 }
0x1315   : > { %v7411_v53 = vadd.f32 %v8357_v29, %v14746_v51  ;;  %v10349_v15 = vpop.eup %10348  ;;  %7560 = vst [vmem:[%s11092_s22 + $0x10] sm:$0xff] %v7528_v22  ;;  %v6941_v29 = vmul.f32 0.5, %v14770_v23  ;;  %v6938_v22 = vmul.f32 0.5, %v14752_v7 }
0x1316   : > { %v7128_v33 = vadd.f32 1.0, %v10349_v15  ;;  %v8359_v34 = vpop.f32.mrf.mxu0  ;;  %7501 = vmatprep.mubr.bf16.mxu0 %v7225_v25  ;;  %v7191_v36 = vmul.f32 %v7127_v57, %v6935_v41 }
0x1317   : > { %v7529_v20 = vadd.f32 %v7411_v53, %v14057_v9  ;;  %v8360_v60 = vadd.f32 %v8359_v34, %v8358_v1  ;;  %v10351_v63 = vpop.eup %10350  ;;  %7502 = vmatmul.mubr.bf16.gmra.mxu0 %v7224_v27  ;;  %v6934_v9 = vmul.f32 0.5, %v14730_v12 }
0x1318   : > { %v8361_v61 = vpop.f32.mrf.mxu0  ;;  %v7129_v45 = vadd.f32 1.0, %v10351_v63  ;;  %v7192_v46 = vmul.f32 %v7128_v33, %v6936_v26 }
0x1319   : > { %7561 = vst [vmem:[%s11092_s22 + $0x18] sm:$0xff] %v7529_v20  ;;  %v7416_v28 = vadd.f32 %v8360_v60, %v14746_v51  ;;  %v7190_v58 = vmul.f32 %v7126_v55, %v6934_v9 }
0x131a   : > { %v8362_v56 = vpop.f32.mrf.mxu0  ;;  %v7193_v54 = vmul.f32 %v7129_v45, %v6937_v18 }
0x131b   : > { %v7530_v10 = vadd.f32 %v7416_v28, %v14045_v38  ;;  %v8363_v30 = vadd.f32 %v8362_v56, %v8361_v61  ;;  %v10353_v31 = vpop.eup %10352  ;;  %v7226_v43 = vpack.c.bf16 %v7192_v46, %v7190_v58  ;;  %v6940_v38 = vmul.f32 0.5, %v14763_v5 }
0x131c   : > { %v10355_v8 = vpop.eup %10354  ;;  %v7227_v19 = vpack.c.bf16 %v7193_v54, %v7191_v36  ;;  %v7131_v35 = vadd.f32 1.0, %v10353_v31 }
0x131d   : > { %7562 = vst [vmem:[%s11092_s22 + $0x20] sm:$0xff] %v7530_v10  ;;  %v7419_v11 = vadd.f32 %v8363_v30, %v14746_v51  ;;  %v10357_v16 = vpop.eup %10356  ;;  %v7130_v59 = vadd.f32 1.0, %v10355_v8 }
0x131e   : > { %v7132_v2 = vadd.f32 1.0, %v10357_v16  ;;  %7509 = vmatprep.mubr.bf16.mxu0 %v7227_v19  ;;  %v7195_v32 = vmul.f32 %v7131_v35, %v6939_v49 }
0x131f   : > { %v7531_v12 = vadd.f32 %v7419_v11, %v14066_v39  ;;  %v10359_v0 = vpop.eup %10358  ;;  %7510 = vmatmul.mubr.bf16.gmra.mxu0 %v7226_v43  ;;  %v7194_v1 = vmul.f32 %v7130_v59, %v6938_v22 }
0x1320   : > { %v7133_v48 = vadd.f32 1.0, %v10359_v0  ;;  %v7196_v3 = vmul.f32 %v7132_v2, %v6940_v38 }
0x1321   : > { %7563 = vst [vmem:[%s11092_s22 + $0x28] sm:$0xff] %v7531_v12 }
0x1322   : > { %v7197_v53 = vmul.f32 %v7133_v48, %v6941_v29  ;;  %v7228_v25 = vpack.c.bf16 %v7196_v3, %v7194_v1 }
0x1324   : > { %v7229_v39 = vpack.c.bf16 %v7197_v53, %v7195_v32 }
0x1326   : > { %7517 = vmatprep.mubr.bf16.mxu0 %v7229_v39 }
0x1327   : > { %7518 = vmatmul.mubr.bf16.gmra.mxu0 %v7228_v25 }
0x1344   : > { %v8364_v5 = vpop.f32.mrf.mxu0 }
0x1346   : > { %v8365_v15 = vpop.f32.mrf.mxu0 }
0x1347   : > { %v8366_v27 = vadd.f32 %v8365_v15, %v8364_v5 }
0x1348   : > { %v8367_v50 = vpop.f32.mrf.mxu0 }
0x1349   : > { %v7424_v23 = vadd.f32 %v8366_v27, %v14746_v51 }
0x134a   : > { %v8368_v33 = vpop.f32.mrf.mxu0 }
0x134b   : > { %v7532_v7 = vadd.f32 %v7424_v23, %v14060_v62  ;;  %v8369_v20 = vadd.f32 %v8368_v33, %v8367_v50 }
0x134c   : > { %v8370_v34 = vpop.f32.mrf.mxu0 }
0x134d   : > { %7564 = vst [vmem:[%s11092_s22 + $0x30] sm:$0xff] %v7532_v7  ;;  %v7427_v57 = vadd.f32 %v8369_v20, %v14746_v51 }
0x134e   : > { %v8371_v60 = vpop.f32.mrf.mxu0 }
0x134f   : > { %v7533_v63 = vadd.f32 %v7427_v57, %v14074_v52  ;;  %v8372_v55 = vadd.f32 %v8371_v60, %v8370_v34  ;;  %v15580_v34 = vld [vmem:[#allocation38_spill] sm:$0xff] }
0x1350   : > { %v8373_v26 = vpop.f32.mrf.mxu0 }
0x1351   : > { %7565 = vst [vmem:[%s11092_s22 + $0x38] sm:$0xff] %v7533_v63  ;;  %v7432_v61 = vadd.f32 %v8372_v55, %v14746_v51  ;;  %v15581_v55 = vld [vmem:[#allocation64_spill] sm:$0xff] }
0x1352   : > { %v8374_v41 = vpop.f32.mrf.mxu0 }
0x1353   : > { %v7534_v18 = vadd.f32 %v7432_v61, %v14071_v13  ;;  %v8375_v45 = vadd.f32 %v8374_v41, %v8373_v26 }
0x1355   : > { %7566 = vst [vmem:[%s11092_s22 + $0x40] sm:$0xff] %v7534_v18  ;;  %v7435_v62 = vadd.f32 %v8375_v45, %v14746_v51  ;;  %v8376_v28 = vpop.f32.mrf.mxu0 }
0x1357   : > { %v7535_v9 = vadd.f32 %v7435_v62, %v14102_v4  ;;  %v8377_v46 = vpop.f32.mrf.mxu0 }
0x1358   : > { %v8378_v56 = vadd.f32 %v8377_v46, %v8376_v28  ;;  %v15582_v28 = vld [vmem:[#allocation62_spill] sm:$0xff] }
0x1359   : > { %7567 = vst [vmem:[%s11092_s22 + $0x48] sm:$0xff] %v7535_v9  ;;  %v8379_v52 = vpop.f32.mrf.mxu0 }
0x135a   : > { %v7440_v36 = vadd.f32 %v8378_v56, %v14746_v51 }
0x135b   : > { %v8380_v54 = vpop.f32.mrf.mxu0 }
0x135c   : > { %v7536_v10 = vadd.f32 %v7440_v36, %v14078_v42  ;;  %v8381_v30 = vadd.f32 %v8380_v54, %v8379_v52  ;;  %v15583_v54 = vld [vmem:[#allocation73_spill] sm:$0xff] }
0x135d   : > { %v8382_v13 = vpop.f32.mrf.mxu0 }
0x135e   : > { %7568 = vst [vmem:[%s11092_s22 + $0x50] sm:$0xff] %v7536_v10  ;;  %v7443_v31 = vadd.f32 %v8381_v30, %v14746_v51 }
0x135f   : > { %v8383_v58 = vpop.f32.mrf.mxu0 }
0x1360   : > { %v7537_v4 = vadd.f32 %v7443_v31, %v14106_v14  ;;  %v8384_v8 = vadd.f32 %v8383_v58, %v8382_v13 }
0x1361   : > { %v8385_v11 = vpop.f32.mrf.mxu0 }
0x1362   : > { %7569 = vst [vmem:[%s11092_s22 + $0x58] sm:$0xff] %v7537_v4  ;;  %v7448_v19 = vadd.f32 %v8384_v8, %v14746_v51  ;;  %v15584_v4 = vld [vmem:[#allocation67_spill] sm:$0xff] }
0x1363   : > { %v8386_v16 = vpop.f32.mrf.mxu0 }
0x1364   : > { %v7538_v43 = vadd.f32 %v7448_v19, %v14112_v24  ;;  %v8387_v35 = vadd.f32 %v8386_v16, %v8385_v11  ;;  %v15585_v16 = vld [vmem:[#allocation76_spill] sm:$0xff] }
0x1365   : > { %v8388_v42 = vpop.f32.mrf.mxu0 }
0x1366   : > { %7570 = vst [vmem:[%s11092_s22 + $0x60] sm:$0xff] %v7538_v43  ;;  %v7451_v2 = vadd.f32 %v8387_v35, %v14746_v51 }
0x1367   : > { %v8389_v12 = vpop.f32.mrf.mxu0 }
0x1368   : > { %v7539_v0 = vadd.f32 %v7451_v2, %v14121_v44  ;;  %v8390_v59 = vadd.f32 %v8389_v12, %v8388_v42 }
0x1369   : > { %v8391_v14 = vpop.f32.mrf.mxu0 }
0x136a   : > { %7571 = vst [vmem:[%s11092_s22 + $0x68] sm:$0xff] %v7539_v0  ;;  %v7456_v38 = vadd.f32 %v8390_v59, %v14746_v51 }
0x136b   : > { %v8392_v49 = vpop.f32.mrf.mxu0 }
0x136c   : > { %v7540_v29 = vadd.f32 %v7456_v38, %v14117_v47  ;;  %v8393_v48 = vadd.f32 %v8392_v49, %v8391_v14 }
0x136e   : > { %7572 = vst [vmem:[%s11092_s22 + $0x70] sm:$0xff] %v7540_v29  ;;  %v7459_v24 = vadd.f32 %v8393_v48, %v14746_v51 }
0x1370   : > { %v7541_v22 = vadd.f32 %v7459_v24, %v14126_v6  ;;  %v15579_v6 = vld [vmem:[#allocation57_spill] sm:$0xff] }
0x1372   : > { %7573 = vst [vmem:[%s11092_s22 + $0x78] sm:$0xff] %v7541_v22 }
0x138b   : > { %v8394_v3 = vpop.f32.mrf.mxu0 }
0x138d   : > { %v8395_v32 = vpop.f32.mrf.mxu0 }
0x138e   : > { %v8396_v44 = vadd.f32 %v8395_v32, %v8394_v3 }
0x138f   : > { %v8397_v53 = vpop.f32.mrf.mxu0 }
0x1390   : > { %v7464_v1 = vadd.f32 %v8396_v44, %v14746_v51 }
0x1391   : > { %v8398_v39 = vpop.f32.mrf.mxu0 }
0x1392   : > { %v7542_v25 = vadd.f32 %v7464_v1, %v14164_v37  ;;  %v8399_v5 = vadd.f32 %v8398_v39, %v8397_v53  ;;  %v15586_v53 = vld [vmem:[#allocation70_spill] sm:$0xff] }
0x1393   : > { %v8400_v47 = vpop.f32.mrf.mxu0 }
0x1394   : > { %7574 = vst [vmem:[%s11092_s22 + $0x80] sm:$0xff] %v7542_v25  ;;  %v7467_v15 = vadd.f32 %v8399_v5, %v14746_v51 }
0x1395   : > { %v8401_v27 = vpop.f32.mrf.mxu0 }
0x1396   : > { %v7543_v50 = vadd.f32 %v7467_v15, %v15579_v6  ;;  %v8402_v23 = vadd.f32 %v8401_v27, %v8400_v47  ;;  %v15587_v47 = vld [vmem:[#allocation80_spill] sm:$0xff] }
0x1397   : > { %v8403_v33 = vpop.f32.mrf.mxu0 }
0x1398   : > { %7575 = vst [vmem:[%s11092_s22 + $0x88] sm:$0xff] %v7543_v50  ;;  %v7472_v7 = vadd.f32 %v8402_v23, %v14746_v51  ;;  %v15589_v23 = vld [vmem:[#allocation78_spill] sm:$0xff] }
0x1399   : > { %v8404_v20 = vpop.f32.mrf.mxu0 }
0x139a   : > { %v7544_v57 = vadd.f32 %v7472_v7, %v15580_v34  ;;  %v8405_v60 = vadd.f32 %v8404_v20, %v8403_v33 }
0x139c   : > { %7576 = vst [vmem:[%s11092_s22 + $0x90] sm:$0xff] %v7544_v57  ;;  %v7475_v37 = vadd.f32 %v8405_v60, %v14746_v51  ;;  %v8406_v63 = vpop.f32.mrf.mxu0  ;;  %v15590_v60 = vld [vmem:[#allocation85_spill] sm:$0xff] }
0x139e   : > { %v7545_v26 = vadd.f32 %v7475_v37, %v15581_v55  ;;  %v8407_v61 = vpop.f32.mrf.mxu0 }
0x139f   : > { %v8408_v41 = vadd.f32 %v8407_v61, %v8406_v63 }
0x13a0   : > { %7577 = vst [vmem:[%s11092_s22 + $0x98] sm:$0xff] %v7545_v26  ;;  %v8409_v18 = vpop.f32.mrf.mxu0 }
0x13a1   : > { %v7480_v45 = vadd.f32 %v8408_v41, %v14746_v51 }
0x13a2   : > { %v8410_v62 = vpop.f32.mrf.mxu0 }
0x13a3   : > { %v7546_v9 = vadd.f32 %v7480_v45, %v15582_v28  ;;  %v8411_v46 = vadd.f32 %v8410_v62, %v8409_v18  ;;  %v15592_v62 = vld [vmem:[#allocation81_spill] sm:$0xff] }
0x13a4   : > { %v8412_v56 = vpop.f32.mrf.mxu0 }
0x13a5   : > { %7578 = vst [vmem:[%s11092_s22 + $0xa0] sm:$0xff] %v7546_v9  ;;  %v7483_v52 = vadd.f32 %v8411_v46, %v14746_v51 }
0x13a6   : > { %v8413_v36 = vpop.f32.mrf.mxu0 }
0x13a7   : > { %v7547_v10 = vadd.f32 %v7483_v52, %v15583_v54  ;;  %v8414_v30 = vadd.f32 %v8413_v36, %v8412_v56 }
0x13a8   : > { %v8415_v13 = vpop.f32.mrf.mxu0 }
0x13a9   : > { %7579 = vst [vmem:[%s11092_s22 + $0xa8] sm:$0xff] %v7547_v10  ;;  %v7488_v31 = vadd.f32 %v8414_v30, %v14746_v51 }
0x13aa   : > { %v8416_v58 = vpop.f32.mrf.mxu0 }
0x13ab   : > { %v7548_v8 = vadd.f32 %v7488_v31, %v15584_v4  ;;  %v8417_v11 = vadd.f32 %v8416_v58, %v8415_v13 }
0x13ad   : > { %7580 = vst [vmem:[%s11092_s22 + $0xb0] sm:$0xff] %v7548_v8  ;;  %v7491_v19 = vadd.f32 %v8417_v11, %v14746_v51 }
0x13af   : > { %v7549_v43 = vadd.f32 %v7491_v19, %v15585_v16 }
0x13b1   : > { %7581 = vst [vmem:[%s11092_s22 + $0xb8] sm:$0xff] %v7549_v43 }
0x13cf   : > { %v8418_v35 = vpop.f32.mrf.mxu0 }
0x13d1   : > { %v8419_v42 = vpop.f32.mrf.mxu0 }
0x13d2   : > { %v8420_v2 = vadd.f32 %v8419_v42, %v8418_v35 }
0x13d3   : > { %v8421_v12 = vpop.f32.mrf.mxu0 }
0x13d4   : > { %v7496_v0 = vadd.f32 %v8420_v2, %v14746_v51 }
0x13d5   : > { %v8422_v59 = vpop.f32.mrf.mxu0 }
0x13d6   : > { %v7550_v14 = vadd.f32 %v7496_v0, %v14252_v17  ;;  %v8423_v38 = vadd.f32 %v8422_v59, %v8421_v12 }
0x13d7   : > { %v8424_v49 = vpop.f32.mrf.mxu0 }
0x13d8   : > { %7582 = vst [vmem:[%s11092_s22 + $0xc0] sm:$0xff] %v7550_v14  ;;  %v7499_v29 = vadd.f32 %v8423_v38, %v14746_v51 }
0x13d9   : > { %v8425_v48 = vpop.f32.mrf.mxu0 }
0x13da   : > { %v7551_v24 = vadd.f32 %v7499_v29, %v14261_v40  ;;  %v8426_v22 = vadd.f32 %v8425_v48, %v8424_v49 }
0x13db   : > { %v8427_v3 = vpop.f32.mrf.mxu0 }
0x13dc   : > { %7583 = vst [vmem:[%s11092_s22 + $0xc8] sm:$0xff] %v7551_v24  ;;  %v7504_v32 = vadd.f32 %v8426_v22, %v14746_v51 }
0x13dd   : > { %v8428_v44 = vpop.f32.mrf.mxu0 }
0x13de   : > { %v7552_v1 = vadd.f32 %v7504_v32, %v15586_v53  ;;  %v8429_v39 = vadd.f32 %v8428_v44, %v8427_v3 }
0x13df   : > { %v8430_v17 = vpop.f32.mrf.mxu0 }
0x13e0   : > { %7584 = vst [vmem:[%s11092_s22 + $0xd0] sm:$0xff] %v7552_v1  ;;  %v7507_v25 = vadd.f32 %v8429_v39, %v14746_v51 }
0x13e1   : > { %v8431_v5 = vpop.f32.mrf.mxu0 }
0x13e2   : > { %v7553_v15 = vadd.f32 %v7507_v25, %v15587_v47  ;;  %v8432_v27 = vadd.f32 %v8431_v5, %v8430_v17 }
0x13e3   : > { %v8433_v40 = vpop.f32.mrf.mxu0 }
0x13e4   : > { %7585 = vst [vmem:[%s11092_s22 + $0xd8] sm:$0xff] %v7553_v15  ;;  %v7512_v6 = vadd.f32 %v8432_v27, %v14746_v51 }
0x13e5   : > { %v8434_v50 = vpop.f32.mrf.mxu0 }
0x13e6   : > { %v7554_v33 = vadd.f32 %v7512_v6, %v15589_v23  ;;  %v8435_v7 = vadd.f32 %v8434_v50, %v8433_v40 }
0x13e7   : > { %v8436_v20 = vpop.f32.mrf.mxu0 }
0x13e8   : > { %7586 = vst [vmem:[%s11092_s22 + $0xe0] sm:$0xff] %v7554_v33  ;;  %v7515_v34 = vadd.f32 %v8435_v7, %v14746_v51 }
0x13e9   : > { %v8437_v57 = vpop.f32.mrf.mxu0 }
0x13ea   : > { %v7555_v37 = vadd.f32 %v7515_v34, %v15590_v60  ;;  %v8438_v63 = vadd.f32 %v8437_v57, %v8436_v20 }
0x13eb   : > { %v8439_v55 = vpop.f32.mrf.mxu0 }
0x13ec   : > { %7587 = vst [vmem:[%s11092_s22 + $0xe8] sm:$0xff] %v7555_v37  ;;  %v7520_v26 = vadd.f32 %v8438_v63, %v14746_v51 }
0x13ed   : > { %v8440_v61 = vpop.f32.mrf.mxu0 }
0x13ee   : > { %v7556_v41 = vadd.f32 %v7520_v26, %v14312_v21  ;;  %v8441_v18 = vadd.f32 %v8440_v61, %v8439_v55 }
0x13f0   : > { %7588 = vst [vmem:[%s11092_s22 + $0xf0] sm:$0xff] %v7556_v41  ;;  %v7523_v45 = vadd.f32 %v8441_v18, %v14746_v51 }
0x13f2   : > { %v7557_v28 = vadd.f32 %v7523_v45, %v15592_v62 }
0x13f4   : > { %7589 = vst [vmem:[%s11092_s22 + $0xf8] sm:$0xff] %v7557_v28 }
0x13f5   : > { %10573 = shalt.err (!%p10570_p1)
}
0x13f6   : > { %s10574_s22 = scalar_lea.hbm %s14877_s6, 4096  ;;  %s10578_s18 = scalar_lea.hbm %s15591_s1, 8192 }
0x13f7   : > { %p10575_p5 = scmp.ne.s32.totalorder %s14877_s6, %s10574_s22  ;;  %p10579_p9 = scmp.lt.s32.totalorder %s14877_s6, %s15591_s1 }
0x13f8   : > { %p10580_p12 = scmp.lt.s32.totalorder %s10578_s18, %s10574_s22 }
0x13f9   : > { %p10576_p3 = pnand %p10575_p5, %p15593_p0 }
0x13fa   : > { %p10581_p13 = por %p10580_p12, %p10579_p9 }
0x13fb   : > { %p10577_p7 = pneg %p10576_p3 }
0x13fd   : > { %p10582_p4 = pnand %p10581_p13, %p10577_p7 }
0x13ff   : > { %10585 = shalt.err (!%p10582_p4)
}
0x1400   : > { %s10711_s24 = smov 128   ;;  %s10712_s23 = smov 8  }
0x1401   : > { %9145 = dma.vmem_to_hbm [thread:$0]  (%p15593_p0), %s14879_s15, 4096, %s14877_s6, %s7591_s26, %s10711_s24, %s10711_s24, %s10712_s23  }
0x1402 PF: > { %s15594_s19 = sld [smem:[#allocation28_spill]] }
0x1403   : > { %s15595_s27 = sld [smem:[#allocation21_spill]] }
0x1404   : > { %s15596_s17 = sld [smem:[#allocation35_spill]] }
0x1408   : > { %p9171_p6 = scmp.ge.s32.totalorder %s15594_s19, 2 }
0x1409   : > { %s7620_s20 = sand.u32 1, %s15595_s27  }
0x140a   : > { %p15597_p2 = scmp.ne.s32.totalorder %s15596_s17, 0  ;;  %s7621_s4 = scalar_lea.sflag [#allocation4], %s7620_s20 }
0x140c   : > { %p9167_p8 = pnand %p9171_p6, %p15597_p2 }
0x140e   : > { %p9168_p10 = pneg %p9167_p8 }
0x1410   : > { %10647 = dma.done.wait (%p9168_p10), %s7621_s4, 4096  }
0x1411   : > { %10649 = vsyncadd (%p9168_p10), %s7621_s4, 4294963200  ;;  %s37_s13 = sadd.s32 1, %s15594_s19   ;;  %s15598_s21 = sld [smem:[#allocation19_spill]] }
0x1412   : > { %p34_p11 = scmp.ge.s32.totalorder %s37_s13, 6   ;;  %s15599_s22 = sld [smem:[#allocation20_spill]] }
0x1413   : > { %s15600_s23 = sld [smem:[#allocation32_spill]] }
0x1414   : > { %s15601_s24 = sld [smem:[#allocation22_spill]] }
0x1415   : > { %s15602_s25 = sld [smem:[#allocation23_spill]] }
0x1416   : > { %s15603_s26 = sld [smem:[#allocation36_spill]]  ;;  %36 = sbr.rel (!%p34_p11) target bundleno = 29 (0x1d), region = 196 }
0x1417   : > { %s15604_s27 = sld [smem:[#allocation26_spill]] }
0x1418   : > { %s15605_s28 = sld [smem:[#allocation27_spill]] }
0x1419   : > { %s15606_s29 = sld [smem:[#allocation30_spill]] }
0x141a   : > { %s15607_s30 = sld [smem:[#allocation33_spill]] }
0x141b   :  { %7626 = vsyncpa [#allocation3], 1 }
0x141c   :  { %7628 = vsyncpa [#allocation3 + $0x1], 1 }
0x141d   :  { %7629 = vsyncpa [#allocation6], 1 }
0x141e   :  { %7631 = vsyncpa [#allocation6 + $0x1], 1 }
0x141f   :  { %7632 = vsyncpa [#allocation9], 1 }
0x1420   :  { %7634 = vsyncpa [#allocation9 + $0x1], 1 }
0x1421   :  { %7635 = vsyncpa [#allocation12], 1 }
0x1422   :  { %7637 = vsyncpa [#allocation12 + $0x1], 1 }
0x1423   :  { %7638 = vsyncpa [#allocation4], 1 }
0x1424   :  { %7640 = vsyncpa [#allocation4 + $0x1], 1 }

</bundles_post_ra>
